<compile_context>
chip_gen: v5e
topology: v5e:2x2
jax: 0.10.0
libtpu: 0.0.40
codegen_flags: <defaults>
</compile_context>

<pallas_src>
import functools

import jax
import jax.numpy as jnp
from jax import lax
from jax.experimental import pallas as pl
from jax.experimental.pallas import tpu as pltpu

F32 = jnp.float32
BF16 = jnp.bfloat16
NEG_INF = -10000.0


# ----------------------------------------------------------------------------
# Small helpers
# ----------------------------------------------------------------------------
def _round_up(x, m):
    return (x + m - 1) // m * m


@functools.lru_cache(maxsize=None)
def _vmem_limit_bytes():
    """Generation-aware scoped-VMEM limit: ~100 MiB on 128-MiB parts, ~48 MiB on v7x."""
    try:
        cap = int(pltpu.get_tpu_info().vmem_capacity_bytes)
    except Exception:
        return None                      # unknown generation -> keep compiler default
    if cap < 64 * 1024 * 1024:
        return None
    return min(cap - 16 * 1024 * 1024, 100 * 1024 * 1024)


def _compiler_params(semantics):
    kwargs = dict(dimension_semantics=tuple(semantics))
    lim = _vmem_limit_bytes()
    if lim is not None:
        kwargs["vmem_limit_bytes"] = lim
    return pltpu.CompilerParams(**kwargs)


# BlockSpec helpers for the 1-D (per-layer) grids
def _const_spec(shape):
    nd = len(shape)
    return pl.BlockSpec(tuple(shape), lambda l, _nd=nd: (0,) * _nd)


def _layer_spec(shape):
    # stacked-per-layer array: block (1, *rest), leading index follows the grid step
    nd = len(shape)
    blk = (1,) + tuple(shape[1:])
    return pl.BlockSpec(blk, lambda l, _nd=nd: (l,) + (0,) * (_nd - 1))


# ----------------------------------------------------------------------------
# In-kernel helpers (traced inline inside pallas kernels)
# ----------------------------------------------------------------------------
def _ln(x, g, b, eps):
    mu = jnp.mean(x, axis=-1, keepdims=True)
    var = jnp.mean((x - mu) ** 2, axis=-1, keepdims=True)
    return (x - mu) * lax.rsqrt(var + eps) * g + b


def _dense(x, w_bf16, b_f32):
    # bf16 operands on the MXU, f32 accumulation, f32 bias/activation path
    return jnp.dot(x.astype(BF16), w_bf16, preferred_element_type=F32) + b_f32


def _gelu(x):
    return jax.nn.gelu(x, approximate=True)   # TODO(synk): exact erf GELU


def _softmax_last(s):
    s = s - jnp.max(s, axis=-1, keepdims=True)
    p = jnp.exp(s)
    # approx reciprocal runs on the EUP slot; ~1e-3 rel. error is fine for a loss.
    return p * pl.reciprocal(jnp.sum(p, axis=-1, keepdims=True), approx=True)


def _attn_heads(head_buf, q_slab, kv_slab, add_mask, *, H, dh, q_off, k_off, v_off, scale):
    """Multi-head attention from fused bf16 activation slabs into a bf16 VMEM scratch.

    q_slab : (B, Lq, *) bf16, queries at lane offset q_off (head-major, dh per head)
    kv_slab: (B, Lk, *) bf16, keys at k_off, values at v_off
    head_buf: (B, Lq, H*dh) bf16 scratch; head h written at lanes [h*dh, (h+1)*dh)
    add_mask: (B, Lq, Lk) f32 additive mask or None.
    """
    for h in range(H):
        q = q_slab[..., q_off + h * dh: q_off + (h + 1) * dh]
        k = kv_slab[..., k_off + h * dh: k_off + (h + 1) * dh]
        v = kv_slab[..., v_off + h * dh: v_off + (h + 1) * dh]
        s = jnp.einsum("bqd,bkd->bqk", q, k, preferred_element_type=F32) * scale
        if add_mask is not None:
            s = s + add_mask
        p = _softmax_last(s)
        o_h = jnp.einsum("bqk,bkd->bqd", p.astype(BF16), v, preferred_element_type=F32)
        head_buf[:, :, h * dh:(h + 1) * dh] = o_h.astype(BF16)


# ----------------------------------------------------------------------------
# Kernel 1: patch-embedding linear (row-tiled, 'parallel')
# ----------------------------------------------------------------------------
def _linear_kernel(x_ref, w_ref, b_ref, o_ref):
    o_ref[...] = _dense(x_ref[...], w_ref[...], b_ref[...])


def patch_embed(x, w, b, *, tile_m=256):
    M, K = x.shape
    N = w.shape[1]
    tm = tile_m if M >= tile_m else _round_up(M, 8)
    Mp = _round_up(M, tm)
    xp = x.astype(F32)
    if Mp != M:
        xp = jnp.pad(xp, ((0, Mp - M), (0, 0)))
    out = pl.pallas_call(
        _linear_kernel,
        out_shape=jax.ShapeDtypeStruct((Mp, N), F32),
        grid=(Mp // tm,),
        in_specs=[pl.BlockSpec((tm, K), lambda i: (i, 0)),
                  pl.BlockSpec((K, N), lambda i: (0, 0)),
                  pl.BlockSpec((1, N), lambda i: (0, 0))],
        out_specs=pl.BlockSpec((tm, N), lambda i: (i, 0)),
        compiler_params=_compiler_params(("parallel",)),
    )(xp, w.astype(BF16), b.reshape(1, N).astype(F32))
    return out[:M]


# ----------------------------------------------------------------------------
# Kernel 2: fused ViT encoder blocks (grid over depth, residual resident in VMEM)
# ----------------------------------------------------------------------------
def _vit_blocks_kernel(x0_hbm_ref,
                       ln1g_ref, ln1b_ref, qkvw_ref, qkvb_ref, projw_ref, projb_ref,
                       ln2g_ref, ln2b_ref, fc1w_ref, fc1b_ref, fc2w_ref, fc2b_ref,
                       normg_ref, normb_ref,
                       o_ref, head_buf, *, B, T, H):
    D = o_ref.shape[-1]
    dh = D // H
    scale = dh ** -0.5
    l = pl.program_id(0)
    last = pl.num_programs(0) - 1

    @pl.when(l == 0)
    def _():
        # residual lives only in the output VMEM block; x0 stays in HBM (no resident dup)
        pltpu.sync_copy(x0_hbm_ref, o_ref)

    x = o_ref[...]                                         # (B*T, D) f32, resident

    # pre-LN self-attention (fused QKV projection; single bf16 cast of the slab)
    h = _ln(x, ln1g_ref[0], ln1b_ref[0], 1e-6)
    qkv = _dense(h, qkvw_ref[0], qkvb_ref[0]).reshape(B, T, 3 * D).astype(BF16)
    _attn_heads(head_buf, qkv, qkv, None, H=H, dh=dh,
                q_off=0, k_off=D, v_off=2 * D, scale=scale)
    x = x + _dense(head_buf[...].reshape(B * T, D), projw_ref[0], projb_ref[0])

    # pre-LN MLP
    h = _ln(x, ln2g_ref[0], ln2b_ref[0], 1e-6)
    h = _gelu(_dense(h, fc1w_ref[0], fc1b_ref[0]))
    x = x + _dense(h, fc2w_ref[0], fc2b_ref[0])

    @pl.when(l == last)
    def _():
        o_ref[...] = _ln(x, normg_ref[...], normb_ref[...], 1e-6)   # final LN fused

    @pl.when(l < last)
    def _():
        o_ref[...] = x


def vit_blocks(x0, blocks, norm_g, norm_b, *, B, T, H):
    D = x0.shape[-1]
    depth = blocks["qkv_w"].shape[0]
    args = [
        x0.astype(F32),
        blocks["ln1_g"], blocks["ln1_b"],
        blocks["qkv_w"].astype(BF16), blocks["qkv_b"],
        blocks["proj_w"].astype(BF16), blocks["proj_b"],
        blocks["ln2_g"], blocks["ln2_b"],
        blocks["fc1_w"].astype(BF16), blocks["fc1_b"],
        blocks["fc2_w"].astype(BF16), blocks["fc2_b"],
        norm_g.reshape(1, D).astype(F32), norm_b.reshape(1, D).astype(F32),
    ]
    in_specs = ([pl.BlockSpec(memory_space=pl.ANY)]            # x0 stays in HBM
                + [_layer_spec(a.shape) for a in args[1:13]]
                + [_const_spec((1, D)), _const_spec((1, D))])
    return pl.pallas_call(
        functools.partial(_vit_blocks_kernel, B=B, T=T, H=H),
        out_shape=jax.ShapeDtypeStruct(x0.shape, F32),
        grid=(depth,),
        in_specs=in_specs,
        out_specs=_const_spec(x0.shape),
        scratch_shapes=[pltpu.VMEM((B, T, D), BF16)],          # merged-head attention buffer
        compiler_params=_compiler_params(("arbitrary",)),
    )(*args)


# ----------------------------------------------------------------------------
# Kernel 3: fused BERT LM-decoder layers (grid over layers, residual in VMEM)
# ----------------------------------------------------------------------------
def _bert_layers_kernel(emb_hbm_ref, enc_ref, mask_ref, embg_ref, embb_ref,
                        saqkvw_ref, saqkvb_ref, saow_ref, saob_ref, salng_ref, salnb_ref,
                        caqw_ref, caqb_ref, cakvw_ref, cakvb_ref, caow_ref, caob_ref,
                        calng_ref, calnb_ref,
                        fiw_ref, fib_ref, fow_ref, fob_ref, flng_ref, flnb_ref,
                        o_ref, head_buf, *, B, L, T, H):
    D = o_ref.shape[-1]
    dh = D // H
    scale = dh ** -0.5
    l = pl.program_id(0)

    @pl.when(l == 0)
    def _():
        # embeddings stay in HBM; copy once into the resident residual, then emb-LN
        pltpu.sync_copy(emb_hbm_ref, o_ref)
        o_ref[...] = _ln(o_ref[...], embg_ref[...], embb_ref[...], 1e-12)

    x = o_ref[...]                                         # (B*L, D) f32, resident
    self_add = mask_ref[...]                               # (B, L, L) additive mask (hoisted)

    # --- self-attention (fused QKV; single bf16 cast of the slab) ---
    qkv = _dense(x, saqkvw_ref[0], saqkvb_ref[0]).reshape(B, L, 3 * D).astype(BF16)
    _attn_heads(head_buf, qkv, qkv, self_add, H=H, dh=dh,
                q_off=0, k_off=D, v_off=2 * D, scale=scale)
    a = head_buf[...].reshape(B * L, D)
    x = _ln(_dense(a, saow_ref[0], saob_ref[0]) + x, salng_ref[0], salnb_ref[0], 1e-12)

    # --- cross-attention to image embeddings (image_atts == ones -> no mask) ---
    qc = _dense(x, caqw_ref[0], caqb_ref[0]).reshape(B, L, D).astype(BF16)
    kv = _dense(enc_ref[...], cakvw_ref[0], cakvb_ref[0]).reshape(B, T, 2 * D).astype(BF16)
    _attn_heads(head_buf, qc, kv, None, H=H, dh=dh,
                q_off=0, k_off=0, v_off=D, scale=scale)
    a = head_buf[...].reshape(B * L, D)
    x = _ln(_dense(a, caow_ref[0], caob_ref[0]) + x, calng_ref[0], calnb_ref[0], 1e-12)

    # --- FFN ---
    h = _gelu(_dense(x, fiw_ref[0], fib_ref[0]))
    x = _ln(_dense(h, fow_ref[0], fob_ref[0]) + x, flng_ref[0], flnb_ref[0], 1e-12)

    o_ref[...] = x


def bert_layers(emb2d, enc2d, add_mask, params, *, B, L, T, H):
    D = emb2d.shape[1]
    lyr = params["layers"]
    nlayers = lyr["sa_qkv_w"].shape[0]
    args = [
        emb2d.astype(F32),
        enc2d.astype(BF16),                    # bf16 resident encoder states
        add_mask.astype(F32),                  # mask built once in the wrapper
        params["emb_ln_g"].reshape(1, D).astype(F32),
        params["emb_ln_b"].reshape(1, D).astype(F32),
        lyr["sa_qkv_w"].astype(BF16), lyr["sa_qkv_b"],
        lyr["sa_o_w"].astype(BF16), lyr["sa_o_b"],
        lyr["sa_ln_g"], lyr["sa_ln_b"],
        lyr["ca_q_w"].astype(BF16), lyr["ca_q_b"],
        lyr["ca_kv_w"].astype(BF16), lyr["ca_kv_b"],
        lyr["ca_o_w"].astype(BF16), lyr["ca_o_b"],
        lyr["ca_ln_g"], lyr["ca_ln_b"],
        lyr["ffn_in_w"].astype(BF16), lyr["ffn_in_b"],
        lyr["ffn_out_w"].astype(BF16), lyr["ffn_out_b"],
        lyr["ffn_ln_g"], lyr["ffn_ln_b"],
    ]
    in_specs = ([pl.BlockSpec(memory_space=pl.ANY)]            # embeddings stay in HBM
                + [_const_spec(a.shape) for a in args[1:5]]
                + [_layer_spec(a.shape) for a in args[5:]])
    return pl.pallas_call(
        functools.partial(_bert_layers_kernel, B=B, L=L, T=T, H=H),
        out_shape=jax.ShapeDtypeStruct((B * L, D), F32),
        grid=(nlayers,),
        in_specs=in_specs,
        out_specs=_const_spec((B * L, D)),
        scratch_shapes=[pltpu.VMEM((B, L, D), BF16)],          # merged-head attention buffer
        compiler_params=_compiler_params(("arbitrary",)),
    )(*args)


# ----------------------------------------------------------------------------
# Kernel 4: LM head (dense->gelu->LN->vocab proj) + vocab log-softmax, with the
#           per-image consensus sum/average folded into the image grid axis.
# ----------------------------------------------------------------------------
def _lm_head_consensus_kernel(x_ref, tw_ref, tb_ref, lng_ref, lnb_ref, dw_ref, db_ref,
                              o_ref, *, num_images, average):
    # TODO(synk): at real vocab size, tile the vocab axis too (online log-sum-exp) and
    #             stream head_d_w from HBM instead of keeping it resident.
    img = pl.program_id(1)
    h = _gelu(_dense(x_ref[0], tw_ref[...], tb_ref[...]))
    h = _ln(h, lng_ref[...], lnb_ref[...], 1e-12)
    logits = _dense(h, dw_ref[...], db_ref[...])
    z = logits - jnp.max(logits, axis=-1, keepdims=True)
    lp = z - jnp.log(jnp.sum(jnp.exp(z), axis=-1, keepdims=True))
    if average:
        lp = lp * (1.0 / num_images)

    @pl.when(img == 0)
    def _():
        o_ref[...] = lp

    @pl.when(img > 0)
    def _():
        o_ref[...] = o_ref[...] + lp


def lm_head_consensus(x, params, *, average, tile_m=256):
    """x: (NI, M, D) with M = B*(L-1).  Returns the (M, V) consensus log-probs."""
    NI, M, D = x.shape
    V = params["head_d_w"].shape[1]
    tm = tile_m if M >= tile_m else _round_up(M, 8)
    Mp = _round_up(M, tm)
    xp = x.astype(BF16)
    if Mp != M:
        xp = jnp.pad(xp, ((0, 0), (0, Mp - M), (0, 0)))
    out = pl.pallas_call(
        functools.partial(_lm_head_consensus_kernel, num_images=NI, average=average),
        out_shape=jax.ShapeDtypeStruct((Mp, V), F32),
        grid=(Mp // tm, NI),                                   # image axis = reduction (last)
        in_specs=[pl.BlockSpec((1, tm, D), lambda i, j: (j, i, 0)),
                  pl.BlockSpec((D, D), lambda i, j: (0, 0)),
                  pl.BlockSpec((1, D), lambda i, j: (0, 0)),
                  pl.BlockSpec((1, D), lambda i, j: (0, 0)),
                  pl.BlockSpec((1, D), lambda i, j: (0, 0)),
                  pl.BlockSpec((D, V), lambda i, j: (0, 0)),
                  pl.BlockSpec((1, V), lambda i, j: (0, 0))],
        out_specs=pl.BlockSpec((tm, V), lambda i, j: (i, 0)),  # lane-dense, image-invariant
        compiler_params=_compiler_params(("parallel", "arbitrary")),
    )(xp,
      params["head_t_w"].astype(BF16), params["head_t_b"].reshape(1, D).astype(F32),
      params["head_ln_g"].reshape(1, D).astype(F32),
      params["head_ln_b"].reshape(1, D).astype(F32),
      params["head_d_w"].astype(BF16), params["head_d_b"].reshape(1, V).astype(F32))
    return out[:M]


# ----------------------------------------------------------------------------
# Kernel 5: consensus sequence-axis log-softmax + label-smoothed cross-entropy
# ----------------------------------------------------------------------------
def _consensus_ce_kernel(cons_ref, tgt_ref, o_ref, *, eps):
    cons = cons_ref[...]                                   # (B, L-1, V), already summed/avg'd
    # PyTorch: consensus_scores has layout (B, V, L-1); .log_softmax(dim=-1) there is the
    # SEQUENCE axis, which is axis=1 in this (B, L-1, V) layout.
    m = jnp.max(cons, axis=1, keepdims=True)
    z = cons - m
    cons = z - jnp.log(jnp.sum(jnp.exp(z), axis=1, keepdims=True))
    # F.cross_entropy over the class (vocab) axis, label smoothing, ignore_index=-100,
    # reduction='none' (ignored positions contribute exactly 0 -- matches PyTorch).
    m2 = jnp.max(cons, axis=-1, keepdims=True)
    z2 = cons - m2
    logp = z2 - jnp.log(jnp.sum(jnp.exp(z2), axis=-1, keepdims=True))   # (B, L-1, V)
    t = tgt_ref[...]                                                     # (B, L-1) int32
    V = logp.shape[-1]
    iota = lax.broadcasted_iota(jnp.int32, logp.shape, 2)
    onehot = (iota == t[:, :, None]).astype(F32)
    nll = -jnp.sum(onehot * logp, axis=-1)
    smooth = -jnp.sum(logp, axis=-1) / V
    loss = (1.0 - eps) * nll + eps * smooth
    o_ref[...] = jnp.where(t == -100, 0.0, loss)


def consensus_ce(cons, targets, *, label_smoothing):
    B, Lm1, _ = cons.shape
    # At real BLIP scale this block is only a few MB (B small, L<=40), so grid=(1,) is fine.
    return pl.pallas_call(
        functools.partial(_consensus_ce_kernel, eps=label_smoothing),
        out_shape=jax.ShapeDtypeStruct((B, Lm1), F32),
        grid=(1,),
        in_specs=[_const_spec(cons.shape), _const_spec(targets.shape)],
        out_specs=_const_spec((B, Lm1)),
        compiler_params=_compiler_params(("arbitrary",)),
    )(cons.astype(F32), targets.astype(jnp.int32))


# ----------------------------------------------------------------------------
# Parameter init (deterministic, synthetic, stacked per layer)
# ----------------------------------------------------------------------------
def init_vit_params(key, *, in_chans, patch, embed_dim, depth, mlp_ratio, num_patches):
    D = embed_dim
    mlp = D * mlp_ratio
    rnd = lambda k, s: jax.random.normal(k, s, F32) * 0.02
    ks = jax.random.split(key, 12)
    return {
        "patch_w": rnd(ks[0], (in_chans * patch * patch, D)),
        "patch_b": rnd(ks[1], (D,)),
        "cls": rnd(ks[2], (1, 1, D)),
        "pos": rnd(ks[3], (1, num_patches + 1, D)),
        "norm_g": jnp.ones((D,), F32), "norm_b": jnp.zeros((D,), F32),
        "blocks": {
            "ln1_g": jnp.ones((depth, 1, D), F32), "ln1_b": jnp.zeros((depth, 1, D), F32),
            "qkv_w": rnd(ks[4], (depth, D, 3 * D)), "qkv_b": rnd(ks[5], (depth, 1, 3 * D)),
            "proj_w": rnd(ks[6], (depth, D, D)), "proj_b": rnd(ks[7], (depth, 1, D)),
            "ln2_g": jnp.ones((depth, 1, D), F32), "ln2_b": jnp.zeros((depth, 1, D), F32),
            "fc1_w": rnd(ks[8], (depth, D, mlp)), "fc1_b": rnd(ks[9], (depth, 1, mlp)),
            "fc2_w": rnd(ks[10], (depth, mlp, D)), "fc2_b": rnd(ks[11], (depth, 1, D)),
        },
    }


def init_bert_params(key, *, vocab, hidden, layers, intermediate, max_pos, encoder_width):
    D, FF, Dv = hidden, intermediate, encoder_width
    rnd = lambda k, s: jax.random.normal(k, s, F32) * 0.02
    ones = lambda s: jnp.ones(s, F32)
    zeros = lambda s: jnp.zeros(s, F32)
    ks = jax.random.split(key, 21)
    return {
        "word_emb": rnd(ks[0], (vocab, D)),
        "pos_emb": rnd(ks[1], (max_pos, D)),
        "type_emb": rnd(ks[2], (2, D)),
        "emb_ln_g": ones((D,)), "emb_ln_b": zeros((D,)),
        "layers": {
            "sa_qkv_w": rnd(ks[3], (layers, D, 3 * D)), "sa_qkv_b": rnd(ks[4], (layers, 1, 3 * D)),
            "sa_o_w": rnd(ks[5], (layers, D, D)), "sa_o_b": rnd(ks[6], (layers, 1, D)),
            "sa_ln_g": ones((layers, 1, D)), "sa_ln_b": zeros((layers, 1, D)),
            "ca_q_w": rnd(ks[7], (layers, D, D)), "ca_q_b": rnd(ks[8], (layers, 1, D)),
            "ca_kv_w": rnd(ks[9], (layers, Dv, 2 * D)), "ca_kv_b": rnd(ks[10], (layers, 1, 2 * D)),
            "ca_o_w": rnd(ks[11], (layers, D, D)), "ca_o_b": rnd(ks[12], (layers, 1, D)),
            "ca_ln_g": ones((layers, 1, D)), "ca_ln_b": zeros((layers, 1, D)),
            "ffn_in_w": rnd(ks[13], (layers, D, FF)), "ffn_in_b": rnd(ks[14], (layers, 1, FF)),
            "ffn_out_w": rnd(ks[15], (layers, FF, D)), "ffn_out_b": rnd(ks[16], (layers, 1, D)),
            "ffn_ln_g": ones((layers, 1, D)), "ffn_ln_b": zeros((layers, 1, D)),
        },
        "head_t_w": rnd(ks[17], (D, D)), "head_t_b": rnd(ks[18], (D,)),
        "head_ln_g": ones((D,)), "head_ln_b": zeros((D,)),
        "head_d_w": rnd(ks[19], (D, vocab)), "head_d_b": rnd(ks[20], (vocab,)),
    }


# ----------------------------------------------------------------------------
# Model forward (plain-JAX glue around the fused kernels)
# ----------------------------------------------------------------------------
def vit_forward(params, image, *, patch, num_heads):
    B, C, H, W = image.shape
    D = params["patch_w"].shape[1]
    gh, gw = H // patch, W // patch
    # patchify (glue): NCHW -> (B*patches, C*P*P), equivalent to the stride-P conv
    x = image.reshape(B, C, gh, patch, gw, patch)
    x = x.transpose(0, 2, 4, 1, 3, 5).reshape(B * gh * gw, C * patch * patch)
    x = patch_embed(x, params["patch_w"], params["patch_b"]).reshape(B, gh * gw, D)
    cls = jnp.broadcast_to(params["cls"], (B, 1, D))
    x = jnp.concatenate([cls, x], axis=1) + params["pos"]
    T = x.shape[1]
    x = vit_blocks(x.reshape(B * T, D), params["blocks"],
                   params["norm_g"], params["norm_b"], B=B, T=T, H=num_heads)
    return x.reshape(B, T, D)


def _decoder_additive_mask(attention_mask):
    """(B, L) {0,1} padding mask -> (B, L, L) additive causal+padding mask (built once)."""
    B, L = attention_mask.shape
    am = attention_mask.astype(F32)
    row = lax.broadcasted_iota(jnp.int32, (L, L), 0)
    col = lax.broadcasted_iota(jnp.int32, (L, L), 1)
    causal = (col <= row).astype(F32)
    return (1.0 - causal[None, :, :] * am[:, None, :]) * NEG_INF


def bert_decoder_hidden(params, input_ids, attention_mask, enc_hidden, *, heads):
    B, L = input_ids.shape
    D = params["word_emb"].shape[1]
    T, Dv = enc_hidden.shape[1], enc_hidden.shape[2]
    emb = (params["word_emb"][input_ids]
           + params["pos_emb"][:L][None, :, :]
           + params["type_emb"][0][None, None, :])
    add_mask = _decoder_additive_mask(attention_mask)
    x = bert_layers(emb.reshape(B * L, D), enc_hidden.reshape(B * T, Dv),
                    add_mask, params, B=B, L=L, T=T, H=heads)
    return x.reshape(B, L, D)


def blip_decoder_forward(vit_params, bert_params, images_list, input_ids, attention_mask,
                         *, prompt_length, pad_token_id, patch, heads_vit, heads_bert,
                         label_smoothing=0.1, average_consensus=True):
    B, L = input_ids.shape
    NI = len(images_list)

    # decoder targets: pad -> -100, prompt positions -> -100, then shift
    tgt = jnp.where(input_ids == pad_token_id, -100, input_ids)
    tgt = jnp.where(jnp.arange(L)[None, :] < prompt_length, -100, tgt)
    tgt = tgt[:, 1:]                                                 # (B, L-1)

    # stack consensus images on the batch axis: weights are fetched once for all images
    images = jnp.concatenate(images_list, axis=0)                    # (NI*B, C, H, W)
    enc_hidden = vit_forward(vit_params, images, patch=patch, num_heads=heads_vit)
    # image_atts = ones -> cross-attention mask contributes nothing (skipped in-kernel)

    ids_rep = jnp.tile(input_ids, (NI, 1))
    mask_rep = jnp.tile(attention_mask, (NI, 1))
    x = bert_decoder_hidden(bert_params, ids_rep, mask_rep, enc_hidden, heads=heads_bert)
    D = x.shape[-1]

    # logits.permute(0,2,1)[:, :, :-1].log_softmax(dim=1): drop the last position before
    # the per-position LM head; group rows per consensus image so the LM-head grid can
    # reduce over images (no (NI, B, L-1, V) HBM round-trip).
    x = x[:, :-1, :].reshape(NI, B * (L - 1), D)
    cons = lm_head_consensus(x, bert_params, average=average_consensus)   # (B*(L-1), V)
    cons = cons.reshape(B, L - 1, cons.shape[-1])

    loss = consensus_ce(cons, tgt, label_smoothing=label_smoothing)       # (B, L-1)
    # reference uses reduction='none' (ignored positions are exactly 0) then .mean(dim=0)
    return loss.mean(axis=0)                                              # (L-1,)


# ----------------------------------------------------------------------------
if __name__ == "__main__":
    key = jax.random.PRNGKey(0)
    k_img1, k_img2, k_vit, k_bert = jax.random.split(key, 4)

    # tiny config
    B = 2
    IMG, PATCH, CH = 16, 8, 3
    D, HEADS, VIT_DEPTH, MLP_RATIO = 32, 4, 2, 2
    VOCAB, BERT_LAYERS, FF, MAX_POS = 128, 2, 64, 16
    NUM_PATCHES = (IMG // PATCH) ** 2

    img1 = jax.random.normal(k_img1, (B, CH, IMG, IMG), F32)
    img2 = jax.random.normal(k_img2, (B, CH, IMG, IMG), F32)

    vit_params = init_vit_params(k_vit, in_chans=CH, patch=PATCH, embed_dim=D,
                                 depth=VIT_DEPTH, mlp_ratio=MLP_RATIO,
                                 num_patches=NUM_PATCHES)
    bert_params = init_bert_params(k_bert, vocab=VOCAB, hidden=D, layers=BERT_LAYERS,
                                   intermediate=FF, max_pos=MAX_POS, encoder_width=D)

    # synthetic "tokenized prompt + caption": bos=1 at position 0, pad=0, eos(sep)=2
    input_ids = jnp.array([[1, 5, 7, 12, 20, 33, 2, 0],
                           [1, 5, 7, 9, 14, 2, 0, 0]], jnp.int32)
    attention_mask = (input_ids != 0).astype(jnp.int32)
    PROMPT_LENGTH = 3
    PAD_TOKEN_ID = 0

    fwd = jax.jit(functools.partial(
        blip_decoder_forward,
        prompt_length=PROMPT_LENGTH, pad_token_id=PAD_TOKEN_ID,
        patch=PATCH, heads_vit=HEADS, heads_bert=HEADS,
        label_smoothing=0.1, average_consensus=True))

    loss = fwd(vit_params, bert_params, [img1, img2], input_ids, attention_mask)
    loss = jax.block_until_ready(loss)
    assert loss.shape == (input_ids.shape[1] - 1,)
    assert bool(jnp.all(jnp.isfinite(loss)))
    print("KERNEL_OK")
</pallas_src>

<mosaic_0001>
module attributes {stable_mosaic.version = 11 : i64} {
  func.func @_linear_kernel(%arg0: i32, %arg1: memref<16x192xf32, #tpu.memory_space<vmem>>, %arg2: memref<192x32xbf16, #tpu.memory_space<vmem>>, %arg3: memref<1x32xf32, #tpu.memory_space<vmem>>, %arg4: memref<16x32xf32, #tpu.memory_space<vmem>>) attributes {dimension_semantics = [#tpu.dimension_semantics<parallel>], iteration_bounds = array<i64: 1>, scalar_prefetch = 0 : i64, scratch_operands = 0 : i64, tpu.core_type = #tpu.core_type<tc>, window_params = [{transform_indices = @transform_0, window_bounds = array<i64: 16, 192>}, {pipeline_mode = #tpu.pipeline_mode<synchronous>, transform_indices = @transform_1, window_bounds = array<i64: 192, 32>}, {pipeline_mode = #tpu.pipeline_mode<synchronous>, transform_indices = @transform_2, window_bounds = array<i64: 1, 32>}, {transform_indices = @transform_3, window_bounds = array<i64: 16, 32>}]} {
    %c0 = arith.constant 0 : index
    %c0_0 = arith.constant 0 : index
    %0 = vector.load %arg1[%c0, %c0_0] : memref<16x192xf32, #tpu.memory_space<vmem>>, vector<16x192xf32>
    %c0_1 = arith.constant 0 : index
    %c0_2 = arith.constant 0 : index
    %1 = vector.load %arg2[%c0_1, %c0_2] : memref<192x32xbf16, #tpu.memory_space<vmem>>, vector<192x32xbf16>
    %c0_3 = arith.constant 0 : index
    %c0_4 = arith.constant 0 : index
    %2 = vector.load %arg3[%c0_3, %c0_4] : memref<1x32xf32, #tpu.memory_space<vmem>>, vector<1x32xf32>
    %3 = arith.truncf %0 : vector<16x192xf32> to vector<16x192xbf16>
    %cst = arith.constant dense<0.000000e+00> : vector<16x32xf32>
    %4 = tpu.matmul %3, %1, %cst {dimension_numbers = #tpu.dot_dimension_numbers<[1], [0], [0], [1], [0, 0, 1, 1], [], []>} : vector<16x192xbf16>, vector<192x32xbf16>, vector<16x32xf32> -> vector<16x32xf32>
    %5 = vector.broadcast %2 : vector<1x32xf32> to vector<16x32xf32>
    %6 = arith.addf %4, %5 : vector<16x32xf32>
    %c0_5 = arith.constant 0 : index
    %c0_6 = arith.constant 0 : index
    %7 = vector.load %arg4[%c0_5, %c0_6] : memref<16x32xf32, #tpu.memory_space<vmem>>, vector<16x32xf32>
    tpu.vector_store %arg4[%c0_5, %c0_6], %6 {strides = array<i32>} : memref<16x32xf32, #tpu.memory_space<vmem>>, vector<16x32xf32>,
    return
  }
  func.func @transform_0(%arg0: i32) -> (i32, i32) {
    %c0_i32 = arith.constant 0 : i32
    %c0_i32_0 = arith.constant 0 : i32
    return %arg0, %c0_i32 : i32, i32
  }
  func.func @transform_1(%arg0: i32) -> (i32, i32) {
    %c0_i32 = arith.constant 0 : i32
    %c0_i32_0 = arith.constant 0 : i32
    %c0_i32_1 = arith.constant 0 : i32
    return %c0_i32, %c0_i32_0 : i32, i32
  }
  func.func @transform_2(%arg0: i32) -> (i32, i32) {
    %c0_i32 = arith.constant 0 : i32
    %c0_i32_0 = arith.constant 0 : i32
    %c0_i32_1 = arith.constant 0 : i32
    return %c0_i32, %c0_i32_0 : i32, i32
  }
  func.func @transform_3(%arg0: i32) -> (i32, i32) {
    %c0_i32 = arith.constant 0 : i32
    %c0_i32_0 = arith.constant 0 : i32
    return %arg0, %c0_i32 : i32, i32
  }
}

module attributes {stable_mosaic.version = 11 : i64} {
  func.func @_vit_blocks_kernel(%arg0: i32, %arg1: memref<20x32xf32, #tpu.memory_space<any>>, %arg2: memref<1x1x32xf32, #tpu.memory_space<vmem>>, %arg3: memref<1x1x32xf32, #tpu.memory_space<vmem>>, %arg4: memref<1x32x96xbf16, #tpu.memory_space<vmem>>, %arg5: memref<1x1x96xf32, #tpu.memory_space<vmem>>, %arg6: memref<1x32x32xbf16, #tpu.memory_space<vmem>>, %arg7: memref<1x1x32xf32, #tpu.memory_space<vmem>>, %arg8: memref<1x1x32xf32, #tpu.memory_space<vmem>>, %arg9: memref<1x1x32xf32, #tpu.memory_space<vmem>>, %arg10: memref<1x32x64xbf16, #tpu.memory_space<vmem>>, %arg11: memref<1x1x64xf32, #tpu.memory_space<vmem>>, %arg12: memref<1x64x32xbf16, #tpu.memory_space<vmem>>, %arg13: memref<1x1x32xf32, #tpu.memory_space<vmem>>, %arg14: memref<1x32xf32, #tpu.memory_space<vmem>>, %arg15: memref<1x32xf32, #tpu.memory_space<vmem>>, %arg16: memref<20x32xf32, #tpu.memory_space<vmem>>, %arg17: memref<4x5x32xbf16, #tpu.memory_space<vmem>>) attributes {dimension_semantics = [#tpu.dimension_semantics<arbitrary>], iteration_bounds = array<i64: 2>, scalar_prefetch = 0 : i64, scratch_operands = 1 : i64, tpu.core_type = #tpu.core_type<tc>, window_params = [{}, {transform_indices = @transform_1, window_bounds = array<i64: 1, 1, 32>}, {transform_indices = @transform_2, window_bounds = array<i64: 1, 1, 32>}, {transform_indices = @transform_3, window_bounds = array<i64: 1, 32, 96>}, {transform_indices = @transform_4, window_bounds = array<i64: 1, 1, 96>}, {transform_indices = @transform_5, window_bounds = array<i64: 1, 32, 32>}, {transform_indices = @transform_6, window_bounds = array<i64: 1, 1, 32>}, {transform_indices = @transform_7, window_bounds = array<i64: 1, 1, 32>}, {transform_indices = @transform_8, window_bounds = array<i64: 1, 1, 32>}, {transform_indices = @transform_9, window_bounds = array<i64: 1, 32, 64>}, {transform_indices = @transform_10, window_bounds = array<i64: 1, 1, 64>}, {transform_indices = @transform_11, window_bounds = array<i64: 1, 64, 32>}, {transform_indices = @transform_12, window_bounds = array<i64: 1, 1, 32>}, {pipeline_mode = #tpu.pipeline_mode<synchronous>, transform_indices = @transform_13, window_bounds = array<i64: 1, 32>}, {pipeline_mode = #tpu.pipeline_mode<synchronous>, transform_indices = @transform_14, window_bounds = array<i64: 1, 32>}, {pipeline_mode = #tpu.pipeline_mode<synchronous>, transform_indices = @transform_15, window_bounds = array<i64: 20, 32>}]} {
    %c0_i32 = arith.constant 0 : i32
    %0 = arith.cmpi eq, %arg0, %c0_i32 : i32
    %1 = arith.extui %0 : i1 to i32
    %c0_i32_0 = arith.constant 0 : i32
    %2 = arith.cmpi ne, %1, %c0_i32_0 : i32
    scf.if %2 {
      "tpu.region"() ({
        %192 = tpu.sem_alloc : memref<!tpu.dma_semaphore, #tpu.memory_space<semaphore_mem>>
        tpu.enqueue_dma source(%arg1 : memref<20x32xf32, #tpu.memory_space<any>>) target(%arg16 : memref<20x32xf32, #tpu.memory_space<vmem>>) target_semaphore(%192 : memref<!tpu.dma_semaphore, #tpu.memory_space<semaphore_mem>>)
        tpu.wait_dma2 semaphore(%192 : memref<!tpu.dma_semaphore, #tpu.memory_space<semaphore_mem>>) src(%arg1 : memref<20x32xf32, #tpu.memory_space<any>>) dst(%arg16 : memref<20x32xf32, #tpu.memory_space<vmem>>)
        tpu.yield
      }) : () -> ()
    } else {
    }
    %c0 = arith.constant 0 : index
    %c0_1 = arith.constant 0 : index
    %3 = vector.load %arg16[%c0, %c0_1] : memref<20x32xf32, #tpu.memory_space<vmem>>, vector<20x32xf32>
    %c0_2 = arith.constant 0 : index
    %c0_3 = arith.constant 0 : index
    %c0_4 = arith.constant 0 : index
    %4 = vector.load %arg2[%c0_2, %c0_3, %c0_4] : memref<1x1x32xf32, #tpu.memory_space<vmem>>, vector<1x1x32xf32>
    %5 = vector.shape_cast %4 : vector<1x1x32xf32> to vector<1x32xf32>
    %c0_5 = arith.constant 0 : index
    %c0_6 = arith.constant 0 : index
    %c0_7 = arith.constant 0 : index
    %6 = vector.load %arg3[%c0_5, %c0_6, %c0_7] : memref<1x1x32xf32, #tpu.memory_space<vmem>>, vector<1x1x32xf32>
    %7 = vector.shape_cast %6 : vector<1x1x32xf32> to vector<1x32xf32>
    %cst = arith.constant dense<0.000000e+00> : vector<20xf32>
    %8 = vector.multi_reduction <add>, %3, %cst [1] : vector<20x32xf32> to vector<20xf32>
    %9 = vector.shape_cast %8 : vector<20xf32> to vector<20x1xf32>
    %cst_8 = arith.constant 3.200000e+01 : f32
    %10 = vector.broadcast %cst_8 : f32 to vector<20x1xf32>
    %11 = arith.divf %9, %10 : vector<20x1xf32>
    %12 = vector.broadcast %11 : vector<20x1xf32> to vector<20x32xf32>
    %13 = arith.subf %3, %12 : vector<20x32xf32>
    %14 = arith.mulf %13, %13 : vector<20x32xf32>
    %cst_9 = arith.constant dense<0.000000e+00> : vector<20xf32>
    %15 = vector.multi_reduction <add>, %14, %cst_9 [1] : vector<20x32xf32> to vector<20xf32>
    %16 = vector.shape_cast %15 : vector<20xf32> to vector<20x1xf32>
    %cst_10 = arith.constant 3.200000e+01 : f32
    %17 = vector.broadcast %cst_10 : f32 to vector<20x1xf32>
    %18 = arith.divf %16, %17 : vector<20x1xf32>
    %19 = vector.broadcast %11 : vector<20x1xf32> to vector<20x32xf32>
    %20 = arith.subf %3, %19 : vector<20x32xf32>
    %cst_11 = arith.constant 9.99999997E-7 : f32
    %21 = vector.broadcast %cst_11 : f32 to vector<20x1xf32>
    %22 = arith.addf %18, %21 : vector<20x1xf32>
    %23 = math.rsqrt %22 : vector<20x1xf32>
    %24 = vector.broadcast %23 : vector<20x1xf32> to vector<20x32xf32>
    %25 = arith.mulf %20, %24 : vector<20x32xf32>
    %26 = vector.broadcast %5 : vector<1x32xf32> to vector<20x32xf32>
    %27 = arith.mulf %25, %26 : vector<20x32xf32>
    %28 = vector.broadcast %7 : vector<1x32xf32> to vector<20x32xf32>
    %29 = arith.addf %27, %28 : vector<20x32xf32>
    %c0_12 = arith.constant 0 : index
    %c0_13 = arith.constant 0 : index
    %c0_14 = arith.constant 0 : index
    %30 = vector.load %arg4[%c0_12, %c0_13, %c0_14] : memref<1x32x96xbf16, #tpu.memory_space<vmem>>, vector<1x32x96xbf16>
    %31 = vector.shape_cast %30 : vector<1x32x96xbf16> to vector<32x96xbf16>
    %c0_15 = arith.constant 0 : index
    %c0_16 = arith.constant 0 : index
    %c0_17 = arith.constant 0 : index
    %32 = vector.load %arg5[%c0_15, %c0_16, %c0_17] : memref<1x1x96xf32, #tpu.memory_space<vmem>>, vector<1x1x96xf32>
    %33 = vector.shape_cast %32 : vector<1x1x96xf32> to vector<1x96xf32>
    %34 = arith.truncf %29 : vector<20x32xf32> to vector<20x32xbf16>
    %cst_18 = arith.constant dense<0.000000e+00> : vector<20x96xf32>
    %35 = tpu.matmul %34, %31, %cst_18 {dimension_numbers = #tpu.dot_dimension_numbers<[1], [0], [0], [1], [0, 0, 1, 1], [], []>} : vector<20x32xbf16>, vector<32x96xbf16>, vector<20x96xf32> -> vector<20x96xf32>
    %36 = vector.broadcast %33 : vector<1x96xf32> to vector<20x96xf32>
    %37 = arith.addf %35, %36 : vector<20x96xf32>
    %38 = vector.shape_cast %37 : vector<20x96xf32> to vector<4x5x96xf32>
    %39 = arith.truncf %38 : vector<4x5x96xf32> to vector<4x5x96xbf16>
    %40 = vector.extract_strided_slice %39 {offsets = [0, 0, 0], sizes = [4, 5, 8], strides = [1, 1, 1]} : vector<4x5x96xbf16> to vector<4x5x8xbf16>
    %41 = vector.extract_strided_slice %39 {offsets = [0, 0, 32], sizes = [4, 5, 8], strides = [1, 1, 1]} : vector<4x5x96xbf16> to vector<4x5x8xbf16>
    %42 = vector.extract_strided_slice %39 {offsets = [0, 0, 64], sizes = [4, 5, 8], strides = [1, 1, 1]} : vector<4x5x96xbf16> to vector<4x5x8xbf16>
    "tpu.trace_start"() <{level = 10 : i32, message = "bqd,bkd->bqk"}> : () -> ()
    %cst_19 = arith.constant dense<0.000000e+00> : vector<4x5x5xf32>
    %43 = tpu.matmul %40, %41, %cst_19 {dimension_numbers = #tpu.dot_dimension_numbers<[2], [2], [1], [1], [0, 0, 0, 1, 1, 1], [0], [0]>} : vector<4x5x8xbf16>, vector<4x5x8xbf16>, vector<4x5x5xf32> -> vector<4x5x5xf32>
    "tpu.trace_stop"() : () -> ()
    %cst_20 = arith.constant 0.353553385 : f32
    %44 = vector.broadcast %cst_20 : f32 to vector<4x5x5xf32>
    %45 = arith.mulf %43, %44 : vector<4x5x5xf32>
    %cst_21 = arith.constant dense<0xFF800000> : vector<4x5xf32>
    %46 = vector.multi_reduction <maximumf>, %45, %cst_21 [2] : vector<4x5x5xf32> to vector<4x5xf32>
    %47 = vector.shape_cast %46 : vector<4x5xf32> to vector<4x5x1xf32>
    %48 = vector.broadcast %47 : vector<4x5x1xf32> to vector<4x5x5xf32>
    %49 = arith.subf %45, %48 : vector<4x5x5xf32>
    %50 = math.exp %49 : vector<4x5x5xf32>
    %cst_22 = arith.constant dense<0.000000e+00> : vector<4x5xf32>
    %51 = vector.multi_reduction <add>, %50, %cst_22 [2] : vector<4x5x5xf32> to vector<4x5xf32>
    %52 = vector.shape_cast %51 : vector<4x5xf32> to vector<4x5x1xf32>
    %53 = tpu.reciprocal %52 {approx = true} : vector<4x5x1xf32> -> vector<4x5x1xf32>
    %54 = vector.broadcast %53 : vector<4x5x1xf32> to vector<4x5x5xf32>
    %55 = arith.mulf %50, %54 : vector<4x5x5xf32>
    %56 = arith.truncf %55 : vector<4x5x5xf32> to vector<4x5x5xbf16>
    "tpu.trace_start"() <{level = 10 : i32, message = "bqk,bkd->bqd"}> : () -> ()
    %cst_23 = arith.constant dense<0.000000e+00> : vector<4x5x8xf32>
    %57 = tpu.matmul %56, %42, %cst_23 {dimension_numbers = #tpu.dot_dimension_numbers<[2], [1], [1], [2], [0, 0, 0, 1, 1, 2], [0], [0]>} : vector<4x5x5xbf16>, vector<4x5x8xbf16>, vector<4x5x8xf32> -> vector<4x5x8xf32>
    "tpu.trace_stop"() : () -> ()
    %58 = arith.truncf %57 : vector<4x5x8xf32> to vector<4x5x8xbf16>
    %c0_24 = arith.constant 0 : index
    %c0_25 = arith.constant 0 : index
    %c0_26 = arith.constant 0 : index
    %59 = vector.load %arg17[%c0_24, %c0_25, %c0_26] : memref<4x5x32xbf16, #tpu.memory_space<vmem>>, vector<4x5x8xbf16>
    tpu.vector_store %arg17[%c0_24, %c0_25, %c0_26], %58 {strides = array<i32>} : memref<4x5x32xbf16, #tpu.memory_space<vmem>>, vector<4x5x8xbf16>,
    %60 = vector.extract_strided_slice %39 {offsets = [0, 0, 8], sizes = [4, 5, 8], strides = [1, 1, 1]} : vector<4x5x96xbf16> to vector<4x5x8xbf16>
    %61 = vector.extract_strided_slice %39 {offsets = [0, 0, 40], sizes = [4, 5, 8], strides = [1, 1, 1]} : vector<4x5x96xbf16> to vector<4x5x8xbf16>
    %62 = vector.extract_strided_slice %39 {offsets = [0, 0, 72], sizes = [4, 5, 8], strides = [1, 1, 1]} : vector<4x5x96xbf16> to vector<4x5x8xbf16>
    "tpu.trace_start"() <{level = 10 : i32, message = "bqd,bkd->bqk"}> : () -> ()
    %cst_27 = arith.constant dense<0.000000e+00> : vector<4x5x5xf32>
    %63 = tpu.matmul %60, %61, %cst_27 {dimension_numbers = #tpu.dot_dimension_numbers<[2], [2], [1], [1], [0, 0, 0, 1, 1, 1], [0], [0]>} : vector<4x5x8xbf16>, vector<4x5x8xbf16>, vector<4x5x5xf32> -> vector<4x5x5xf32>
    "tpu.trace_stop"() : () -> ()
    %cst_28 = arith.constant 0.353553385 : f32
    %64 = vector.broadcast %cst_28 : f32 to vector<4x5x5xf32>
    %65 = arith.mulf %63, %64 : vector<4x5x5xf32>
    %cst_29 = arith.constant dense<0xFF800000> : vector<4x5xf32>
    %66 = vector.multi_reduction <maximumf>, %65, %cst_29 [2] : vector<4x5x5xf32> to vector<4x5xf32>
    %67 = vector.shape_cast %66 : vector<4x5xf32> to vector<4x5x1xf32>
    %68 = vector.broadcast %67 : vector<4x5x1xf32> to vector<4x5x5xf32>
    %69 = arith.subf %65, %68 : vector<4x5x5xf32>
    %70 = math.exp %69 : vector<4x5x5xf32>
    %cst_30 = arith.constant dense<0.000000e+00> : vector<4x5xf32>
    %71 = vector.multi_reduction <add>, %70, %cst_30 [2] : vector<4x5x5xf32> to vector<4x5xf32>
    %72 = vector.shape_cast %71 : vector<4x5xf32> to vector<4x5x1xf32>
    %73 = tpu.reciprocal %72 {approx = true} : vector<4x5x1xf32> -> vector<4x5x1xf32>
    %74 = vector.broadcast %73 : vector<4x5x1xf32> to vector<4x5x5xf32>
    %75 = arith.mulf %70, %74 : vector<4x5x5xf32>
    %76 = arith.truncf %75 : vector<4x5x5xf32> to vector<4x5x5xbf16>
    "tpu.trace_start"() <{level = 10 : i32, message = "bqk,bkd->bqd"}> : () -> ()
    %cst_31 = arith.constant dense<0.000000e+00> : vector<4x5x8xf32>
    %77 = tpu.matmul %76, %62, %cst_31 {dimension_numbers = #tpu.dot_dimension_numbers<[2], [1], [1], [2], [0, 0, 0, 1, 1, 2], [0], [0]>} : vector<4x5x5xbf16>, vector<4x5x8xbf16>, vector<4x5x8xf32> -> vector<4x5x8xf32>
    "tpu.trace_stop"() : () -> ()
    %78 = arith.truncf %77 : vector<4x5x8xf32> to vector<4x5x8xbf16>
    %c0_32 = arith.constant 0 : index
    %c0_33 = arith.constant 0 : index
    %c8 = arith.constant 8 : index
    %79 = vector.load %arg17[%c0_32, %c0_33, %c8] : memref<4x5x32xbf16, #tpu.memory_space<vmem>>, vector<4x5x8xbf16>
    tpu.vector_store %arg17[%c0_32, %c0_33, %c8], %78 {strides = array<i32>} : memref<4x5x32xbf16, #tpu.memory_space<vmem>>, vector<4x5x8xbf16>,
    %80 = vector.extract_strided_slice %39 {offsets = [0, 0, 16], sizes = [4, 5, 8], strides = [1, 1, 1]} : vector<4x5x96xbf16> to vector<4x5x8xbf16>
    %81 = vector.extract_strided_slice %39 {offsets = [0, 0, 48], sizes = [4, 5, 8], strides = [1, 1, 1]} : vector<4x5x96xbf16> to vector<4x5x8xbf16>
    %82 = vector.extract_strided_slice %39 {offsets = [0, 0, 80], sizes = [4, 5, 8], strides = [1, 1, 1]} : vector<4x5x96xbf16> to vector<4x5x8xbf16>
    "tpu.trace_start"() <{level = 10 : i32, message = "bqd,bkd->bqk"}> : () -> ()
    %cst_34 = arith.constant dense<0.000000e+00> : vector<4x5x5xf32>
    %83 = tpu.matmul %80, %81, %cst_34 {dimension_numbers = #tpu.dot_dimension_numbers<[2], [2], [1], [1], [0, 0, 0, 1, 1, 1], [0], [0]>} : vector<4x5x8xbf16>, vector<4x5x8xbf16>, vector<4x5x5xf32> -> vector<4x5x5xf32>
    "tpu.trace_stop"() : () -> ()
    %cst_35 = arith.constant 0.353553385 : f32
    %84 = vector.broadcast %cst_35 : f32 to vector<4x5x5xf32>
    %85 = arith.mulf %83, %84 : vector<4x5x5xf32>
    %cst_36 = arith.constant dense<0xFF800000> : vector<4x5xf32>
    %86 = vector.multi_reduction <maximumf>, %85, %cst_36 [2] : vector<4x5x5xf32> to vector<4x5xf32>
    %87 = vector.shape_cast %86 : vector<4x5xf32> to vector<4x5x1xf32>
    %88 = vector.broadcast %87 : vector<4x5x1xf32> to vector<4x5x5xf32>
    %89 = arith.subf %85, %88 : vector<4x5x5xf32>
    %90 = math.exp %89 : vector<4x5x5xf32>
    %cst_37 = arith.constant dense<0.000000e+00> : vector<4x5xf32>
    %91 = vector.multi_reduction <add>, %90, %cst_37 [2] : vector<4x5x5xf32> to vector<4x5xf32>
    %92 = vector.shape_cast %91 : vector<4x5xf32> to vector<4x5x1xf32>
    %93 = tpu.reciprocal %92 {approx = true} : vector<4x5x1xf32> -> vector<4x5x1xf32>
    %94 = vector.broadcast %93 : vector<4x5x1xf32> to vector<4x5x5xf32>
    %95 = arith.mulf %90, %94 : vector<4x5x5xf32>
    %96 = arith.truncf %95 : vector<4x5x5xf32> to vector<4x5x5xbf16>
    "tpu.trace_start"() <{level = 10 : i32, message = "bqk,bkd->bqd"}> : () -> ()
    %cst_38 = arith.constant dense<0.000000e+00> : vector<4x5x8xf32>
    %97 = tpu.matmul %96, %82, %cst_38 {dimension_numbers = #tpu.dot_dimension_numbers<[2], [1], [1], [2], [0, 0, 0, 1, 1, 2], [0], [0]>} : vector<4x5x5xbf16>, vector<4x5x8xbf16>, vector<4x5x8xf32> -> vector<4x5x8xf32>
    "tpu.trace_stop"() : () -> ()
    %98 = arith.truncf %97 : vector<4x5x8xf32> to vector<4x5x8xbf16>
    %c0_39 = arith.constant 0 : index
    %c0_40 = arith.constant 0 : index
    %c16 = arith.constant 16 : index
    %99 = vector.load %arg17[%c0_39, %c0_40, %c16] : memref<4x5x32xbf16, #tpu.memory_space<vmem>>, vector<4x5x8xbf16>
    tpu.vector_store %arg17[%c0_39, %c0_40, %c16], %98 {strides = array<i32>} : memref<4x5x32xbf16, #tpu.memory_space<vmem>>, vector<4x5x8xbf16>,
    %100 = vector.extract_strided_slice %39 {offsets = [0, 0, 24], sizes = [4, 5, 8], strides = [1, 1, 1]} : vector<4x5x96xbf16> to vector<4x5x8xbf16>
    %101 = vector.extract_strided_slice %39 {offsets = [0, 0, 56], sizes = [4, 5, 8], strides = [1, 1, 1]} : vector<4x5x96xbf16> to vector<4x5x8xbf16>
    %102 = vector.extract_strided_slice %39 {offsets = [0, 0, 88], sizes = [4, 5, 8], strides = [1, 1, 1]} : vector<4x5x96xbf16> to vector<4x5x8xbf16>
    "tpu.trace_start"() <{level = 10 : i32, message = "bqd,bkd->bqk"}> : () -> ()
    %cst_41 = arith.constant dense<0.000000e+00> : vector<4x5x5xf32>
    %103 = tpu.matmul %100, %101, %cst_41 {dimension_numbers = #tpu.dot_dimension_numbers<[2], [2], [1], [1], [0, 0, 0, 1, 1, 1], [0], [0]>} : vector<4x5x8xbf16>, vector<4x5x8xbf16>, vector<4x5x5xf32> -> vector<4x5x5xf32>
    "tpu.trace_stop"() : () -> ()
    %cst_42 = arith.constant 0.353553385 : f32
    %104 = vector.broadcast %cst_42 : f32 to vector<4x5x5xf32>
    %105 = arith.mulf %103, %104 : vector<4x5x5xf32>
    %cst_43 = arith.constant dense<0xFF800000> : vector<4x5xf32>
    %106 = vector.multi_reduction <maximumf>, %105, %cst_43 [2] : vector<4x5x5xf32> to vector<4x5xf32>
    %107 = vector.shape_cast %106 : vector<4x5xf32> to vector<4x5x1xf32>
    %108 = vector.broadcast %107 : vector<4x5x1xf32> to vector<4x5x5xf32>
    %109 = arith.subf %105, %108 : vector<4x5x5xf32>
    %110 = math.exp %109 : vector<4x5x5xf32>
    %cst_44 = arith.constant dense<0.000000e+00> : vector<4x5xf32>
    %111 = vector.multi_reduction <add>, %110, %cst_44 [2] : vector<4x5x5xf32> to vector<4x5xf32>
    %112 = vector.shape_cast %111 : vector<4x5xf32> to vector<4x5x1xf32>
    %113 = tpu.reciprocal %112 {approx = true} : vector<4x5x1xf32> -> vector<4x5x1xf32>
    %114 = vector.broadcast %113 : vector<4x5x1xf32> to vector<4x5x5xf32>
    %115 = arith.mulf %110, %114 : vector<4x5x5xf32>
    %116 = arith.truncf %115 : vector<4x5x5xf32> to vector<4x5x5xbf16>
    "tpu.trace_start"() <{level = 10 : i32, message = "bqk,bkd->bqd"}> : () -> ()
    %cst_45 = arith.constant dense<0.000000e+00> : vector<4x5x8xf32>
    %117 = tpu.matmul %116, %102, %cst_45 {dimension_numbers = #tpu.dot_dimension_numbers<[2], [1], [1], [2], [0, 0, 0, 1, 1, 2], [0], [0]>} : vector<4x5x5xbf16>, vector<4x5x8xbf16>, vector<4x5x8xf32> -> vector<4x5x8xf32>
    "tpu.trace_stop"() : () -> ()
    %118 = arith.truncf %117 : vector<4x5x8xf32> to vector<4x5x8xbf16>
    %c0_46 = arith.constant 0 : index
    %c0_47 = arith.constant 0 : index
    %c24 = arith.constant 24 : index
    %119 = vector.load %arg17[%c0_46, %c0_47, %c24] : memref<4x5x32xbf16, #tpu.memory_space<vmem>>, vector<4x5x8xbf16>
    tpu.vector_store %arg17[%c0_46, %c0_47, %c24], %118 {strides = array<i32>} : memref<4x5x32xbf16, #tpu.memory_space<vmem>>, vector<4x5x8xbf16>,
    %c0_48 = arith.constant 0 : index
    %c0_49 = arith.constant 0 : index
    %c0_50 = arith.constant 0 : index
    %120 = vector.load %arg17[%c0_48, %c0_49, %c0_50] : memref<4x5x32xbf16, #tpu.memory_space<vmem>>, vector<4x5x32xbf16>
    %121 = vector.shape_cast %120 : vector<4x5x32xbf16> to vector<20x32xbf16>
    %c0_51 = arith.constant 0 : index
    %c0_52 = arith.constant 0 : index
    %c0_53 = arith.constant 0 : index
    %122 = vector.load %arg6[%c0_51, %c0_52, %c0_53] : memref<1x32x32xbf16, #tpu.memory_space<vmem>>, vector<1x32x32xbf16>
    %123 = vector.shape_cast %122 : vector<1x32x32xbf16> to vector<32x32xbf16>
    %c0_54 = arith.constant 0 : index
    %c0_55 = arith.constant 0 : index
    %c0_56 = arith.constant 0 : index
    %124 = vector.load %arg7[%c0_54, %c0_55, %c0_56] : memref<1x1x32xf32, #tpu.memory_space<vmem>>, vector<1x1x32xf32>
    %125 = vector.shape_cast %124 : vector<1x1x32xf32> to vector<1x32xf32>
    %cst_57 = arith.constant dense<0.000000e+00> : vector<20x32xf32>
    %126 = tpu.matmul %121, %123, %cst_57 {dimension_numbers = #tpu.dot_dimension_numbers<[1], [0], [0], [1], [0, 0, 1, 1], [], []>} : vector<20x32xbf16>, vector<32x32xbf16>, vector<20x32xf32> -> vector<20x32xf32>
    %127 = vector.broadcast %125 : vector<1x32xf32> to vector<20x32xf32>
    %128 = arith.addf %126, %127 : vector<20x32xf32>
    %129 = arith.addf %3, %128 : vector<20x32xf32>
    %c0_58 = arith.constant 0 : index
    %c0_59 = arith.constant 0 : index
    %c0_60 = arith.constant 0 : index
    %130 = vector.load %arg8[%c0_58, %c0_59, %c0_60] : memref<1x1x32xf32, #tpu.memory_space<vmem>>, vector<1x1x32xf32>
    %131 = vector.shape_cast %130 : vector<1x1x32xf32> to vector<1x32xf32>
    %c0_61 = arith.constant 0 : index
    %c0_62 = arith.constant 0 : index
    %c0_63 = arith.constant 0 : index
    %132 = vector.load %arg9[%c0_61, %c0_62, %c0_63] : memref<1x1x32xf32, #tpu.memory_space<vmem>>, vector<1x1x32xf32>
    %133 = vector.shape_cast %132 : vector<1x1x32xf32> to vector<1x32xf32>
    %cst_64 = arith.constant dense<0.000000e+00> : vector<20xf32>
    %134 = vector.multi_reduction <add>, %129, %cst_64 [1] : vector<20x32xf32> to vector<20xf32>
    %135 = vector.shape_cast %134 : vector<20xf32> to vector<20x1xf32>
    %cst_65 = arith.constant 3.200000e+01 : f32
    %136 = vector.broadcast %cst_65 : f32 to vector<20x1xf32>
    %137 = arith.divf %135, %136 : vector<20x1xf32>
    %138 = vector.broadcast %137 : vector<20x1xf32> to vector<20x32xf32>
    %139 = arith.subf %129, %138 : vector<20x32xf32>
    %140 = arith.mulf %139, %139 : vector<20x32xf32>
    %cst_66 = arith.constant dense<0.000000e+00> : vector<20xf32>
    %141 = vector.multi_reduction <add>, %140, %cst_66 [1] : vector<20x32xf32> to vector<20xf32>
    %142 = vector.shape_cast %141 : vector<20xf32> to vector<20x1xf32>
    %cst_67 = arith.constant 3.200000e+01 : f32
    %143 = vector.broadcast %cst_67 : f32 to vector<20x1xf32>
    %144 = arith.divf %142, %143 : vector<20x1xf32>
    %145 = vector.broadcast %137 : vector<20x1xf32> to vector<20x32xf32>
    %146 = arith.subf %129, %145 : vector<20x32xf32>
    %cst_68 = arith.constant 9.99999997E-7 : f32
    %147 = vector.broadcast %cst_68 : f32 to vector<20x1xf32>
    %148 = arith.addf %144, %147 : vector<20x1xf32>
    %149 = math.rsqrt %148 : vector<20x1xf32>
    %150 = vector.broadcast %149 : vector<20x1xf32> to vector<20x32xf32>
    %151 = arith.mulf %146, %150 : vector<20x32xf32>
    %152 = vector.broadcast %131 : vector<1x32xf32> to vector<20x32xf32>
    %153 = arith.mulf %151, %152 : vector<20x32xf32>
    %154 = vector.broadcast %133 : vector<1x32xf32> to vector<20x32xf32>
    %155 = arith.addf %153, %154 : vector<20x32xf32>
    %c0_69 = arith.constant 0 : index
    %c0_70 = arith.constant 0 : index
    %c0_71 = arith.constant 0 : index
    %156 = vector.load %arg10[%c0_69, %c0_70, %c0_71] : memref<1x32x64xbf16, #tpu.memory_space<vmem>>, vector<1x32x64xbf16>
    %157 = vector.shape_cast %156 : vector<1x32x64xbf16> to vector<32x64xbf16>
    %c0_72 = arith.constant 0 : index
    %c0_73 = arith.constant 0 : index
    %c0_74 = arith.constant 0 : index
    %158 = vector.load %arg11[%c0_72, %c0_73, %c0_74] : memref<1x1x64xf32, #tpu.memory_space<vmem>>, vector<1x1x64xf32>
    %159 = vector.shape_cast %158 : vector<1x1x64xf32> to vector<1x64xf32>
    %160 = arith.truncf %155 : vector<20x32xf32> to vector<20x32xbf16>
    %cst_75 = arith.constant dense<0.000000e+00> : vector<20x64xf32>
    %161 = tpu.matmul %160, %157, %cst_75 {dimension_numbers = #tpu.dot_dimension_numbers<[1], [0], [0], [1], [0, 0, 1, 1], [], []>} : vector<20x32xbf16>, vector<32x64xbf16>, vector<20x64xf32> -> vector<20x64xf32>
    %162 = vector.broadcast %159 : vector<1x64xf32> to vector<20x64xf32>
    %163 = arith.addf %161, %162 : vector<20x64xf32>
    %164 = arith.mulf %163, %163 : vector<20x64xf32>
    %165 = arith.mulf %163, %164 : vector<20x64xf32>
    %cst_76 = arith.constant 4.471500e-02 : f32
    %166 = vector.broadcast %cst_76 : f32 to vector<20x64xf32>
    %167 = arith.mulf %166, %165 : vector<20x64xf32>
    %168 = arith.addf %163, %167 : vector<20x64xf32>
    %cst_77 = arith.constant 0.797884583 : f32
    %169 = vector.broadcast %cst_77 : f32 to vector<20x64xf32>
    %170 = arith.mulf %169, %168 : vector<20x64xf32>
    %171 = math.tanh %170 : vector<20x64xf32>
    %cst_78 = arith.constant 1.000000e+00 : f32
    %172 = vector.broadcast %cst_78 : f32 to vector<20x64xf32>
    %173 = arith.addf %172, %171 : vector<20x64xf32>
    %cst_79 = arith.constant 5.000000e-01 : f32
    %174 = vector.broadcast %cst_79 : f32 to vector<20x64xf32>
    %175 = arith.mulf %174, %173 : vector<20x64xf32>
    %176 = arith.mulf %163, %175 : vector<20x64xf32>
    %c0_80 = arith.constant 0 : index
    %c0_81 = arith.constant 0 : index
    %c0_82 = arith.constant 0 : index
    %177 = vector.load %arg12[%c0_80, %c0_81, %c0_82] : memref<1x64x32xbf16, #tpu.memory_space<vmem>>, vector<1x64x32xbf16>
    %178 = vector.shape_cast %177 : vector<1x64x32xbf16> to vector<64x32xbf16>
    %c0_83 = arith.constant 0 : index
    %c0_84 = arith.constant 0 : index
    %c0_85 = arith.constant 0 : index
    %179 = vector.load %arg13[%c0_83, %c0_84, %c0_85] : memref<1x1x32xf32, #tpu.memory_space<vmem>>, vector<1x1x32xf32>
    %180 = vector.shape_cast %179 : vector<1x1x32xf32> to vector<1x32xf32>
    %181 = arith.truncf %176 : vector<20x64xf32> to vector<20x64xbf16>
    %cst_86 = arith.constant dense<0.000000e+00> : vector<20x32xf32>
    %182 = tpu.matmul %181, %178, %cst_86 {dimension_numbers = #tpu.dot_dimension_numbers<[1], [0], [0], [1], [0, 0, 1, 1], [], []>} : vector<20x64xbf16>, vector<64x32xbf16>, vector<20x32xf32> -> vector<20x32xf32>
    %183 = vector.broadcast %180 : vector<1x32xf32> to vector<20x32xf32>
    %184 = arith.addf %182, %183 : vector<20x32xf32>
    %185 = arith.addf %129, %184 : vector<20x32xf32>
    %c1_i32 = arith.constant 1 : i32
    %186 = arith.cmpi eq, %arg0, %c1_i32 : i32
    %187 = arith.extui %186 : i1 to i32
    %c0_i32_87 = arith.constant 0 : i32
    %188 = arith.cmpi ne, %187, %c0_i32_87 : i32
    scf.if %188 {
      %c0_90 = arith.constant 0 : index
      %c0_91 = arith.constant 0 : index
      %192 = vector.load %arg14[%c0_90, %c0_91] : memref<1x32xf32, #tpu.memory_space<vmem>>, vector<1x32xf32>
      %c0_92 = arith.constant 0 : index
      %c0_93 = arith.constant 0 : index
      %193 = vector.load %arg15[%c0_92, %c0_93] : memref<1x32xf32, #tpu.memory_space<vmem>>, vector<1x32xf32>
      %cst_94 = arith.constant dense<0.000000e+00> : vector<20xf32>
      %194 = vector.multi_reduction <add>, %185, %cst_94 [1] : vector<20x32xf32> to vector<20xf32>
      %195 = vector.shape_cast %194 : vector<20xf32> to vector<20x1xf32>
      %cst_95 = arith.constant 3.200000e+01 : f32
      %196 = vector.broadcast %cst_95 : f32 to vector<20x1xf32>
      %197 = arith.divf %195, %196 : vector<20x1xf32>
      %198 = vector.broadcast %197 : vector<20x1xf32> to vector<20x32xf32>
      %199 = arith.subf %185, %198 : vector<20x32xf32>
      %200 = arith.mulf %199, %199 : vector<20x32xf32>
      %cst_96 = arith.constant dense<0.000000e+00> : vector<20xf32>
      %201 = vector.multi_reduction <add>, %200, %cst_96 [1] : vector<20x32xf32> to vector<20xf32>
      %202 = vector.shape_cast %201 : vector<20xf32> to vector<20x1xf32>
      %cst_97 = arith.constant 3.200000e+01 : f32
      %203 = vector.broadcast %cst_97 : f32 to vector<20x1xf32>
      %204 = arith.divf %202, %203 : vector<20x1xf32>
      %205 = vector.broadcast %197 : vector<20x1xf32> to vector<20x32xf32>
      %206 = arith.subf %185, %205 : vector<20x32xf32>
      %cst_98 = arith.constant 9.99999997E-7 : f32
      %207 = vector.broadcast %cst_98 : f32 to vector<20x1xf32>
      %208 = arith.addf %204, %207 : vector<20x1xf32>
      %209 = math.rsqrt %208 : vector<20x1xf32>
      %210 = vector.broadcast %209 : vector<20x1xf32> to vector<20x32xf32>
      %211 = arith.mulf %206, %210 : vector<20x32xf32>
      %212 = vector.broadcast %192 : vector<1x32xf32> to vector<20x32xf32>
      %213 = arith.mulf %211, %212 : vector<20x32xf32>
      %214 = vector.broadcast %193 : vector<1x32xf32> to vector<20x32xf32>
      %215 = arith.addf %213, %214 : vector<20x32xf32>
      %c0_99 = arith.constant 0 : index
      %c0_100 = arith.constant 0 : index
      %216 = vector.load %arg16[%c0_99, %c0_100] : memref<20x32xf32, #tpu.memory_space<vmem>>, vector<20x32xf32>
      tpu.vector_store %arg16[%c0_99, %c0_100], %215 {strides = array<i32>} : memref<20x32xf32, #tpu.memory_space<vmem>>, vector<20x32xf32>,
    } else {
    }
    %c1_i32_88 = arith.constant 1 : i32
    %189 = arith.cmpi slt, %arg0, %c1_i32_88 : i32
    %190 = arith.extui %189 : i1 to i32
    %c0_i32_89 = arith.constant 0 : i32
    %191 = arith.cmpi ne, %190, %c0_i32_89 : i32
    scf.if %191 {
      %c0_90 = arith.constant 0 : index
      %c0_91 = arith.constant 0 : index
      %192 = vector.load %arg16[%c0_90, %c0_91] : memref<20x32xf32, #tpu.memory_space<vmem>>, vector<20x32xf32>
      tpu.vector_store %arg16[%c0_90, %c0_91], %185 {strides = array<i32>} : memref<20x32xf32, #tpu.memory_space<vmem>>, vector<20x32xf32>,
    } else {
    }
    return
  }
  func.func @transform_1(%arg0: i32) -> (i32, i32, i32) {
    %c0_i32 = arith.constant 0 : i32
    %c0_i32_0 = arith.constant 0 : i32
    %c0_i32_1 = arith.constant 0 : i32
    return %arg0, %c0_i32, %c0_i32_0 : i32, i32, i32
  }
  func.func @transform_2(%arg0: i32) -> (i32, i32, i32) {
    %c0_i32 = arith.constant 0 : i32
    %c0_i32_0 = arith.constant 0 : i32
    %c0_i32_1 = arith.constant 0 : i32
    return %arg0, %c0_i32, %c0_i32_0 : i32, i32, i32
  }
  func.func @transform_3(%arg0: i32) -> (i32, i32, i32) {
    %c0_i32 = arith.constant 0 : i32
    %c0_i32_0 = arith.constant 0 : i32
    %c0_i32_1 = arith.constant 0 : i32
    return %arg0, %c0_i32, %c0_i32_0 : i32, i32, i32
  }
  func.func @transform_4(%arg0: i32) -> (i32, i32, i32) {
    %c0_i32 = arith.constant 0 : i32
    %c0_i32_0 = arith.constant 0 : i32
    %c0_i32_1 = arith.constant 0 : i32
    return %arg0, %c0_i32, %c0_i32_0 : i32, i32, i32
  }
  func.func @transform_5(%arg0: i32) -> (i32, i32, i32) {
    %c0_i32 = arith.constant 0 : i32
    %c0_i32_0 = arith.constant 0 : i32
    %c0_i32_1 = arith.constant 0 : i32
    return %arg0, %c0_i32, %c0_i32_0 : i32, i32, i32
  }
  func.func @transform_6(%arg0: i32) -> (i32, i32, i32) {
    %c0_i32 = arith.constant 0 : i32
    %c0_i32_0 = arith.constant 0 : i32
    %c0_i32_1 = arith.constant 0 : i32
    return %arg0, %c0_i32, %c0_i32_0 : i32, i32, i32
  }
  func.func @transform_7(%arg0: i32) -> (i32, i32, i32) {
    %c0_i32 = arith.constant 0 : i32
    %c0_i32_0 = arith.constant 0 : i32
    %c0_i32_1 = arith.constant 0 : i32
    return %arg0, %c0_i32, %c0_i32_0 : i32, i32, i32
  }
  func.func @transform_8(%arg0: i32) -> (i32, i32, i32) {
    %c0_i32 = arith.constant 0 : i32
    %c0_i32_0 = arith.constant 0 : i32
    %c0_i32_1 = arith.constant 0 : i32
    return %arg0, %c0_i32, %c0_i32_0 : i32, i32, i32
  }
  func.func @transform_9(%arg0: i32) -> (i32, i32, i32) {
    %c0_i32 = arith.constant 0 : i32
    %c0_i32_0 = arith.constant 0 : i32
    %c0_i32_1 = arith.constant 0 : i32
    return %arg0, %c0_i32, %c0_i32_0 : i32, i32, i32
  }
  func.func @transform_10(%arg0: i32) -> (i32, i32, i32) {
    %c0_i32 = arith.constant 0 : i32
    %c0_i32_0 = arith.constant 0 : i32
    %c0_i32_1 = arith.constant 0 : i32
    return %arg0, %c0_i32, %c0_i32_0 : i32, i32, i32
  }
  func.func @transform_11(%arg0: i32) -> (i32, i32, i32) {
    %c0_i32 = arith.constant 0 : i32
    %c0_i32_0 = arith.constant 0 : i32
    %c0_i32_1 = arith.constant 0 : i32
    return %arg0, %c0_i32, %c0_i32_0 : i32, i32, i32
  }
  func.func @transform_12(%arg0: i32) -> (i32, i32, i32) {
    %c0_i32 = arith.constant 0 : i32
    %c0_i32_0 = arith.constant 0 : i32
    %c0_i32_1 = arith.constant 0 : i32
    return %arg0, %c0_i32, %c0_i32_0 : i32, i32, i32
  }
  func.func @transform_13(%arg0: i32) -> (i32, i32) {
    %c0_i32 = arith.constant 0 : i32
    %c0_i32_0 = arith.constant 0 : i32
    %c0_i32_1 = arith.constant 0 : i32
    return %c0_i32, %c0_i32_0 : i32, i32
  }
  func.func @transform_14(%arg0: i32) -> (i32, i32) {
    %c0_i32 = arith.constant 0 : i32
    %c0_i32_0 = arith.constant 0 : i32
    %c0_i32_1 = arith.constant 0 : i32
    return %c0_i32, %c0_i32_0 : i32, i32
  }
  func.func @transform_15(%arg0: i32) -> (i32, i32) {
    %c0_i32 = arith.constant 0 : i32
    %c0_i32_0 = arith.constant 0 : i32
    %c0_i32_1 = arith.constant 0 : i32
    return %c0_i32, %c0_i32_0 : i32, i32
  }
}

module attributes {stable_mosaic.version = 11 : i64} {
  func.func @_bert_layers_kernel(%arg0: i32, %arg1: memref<32x32xf32, #tpu.memory_space<any>>, %arg2: memref<20x32xbf16, #tpu.memory_space<vmem>>, %arg3: memref<4x8x8xf32, #tpu.memory_space<vmem>>, %arg4: memref<1x32xf32, #tpu.memory_space<vmem>>, %arg5: memref<1x32xf32, #tpu.memory_space<vmem>>, %arg6: memref<1x32x96xbf16, #tpu.memory_space<vmem>>, %arg7: memref<1x1x96xf32, #tpu.memory_space<vmem>>, %arg8: memref<1x32x32xbf16, #tpu.memory_space<vmem>>, %arg9: memref<1x1x32xf32, #tpu.memory_space<vmem>>, %arg10: memref<1x1x32xf32, #tpu.memory_space<vmem>>, %arg11: memref<1x1x32xf32, #tpu.memory_space<vmem>>, %arg12: memref<1x32x32xbf16, #tpu.memory_space<vmem>>, %arg13: memref<1x1x32xf32, #tpu.memory_space<vmem>>, %arg14: memref<1x32x64xbf16, #tpu.memory_space<vmem>>, %arg15: memref<1x1x64xf32, #tpu.memory_space<vmem>>, %arg16: memref<1x32x32xbf16, #tpu.memory_space<vmem>>, %arg17: memref<1x1x32xf32, #tpu.memory_space<vmem>>, %arg18: memref<1x1x32xf32, #tpu.memory_space<vmem>>, %arg19: memref<1x1x32xf32, #tpu.memory_space<vmem>>, %arg20: memref<1x32x64xbf16, #tpu.memory_space<vmem>>, %arg21: memref<1x1x64xf32, #tpu.memory_space<vmem>>, %arg22: memref<1x64x32xbf16, #tpu.memory_space<vmem>>, %arg23: memref<1x1x32xf32, #tpu.memory_space<vmem>>, %arg24: memref<1x1x32xf32, #tpu.memory_space<vmem>>, %arg25: memref<1x1x32xf32, #tpu.memory_space<vmem>>, %arg26: memref<32x32xf32, #tpu.memory_space<vmem>>, %arg27: memref<4x8x32xbf16, #tpu.memory_space<vmem>>) attributes {dimension_semantics = [#tpu.dimension_semantics<arbitrary>], iteration_bounds = array<i64: 2>, scalar_prefetch = 0 : i64, scratch_operands = 1 : i64, tpu.core_type = #tpu.core_type<tc>, window_params = [{}, {pipeline_mode = #tpu.pipeline_mode<synchronous>, transform_indices = @transform_1, window_bounds = array<i64: 20, 32>}, {pipeline_mode = #tpu.pipeline_mode<synchronous>, transform_indices = @transform_2, window_bounds = array<i64: 4, 8, 8>}, {pipeline_mode = #tpu.pipeline_mode<synchronous>, transform_indices = @transform_3, window_bounds = array<i64: 1, 32>}, {pipeline_mode = #tpu.pipeline_mode<synchronous>, transform_indices = @transform_4, window_bounds = array<i64: 1, 32>}, {transform_indices = @transform_5, window_bounds = array<i64: 1, 32, 96>}, {transform_indices = @transform_6, window_bounds = array<i64: 1, 1, 96>}, {transform_indices = @transform_7, window_bounds = array<i64: 1, 32, 32>}, {transform_indices = @transform_8, window_bounds = array<i64: 1, 1, 32>}, {transform_indices = @transform_9, window_bounds = array<i64: 1, 1, 32>}, {transform_indices = @transform_10, window_bounds = array<i64: 1, 1, 32>}, {transform_indices = @transform_11, window_bounds = array<i64: 1, 32, 32>}, {transform_indices = @transform_12, window_bounds = array<i64: 1, 1, 32>}, {transform_indices = @transform_13, window_bounds = array<i64: 1, 32, 64>}, {transform_indices = @transform_14, window_bounds = array<i64: 1, 1, 64>}, {transform_indices = @transform_15, window_bounds = array<i64: 1, 32, 32>}, {transform_indices = @transform_16, window_bounds = array<i64: 1, 1, 32>}, {transform_indices = @transform_17, window_bounds = array<i64: 1, 1, 32>}, {transform_indices = @transform_18, window_bounds = array<i64: 1, 1, 32>}, {transform_indices = @transform_19, window_bounds = array<i64: 1, 32, 64>}, {transform_indices = @transform_20, window_bounds = array<i64: 1, 1, 64>}, {transform_indices = @transform_21, window_bounds = array<i64: 1, 64, 32>}, {transform_indices = @transform_22, window_bounds = array<i64: 1, 1, 32>}, {transform_indices = @transform_23, window_bounds = array<i64: 1, 1, 32>}, {transform_indices = @transform_24, window_bounds = array<i64: 1, 1, 32>}, {pipeline_mode = #tpu.pipeline_mode<synchronous>, transform_indices = @transform_25, window_bounds = array<i64: 32, 32>}]} {
    %c0_i32 = arith.constant 0 : i32
    %0 = arith.cmpi eq, %arg0, %c0_i32 : i32
    %1 = arith.extui %0 : i1 to i32
    %c0_i32_0 = arith.constant 0 : i32
    %2 = arith.cmpi ne, %1, %c0_i32_0 : i32
    scf.if %2 {
      "tpu.region"() ({
        %354 = tpu.sem_alloc : memref<!tpu.dma_semaphore, #tpu.memory_space<semaphore_mem>>
        tpu.enqueue_dma source(%arg1 : memref<32x32xf32, #tpu.memory_space<any>>) target(%arg26 : memref<32x32xf32, #tpu.memory_space<vmem>>) target_semaphore(%354 : memref<!tpu.dma_semaphore, #tpu.memory_space<semaphore_mem>>)
        tpu.wait_dma2 semaphore(%354 : memref<!tpu.dma_semaphore, #tpu.memory_space<semaphore_mem>>) src(%arg1 : memref<32x32xf32, #tpu.memory_space<any>>) dst(%arg26 : memref<32x32xf32, #tpu.memory_space<vmem>>)
        tpu.yield
      }) : () -> ()
      %c0_161 = arith.constant 0 : index
      %c0_162 = arith.constant 0 : index
      %328 = vector.load %arg26[%c0_161, %c0_162] : memref<32x32xf32, #tpu.memory_space<vmem>>, vector<32x32xf32>
      %c0_163 = arith.constant 0 : index
      %c0_164 = arith.constant 0 : index
      %329 = vector.load %arg4[%c0_163, %c0_164] : memref<1x32xf32, #tpu.memory_space<vmem>>, vector<1x32xf32>
      %c0_165 = arith.constant 0 : index
      %c0_166 = arith.constant 0 : index
      %330 = vector.load %arg5[%c0_165, %c0_166] : memref<1x32xf32, #tpu.memory_space<vmem>>, vector<1x32xf32>
      %cst_167 = arith.constant dense<0.000000e+00> : vector<32xf32>
      %331 = vector.multi_reduction <add>, %328, %cst_167 [1] : vector<32x32xf32> to vector<32xf32>
      %332 = vector.shape_cast %331 : vector<32xf32> to vector<32x1xf32>
      %cst_168 = arith.constant 3.200000e+01 : f32
      %333 = vector.broadcast %cst_168 : f32 to vector<32x1xf32>
      %334 = arith.divf %332, %333 : vector<32x1xf32>
      %335 = vector.broadcast %334 : vector<32x1xf32> to vector<32x32xf32>
      %336 = arith.subf %328, %335 : vector<32x32xf32>
      %337 = arith.mulf %336, %336 : vector<32x32xf32>
      %cst_169 = arith.constant dense<0.000000e+00> : vector<32xf32>
      %338 = vector.multi_reduction <add>, %337, %cst_169 [1] : vector<32x32xf32> to vector<32xf32>
      %339 = vector.shape_cast %338 : vector<32xf32> to vector<32x1xf32>
      %cst_170 = arith.constant 3.200000e+01 : f32
      %340 = vector.broadcast %cst_170 : f32 to vector<32x1xf32>
      %341 = arith.divf %339, %340 : vector<32x1xf32>
      %342 = vector.broadcast %334 : vector<32x1xf32> to vector<32x32xf32>
      %343 = arith.subf %328, %342 : vector<32x32xf32>
      %cst_171 = arith.constant 9.99999996E-13 : f32
      %344 = vector.broadcast %cst_171 : f32 to vector<32x1xf32>
      %345 = arith.addf %341, %344 : vector<32x1xf32>
      %346 = math.rsqrt %345 : vector<32x1xf32>
      %347 = vector.broadcast %346 : vector<32x1xf32> to vector<32x32xf32>
      %348 = arith.mulf %343, %347 : vector<32x32xf32>
      %349 = vector.broadcast %329 : vector<1x32xf32> to vector<32x32xf32>
      %350 = arith.mulf %348, %349 : vector<32x32xf32>
      %351 = vector.broadcast %330 : vector<1x32xf32> to vector<32x32xf32>
      %352 = arith.addf %350, %351 : vector<32x32xf32>
      %c0_172 = arith.constant 0 : index
      %c0_173 = arith.constant 0 : index
      %353 = vector.load %arg26[%c0_172, %c0_173] : memref<32x32xf32, #tpu.memory_space<vmem>>, vector<32x32xf32>
      tpu.vector_store %arg26[%c0_172, %c0_173], %352 {strides = array<i32>} : memref<32x32xf32, #tpu.memory_space<vmem>>, vector<32x32xf32>,
    } else {
    }
    %c0 = arith.constant 0 : index
    %c0_1 = arith.constant 0 : index
    %3 = vector.load %arg26[%c0, %c0_1] : memref<32x32xf32, #tpu.memory_space<vmem>>, vector<32x32xf32>
    %c0_2 = arith.constant 0 : index
    %c0_3 = arith.constant 0 : index
    %c0_4 = arith.constant 0 : index
    %4 = vector.load %arg3[%c0_2, %c0_3, %c0_4] : memref<4x8x8xf32, #tpu.memory_space<vmem>>, vector<4x8x8xf32>
    %c0_5 = arith.constant 0 : index
    %c0_6 = arith.constant 0 : index
    %c0_7 = arith.constant 0 : index
    %5 = vector.load %arg6[%c0_5, %c0_6, %c0_7] : memref<1x32x96xbf16, #tpu.memory_space<vmem>>, vector<1x32x96xbf16>
    %6 = vector.shape_cast %5 : vector<1x32x96xbf16> to vector<32x96xbf16>
    %c0_8 = arith.constant 0 : index
    %c0_9 = arith.constant 0 : index
    %c0_10 = arith.constant 0 : index
    %7 = vector.load %arg7[%c0_8, %c0_9, %c0_10] : memref<1x1x96xf32, #tpu.memory_space<vmem>>, vector<1x1x96xf32>
    %8 = vector.shape_cast %7 : vector<1x1x96xf32> to vector<1x96xf32>
    %9 = arith.truncf %3 : vector<32x32xf32> to vector<32x32xbf16>
    %cst = arith.constant dense<0.000000e+00> : vector<32x96xf32>
    %10 = tpu.matmul %9, %6, %cst {dimension_numbers = #tpu.dot_dimension_numbers<[1], [0], [0], [1], [0, 0, 1, 1], [], []>} : vector<32x32xbf16>, vector<32x96xbf16>, vector<32x96xf32> -> vector<32x96xf32>
    %11 = vector.broadcast %8 : vector<1x96xf32> to vector<32x96xf32>
    %12 = arith.addf %10, %11 : vector<32x96xf32>
    %13 = vector.shape_cast %12 : vector<32x96xf32> to vector<4x8x96xf32>
    %14 = arith.truncf %13 : vector<4x8x96xf32> to vector<4x8x96xbf16>
    %15 = vector.extract_strided_slice %14 {offsets = [0, 0, 0], sizes = [4, 8, 8], strides = [1, 1, 1]} : vector<4x8x96xbf16> to vector<4x8x8xbf16>
    %16 = vector.extract_strided_slice %14 {offsets = [0, 0, 32], sizes = [4, 8, 8], strides = [1, 1, 1]} : vector<4x8x96xbf16> to vector<4x8x8xbf16>
    %17 = vector.extract_strided_slice %14 {offsets = [0, 0, 64], sizes = [4, 8, 8], strides = [1, 1, 1]} : vector<4x8x96xbf16> to vector<4x8x8xbf16>
    "tpu.trace_start"() <{level = 10 : i32, message = "bqd,bkd->bqk"}> : () -> ()
    %cst_11 = arith.constant dense<0.000000e+00> : vector<4x8x8xf32>
    %18 = tpu.matmul %15, %16, %cst_11 {dimension_numbers = #tpu.dot_dimension_numbers<[2], [2], [1], [1], [0, 0, 0, 1, 1, 1], [0], [0]>} : vector<4x8x8xbf16>, vector<4x8x8xbf16>, vector<4x8x8xf32> -> vector<4x8x8xf32>
    "tpu.trace_stop"() : () -> ()
    %cst_12 = arith.constant 0.353553385 : f32
    %19 = vector.broadcast %cst_12 : f32 to vector<4x8x8xf32>
    %20 = arith.mulf %18, %19 : vector<4x8x8xf32>
    %21 = arith.addf %20, %4 : vector<4x8x8xf32>
    %cst_13 = arith.constant dense<0xFF800000> : vector<4x8xf32>
    %22 = vector.multi_reduction <maximumf>, %21, %cst_13 [2] : vector<4x8x8xf32> to vector<4x8xf32>
    %23 = vector.shape_cast %22 : vector<4x8xf32> to vector<4x8x1xf32>
    %24 = vector.broadcast %23 : vector<4x8x1xf32> to vector<4x8x8xf32>
    %25 = arith.subf %21, %24 : vector<4x8x8xf32>
    %26 = math.exp %25 : vector<4x8x8xf32>
    %cst_14 = arith.constant dense<0.000000e+00> : vector<4x8xf32>
    %27 = vector.multi_reduction <add>, %26, %cst_14 [2] : vector<4x8x8xf32> to vector<4x8xf32>
    %28 = vector.shape_cast %27 : vector<4x8xf32> to vector<4x8x1xf32>
    %29 = tpu.reciprocal %28 {approx = true} : vector<4x8x1xf32> -> vector<4x8x1xf32>
    %30 = vector.broadcast %29 : vector<4x8x1xf32> to vector<4x8x8xf32>
    %31 = arith.mulf %26, %30 : vector<4x8x8xf32>
    %32 = arith.truncf %31 : vector<4x8x8xf32> to vector<4x8x8xbf16>
    "tpu.trace_start"() <{level = 10 : i32, message = "bqk,bkd->bqd"}> : () -> ()
    %cst_15 = arith.constant dense<0.000000e+00> : vector<4x8x8xf32>
    %33 = tpu.matmul %32, %17, %cst_15 {dimension_numbers = #tpu.dot_dimension_numbers<[2], [1], [1], [2], [0, 0, 0, 1, 1, 2], [0], [0]>} : vector<4x8x8xbf16>, vector<4x8x8xbf16>, vector<4x8x8xf32> -> vector<4x8x8xf32>
    "tpu.trace_stop"() : () -> ()
    %34 = arith.truncf %33 : vector<4x8x8xf32> to vector<4x8x8xbf16>
    %c0_16 = arith.constant 0 : index
    %c0_17 = arith.constant 0 : index
    %c0_18 = arith.constant 0 : index
    %35 = vector.load %arg27[%c0_16, %c0_17, %c0_18] : memref<4x8x32xbf16, #tpu.memory_space<vmem>>, vector<4x8x8xbf16>
    tpu.vector_store %arg27[%c0_16, %c0_17, %c0_18], %34 {strides = array<i32>} : memref<4x8x32xbf16, #tpu.memory_space<vmem>>, vector<4x8x8xbf16>,
    %36 = vector.extract_strided_slice %14 {offsets = [0, 0, 8], sizes = [4, 8, 8], strides = [1, 1, 1]} : vector<4x8x96xbf16> to vector<4x8x8xbf16>
    %37 = vector.extract_strided_slice %14 {offsets = [0, 0, 40], sizes = [4, 8, 8], strides = [1, 1, 1]} : vector<4x8x96xbf16> to vector<4x8x8xbf16>
    %38 = vector.extract_strided_slice %14 {offsets = [0, 0, 72], sizes = [4, 8, 8], strides = [1, 1, 1]} : vector<4x8x96xbf16> to vector<4x8x8xbf16>
    "tpu.trace_start"() <{level = 10 : i32, message = "bqd,bkd->bqk"}> : () -> ()
    %cst_19 = arith.constant dense<0.000000e+00> : vector<4x8x8xf32>
    %39 = tpu.matmul %36, %37, %cst_19 {dimension_numbers = #tpu.dot_dimension_numbers<[2], [2], [1], [1], [0, 0, 0, 1, 1, 1], [0], [0]>} : vector<4x8x8xbf16>, vector<4x8x8xbf16>, vector<4x8x8xf32> -> vector<4x8x8xf32>
    "tpu.trace_stop"() : () -> ()
    %cst_20 = arith.constant 0.353553385 : f32
    %40 = vector.broadcast %cst_20 : f32 to vector<4x8x8xf32>
    %41 = arith.mulf %39, %40 : vector<4x8x8xf32>
    %42 = arith.addf %41, %4 : vector<4x8x8xf32>
    %cst_21 = arith.constant dense<0xFF800000> : vector<4x8xf32>
    %43 = vector.multi_reduction <maximumf>, %42, %cst_21 [2] : vector<4x8x8xf32> to vector<4x8xf32>
    %44 = vector.shape_cast %43 : vector<4x8xf32> to vector<4x8x1xf32>
    %45 = vector.broadcast %44 : vector<4x8x1xf32> to vector<4x8x8xf32>
    %46 = arith.subf %42, %45 : vector<4x8x8xf32>
    %47 = math.exp %46 : vector<4x8x8xf32>
    %cst_22 = arith.constant dense<0.000000e+00> : vector<4x8xf32>
    %48 = vector.multi_reduction <add>, %47, %cst_22 [2] : vector<4x8x8xf32> to vector<4x8xf32>
    %49 = vector.shape_cast %48 : vector<4x8xf32> to vector<4x8x1xf32>
    %50 = tpu.reciprocal %49 {approx = true} : vector<4x8x1xf32> -> vector<4x8x1xf32>
    %51 = vector.broadcast %50 : vector<4x8x1xf32> to vector<4x8x8xf32>
    %52 = arith.mulf %47, %51 : vector<4x8x8xf32>
    %53 = arith.truncf %52 : vector<4x8x8xf32> to vector<4x8x8xbf16>
    "tpu.trace_start"() <{level = 10 : i32, message = "bqk,bkd->bqd"}> : () -> ()
    %cst_23 = arith.constant dense<0.000000e+00> : vector<4x8x8xf32>
    %54 = tpu.matmul %53, %38, %cst_23 {dimension_numbers = #tpu.dot_dimension_numbers<[2], [1], [1], [2], [0, 0, 0, 1, 1, 2], [0], [0]>} : vector<4x8x8xbf16>, vector<4x8x8xbf16>, vector<4x8x8xf32> -> vector<4x8x8xf32>
    "tpu.trace_stop"() : () -> ()
    %55 = arith.truncf %54 : vector<4x8x8xf32> to vector<4x8x8xbf16>
    %c0_24 = arith.constant 0 : index
    %c0_25 = arith.constant 0 : index
    %c8 = arith.constant 8 : index
    %56 = vector.load %arg27[%c0_24, %c0_25, %c8] : memref<4x8x32xbf16, #tpu.memory_space<vmem>>, vector<4x8x8xbf16>
    tpu.vector_store %arg27[%c0_24, %c0_25, %c8], %55 {strides = array<i32>} : memref<4x8x32xbf16, #tpu.memory_space<vmem>>, vector<4x8x8xbf16>,
    %57 = vector.extract_strided_slice %14 {offsets = [0, 0, 16], sizes = [4, 8, 8], strides = [1, 1, 1]} : vector<4x8x96xbf16> to vector<4x8x8xbf16>
    %58 = vector.extract_strided_slice %14 {offsets = [0, 0, 48], sizes = [4, 8, 8], strides = [1, 1, 1]} : vector<4x8x96xbf16> to vector<4x8x8xbf16>
    %59 = vector.extract_strided_slice %14 {offsets = [0, 0, 80], sizes = [4, 8, 8], strides = [1, 1, 1]} : vector<4x8x96xbf16> to vector<4x8x8xbf16>
    "tpu.trace_start"() <{level = 10 : i32, message = "bqd,bkd->bqk"}> : () -> ()
    %cst_26 = arith.constant dense<0.000000e+00> : vector<4x8x8xf32>
    %60 = tpu.matmul %57, %58, %cst_26 {dimension_numbers = #tpu.dot_dimension_numbers<[2], [2], [1], [1], [0, 0, 0, 1, 1, 1], [0], [0]>} : vector<4x8x8xbf16>, vector<4x8x8xbf16>, vector<4x8x8xf32> -> vector<4x8x8xf32>
    "tpu.trace_stop"() : () -> ()
    %cst_27 = arith.constant 0.353553385 : f32
    %61 = vector.broadcast %cst_27 : f32 to vector<4x8x8xf32>
    %62 = arith.mulf %60, %61 : vector<4x8x8xf32>
    %63 = arith.addf %62, %4 : vector<4x8x8xf32>
    %cst_28 = arith.constant dense<0xFF800000> : vector<4x8xf32>
    %64 = vector.multi_reduction <maximumf>, %63, %cst_28 [2] : vector<4x8x8xf32> to vector<4x8xf32>
    %65 = vector.shape_cast %64 : vector<4x8xf32> to vector<4x8x1xf32>
    %66 = vector.broadcast %65 : vector<4x8x1xf32> to vector<4x8x8xf32>
    %67 = arith.subf %63, %66 : vector<4x8x8xf32>
    %68 = math.exp %67 : vector<4x8x8xf32>
    %cst_29 = arith.constant dense<0.000000e+00> : vector<4x8xf32>
    %69 = vector.multi_reduction <add>, %68, %cst_29 [2] : vector<4x8x8xf32> to vector<4x8xf32>
    %70 = vector.shape_cast %69 : vector<4x8xf32> to vector<4x8x1xf32>
    %71 = tpu.reciprocal %70 {approx = true} : vector<4x8x1xf32> -> vector<4x8x1xf32>
    %72 = vector.broadcast %71 : vector<4x8x1xf32> to vector<4x8x8xf32>
    %73 = arith.mulf %68, %72 : vector<4x8x8xf32>
    %74 = arith.truncf %73 : vector<4x8x8xf32> to vector<4x8x8xbf16>
    "tpu.trace_start"() <{level = 10 : i32, message = "bqk,bkd->bqd"}> : () -> ()
    %cst_30 = arith.constant dense<0.000000e+00> : vector<4x8x8xf32>
    %75 = tpu.matmul %74, %59, %cst_30 {dimension_numbers = #tpu.dot_dimension_numbers<[2], [1], [1], [2], [0, 0, 0, 1, 1, 2], [0], [0]>} : vector<4x8x8xbf16>, vector<4x8x8xbf16>, vector<4x8x8xf32> -> vector<4x8x8xf32>
    "tpu.trace_stop"() : () -> ()
    %76 = arith.truncf %75 : vector<4x8x8xf32> to vector<4x8x8xbf16>
    %c0_31 = arith.constant 0 : index
    %c0_32 = arith.constant 0 : index
    %c16 = arith.constant 16 : index
    %77 = vector.load %arg27[%c0_31, %c0_32, %c16] : memref<4x8x32xbf16, #tpu.memory_space<vmem>>, vector<4x8x8xbf16>
    tpu.vector_store %arg27[%c0_31, %c0_32, %c16], %76 {strides = array<i32>} : memref<4x8x32xbf16, #tpu.memory_space<vmem>>, vector<4x8x8xbf16>,
    %78 = vector.extract_strided_slice %14 {offsets = [0, 0, 24], sizes = [4, 8, 8], strides = [1, 1, 1]} : vector<4x8x96xbf16> to vector<4x8x8xbf16>
    %79 = vector.extract_strided_slice %14 {offsets = [0, 0, 56], sizes = [4, 8, 8], strides = [1, 1, 1]} : vector<4x8x96xbf16> to vector<4x8x8xbf16>
    %80 = vector.extract_strided_slice %14 {offsets = [0, 0, 88], sizes = [4, 8, 8], strides = [1, 1, 1]} : vector<4x8x96xbf16> to vector<4x8x8xbf16>
    "tpu.trace_start"() <{level = 10 : i32, message = "bqd,bkd->bqk"}> : () -> ()
    %cst_33 = arith.constant dense<0.000000e+00> : vector<4x8x8xf32>
    %81 = tpu.matmul %78, %79, %cst_33 {dimension_numbers = #tpu.dot_dimension_numbers<[2], [2], [1], [1], [0, 0, 0, 1, 1, 1], [0], [0]>} : vector<4x8x8xbf16>, vector<4x8x8xbf16>, vector<4x8x8xf32> -> vector<4x8x8xf32>
    "tpu.trace_stop"() : () -> ()
    %cst_34 = arith.constant 0.353553385 : f32
    %82 = vector.broadcast %cst_34 : f32 to vector<4x8x8xf32>
    %83 = arith.mulf %81, %82 : vector<4x8x8xf32>
    %84 = arith.addf %83, %4 : vector<4x8x8xf32>
    %cst_35 = arith.constant dense<0xFF800000> : vector<4x8xf32>
    %85 = vector.multi_reduction <maximumf>, %84, %cst_35 [2] : vector<4x8x8xf32> to vector<4x8xf32>
    %86 = vector.shape_cast %85 : vector<4x8xf32> to vector<4x8x1xf32>
    %87 = vector.broadcast %86 : vector<4x8x1xf32> to vector<4x8x8xf32>
    %88 = arith.subf %84, %87 : vector<4x8x8xf32>
    %89 = math.exp %88 : vector<4x8x8xf32>
    %cst_36 = arith.constant dense<0.000000e+00> : vector<4x8xf32>
    %90 = vector.multi_reduction <add>, %89, %cst_36 [2] : vector<4x8x8xf32> to vector<4x8xf32>
    %91 = vector.shape_cast %90 : vector<4x8xf32> to vector<4x8x1xf32>
    %92 = tpu.reciprocal %91 {approx = true} : vector<4x8x1xf32> -> vector<4x8x1xf32>
    %93 = vector.broadcast %92 : vector<4x8x1xf32> to vector<4x8x8xf32>
    %94 = arith.mulf %89, %93 : vector<4x8x8xf32>
    %95 = arith.truncf %94 : vector<4x8x8xf32> to vector<4x8x8xbf16>
    "tpu.trace_start"() <{level = 10 : i32, message = "bqk,bkd->bqd"}> : () -> ()
    %cst_37 = arith.constant dense<0.000000e+00> : vector<4x8x8xf32>
    %96 = tpu.matmul %95, %80, %cst_37 {dimension_numbers = #tpu.dot_dimension_numbers<[2], [1], [1], [2], [0, 0, 0, 1, 1, 2], [0], [0]>} : vector<4x8x8xbf16>, vector<4x8x8xbf16>, vector<4x8x8xf32> -> vector<4x8x8xf32>
    "tpu.trace_stop"() : () -> ()
    %97 = arith.truncf %96 : vector<4x8x8xf32> to vector<4x8x8xbf16>
    %c0_38 = arith.constant 0 : index
    %c0_39 = arith.constant 0 : index
    %c24 = arith.constant 24 : index
    %98 = vector.load %arg27[%c0_38, %c0_39, %c24] : memref<4x8x32xbf16, #tpu.memory_space<vmem>>, vector<4x8x8xbf16>
    tpu.vector_store %arg27[%c0_38, %c0_39, %c24], %97 {strides = array<i32>} : memref<4x8x32xbf16, #tpu.memory_space<vmem>>, vector<4x8x8xbf16>,
    %c0_40 = arith.constant 0 : index
    %c0_41 = arith.constant 0 : index
    %c0_42 = arith.constant 0 : index
    %99 = vector.load %arg27[%c0_40, %c0_41, %c0_42] : memref<4x8x32xbf16, #tpu.memory_space<vmem>>, vector<4x8x32xbf16>
    %100 = vector.shape_cast %99 : vector<4x8x32xbf16> to vector<32x32xbf16>
    %c0_43 = arith.constant 0 : index
    %c0_44 = arith.constant 0 : index
    %c0_45 = arith.constant 0 : index
    %101 = vector.load %arg8[%c0_43, %c0_44, %c0_45] : memref<1x32x32xbf16, #tpu.memory_space<vmem>>, vector<1x32x32xbf16>
    %102 = vector.shape_cast %101 : vector<1x32x32xbf16> to vector<32x32xbf16>
    %c0_46 = arith.constant 0 : index
    %c0_47 = arith.constant 0 : index
    %c0_48 = arith.constant 0 : index
    %103 = vector.load %arg9[%c0_46, %c0_47, %c0_48] : memref<1x1x32xf32, #tpu.memory_space<vmem>>, vector<1x1x32xf32>
    %104 = vector.shape_cast %103 : vector<1x1x32xf32> to vector<1x32xf32>
    %cst_49 = arith.constant dense<0.000000e+00> : vector<32x32xf32>
    %105 = tpu.matmul %100, %102, %cst_49 {dimension_numbers = #tpu.dot_dimension_numbers<[1], [0], [0], [1], [0, 0, 1, 1], [], []>} : vector<32x32xbf16>, vector<32x32xbf16>, vector<32x32xf32> -> vector<32x32xf32>
    %106 = vector.broadcast %104 : vector<1x32xf32> to vector<32x32xf32>
    %107 = arith.addf %105, %106 : vector<32x32xf32>
    %108 = arith.addf %107, %3 : vector<32x32xf32>
    %c0_50 = arith.constant 0 : index
    %c0_51 = arith.constant 0 : index
    %c0_52 = arith.constant 0 : index
    %109 = vector.load %arg10[%c0_50, %c0_51, %c0_52] : memref<1x1x32xf32, #tpu.memory_space<vmem>>, vector<1x1x32xf32>
    %110 = vector.shape_cast %109 : vector<1x1x32xf32> to vector<1x32xf32>
    %c0_53 = arith.constant 0 : index
    %c0_54 = arith.constant 0 : index
    %c0_55 = arith.constant 0 : index
    %111 = vector.load %arg11[%c0_53, %c0_54, %c0_55] : memref<1x1x32xf32, #tpu.memory_space<vmem>>, vector<1x1x32xf32>
    %112 = vector.shape_cast %111 : vector<1x1x32xf32> to vector<1x32xf32>
    %cst_56 = arith.constant dense<0.000000e+00> : vector<32xf32>
    %113 = vector.multi_reduction <add>, %108, %cst_56 [1] : vector<32x32xf32> to vector<32xf32>
    %114 = vector.shape_cast %113 : vector<32xf32> to vector<32x1xf32>
    %cst_57 = arith.constant 3.200000e+01 : f32
    %115 = vector.broadcast %cst_57 : f32 to vector<32x1xf32>
    %116 = arith.divf %114, %115 : vector<32x1xf32>
    %117 = vector.broadcast %116 : vector<32x1xf32> to vector<32x32xf32>
    %118 = arith.subf %108, %117 : vector<32x32xf32>
    %119 = arith.mulf %118, %118 : vector<32x32xf32>
    %cst_58 = arith.constant dense<0.000000e+00> : vector<32xf32>
    %120 = vector.multi_reduction <add>, %119, %cst_58 [1] : vector<32x32xf32> to vector<32xf32>
    %121 = vector.shape_cast %120 : vector<32xf32> to vector<32x1xf32>
    %cst_59 = arith.constant 3.200000e+01 : f32
    %122 = vector.broadcast %cst_59 : f32 to vector<32x1xf32>
    %123 = arith.divf %121, %122 : vector<32x1xf32>
    %124 = vector.broadcast %116 : vector<32x1xf32> to vector<32x32xf32>
    %125 = arith.subf %108, %124 : vector<32x32xf32>
    %cst_60 = arith.constant 9.99999996E-13 : f32
    %126 = vector.broadcast %cst_60 : f32 to vector<32x1xf32>
    %127 = arith.addf %123, %126 : vector<32x1xf32>
    %128 = math.rsqrt %127 : vector<32x1xf32>
    %129 = vector.broadcast %128 : vector<32x1xf32> to vector<32x32xf32>
    %130 = arith.mulf %125, %129 : vector<32x32xf32>
    %131 = vector.broadcast %110 : vector<1x32xf32> to vector<32x32xf32>
    %132 = arith.mulf %130, %131 : vector<32x32xf32>
    %133 = vector.broadcast %112 : vector<1x32xf32> to vector<32x32xf32>
    %134 = arith.addf %132, %133 : vector<32x32xf32>
    %c0_61 = arith.constant 0 : index
    %c0_62 = arith.constant 0 : index
    %c0_63 = arith.constant 0 : index
    %135 = vector.load %arg12[%c0_61, %c0_62, %c0_63] : memref<1x32x32xbf16, #tpu.memory_space<vmem>>, vector<1x32x32xbf16>
    %136 = vector.shape_cast %135 : vector<1x32x32xbf16> to vector<32x32xbf16>
    %c0_64 = arith.constant 0 : index
    %c0_65 = arith.constant 0 : index
    %c0_66 = arith.constant 0 : index
    %137 = vector.load %arg13[%c0_64, %c0_65, %c0_66] : memref<1x1x32xf32, #tpu.memory_space<vmem>>, vector<1x1x32xf32>
    %138 = vector.shape_cast %137 : vector<1x1x32xf32> to vector<1x32xf32>
    %139 = arith.truncf %134 : vector<32x32xf32> to vector<32x32xbf16>
    %cst_67 = arith.constant dense<0.000000e+00> : vector<32x32xf32>
    %140 = tpu.matmul %139, %136, %cst_67 {dimension_numbers = #tpu.dot_dimension_numbers<[1], [0], [0], [1], [0, 0, 1, 1], [], []>} : vector<32x32xbf16>, vector<32x32xbf16>, vector<32x32xf32> -> vector<32x32xf32>
    %141 = vector.broadcast %138 : vector<1x32xf32> to vector<32x32xf32>
    %142 = arith.addf %140, %141 : vector<32x32xf32>
    %143 = vector.shape_cast %142 : vector<32x32xf32> to vector<4x8x32xf32>
    %144 = arith.truncf %143 : vector<4x8x32xf32> to vector<4x8x32xbf16>
    %c0_68 = arith.constant 0 : index
    %c0_69 = arith.constant 0 : index
    %145 = vector.load %arg2[%c0_68, %c0_69] : memref<20x32xbf16, #tpu.memory_space<vmem>>, vector<20x32xbf16>
    %c0_70 = arith.constant 0 : index
    %c0_71 = arith.constant 0 : index
    %c0_72 = arith.constant 0 : index
    %146 = vector.load %arg14[%c0_70, %c0_71, %c0_72] : memref<1x32x64xbf16, #tpu.memory_space<vmem>>, vector<1x32x64xbf16>
    %147 = vector.shape_cast %146 : vector<1x32x64xbf16> to vector<32x64xbf16>
    %c0_73 = arith.constant 0 : index
    %c0_74 = arith.constant 0 : index
    %c0_75 = arith.constant 0 : index
    %148 = vector.load %arg15[%c0_73, %c0_74, %c0_75] : memref<1x1x64xf32, #tpu.memory_space<vmem>>, vector<1x1x64xf32>
    %149 = vector.shape_cast %148 : vector<1x1x64xf32> to vector<1x64xf32>
    %cst_76 = arith.constant dense<0.000000e+00> : vector<20x64xf32>
    %150 = tpu.matmul %145, %147, %cst_76 {dimension_numbers = #tpu.dot_dimension_numbers<[1], [0], [0], [1], [0, 0, 1, 1], [], []>} : vector<20x32xbf16>, vector<32x64xbf16>, vector<20x64xf32> -> vector<20x64xf32>
    %151 = vector.broadcast %149 : vector<1x64xf32> to vector<20x64xf32>
    %152 = arith.addf %150, %151 : vector<20x64xf32>
    %153 = vector.shape_cast %152 : vector<20x64xf32> to vector<4x5x64xf32>
    %154 = arith.truncf %153 : vector<4x5x64xf32> to vector<4x5x64xbf16>
    %155 = vector.extract_strided_slice %144 {offsets = [0, 0, 0], sizes = [4, 8, 8], strides = [1, 1, 1]} : vector<4x8x32xbf16> to vector<4x8x8xbf16>
    %156 = vector.extract_strided_slice %154 {offsets = [0, 0, 0], sizes = [4, 5, 8], strides = [1, 1, 1]} : vector<4x5x64xbf16> to vector<4x5x8xbf16>
    %157 = vector.extract_strided_slice %154 {offsets = [0, 0, 32], sizes = [4, 5, 8], strides = [1, 1, 1]} : vector<4x5x64xbf16> to vector<4x5x8xbf16>
    "tpu.trace_start"() <{level = 10 : i32, message = "bqd,bkd->bqk"}> : () -> ()
    %cst_77 = arith.constant dense<0.000000e+00> : vector<4x8x5xf32>
    %158 = tpu.matmul %155, %156, %cst_77 {dimension_numbers = #tpu.dot_dimension_numbers<[2], [2], [1], [1], [0, 0, 0, 1, 1, 1], [0], [0]>} : vector<4x8x8xbf16>, vector<4x5x8xbf16>, vector<4x8x5xf32> -> vector<4x8x5xf32>
    "tpu.trace_stop"() : () -> ()
    %cst_78 = arith.constant 0.353553385 : f32
    %159 = vector.broadcast %cst_78 : f32 to vector<4x8x5xf32>
    %160 = arith.mulf %158, %159 : vector<4x8x5xf32>
    %cst_79 = arith.constant dense<0xFF800000> : vector<4x8xf32>
    %161 = vector.multi_reduction <maximumf>, %160, %cst_79 [2] : vector<4x8x5xf32> to vector<4x8xf32>
    %162 = vector.shape_cast %161 : vector<4x8xf32> to vector<4x8x1xf32>
    %163 = vector.broadcast %162 : vector<4x8x1xf32> to vector<4x8x5xf32>
    %164 = arith.subf %160, %163 : vector<4x8x5xf32>
    %165 = math.exp %164 : vector<4x8x5xf32>
    %cst_80 = arith.constant dense<0.000000e+00> : vector<4x8xf32>
    %166 = vector.multi_reduction <add>, %165, %cst_80 [2] : vector<4x8x5xf32> to vector<4x8xf32>
    %167 = vector.shape_cast %166 : vector<4x8xf32> to vector<4x8x1xf32>
    %168 = tpu.reciprocal %167 {approx = true} : vector<4x8x1xf32> -> vector<4x8x1xf32>
    %169 = vector.broadcast %168 : vector<4x8x1xf32> to vector<4x8x5xf32>
    %170 = arith.mulf %165, %169 : vector<4x8x5xf32>
    %171 = arith.truncf %170 : vector<4x8x5xf32> to vector<4x8x5xbf16>
    "tpu.trace_start"() <{level = 10 : i32, message = "bqk,bkd->bqd"}> : () -> ()
    %cst_81 = arith.constant dense<0.000000e+00> : vector<4x8x8xf32>
    %172 = tpu.matmul %171, %157, %cst_81 {dimension_numbers = #tpu.dot_dimension_numbers<[2], [1], [1], [2], [0, 0, 0, 1, 1, 2], [0], [0]>} : vector<4x8x5xbf16>, vector<4x5x8xbf16>, vector<4x8x8xf32> -> vector<4x8x8xf32>
    "tpu.trace_stop"() : () -> ()
    %173 = arith.truncf %172 : vector<4x8x8xf32> to vector<4x8x8xbf16>
    %c0_82 = arith.constant 0 : index
    %c0_83 = arith.constant 0 : index
    %c0_84 = arith.constant 0 : index
    %174 = vector.load %arg27[%c0_82, %c0_83, %c0_84] : memref<4x8x32xbf16, #tpu.memory_space<vmem>>, vector<4x8x8xbf16>
    tpu.vector_store %arg27[%c0_82, %c0_83, %c0_84], %173 {strides = array<i32>} : memref<4x8x32xbf16, #tpu.memory_space<vmem>>, vector<4x8x8xbf16>,
    %175 = vector.extract_strided_slice %144 {offsets = [0, 0, 8], sizes = [4, 8, 8], strides = [1, 1, 1]} : vector<4x8x32xbf16> to vector<4x8x8xbf16>
    %176 = vector.extract_strided_slice %154 {offsets = [0, 0, 8], sizes = [4, 5, 8], strides = [1, 1, 1]} : vector<4x5x64xbf16> to vector<4x5x8xbf16>
    %177 = vector.extract_strided_slice %154 {offsets = [0, 0, 40], sizes = [4, 5, 8], strides = [1, 1, 1]} : vector<4x5x64xbf16> to vector<4x5x8xbf16>
    "tpu.trace_start"() <{level = 10 : i32, message = "bqd,bkd->bqk"}> : () -> ()
    %cst_85 = arith.constant dense<0.000000e+00> : vector<4x8x5xf32>
    %178 = tpu.matmul %175, %176, %cst_85 {dimension_numbers = #tpu.dot_dimension_numbers<[2], [2], [1], [1], [0, 0, 0, 1, 1, 1], [0], [0]>} : vector<4x8x8xbf16>, vector<4x5x8xbf16>, vector<4x8x5xf32> -> vector<4x8x5xf32>
    "tpu.trace_stop"() : () -> ()
    %cst_86 = arith.constant 0.353553385 : f32
    %179 = vector.broadcast %cst_86 : f32 to vector<4x8x5xf32>
    %180 = arith.mulf %178, %179 : vector<4x8x5xf32>
    %cst_87 = arith.constant dense<0xFF800000> : vector<4x8xf32>
    %181 = vector.multi_reduction <maximumf>, %180, %cst_87 [2] : vector<4x8x5xf32> to vector<4x8xf32>
    %182 = vector.shape_cast %181 : vector<4x8xf32> to vector<4x8x1xf32>
    %183 = vector.broadcast %182 : vector<4x8x1xf32> to vector<4x8x5xf32>
    %184 = arith.subf %180, %183 : vector<4x8x5xf32>
    %185 = math.exp %184 : vector<4x8x5xf32>
    %cst_88 = arith.constant dense<0.000000e+00> : vector<4x8xf32>
    %186 = vector.multi_reduction <add>, %185, %cst_88 [2] : vector<4x8x5xf32> to vector<4x8xf32>
    %187 = vector.shape_cast %186 : vector<4x8xf32> to vector<4x8x1xf32>
    %188 = tpu.reciprocal %187 {approx = true} : vector<4x8x1xf32> -> vector<4x8x1xf32>
    %189 = vector.broadcast %188 : vector<4x8x1xf32> to vector<4x8x5xf32>
    %190 = arith.mulf %185, %189 : vector<4x8x5xf32>
    %191 = arith.truncf %190 : vector<4x8x5xf32> to vector<4x8x5xbf16>
    "tpu.trace_start"() <{level = 10 : i32, message = "bqk,bkd->bqd"}> : () -> ()
    %cst_89 = arith.constant dense<0.000000e+00> : vector<4x8x8xf32>
    %192 = tpu.matmul %191, %177, %cst_89 {dimension_numbers = #tpu.dot_dimension_numbers<[2], [1], [1], [2], [0, 0, 0, 1, 1, 2], [0], [0]>} : vector<4x8x5xbf16>, vector<4x5x8xbf16>, vector<4x8x8xf32> -> vector<4x8x8xf32>
    "tpu.trace_stop"() : () -> ()
    %193 = arith.truncf %192 : vector<4x8x8xf32> to vector<4x8x8xbf16>
    %c0_90 = arith.constant 0 : index
    %c0_91 = arith.constant 0 : index
    %c8_92 = arith.constant 8 : index
    %194 = vector.load %arg27[%c0_90, %c0_91, %c8_92] : memref<4x8x32xbf16, #tpu.memory_space<vmem>>, vector<4x8x8xbf16>
    tpu.vector_store %arg27[%c0_90, %c0_91, %c8_92], %193 {strides = array<i32>} : memref<4x8x32xbf16, #tpu.memory_space<vmem>>, vector<4x8x8xbf16>,
    %195 = vector.extract_strided_slice %144 {offsets = [0, 0, 16], sizes = [4, 8, 8], strides = [1, 1, 1]} : vector<4x8x32xbf16> to vector<4x8x8xbf16>
    %196 = vector.extract_strided_slice %154 {offsets = [0, 0, 16], sizes = [4, 5, 8], strides = [1, 1, 1]} : vector<4x5x64xbf16> to vector<4x5x8xbf16>
    %197 = vector.extract_strided_slice %154 {offsets = [0, 0, 48], sizes = [4, 5, 8], strides = [1, 1, 1]} : vector<4x5x64xbf16> to vector<4x5x8xbf16>
    "tpu.trace_start"() <{level = 10 : i32, message = "bqd,bkd->bqk"}> : () -> ()
    %cst_93 = arith.constant dense<0.000000e+00> : vector<4x8x5xf32>
    %198 = tpu.matmul %195, %196, %cst_93 {dimension_numbers = #tpu.dot_dimension_numbers<[2], [2], [1], [1], [0, 0, 0, 1, 1, 1], [0], [0]>} : vector<4x8x8xbf16>, vector<4x5x8xbf16>, vector<4x8x5xf32> -> vector<4x8x5xf32>
    "tpu.trace_stop"() : () -> ()
    %cst_94 = arith.constant 0.353553385 : f32
    %199 = vector.broadcast %cst_94 : f32 to vector<4x8x5xf32>
    %200 = arith.mulf %198, %199 : vector<4x8x5xf32>
    %cst_95 = arith.constant dense<0xFF800000> : vector<4x8xf32>
    %201 = vector.multi_reduction <maximumf>, %200, %cst_95 [2] : vector<4x8x5xf32> to vector<4x8xf32>
    %202 = vector.shape_cast %201 : vector<4x8xf32> to vector<4x8x1xf32>
    %203 = vector.broadcast %202 : vector<4x8x1xf32> to vector<4x8x5xf32>
    %204 = arith.subf %200, %203 : vector<4x8x5xf32>
    %205 = math.exp %204 : vector<4x8x5xf32>
    %cst_96 = arith.constant dense<0.000000e+00> : vector<4x8xf32>
    %206 = vector.multi_reduction <add>, %205, %cst_96 [2] : vector<4x8x5xf32> to vector<4x8xf32>
    %207 = vector.shape_cast %206 : vector<4x8xf32> to vector<4x8x1xf32>
    %208 = tpu.reciprocal %207 {approx = true} : vector<4x8x1xf32> -> vector<4x8x1xf32>
    %209 = vector.broadcast %208 : vector<4x8x1xf32> to vector<4x8x5xf32>
    %210 = arith.mulf %205, %209 : vector<4x8x5xf32>
    %211 = arith.truncf %210 : vector<4x8x5xf32> to vector<4x8x5xbf16>
    "tpu.trace_start"() <{level = 10 : i32, message = "bqk,bkd->bqd"}> : () -> ()
    %cst_97 = arith.constant dense<0.000000e+00> : vector<4x8x8xf32>
    %212 = tpu.matmul %211, %197, %cst_97 {dimension_numbers = #tpu.dot_dimension_numbers<[2], [1], [1], [2], [0, 0, 0, 1, 1, 2], [0], [0]>} : vector<4x8x5xbf16>, vector<4x5x8xbf16>, vector<4x8x8xf32> -> vector<4x8x8xf32>
    "tpu.trace_stop"() : () -> ()
    %213 = arith.truncf %212 : vector<4x8x8xf32> to vector<4x8x8xbf16>
    %c0_98 = arith.constant 0 : index
    %c0_99 = arith.constant 0 : index
    %c16_100 = arith.constant 16 : index
    %214 = vector.load %arg27[%c0_98, %c0_99, %c16_100] : memref<4x8x32xbf16, #tpu.memory_space<vmem>>, vector<4x8x8xbf16>
    tpu.vector_store %arg27[%c0_98, %c0_99, %c16_100], %213 {strides = array<i32>} : memref<4x8x32xbf16, #tpu.memory_space<vmem>>, vector<4x8x8xbf16>,
    %215 = vector.extract_strided_slice %144 {offsets = [0, 0, 24], sizes = [4, 8, 8], strides = [1, 1, 1]} : vector<4x8x32xbf16> to vector<4x8x8xbf16>
    %216 = vector.extract_strided_slice %154 {offsets = [0, 0, 24], sizes = [4, 5, 8], strides = [1, 1, 1]} : vector<4x5x64xbf16> to vector<4x5x8xbf16>
    %217 = vector.extract_strided_slice %154 {offsets = [0, 0, 56], sizes = [4, 5, 8], strides = [1, 1, 1]} : vector<4x5x64xbf16> to vector<4x5x8xbf16>
    "tpu.trace_start"() <{level = 10 : i32, message = "bqd,bkd->bqk"}> : () -> ()
    %cst_101 = arith.constant dense<0.000000e+00> : vector<4x8x5xf32>
    %218 = tpu.matmul %215, %216, %cst_101 {dimension_numbers = #tpu.dot_dimension_numbers<[2], [2], [1], [1], [0, 0, 0, 1, 1, 1], [0], [0]>} : vector<4x8x8xbf16>, vector<4x5x8xbf16>, vector<4x8x5xf32> -> vector<4x8x5xf32>
    "tpu.trace_stop"() : () -> ()
    %cst_102 = arith.constant 0.353553385 : f32
    %219 = vector.broadcast %cst_102 : f32 to vector<4x8x5xf32>
    %220 = arith.mulf %218, %219 : vector<4x8x5xf32>
    %cst_103 = arith.constant dense<0xFF800000> : vector<4x8xf32>
    %221 = vector.multi_reduction <maximumf>, %220, %cst_103 [2] : vector<4x8x5xf32> to vector<4x8xf32>
    %222 = vector.shape_cast %221 : vector<4x8xf32> to vector<4x8x1xf32>
    %223 = vector.broadcast %222 : vector<4x8x1xf32> to vector<4x8x5xf32>
    %224 = arith.subf %220, %223 : vector<4x8x5xf32>
    %225 = math.exp %224 : vector<4x8x5xf32>
    %cst_104 = arith.constant dense<0.000000e+00> : vector<4x8xf32>
    %226 = vector.multi_reduction <add>, %225, %cst_104 [2] : vector<4x8x5xf32> to vector<4x8xf32>
    %227 = vector.shape_cast %226 : vector<4x8xf32> to vector<4x8x1xf32>
    %228 = tpu.reciprocal %227 {approx = true} : vector<4x8x1xf32> -> vector<4x8x1xf32>
    %229 = vector.broadcast %228 : vector<4x8x1xf32> to vector<4x8x5xf32>
    %230 = arith.mulf %225, %229 : vector<4x8x5xf32>
    %231 = arith.truncf %230 : vector<4x8x5xf32> to vector<4x8x5xbf16>
    "tpu.trace_start"() <{level = 10 : i32, message = "bqk,bkd->bqd"}> : () -> ()
    %cst_105 = arith.constant dense<0.000000e+00> : vector<4x8x8xf32>
    %232 = tpu.matmul %231, %217, %cst_105 {dimension_numbers = #tpu.dot_dimension_numbers<[2], [1], [1], [2], [0, 0, 0, 1, 1, 2], [0], [0]>} : vector<4x8x5xbf16>, vector<4x5x8xbf16>, vector<4x8x8xf32> -> vector<4x8x8xf32>
    "tpu.trace_stop"() : () -> ()
    %233 = arith.truncf %232 : vector<4x8x8xf32> to vector<4x8x8xbf16>
    %c0_106 = arith.constant 0 : index
    %c0_107 = arith.constant 0 : index
    %c24_108 = arith.constant 24 : index
    %234 = vector.load %arg27[%c0_106, %c0_107, %c24_108] : memref<4x8x32xbf16, #tpu.memory_space<vmem>>, vector<4x8x8xbf16>
    tpu.vector_store %arg27[%c0_106, %c0_107, %c24_108], %233 {strides = array<i32>} : memref<4x8x32xbf16, #tpu.memory_space<vmem>>, vector<4x8x8xbf16>,
    %c0_109 = arith.constant 0 : index
    %c0_110 = arith.constant 0 : index
    %c0_111 = arith.constant 0 : index
    %235 = vector.load %arg27[%c0_109, %c0_110, %c0_111] : memref<4x8x32xbf16, #tpu.memory_space<vmem>>, vector<4x8x32xbf16>
    %236 = vector.shape_cast %235 : vector<4x8x32xbf16> to vector<32x32xbf16>
    %c0_112 = arith.constant 0 : index
    %c0_113 = arith.constant 0 : index
    %c0_114 = arith.constant 0 : index
    %237 = vector.load %arg16[%c0_112, %c0_113, %c0_114] : memref<1x32x32xbf16, #tpu.memory_space<vmem>>, vector<1x32x32xbf16>
    %238 = vector.shape_cast %237 : vector<1x32x32xbf16> to vector<32x32xbf16>
    %c0_115 = arith.constant 0 : index
    %c0_116 = arith.constant 0 : index
    %c0_117 = arith.constant 0 : index
    %239 = vector.load %arg17[%c0_115, %c0_116, %c0_117] : memref<1x1x32xf32, #tpu.memory_space<vmem>>, vector<1x1x32xf32>
    %240 = vector.shape_cast %239 : vector<1x1x32xf32> to vector<1x32xf32>
    %cst_118 = arith.constant dense<0.000000e+00> : vector<32x32xf32>
    %241 = tpu.matmul %236, %238, %cst_118 {dimension_numbers = #tpu.dot_dimension_numbers<[1], [0], [0], [1], [0, 0, 1, 1], [], []>} : vector<32x32xbf16>, vector<32x32xbf16>, vector<32x32xf32> -> vector<32x32xf32>
    %242 = vector.broadcast %240 : vector<1x32xf32> to vector<32x32xf32>
    %243 = arith.addf %241, %242 : vector<32x32xf32>
    %244 = arith.addf %243, %134 : vector<32x32xf32>
    %c0_119 = arith.constant 0 : index
    %c0_120 = arith.constant 0 : index
    %c0_121 = arith.constant 0 : index
    %245 = vector.load %arg18[%c0_119, %c0_120, %c0_121] : memref<1x1x32xf32, #tpu.memory_space<vmem>>, vector<1x1x32xf32>
    %246 = vector.shape_cast %245 : vector<1x1x32xf32> to vector<1x32xf32>
    %c0_122 = arith.constant 0 : index
    %c0_123 = arith.constant 0 : index
    %c0_124 = arith.constant 0 : index
    %247 = vector.load %arg19[%c0_122, %c0_123, %c0_124] : memref<1x1x32xf32, #tpu.memory_space<vmem>>, vector<1x1x32xf32>
    %248 = vector.shape_cast %247 : vector<1x1x32xf32> to vector<1x32xf32>
    %cst_125 = arith.constant dense<0.000000e+00> : vector<32xf32>
    %249 = vector.multi_reduction <add>, %244, %cst_125 [1] : vector<32x32xf32> to vector<32xf32>
    %250 = vector.shape_cast %249 : vector<32xf32> to vector<32x1xf32>
    %cst_126 = arith.constant 3.200000e+01 : f32
    %251 = vector.broadcast %cst_126 : f32 to vector<32x1xf32>
    %252 = arith.divf %250, %251 : vector<32x1xf32>
    %253 = vector.broadcast %252 : vector<32x1xf32> to vector<32x32xf32>
    %254 = arith.subf %244, %253 : vector<32x32xf32>
    %255 = arith.mulf %254, %254 : vector<32x32xf32>
    %cst_127 = arith.constant dense<0.000000e+00> : vector<32xf32>
    %256 = vector.multi_reduction <add>, %255, %cst_127 [1] : vector<32x32xf32> to vector<32xf32>
    %257 = vector.shape_cast %256 : vector<32xf32> to vector<32x1xf32>
    %cst_128 = arith.constant 3.200000e+01 : f32
    %258 = vector.broadcast %cst_128 : f32 to vector<32x1xf32>
    %259 = arith.divf %257, %258 : vector<32x1xf32>
    %260 = vector.broadcast %252 : vector<32x1xf32> to vector<32x32xf32>
    %261 = arith.subf %244, %260 : vector<32x32xf32>
    %cst_129 = arith.constant 9.99999996E-13 : f32
    %262 = vector.broadcast %cst_129 : f32 to vector<32x1xf32>
    %263 = arith.addf %259, %262 : vector<32x1xf32>
    %264 = math.rsqrt %263 : vector<32x1xf32>
    %265 = vector.broadcast %264 : vector<32x1xf32> to vector<32x32xf32>
    %266 = arith.mulf %261, %265 : vector<32x32xf32>
    %267 = vector.broadcast %246 : vector<1x32xf32> to vector<32x32xf32>
    %268 = arith.mulf %266, %267 : vector<32x32xf32>
    %269 = vector.broadcast %248 : vector<1x32xf32> to vector<32x32xf32>
    %270 = arith.addf %268, %269 : vector<32x32xf32>
    %c0_130 = arith.constant 0 : index
    %c0_131 = arith.constant 0 : index
    %c0_132 = arith.constant 0 : index
    %271 = vector.load %arg20[%c0_130, %c0_131, %c0_132] : memref<1x32x64xbf16, #tpu.memory_space<vmem>>, vector<1x32x64xbf16>
    %272 = vector.shape_cast %271 : vector<1x32x64xbf16> to vector<32x64xbf16>
    %c0_133 = arith.constant 0 : index
    %c0_134 = arith.constant 0 : index
    %c0_135 = arith.constant 0 : index
    %273 = vector.load %arg21[%c0_133, %c0_134, %c0_135] : memref<1x1x64xf32, #tpu.memory_space<vmem>>, vector<1x1x64xf32>
    %274 = vector.shape_cast %273 : vector<1x1x64xf32> to vector<1x64xf32>
    %275 = arith.truncf %270 : vector<32x32xf32> to vector<32x32xbf16>
    %cst_136 = arith.constant dense<0.000000e+00> : vector<32x64xf32>
    %276 = tpu.matmul %275, %272, %cst_136 {dimension_numbers = #tpu.dot_dimension_numbers<[1], [0], [0], [1], [0, 0, 1, 1], [], []>} : vector<32x32xbf16>, vector<32x64xbf16>, vector<32x64xf32> -> vector<32x64xf32>
    %277 = vector.broadcast %274 : vector<1x64xf32> to vector<32x64xf32>
    %278 = arith.addf %276, %277 : vector<32x64xf32>
    %279 = arith.mulf %278, %278 : vector<32x64xf32>
    %280 = arith.mulf %278, %279 : vector<32x64xf32>
    %cst_137 = arith.constant 4.471500e-02 : f32
    %281 = vector.broadcast %cst_137 : f32 to vector<32x64xf32>
    %282 = arith.mulf %281, %280 : vector<32x64xf32>
    %283 = arith.addf %278, %282 : vector<32x64xf32>
    %cst_138 = arith.constant 0.797884583 : f32
    %284 = vector.broadcast %cst_138 : f32 to vector<32x64xf32>
    %285 = arith.mulf %284, %283 : vector<32x64xf32>
    %286 = math.tanh %285 : vector<32x64xf32>
    %cst_139 = arith.constant 1.000000e+00 : f32
    %287 = vector.broadcast %cst_139 : f32 to vector<32x64xf32>
    %288 = arith.addf %287, %286 : vector<32x64xf32>
    %cst_140 = arith.constant 5.000000e-01 : f32
    %289 = vector.broadcast %cst_140 : f32 to vector<32x64xf32>
    %290 = arith.mulf %289, %288 : vector<32x64xf32>
    %291 = arith.mulf %278, %290 : vector<32x64xf32>
    %c0_141 = arith.constant 0 : index
    %c0_142 = arith.constant 0 : index
    %c0_143 = arith.constant 0 : index
    %292 = vector.load %arg22[%c0_141, %c0_142, %c0_143] : memref<1x64x32xbf16, #tpu.memory_space<vmem>>, vector<1x64x32xbf16>
    %293 = vector.shape_cast %292 : vector<1x64x32xbf16> to vector<64x32xbf16>
    %c0_144 = arith.constant 0 : index
    %c0_145 = arith.constant 0 : index
    %c0_146 = arith.constant 0 : index
    %294 = vector.load %arg23[%c0_144, %c0_145, %c0_146] : memref<1x1x32xf32, #tpu.memory_space<vmem>>, vector<1x1x32xf32>
    %295 = vector.shape_cast %294 : vector<1x1x32xf32> to vector<1x32xf32>
    %296 = arith.truncf %291 : vector<32x64xf32> to vector<32x64xbf16>
    %cst_147 = arith.constant dense<0.000000e+00> : vector<32x32xf32>
    %297 = tpu.matmul %296, %293, %cst_147 {dimension_numbers = #tpu.dot_dimension_numbers<[1], [0], [0], [1], [0, 0, 1, 1], [], []>} : vector<32x64xbf16>, vector<64x32xbf16>, vector<32x32xf32> -> vector<32x32xf32>
    %298 = vector.broadcast %295 : vector<1x32xf32> to vector<32x32xf32>
    %299 = arith.addf %297, %298 : vector<32x32xf32>
    %300 = arith.addf %299, %270 : vector<32x32xf32>
    %c0_148 = arith.constant 0 : index
    %c0_149 = arith.constant 0 : index
    %c0_150 = arith.constant 0 : index
    %301 = vector.load %arg24[%c0_148, %c0_149, %c0_150] : memref<1x1x32xf32, #tpu.memory_space<vmem>>, vector<1x1x32xf32>
    %302 = vector.shape_cast %301 : vector<1x1x32xf32> to vector<1x32xf32>
    %c0_151 = arith.constant 0 : index
    %c0_152 = arith.constant 0 : index
    %c0_153 = arith.constant 0 : index
    %303 = vector.load %arg25[%c0_151, %c0_152, %c0_153] : memref<1x1x32xf32, #tpu.memory_space<vmem>>, vector<1x1x32xf32>
    %304 = vector.shape_cast %303 : vector<1x1x32xf32> to vector<1x32xf32>
    %cst_154 = arith.constant dense<0.000000e+00> : vector<32xf32>
    %305 = vector.multi_reduction <add>, %300, %cst_154 [1] : vector<32x32xf32> to vector<32xf32>
    %306 = vector.shape_cast %305 : vector<32xf32> to vector<32x1xf32>
    %cst_155 = arith.constant 3.200000e+01 : f32
    %307 = vector.broadcast %cst_155 : f32 to vector<32x1xf32>
    %308 = arith.divf %306, %307 : vector<32x1xf32>
    %309 = vector.broadcast %308 : vector<32x1xf32> to vector<32x32xf32>
    %310 = arith.subf %300, %309 : vector<32x32xf32>
    %311 = arith.mulf %310, %310 : vector<32x32xf32>
    %cst_156 = arith.constant dense<0.000000e+00> : vector<32xf32>
    %312 = vector.multi_reduction <add>, %311, %cst_156 [1] : vector<32x32xf32> to vector<32xf32>
    %313 = vector.shape_cast %312 : vector<32xf32> to vector<32x1xf32>
    %cst_157 = arith.constant 3.200000e+01 : f32
    %314 = vector.broadcast %cst_157 : f32 to vector<32x1xf32>
    %315 = arith.divf %313, %314 : vector<32x1xf32>
    %316 = vector.broadcast %308 : vector<32x1xf32> to vector<32x32xf32>
    %317 = arith.subf %300, %316 : vector<32x32xf32>
    %cst_158 = arith.constant 9.99999996E-13 : f32
    %318 = vector.broadcast %cst_158 : f32 to vector<32x1xf32>
    %319 = arith.addf %315, %318 : vector<32x1xf32>
    %320 = math.rsqrt %319 : vector<32x1xf32>
    %321 = vector.broadcast %320 : vector<32x1xf32> to vector<32x32xf32>
    %322 = arith.mulf %317, %321 : vector<32x32xf32>
    %323 = vector.broadcast %302 : vector<1x32xf32> to vector<32x32xf32>
    %324 = arith.mulf %322, %323 : vector<32x32xf32>
    %325 = vector.broadcast %304 : vector<1x32xf32> to vector<32x32xf32>
    %326 = arith.addf %324, %325 : vector<32x32xf32>
    %c0_159 = arith.constant 0 : index
    %c0_160 = arith.constant 0 : index
    %327 = vector.load %arg26[%c0_159, %c0_160] : memref<32x32xf32, #tpu.memory_space<vmem>>, vector<32x32xf32>
    tpu.vector_store %arg26[%c0_159, %c0_160], %326 {strides = array<i32>} : memref<32x32xf32, #tpu.memory_space<vmem>>, vector<32x32xf32>,
    return
  }
  func.func @transform_1(%arg0: i32) -> (i32, i32) {
    %c0_i32 = arith.constant 0 : i32
    %c0_i32_0 = arith.constant 0 : i32
    %c0_i32_1 = arith.constant 0 : i32
    return %c0_i32, %c0_i32_0 : i32, i32
  }
  func.func @transform_2(%arg0: i32) -> (i32, i32, i32) {
    %c0_i32 = arith.constant 0 : i32
    %c0_i32_0 = arith.constant 0 : i32
    %c0_i32_1 = arith.constant 0 : i32
    %c0_i32_2 = arith.constant 0 : i32
    return %c0_i32, %c0_i32_0, %c0_i32_1 : i32, i32, i32
  }
  func.func @transform_3(%arg0: i32) -> (i32, i32) {
    %c0_i32 = arith.constant 0 : i32
    %c0_i32_0 = arith.constant 0 : i32
    %c0_i32_1 = arith.constant 0 : i32
    return %c0_i32, %c0_i32_0 : i32, i32
  }
  func.func @transform_4(%arg0: i32) -> (i32, i32) {
    %c0_i32 = arith.constant 0 : i32
    %c0_i32_0 = arith.constant 0 : i32
    %c0_i32_1 = arith.constant 0 : i32
    return %c0_i32, %c0_i32_0 : i32, i32
  }
  func.func @transform_5(%arg0: i32) -> (i32, i32, i32) {
    %c0_i32 = arith.constant 0 : i32
    %c0_i32_0 = arith.constant 0 : i32
    %c0_i32_1 = arith.constant 0 : i32
    return %arg0, %c0_i32, %c0_i32_0 : i32, i32, i32
  }
  func.func @transform_6(%arg0: i32) -> (i32, i32, i32) {
    %c0_i32 = arith.constant 0 : i32
    %c0_i32_0 = arith.constant 0 : i32
    %c0_i32_1 = arith.constant 0 : i32
    return %arg0, %c0_i32, %c0_i32_0 : i32, i32, i32
  }
  func.func @transform_7(%arg0: i32) -> (i32, i32, i32) {
    %c0_i32 = arith.constant 0 : i32
    %c0_i32_0 = arith.constant 0 : i32
    %c0_i32_1 = arith.constant 0 : i32
    return %arg0, %c0_i32, %c0_i32_0 : i32, i32, i32
  }
  func.func @transform_8(%arg0: i32) -> (i32, i32, i32) {
    %c0_i32 = arith.constant 0 : i32
    %c0_i32_0 = arith.constant 0 : i32
    %c0_i32_1 = arith.constant 0 : i32
    return %arg0, %c0_i32, %c0_i32_0 : i32, i32, i32
  }
  func.func @transform_9(%arg0: i32) -> (i32, i32, i32) {
    %c0_i32 = arith.constant 0 : i32
    %c0_i32_0 = arith.constant 0 : i32
    %c0_i32_1 = arith.constant 0 : i32
    return %arg0, %c0_i32, %c0_i32_0 : i32, i32, i32
  }
  func.func @transform_10(%arg0: i32) -> (i32, i32, i32) {
    %c0_i32 = arith.constant 0 : i32
    %c0_i32_0 = arith.constant 0 : i32
    %c0_i32_1 = arith.constant 0 : i32
    return %arg0, %c0_i32, %c0_i32_0 : i32, i32, i32
  }
  func.func @transform_11(%arg0: i32) -> (i32, i32, i32) {
    %c0_i32 = arith.constant 0 : i32
    %c0_i32_0 = arith.constant 0 : i32
    %c0_i32_1 = arith.constant 0 : i32
    return %arg0, %c0_i32, %c0_i32_0 : i32, i32, i32
  }
  func.func @transform_12(%arg0: i32) -> (i32, i32, i32) {
    %c0_i32 = arith.constant 0 : i32
    %c0_i32_0 = arith.constant 0 : i32
    %c0_i32_1 = arith.constant 0 : i32
    return %arg0, %c0_i32, %c0_i32_0 : i32, i32, i32
  }
  func.func @transform_13(%arg0: i32) -> (i32, i32, i32) {
    %c0_i32 = arith.constant 0 : i32
    %c0_i32_0 = arith.constant 0 : i32
    %c0_i32_1 = arith.constant 0 : i32
    return %arg0, %c0_i32, %c0_i32_0 : i32, i32, i32
  }
  func.func @transform_14(%arg0: i32) -> (i32, i32, i32) {
    %c0_i32 = arith.constant 0 : i32
    %c0_i32_0 = arith.constant 0 : i32
    %c0_i32_1 = arith.constant 0 : i32
    return %arg0, %c0_i32, %c0_i32_0 : i32, i32, i32
  }
  func.func @transform_15(%arg0: i32) -> (i32, i32, i32) {
    %c0_i32 = arith.constant 0 : i32
    %c0_i32_0 = arith.constant 0 : i32
    %c0_i32_1 = arith.constant 0 : i32
    return %arg0, %c0_i32, %c0_i32_0 : i32, i32, i32
  }
  func.func @transform_16(%arg0: i32) -> (i32, i32, i32) {
    %c0_i32 = arith.constant 0 : i32
    %c0_i32_0 = arith.constant 0 : i32
    %c0_i32_1 = arith.constant 0 : i32
    return %arg0, %c0_i32, %c0_i32_0 : i32, i32, i32
  }
  func.func @transform_17(%arg0: i32) -> (i32, i32, i32) {
    %c0_i32 = arith.constant 0 : i32
    %c0_i32_0 = arith.constant 0 : i32
    %c0_i32_1 = arith.constant 0 : i32
    return %arg0, %c0_i32, %c0_i32_0 : i32, i32, i32
  }
  func.func @transform_18(%arg0: i32) -> (i32, i32, i32) {
    %c0_i32 = arith.constant 0 : i32
    %c0_i32_0 = arith.constant 0 : i32
    %c0_i32_1 = arith.constant 0 : i32
    return %arg0, %c0_i32, %c0_i32_0 : i32, i32, i32
  }
  func.func @transform_19(%arg0: i32) -> (i32, i32, i32) {
    %c0_i32 = arith.constant 0 : i32
    %c0_i32_0 = arith.constant 0 : i32
    %c0_i32_1 = arith.constant 0 : i32
    return %arg0, %c0_i32, %c0_i32_0 : i32, i32, i32
  }
  func.func @transform_20(%arg0: i32) -> (i32, i32, i32) {
    %c0_i32 = arith.constant 0 : i32
    %c0_i32_0 = arith.constant 0 : i32
    %c0_i32_1 = arith.constant 0 : i32
    return %arg0, %c0_i32, %c0_i32_0 : i32, i32, i32
  }
  func.func @transform_21(%arg0: i32) -> (i32, i32, i32) {
    %c0_i32 = arith.constant 0 : i32
    %c0_i32_0 = arith.constant 0 : i32
    %c0_i32_1 = arith.constant 0 : i32
    return %arg0, %c0_i32, %c0_i32_0 : i32, i32, i32
  }
  func.func @transform_22(%arg0: i32) -> (i32, i32, i32) {
    %c0_i32 = arith.constant 0 : i32
    %c0_i32_0 = arith.constant 0 : i32
    %c0_i32_1 = arith.constant 0 : i32
    return %arg0, %c0_i32, %c0_i32_0 : i32, i32, i32
  }
  func.func @transform_23(%arg0: i32) -> (i32, i32, i32) {
    %c0_i32 = arith.constant 0 : i32
    %c0_i32_0 = arith.constant 0 : i32
    %c0_i32_1 = arith.constant 0 : i32
    return %arg0, %c0_i32, %c0_i32_0 : i32, i32, i32
  }
  func.func @transform_24(%arg0: i32) -> (i32, i32, i32) {
    %c0_i32 = arith.constant 0 : i32
    %c0_i32_0 = arith.constant 0 : i32
    %c0_i32_1 = arith.constant 0 : i32
    return %arg0, %c0_i32, %c0_i32_0 : i32, i32, i32
  }
  func.func @transform_25(%arg0: i32) -> (i32, i32) {
    %c0_i32 = arith.constant 0 : i32
    %c0_i32_0 = arith.constant 0 : i32
    %c0_i32_1 = arith.constant 0 : i32
    return %c0_i32, %c0_i32_0 : i32, i32
  }
}

module attributes {stable_mosaic.version = 11 : i64} {
  func.func @_lm_head_consensus_kernel(%arg0: i32, %arg1: i32, %arg2: memref<1x16x32xbf16, #tpu.memory_space<vmem>>, %arg3: memref<32x32xbf16, #tpu.memory_space<vmem>>, %arg4: memref<1x32xf32, #tpu.memory_space<vmem>>, %arg5: memref<1x32xf32, #tpu.memory_space<vmem>>, %arg6: memref<1x32xf32, #tpu.memory_space<vmem>>, %arg7: memref<32x128xbf16, #tpu.memory_space<vmem>>, %arg8: memref<1x128xf32, #tpu.memory_space<vmem>>, %arg9: memref<16x128xf32, #tpu.memory_space<vmem>>) attributes {dimension_semantics = [#tpu.dimension_semantics<parallel>, #tpu.dimension_semantics<arbitrary>], iteration_bounds = array<i64: 1, 2>, scalar_prefetch = 0 : i64, scratch_operands = 0 : i64, tpu.core_type = #tpu.core_type<tc>, window_params = [{transform_indices = @transform_0, window_bounds = array<i64: 1, 16, 32>}, {pipeline_mode = #tpu.pipeline_mode<synchronous>, transform_indices = @transform_1, window_bounds = array<i64: 32, 32>}, {pipeline_mode = #tpu.pipeline_mode<synchronous>, transform_indices = @transform_2, window_bounds = array<i64: 1, 32>}, {pipeline_mode = #tpu.pipeline_mode<synchronous>, transform_indices = @transform_3, window_bounds = array<i64: 1, 32>}, {pipeline_mode = #tpu.pipeline_mode<synchronous>, transform_indices = @transform_4, window_bounds = array<i64: 1, 32>}, {pipeline_mode = #tpu.pipeline_mode<synchronous>, transform_indices = @transform_5, window_bounds = array<i64: 32, 128>}, {pipeline_mode = #tpu.pipeline_mode<synchronous>, transform_indices = @transform_6, window_bounds = array<i64: 1, 128>}, {transform_indices = @transform_7, window_bounds = array<i64: 16, 128>}]} {
    %c0 = arith.constant 0 : index
    %c0_0 = arith.constant 0 : index
    %c0_1 = arith.constant 0 : index
    %0 = vector.load %arg2[%c0, %c0_0, %c0_1] : memref<1x16x32xbf16, #tpu.memory_space<vmem>>, vector<1x16x32xbf16>
    %1 = vector.shape_cast %0 : vector<1x16x32xbf16> to vector<16x32xbf16>
    %c0_2 = arith.constant 0 : index
    %c0_3 = arith.constant 0 : index
    %2 = vector.load %arg3[%c0_2, %c0_3] : memref<32x32xbf16, #tpu.memory_space<vmem>>, vector<32x32xbf16>
    %c0_4 = arith.constant 0 : index
    %c0_5 = arith.constant 0 : index
    %3 = vector.load %arg4[%c0_4, %c0_5] : memref<1x32xf32, #tpu.memory_space<vmem>>, vector<1x32xf32>
    %cst = arith.constant dense<0.000000e+00> : vector<16x32xf32>
    %4 = tpu.matmul %1, %2, %cst {dimension_numbers = #tpu.dot_dimension_numbers<[1], [0], [0], [1], [0, 0, 1, 1], [], []>} : vector<16x32xbf16>, vector<32x32xbf16>, vector<16x32xf32> -> vector<16x32xf32>
    %5 = vector.broadcast %3 : vector<1x32xf32> to vector<16x32xf32>
    %6 = arith.addf %4, %5 : vector<16x32xf32>
    %7 = arith.mulf %6, %6 : vector<16x32xf32>
    %8 = arith.mulf %6, %7 : vector<16x32xf32>
    %cst_6 = arith.constant 4.471500e-02 : f32
    %9 = vector.broadcast %cst_6 : f32 to vector<16x32xf32>
    %10 = arith.mulf %9, %8 : vector<16x32xf32>
    %11 = arith.addf %6, %10 : vector<16x32xf32>
    %cst_7 = arith.constant 0.797884583 : f32
    %12 = vector.broadcast %cst_7 : f32 to vector<16x32xf32>
    %13 = arith.mulf %12, %11 : vector<16x32xf32>
    %14 = math.tanh %13 : vector<16x32xf32>
    %cst_8 = arith.constant 1.000000e+00 : f32
    %15 = vector.broadcast %cst_8 : f32 to vector<16x32xf32>
    %16 = arith.addf %15, %14 : vector<16x32xf32>
    %cst_9 = arith.constant 5.000000e-01 : f32
    %17 = vector.broadcast %cst_9 : f32 to vector<16x32xf32>
    %18 = arith.mulf %17, %16 : vector<16x32xf32>
    %19 = arith.mulf %6, %18 : vector<16x32xf32>
    %c0_10 = arith.constant 0 : index
    %c0_11 = arith.constant 0 : index
    %20 = vector.load %arg5[%c0_10, %c0_11] : memref<1x32xf32, #tpu.memory_space<vmem>>, vector<1x32xf32>
    %c0_12 = arith.constant 0 : index
    %c0_13 = arith.constant 0 : index
    %21 = vector.load %arg6[%c0_12, %c0_13] : memref<1x32xf32, #tpu.memory_space<vmem>>, vector<1x32xf32>
    %cst_14 = arith.constant dense<0.000000e+00> : vector<16xf32>
    %22 = vector.multi_reduction <add>, %19, %cst_14 [1] : vector<16x32xf32> to vector<16xf32>
    %23 = vector.shape_cast %22 : vector<16xf32> to vector<16x1xf32>
    %cst_15 = arith.constant 3.200000e+01 : f32
    %24 = vector.broadcast %cst_15 : f32 to vector<16x1xf32>
    %25 = arith.divf %23, %24 : vector<16x1xf32>
    %26 = vector.broadcast %25 : vector<16x1xf32> to vector<16x32xf32>
    %27 = arith.subf %19, %26 : vector<16x32xf32>
    %28 = arith.mulf %27, %27 : vector<16x32xf32>
    %cst_16 = arith.constant dense<0.000000e+00> : vector<16xf32>
    %29 = vector.multi_reduction <add>, %28, %cst_16 [1] : vector<16x32xf32> to vector<16xf32>
    %30 = vector.shape_cast %29 : vector<16xf32> to vector<16x1xf32>
    %cst_17 = arith.constant 3.200000e+01 : f32
    %31 = vector.broadcast %cst_17 : f32 to vector<16x1xf32>
    %32 = arith.divf %30, %31 : vector<16x1xf32>
    %33 = vector.broadcast %25 : vector<16x1xf32> to vector<16x32xf32>
    %34 = arith.subf %19, %33 : vector<16x32xf32>
    %cst_18 = arith.constant 9.99999996E-13 : f32
    %35 = vector.broadcast %cst_18 : f32 to vector<16x1xf32>
    %36 = arith.addf %32, %35 : vector<16x1xf32>
    %37 = math.rsqrt %36 : vector<16x1xf32>
    %38 = vector.broadcast %37 : vector<16x1xf32> to vector<16x32xf32>
    %39 = arith.mulf %34, %38 : vector<16x32xf32>
    %40 = vector.broadcast %20 : vector<1x32xf32> to vector<16x32xf32>
    %41 = arith.mulf %39, %40 : vector<16x32xf32>
    %42 = vector.broadcast %21 : vector<1x32xf32> to vector<16x32xf32>
    %43 = arith.addf %41, %42 : vector<16x32xf32>
    %c0_19 = arith.constant 0 : index
    %c0_20 = arith.constant 0 : index
    %44 = vector.load %arg7[%c0_19, %c0_20] : memref<32x128xbf16, #tpu.memory_space<vmem>>, vector<32x128xbf16>
    %c0_21 = arith.constant 0 : index
    %c0_22 = arith.constant 0 : index
    %45 = vector.load %arg8[%c0_21, %c0_22] : memref<1x128xf32, #tpu.memory_space<vmem>>, vector<1x128xf32>
    %46 = arith.truncf %43 : vector<16x32xf32> to vector<16x32xbf16>
    %cst_23 = arith.constant dense<0.000000e+00> : vector<16x128xf32>
    %47 = tpu.matmul %46, %44, %cst_23 {dimension_numbers = #tpu.dot_dimension_numbers<[1], [0], [0], [1], [0, 0, 1, 1], [], []>} : vector<16x32xbf16>, vector<32x128xbf16>, vector<16x128xf32> -> vector<16x128xf32>
    %48 = vector.broadcast %45 : vector<1x128xf32> to vector<16x128xf32>
    %49 = arith.addf %47, %48 : vector<16x128xf32>
    %cst_24 = arith.constant dense<0xFF800000> : vector<16xf32>
    %50 = vector.multi_reduction <maximumf>, %49, %cst_24 [1] : vector<16x128xf32> to vector<16xf32>
    %51 = vector.shape_cast %50 : vector<16xf32> to vector<16x1xf32>
    %52 = vector.broadcast %51 : vector<16x1xf32> to vector<16x128xf32>
    %53 = arith.subf %49, %52 : vector<16x128xf32>
    %54 = math.exp %53 : vector<16x128xf32>
    %cst_25 = arith.constant dense<0.000000e+00> : vector<16xf32>
    %55 = vector.multi_reduction <add>, %54, %cst_25 [1] : vector<16x128xf32> to vector<16xf32>
    %56 = vector.shape_cast %55 : vector<16xf32> to vector<16x1xf32>
    %57 = math.log %56 : vector<16x1xf32>
    %58 = vector.broadcast %57 : vector<16x1xf32> to vector<16x128xf32>
    %59 = arith.subf %53, %58 : vector<16x128xf32>
    %cst_26 = arith.constant 5.000000e-01 : f32
    %60 = vector.broadcast %cst_26 : f32 to vector<16x128xf32>
    %61 = arith.mulf %59, %60 : vector<16x128xf32>
    %c0_i32 = arith.constant 0 : i32
    %62 = arith.cmpi eq, %arg1, %c0_i32 : i32
    %63 = arith.extui %62 : i1 to i32
    %c0_i32_27 = arith.constant 0 : i32
    %64 = arith.cmpi ne, %63, %c0_i32_27 : i32
    scf.if %64 {
      %c0_30 = arith.constant 0 : index
      %c0_31 = arith.constant 0 : index
      %68 = vector.load %arg9[%c0_30, %c0_31] : memref<16x128xf32, #tpu.memory_space<vmem>>, vector<16x128xf32>
      tpu.vector_store %arg9[%c0_30, %c0_31], %61 {strides = array<i32>} : memref<16x128xf32, #tpu.memory_space<vmem>>, vector<16x128xf32>,
    } else {
    }
    %c0_i32_28 = arith.constant 0 : i32
    %65 = arith.cmpi sgt, %arg1, %c0_i32_28 : i32
    %66 = arith.extui %65 : i1 to i32
    %c0_i32_29 = arith.constant 0 : i32
    %67 = arith.cmpi ne, %66, %c0_i32_29 : i32
    scf.if %67 {
      %c0_30 = arith.constant 0 : index
      %c0_31 = arith.constant 0 : index
      %68 = vector.load %arg9[%c0_30, %c0_31] : memref<16x128xf32, #tpu.memory_space<vmem>>, vector<16x128xf32>
      %69 = arith.addf %68, %61 : vector<16x128xf32>
      %c0_32 = arith.constant 0 : index
      %c0_33 = arith.constant 0 : index
      %70 = vector.load %arg9[%c0_32, %c0_33] : memref<16x128xf32, #tpu.memory_space<vmem>>, vector<16x128xf32>
      tpu.vector_store %arg9[%c0_32, %c0_33], %69 {strides = array<i32>} : memref<16x128xf32, #tpu.memory_space<vmem>>, vector<16x128xf32>,
    } else {
    }
    return
  }
  func.func @transform_0(%arg0: i32, %arg1: i32) -> (i32, i32, i32) {
    %c0_i32 = arith.constant 0 : i32
    %c0_i32_0 = arith.constant 0 : i32
    return %arg1, %arg0, %c0_i32 : i32, i32, i32
  }
  func.func @transform_1(%arg0: i32, %arg1: i32) -> (i32, i32) {
    %c0_i32 = arith.constant 0 : i32
    %c0_i32_0 = arith.constant 0 : i32
    %c0_i32_1 = arith.constant 0 : i32
    return %c0_i32, %c0_i32_0 : i32, i32
  }
  func.func @transform_2(%arg0: i32, %arg1: i32) -> (i32, i32) {
    %c0_i32 = arith.constant 0 : i32
    %c0_i32_0 = arith.constant 0 : i32
    %c0_i32_1 = arith.constant 0 : i32
    return %c0_i32, %c0_i32_0 : i32, i32
  }
  func.func @transform_3(%arg0: i32, %arg1: i32) -> (i32, i32) {
    %c0_i32 = arith.constant 0 : i32
    %c0_i32_0 = arith.constant 0 : i32
    %c0_i32_1 = arith.constant 0 : i32
    return %c0_i32, %c0_i32_0 : i32, i32
  }
  func.func @transform_4(%arg0: i32, %arg1: i32) -> (i32, i32) {
    %c0_i32 = arith.constant 0 : i32
    %c0_i32_0 = arith.constant 0 : i32
    %c0_i32_1 = arith.constant 0 : i32
    return %c0_i32, %c0_i32_0 : i32, i32
  }
  func.func @transform_5(%arg0: i32, %arg1: i32) -> (i32, i32) {
    %c0_i32 = arith.constant 0 : i32
    %c0_i32_0 = arith.constant 0 : i32
    %c0_i32_1 = arith.constant 0 : i32
    return %c0_i32, %c0_i32_0 : i32, i32
  }
  func.func @transform_6(%arg0: i32, %arg1: i32) -> (i32, i32) {
    %c0_i32 = arith.constant 0 : i32
    %c0_i32_0 = arith.constant 0 : i32
    %c0_i32_1 = arith.constant 0 : i32
    return %c0_i32, %c0_i32_0 : i32, i32
  }
  func.func @transform_7(%arg0: i32, %arg1: i32) -> (i32, i32) {
    %c0_i32 = arith.constant 0 : i32
    %c0_i32_0 = arith.constant 0 : i32
    return %arg0, %c0_i32 : i32, i32
  }
}

module attributes {stable_mosaic.version = 11 : i64} {
  func.func @_consensus_ce_kernel(%arg0: i32, %arg1: memref<2x7x128xf32, #tpu.memory_space<vmem>>, %arg2: memref<2x7xi32, #tpu.memory_space<vmem>>, %arg3: memref<2x7xf32, #tpu.memory_space<vmem>>) attributes {dimension_semantics = [#tpu.dimension_semantics<arbitrary>], iteration_bounds = array<i64: 1>, scalar_prefetch = 0 : i64, scratch_operands = 0 : i64, tpu.core_type = #tpu.core_type<tc>, window_params = [{pipeline_mode = #tpu.pipeline_mode<synchronous>, transform_indices = @transform_0, window_bounds = array<i64: 2, 7, 128>}, {pipeline_mode = #tpu.pipeline_mode<synchronous>, transform_indices = @transform_1, window_bounds = array<i64: 2, 7>}, {pipeline_mode = #tpu.pipeline_mode<synchronous>, transform_indices = @transform_2, window_bounds = array<i64: 2, 7>}]} {
    %c0 = arith.constant 0 : index
    %c0_0 = arith.constant 0 : index
    %c0_1 = arith.constant 0 : index
    %0 = vector.load %arg1[%c0, %c0_0, %c0_1] : memref<2x7x128xf32, #tpu.memory_space<vmem>>, vector<2x7x128xf32>
    %cst = arith.constant dense<0xFF800000> : vector<2x128xf32>
    %1 = vector.multi_reduction <maximumf>, %0, %cst [1] : vector<2x7x128xf32> to vector<2x128xf32>
    %2 = vector.shape_cast %1 : vector<2x128xf32> to vector<2x1x128xf32>
    %3 = vector.broadcast %2 : vector<2x1x128xf32> to vector<2x7x128xf32>
    %4 = arith.subf %0, %3 : vector<2x7x128xf32>
    %5 = math.exp %4 : vector<2x7x128xf32>
    %cst_2 = arith.constant dense<0.000000e+00> : vector<2x128xf32>
    %6 = vector.multi_reduction <add>, %5, %cst_2 [1] : vector<2x7x128xf32> to vector<2x128xf32>
    %7 = vector.shape_cast %6 : vector<2x128xf32> to vector<2x1x128xf32>
    %8 = math.log %7 : vector<2x1x128xf32>
    %9 = vector.broadcast %8 : vector<2x1x128xf32> to vector<2x7x128xf32>
    %10 = arith.subf %4, %9 : vector<2x7x128xf32>
    %cst_3 = arith.constant dense<0xFF800000> : vector<2x7xf32>
    %11 = vector.multi_reduction <maximumf>, %10, %cst_3 [2] : vector<2x7x128xf32> to vector<2x7xf32>
    %12 = vector.shape_cast %11 : vector<2x7xf32> to vector<2x7x1xf32>
    %13 = vector.broadcast %12 : vector<2x7x1xf32> to vector<2x7x128xf32>
    %14 = arith.subf %10, %13 : vector<2x7x128xf32>
    %15 = math.exp %14 : vector<2x7x128xf32>
    %cst_4 = arith.constant dense<0.000000e+00> : vector<2x7xf32>
    %16 = vector.multi_reduction <add>, %15, %cst_4 [2] : vector<2x7x128xf32> to vector<2x7xf32>
    %17 = vector.shape_cast %16 : vector<2x7xf32> to vector<2x7x1xf32>
    %18 = math.log %17 : vector<2x7x1xf32>
    %19 = vector.broadcast %18 : vector<2x7x1xf32> to vector<2x7x128xf32>
    %20 = arith.subf %14, %19 : vector<2x7x128xf32>
    %c0_5 = arith.constant 0 : index
    %c0_6 = arith.constant 0 : index
    %21 = vector.load %arg2[%c0_5, %c0_6] : memref<2x7xi32, #tpu.memory_space<vmem>>, vector<2x7xi32>
    %22 = tpu.iota {dimensions = array<i32: 2>} : vector<2x7x128xi32>
    %23 = vector.shape_cast %21 : vector<2x7xi32> to vector<2x7x1xi32>
    %24 = vector.broadcast %23 : vector<2x7x1xi32> to vector<2x7x128xi32>
    %25 = arith.cmpi eq, %22, %24 : vector<2x7x128xi32>
    %26 = arith.extui %25 : vector<2x7x128xi1> to vector<2x7x128xi32>
    %27 = arith.sitofp %26 : vector<2x7x128xi32> to vector<2x7x128xf32>
    %28 = arith.mulf %27, %20 : vector<2x7x128xf32>
    %cst_7 = arith.constant dense<0.000000e+00> : vector<2x7xf32>
    %29 = vector.multi_reduction <add>, %28, %cst_7 [2] : vector<2x7x128xf32> to vector<2x7xf32>
    %cst_8 = arith.constant 0.000000e+00 : f32
    %30 = vector.broadcast %cst_8 : f32 to vector<2x7xf32>
    %31 = arith.subf %30, %29 : vector<2x7xf32>
    %cst_9 = arith.constant dense<0.000000e+00> : vector<2x7xf32>
    %32 = vector.multi_reduction <add>, %20, %cst_9 [2] : vector<2x7x128xf32> to vector<2x7xf32>
    %cst_10 = arith.constant 0.000000e+00 : f32
    %33 = vector.broadcast %cst_10 : f32 to vector<2x7xf32>
    %34 = arith.subf %33, %32 : vector<2x7xf32>
    %cst_11 = arith.constant 1.280000e+02 : f32
    %35 = vector.broadcast %cst_11 : f32 to vector<2x7xf32>
    %36 = arith.divf %34, %35 : vector<2x7xf32>
    %cst_12 = arith.constant 0.899999976 : f32
    %37 = vector.broadcast %cst_12 : f32 to vector<2x7xf32>
    %38 = arith.mulf %37, %31 : vector<2x7xf32>
    %cst_13 = arith.constant 1.000000e-01 : f32
    %39 = vector.broadcast %cst_13 : f32 to vector<2x7xf32>
    %40 = arith.mulf %39, %36 : vector<2x7xf32>
    %41 = arith.addf %38, %40 : vector<2x7xf32>
    %c-100_i32 = arith.constant -100 : i32
    %42 = vector.broadcast %c-100_i32 : i32 to vector<2x7xi32>
    %43 = arith.cmpi eq, %21, %42 : vector<2x7xi32>
    %cst_14 = arith.constant 0.000000e+00 : f32
    %44 = vector.broadcast %cst_14 : f32 to vector<2x7xf32>
    %45 = arith.select %43, %44, %41 : vector<2x7xi1>, vector<2x7xf32>
    %c0_15 = arith.constant 0 : index
    %c0_16 = arith.constant 0 : index
    %46 = vector.load %arg3[%c0_15, %c0_16] : memref<2x7xf32, #tpu.memory_space<vmem>>, vector<2x7xf32>
    tpu.vector_store %arg3[%c0_15, %c0_16], %45 {strides = array<i32>} : memref<2x7xf32, #tpu.memory_space<vmem>>, vector<2x7xf32>,
    return
  }
  func.func @transform_0(%arg0: i32) -> (i32, i32, i32) {
    %c0_i32 = arith.constant 0 : i32
    %c0_i32_0 = arith.constant 0 : i32
    %c0_i32_1 = arith.constant 0 : i32
    %c0_i32_2 = arith.constant 0 : i32
    return %c0_i32, %c0_i32_0, %c0_i32_1 : i32, i32, i32
  }
  func.func @transform_1(%arg0: i32) -> (i32, i32) {
    %c0_i32 = arith.constant 0 : i32
    %c0_i32_0 = arith.constant 0 : i32
    %c0_i32_1 = arith.constant 0 : i32
    return %c0_i32, %c0_i32_0 : i32, i32
  }
  func.func @transform_2(%arg0: i32) -> (i32, i32) {
    %c0_i32 = arith.constant 0 : i32
    %c0_i32_0 = arith.constant 0 : i32
    %c0_i32_1 = arith.constant 0 : i32
    return %c0_i32, %c0_i32_0 : i32, i32
  }
}

</mosaic_0001>

<bundles_post_ra>
// kernel: blip_decoder_forward.5
= control target key start
LH: loop header
LB: loop body
LE: loop exit
PB: predicated region body
PF: predicated region fallthrough
CT: control target
= control target key end

     0   :  { %vm121_vm0 = vcmask 523264   ;;  %vm153_vm1 = vcmask 261120   ;;  %s299_s1 = inlined_call_operand.vmem [shape: bf16[192,32], index: 1, kind: input, shape index: {}]   ;;  %s300_s0 = inlined_call_operand.vmem [shape: f32[16,192], index: 0, kind: input, shape index: {}]   ;;  %s301_s2 = inlined_call_operand.vmem [shape: f32[1,32], index: 2, kind: input, shape index: {}]   ;;  %s302_s3 = inlined_call_operand.vmem [shape: f32[16,32], index: 3, kind: output, shape index: {}]  }
   0x1   :  { %v216_v0 = vld [vmem:[%s299_s1 + $0x38] sm:$0xff]  ;;  %v215_v2 = vld [vmem:[%s299_s1 + $0x30] sm:$0xff]  ;;  %v214_v4 = vld [vmem:[%s299_s1 + $0x28] sm:$0xff] }
   0x2   :  { %v220_v1 = vld [vmem:[%s299_s1 + $0x58] sm:$0xff]  ;;  %125 = vmatpush.bf16.msra.mxu0 %v216_v0  ;;  %v219_v3 = vld [vmem:[%s299_s1 + $0x50] sm:$0xff]  ;;  %v218_v5 = vld [vmem:[%s299_s1 + $0x48] sm:$0xff] }
   0x3   :  { %143 = vmatpush.bf16.msra.mxu1 %v220_v1  ;;  %v213_v6 = vld [vmem:[%s299_s1 + $0x20] sm:$0xff]  ;;  %v16_v8 = vld [vmem:[%s300_s0 + $0x8] sm:$0xff]  ;;  %v18_v9 = vld [vmem:[%s300_s0 + $0x18] sm:$0xff] }
   0x4   :  { %v217_v7 = vld [vmem:[%s299_s1 + $0x40] sm:$0xff]  ;;  %v212_v10 = vld [vmem:[%s299_s1 + $0x18] sm:$0xff]  ;;  %v45_v11 = vpack.c.bf16 %v18_v9, %v16_v8  ;;  %v211_v12 = vld [vmem:[%s299_s1 + $0x10] sm:$0xff] }
   0x5   :  { %v210_v13 = vld [vmem:[%s299_s1 + $0x8] sm:$0xff]  ;;  %v209_v14 = vld [vmem:[%s299_s1] sm:$0xff]  ;;  %v17_v16 = vld [vmem:[%s300_s0 + $0x10] sm:$0xff] }
   0x6   :  { %126 = vmatpush.bf16.msra.mxu0 %v215_v2  ;;  %v15_v15 = vld [vmem:[%s300_s0] sm:$0xff] }
   0x7   :  { %144 = vmatpush.bf16.msra.mxu1 %v219_v3  ;;  %v44_v17 = vpack.c.bf16 %v17_v16, %v15_v15  ;;  %v221_v18 = vld [vmem:[%s301_s2] ss:$0 sm:$0xff] }
   0xa   :  { %127 = vmatpush.bf16.msra.mxu0 %v214_v4 }
   0xb   :  { %145 = vmatpush.bf16.msra.mxu1 %v218_v5 }
   0xe   :  { %128 = vmatpush.bf16.msra.mxu0 %v213_v6 }
   0xf   :  { %146 = vmatpush.bf16.msra.mxu1 %v217_v7 }
  0x12   :  { %129 = vmatpush.bf16.msra.mxu0 %v212_v10  ;;  %208 = vmatmul.msk.bf16.vlgmr.msra.gmra.mxu1 %vm121_vm0, %v45_v11 }
  0x16   :  { %130 = vmatpush.bf16.msra.mxu0 %v211_v12 }
  0x1a   :  { %131 = vmatpush.bf16.msra.mxu0 %v210_v13 }
  0x1e   :  { %132 = vmatpush.bf16.msra.mxu0 %v209_v14 }
  0x21   :  { %133 = vmatmul.bf16.vlgmr.msra.gmra.mxu0 %v44_v17 }
  0x8f   :  { %v148_v19 = vpop.f32.mrf.mxu1 }
  0x97   :  { %v150_v25 = vpop.f32.mrf.mxu1 }
  0x9e   :  { %v134_v20 = vpop.f32.mrf.mxu0 }
  0x9f   :  { %v135_v21 = vadd.f32 %v221_v18, %v134_v20 }
  0xa1   :  { %v149_v22 = vadd.f32 %v148_v19, %v135_v21 }
  0xa3   :  { %154 = vst.msk [vmem:[%s302_s3] sm:$0xff] %vm153_vm1, %v149_v22 }
  0xa6   :  { %v136_v23 = vpop.f32.mrf.mxu0 }
  0xa7   :  { %v137_v24 = vadd.f32 %v221_v18, %v136_v23 }
  0xa9   :  { %v151_v26 = vadd.f32 %v150_v25, %v137_v24 }
  0xab   :  { %155 = vst.msk [vmem:[%s302_s3 + $0x8] sm:$0xff] %vm153_vm1, %v151_v26 }

// kernel: blip_decoder_forward.8
= control target key start
LH: loop header
LB: loop body
LE: loop exit
PB: predicated region body
PF: predicated region fallthrough
CT: control target
= control target key end

     0   :  { %s731_s24 = smov 0   ;;  %s733_s25 = smov 0   ;;  %s815_s0 = inlined_call_operand.vmem [shape: bf16[2,16,32], index: 0, kind: input, shape index: {}]   ;;  %s816_s1 = inlined_call_operand.vmem [shape: bf16[32,32], index: 1, kind: input, shape index: {}]   ;;  %s817_s2 = inlined_call_operand.vmem [shape: f32[1,32], index: 2, kind: input, shape index: {}]   ;;  %s818_s3 = inlined_call_operand.vmem [shape: f32[1,32], index: 3, kind: input, shape index: {}]   ;;  %s819_s4 = inlined_call_operand.vmem [shape: f32[1,32], index: 4, kind: input, shape index: {}]   ;;  %s820_s5 = inlined_call_operand.vmem [shape: bf16[32,128], index: 5, kind: input, shape index: {}]   ;;  %s821_s6 = inlined_call_operand.vmem [shape: f32[1,128], index: 6, kind: input, shape index: {}]   ;;  %s822_s7 = inlined_call_operand.vmem [shape: f32[16,128], index: 7, kind: output, shape index: {}]  }
   0x1   :  { %s735_s26 = smov 0  }
   0x2 LB: > { %s26_s27 = sadd.s32 1, %s684_s25  ;;  %p582_p0 = scmp.ge.s32.totalorder %s688_s26, 1  ;;  %s688_s26 = sphi %s735_s26, %s17_s26   ;;  %s684_s25 = sphi %s733_s25, %s824_s25   ;;  %s680_s24 = sphi %s731_s24, %s823_s24  }
   0x3   : > { %p27_p1 = scmp.ge.s32.totalorder %s26_s27, 2  ;;  %p256_p2 = scmp.lt.s32.totalorder %s688_s26, 3 }
   0x5   : > { %s826_s27 = smov (%p27_p1, %s26_s27), 0  ;;  %p257_p3 = pnand %p582_p0, %p256_p2 }
   0x6   : > { %p293_p4 = scmp.lt.s32.totalorder (!%p257_p3), %s680_s24, 1  ;;  %p607_p5 = scmp.ne.s32.totalorder (!%p257_p3), %s680_s24, 0 }
   0x7   : > { %260 = sbr.rel (%p257_p3) target bundleno = 854 (0x356), region = 48 }
   0xc   : > { %v616_v0 = vld [vmem:[%s816_s1 + $0x8] sm:$0xff]  ;;  %v615_v1 = vld [vmem:[%s816_s1] sm:$0xff]  ;;  %s294_s9 = scalar_select %p293_p4, %s680_s24, 1  ;;  %vm336_vm0 = vcmask 261120   ;;  %v690_v28 = vmov 32.0  }
   0xd   : > { %346 = vmatpush.bf16.msra.mxu0 %v616_v0  ;;  %v644_v3 = vld [vmem:[%s817_s2] ss:$0 sm:$0xff]  ;;  %v618_v45 = vld [vmem:[%s820_s5 + $0x8] sm:$0xff] }
   0xe   : > { %s613_s10 = sshll.u32 %s294_s9, 3  ;;  %465 = vmatpush.bf16.msra.mxu1 %v618_v45  ;;  %v617_v47 = vld [vmem:[%s820_s5] sm:$0xff] }
   0xf   : > { %s300_s13 = scalar_lea.vmem %s815_s0, %s613_s10 }
  0x10   : > { %v614_v2 = vld [vmem:[%s300_s13] sm:$0xff] }
  0x11   : > { %347 = vmatpush.bf16.msra.mxu0 %v615_v1 }
  0x12   : > { %466 = vmatpush.bf16.msra.mxu1 %v617_v47 }
  0x14   : > { %597 = vmatmul.msk.bf16.vlgmr.msra.gmra.mxu0 %vm336_vm0, %v614_v2  ;;  %v645_v2 = vld [vmem:[%s818_s3] ss:$0 sm:$0xff] }
  0x91   : > { %v349_v4 = vpop.f32.mrf.mxu0 }
  0x92   : > { %v350_v5 = vadd.f32 %v644_v3, %v349_v4 }
  0x94   : > { %v354_v6 = vmul.f32 %v350_v5, %v350_v5 }
  0x96   : > { %v356_v7 = vmul.f32 %v354_v6, %v350_v5 }
  0x98   : > { %v358_v8 = vmul.f32 0.044715, %v356_v7  ;;  %v646_v7 = vld [vmem:[%s819_s4] ss:$0 sm:$0xff] }
  0x99   : > { %v351_v9 = vpop.f32.mrf.mxu0 }
  0x9a   : > { %v352_v10 = vadd.f32 %v644_v3, %v351_v9  ;;  %v360_v11 = vadd.f32 %v358_v8, %v350_v5 }
  0x9c   : > { %v355_v12 = vmul.f32 %v352_v10, %v352_v10  ;;  %v362_v13 = vmul.f32 0.7978846, %v360_v11 }
  0x9e   : > { %v357_v14 = vmul.f32 %v355_v12, %v352_v10  ;;  %648 = vtanh.f32 %v362_v13  ;;  %v647_v12 = vld [vmem:[%s821_s6] ss:$0 sm:$0xff] }
  0xa0   : > { %v359_v15 = vmul.f32 0.044715, %v357_v14 }
  0xa2   : > { %v361_v16 = vadd.f32 %v359_v15, %v352_v10 }
  0xa4   : > { %v649_v17 = vpop.eup %648  ;;  %v363_v18 = vmul.f32 0.7978846, %v361_v16 }
  0xa5   : > { %v366_v19 = vadd.f32 1.0, %v649_v17 }
  0xa6   : > { %650 = vtanh.f32 %v363_v18 }
  0xa7   : > { %v368_v20 = vmul.f32 0.5, %v366_v19  ;;  %652 = vrcp.f32 %v690_v28 }
  0xa9   : > { %v370_v21 = vmul.f32 %v368_v20, %v350_v5 }
  0xab   : > { %v374_v22 = vsel %vm336_vm0, %v370_v21, 0.0 }
  0xac   : > { %v651_v23 = vpop.eup %650  ;;  %375 = vadd.xlane.f32.xlu0 %v374_v22 }
  0xad   : > { %v367_v24 = vadd.f32 1.0, %v651_v23  ;;  %v653_v29 = vpop.eup %652 }
  0xae   : > { %v381_v30 = vmul.f32 32.0, %v653_v29  ;;  %vm385_vm1 = vweird.f32 %v653_v29 }
  0xaf   : > { %v369_v25 = vmul.f32 0.5, %v367_v24 }
  0xb0   : > { %v382_v31 = vsub.f32 1.0, %v381_v30 }
  0xb1   : > { %v371_v26 = vmul.f32 %v369_v25, %v352_v10 }
  0xb2   : > { %v383_v32 = vmul.f32 %v653_v29, %v382_v31 }
  0xb3   : > { %v377_v27 = vsel %vm336_vm0, %v371_v26, 0.0 }
  0xb4   : > { %378 = vadd.xlane.f32.xlu0 %v377_v27  ;;  %v384_v33 = vadd.f32 %v653_v29, %v383_v32 }
  0xb6   : > { %v386_v34 = vsel %vm385_vm1, %v653_v29, %v384_v33 }
 0x11f   : > { %v376_v35 = vpop.xlane.xlu0 %375 }
 0x120   : > { %v387_v36 = vmul.f32 %v386_v34, %v376_v35 }
 0x122   : > { %v389_v37 = vsub.f32 %v370_v21, %v387_v36 }
 0x124   : > { %v391_v38 = vmul.f32 %v389_v37, %v389_v37 }
 0x126   : > { %v393_v39 = vsel %vm336_vm0, %v391_v38, 0.0 }
 0x127   : > { %394 = vadd.xlane.f32.xlu1 %v393_v39  ;;  %v379_v40 = vpop.xlane.xlu0 %378 }
 0x128   : > { %v388_v41 = vmul.f32 %v386_v34, %v379_v40 }
 0x12a   : > { %v390_v42 = vsub.f32 %v371_v26, %v388_v41 }
 0x12c   : > { %v392_v43 = vmul.f32 %v390_v42, %v390_v42 }
 0x12e   : > { %v396_v44 = vsel %vm336_vm0, %v392_v43, 0.0 }
 0x12f   : > { %397 = vadd.xlane.f32.xlu1 %v396_v44 }
 0x19a   : > { %v395_v46 = vpop.xlane.xlu1 %394 }
 0x19b   : > { %v399_v48 = vmul.f32 %v395_v46, %v386_v34 }
 0x19d   : > { %v401_v49 = vadd.f32 1e-12, %v399_v48 }
 0x19f   : > { %654 = vrsqrt.f32 %v401_v49  ;;  %vm409_vm3 = vweird.f32 %v401_v49 }
 0x1a2   : > { %v398_v50 = vpop.xlane.xlu1 %397 }
 0x1a3   : > { %v400_v51 = vmul.f32 %v398_v50, %v386_v34 }
 0x1a5   : > { %v655_v52 = vpop.eup %654  ;;  %v402_v53 = vadd.f32 1e-12, %v400_v51 }
 0x1a6   : > { %v404_v54 = vmul.f32 %v655_v52, %v401_v49  ;;  %vm410_vm2 = vweird.f32 %v655_v52 }
 0x1a7   : > { %656 = vrsqrt.f32 %v402_v53  ;;  %vm411_vm4 = vmor %vm409_vm3, %vm410_vm2  ;;  %vm419_vm6 = vweird.f32 %v402_v53 }
 0x1a8   : > { %v405_v55 = vmul.f32 %v655_v52, %v404_v54 }
 0x1aa   : > { %v406_v56 = vmul.f32 0.5, %v405_v55 }
 0x1ac   : > { %v407_v57 = vsub.f32 1.5, %v406_v56 }
 0x1ad   : > { %v657_v58 = vpop.eup %656 }
 0x1ae   : > { %v408_v59 = vmul.f32 %v655_v52, %v407_v57  ;;  %v414_v60 = vmul.f32 %v657_v58, %v402_v53  ;;  %vm420_vm5 = vweird.f32 %v657_v58 }
 0x1af   : > { %vm421_vm7 = vmor %vm419_vm6, %vm420_vm5 }
 0x1b0   : > { %v415_v61 = vmul.f32 %v657_v58, %v414_v60  ;;  %v412_v62 = vsel %vm411_vm4, %v655_v52, %v408_v59 }
 0x1b1   : > { %v423_v1 = vmul.f32 %v412_v62, %v389_v37 }
 0x1b2   : > { %v416_v63 = vmul.f32 0.5, %v415_v61 }
 0x1b3   : > { %v428_v6 = vmul.f32 %v645_v2, %v423_v1 }
 0x1b4   : > { %v417_v0 = vsub.f32 1.5, %v416_v63 }
 0x1b5   : > { %v433_v9 = vadd.f32 %v646_v7, %v428_v6 }
 0x1b6   : > { %v418_v3 = vmul.f32 %v657_v58, %v417_v0 }
 0x1b8   : > { %v422_v4 = vsel %vm421_vm7, %v657_v58, %v418_v3 }
 0x1b9   : > { %v424_v5 = vmul.f32 %v422_v4, %v390_v42 }
 0x1bb   : > { %v429_v8 = vmul.f32 %v645_v2, %v424_v5 }
 0x1bd   : > { %v434_v10 = vadd.f32 %v646_v7, %v429_v8 }
 0x1bf   : > { %v440_v11 = vpack.c.bf16 %v434_v10, %v433_v9 }
 0x1c1   : > { %606 = vmatmul.msk.bf16.vlgmr.msra.gmra.mxu1 %vm336_vm0, %v440_v11 }
 0x23e   : > { %v468_v13 = vpop.f32.mrf.mxu1 }
 0x23f   : > { %v469_v14 = vadd.f32 %v647_v12, %v468_v13 }
 0x241   : > { %473 = vmax.xlane.f32.xlu2 %v469_v14 }
 0x246   : > { %v470_v15 = vpop.f32.mrf.mxu1 }
 0x247   : > { %v471_v16 = vadd.f32 %v647_v12, %v470_v15 }
 0x249   : > { %475 = vmax.xlane.f32.xlu2 %v471_v16 }
 0x2b4   : > { %v474_v17 = vpop.xlane.xlu2 %473 }
 0x2b5   : > { %v477_v18 = vsub.f32 %v469_v14, %v474_v17 }
 0x2b7   : > { %v479_v19 = vmul.f32 1.442695, %v477_v18 }
 0x2b9   : > { %658 = vpow2.f32 %v479_v19 }
 0x2bc   : > { %v476_v20 = vpop.xlane.xlu2 %475 }
 0x2bd   : > { %v478_v21 = vsub.f32 %v471_v16, %v476_v20 }
 0x2bf   : > { %v659_v22 = vpop.eup %658  ;;  %v481_v23 = vmul.f32 1.442695, %v478_v21 }
 0x2c0   : > { %483 = vadd.xlane.f32.xlu0 %v659_v22 }
 0x2c1   : > { %660 = vpow2.f32 %v481_v23 }
 0x2c7   : > { %v661_v24 = vpop.eup %660 }
 0x2c8   : > { %485 = vadd.xlane.f32.xlu1 %v661_v24 }
 0x333   : > { %v484_v25 = vpop.xlane.xlu0 %483 }
 0x334   : > { %662 = vlog2.f32 %v484_v25 }
 0x33a   : > { %v663_v26 = vpop.eup %662 }
 0x33b   : > { %v488_v27 = vmul.f32 0.6931472, %v663_v26  ;;  %v486_v28 = vpop.xlane.xlu1 %485 }
 0x33c   : > { %664 = vlog2.f32 %v486_v28 }
 0x33d   : > { %v491_v29 = vsub.f32 %v477_v18, %v488_v27 }
 0x33f   : > { %v493_v30 = vmul.f32 0.5, %v491_v29 }
 0x342   : > { %v665_v31 = vpop.eup %664 }
 0x343   : > { %v490_v32 = vmul.f32 0.6931472, %v665_v31  ;;  %498 = sbr.rel (%p607_p5) target bundleno = 842 (0x34a), region = 52 }
 0x345   : > { %v492_v33 = vsub.f32 %v478_v21, %v490_v32 }
 0x347   : > { %v494_v34 = vmul.f32 0.5, %v492_v33 }
 0x348   : > { %499 = vst [vmem:[%s822_s7] sm:$0xff] %v493_v30 }
 0x349   : > { %500 = vst [vmem:[%s822_s7 + $0x8] sm:$0xff] %v494_v34 }
 0x34a PF: > { %p608_p6 = scmp.le.s32.totalorder %s680_s24, 0 }
 0x34c   : > { %504 = sbr.rel (%p608_p6) target bundleno = 854 (0x356), region = 56 }
 0x351   : > { %v505_v35 = vld [vmem:[%s822_s7] sm:$0xff]  ;;  %v506_v36 = vld [vmem:[%s822_s7 + $0x8] sm:$0xff] }
 0x352   : > { %v507_v37 = vadd.f32 %v505_v35, %v493_v30  ;;  %v508_v38 = vadd.f32 %v506_v36, %v494_v34 }
 0x354   : > { %509 = vst [vmem:[%s822_s7] sm:$0xff] %v507_v37 }
 0x355   : > { %510 = vst [vmem:[%s822_s7 + $0x8] sm:$0xff] %v508_v38 }
 0x356 PF: > { %s17_s26 = sadd.s32 1, %s688_s26   ;;  %s823_s24 = smov %s684_s25 }
 0x357   : > { %p14_p7 = scmp.ge.s32.totalorder %s17_s26, 4   ;;  %s824_s25 = smov %s826_s27 }
 0x359   :  { %16 = sbr.rel (!%p14_p7) target bundleno = 2 (0x2), region = 86 }

// kernel: blip_decoder_forward.9
= control target key start
LH: loop header
LB: loop body
LE: loop exit
PB: predicated region body
PF: predicated region fallthrough
CT: control target
= control target key end

     0   :  { %vm13_vm0 = vcmask 1046528   ;;  %v79_v44 = vlaneseq  ;;  %vm139_vm4 = vcmask 1041409   ;;  %vm143_vm6 = vcmask 50176   ;;  %s219_s0 = inlined_call_operand.vmem [shape: f32[2,7,128], index: 0, kind: input, shape index: {}]   ;;  %s220_s1 = inlined_call_operand.vmem [shape: s32[2,7], index: 1, kind: input, shape index: {}]   ;;  %s221_s2 = inlined_call_operand.vmem [shape: f32[2,7], index: 2, kind: output, shape index: {}]  }
   0x1   :  { %v11_v0 = vld [vmem:[%s219_s0] sm:$0x7f]  ;;  %v12_v1 = vld [vmem:[%s219_s0 + $0x8] sm:$0x7f] }
   0x2   :  { %v14_v2 = vsel %vm13_vm0, %v11_v0, -inf  ;;  %v21_v3 = vsel %vm13_vm0, %v12_v1, -inf  ;;  %v83_v45 = vshrl.u32 %v79_v44, 7  ;;  %v205_v46 = vld [vmem:[%s220_s1] sm:$0x3]  ;;  %v80_v60 = vand.u32 127, %v79_v44 }
   0x3   :  { %v15_v4 = vrot.slane %v14_v2, 4  ;;  %v22_v5 = vrot.slane %v21_v3, 4  ;;  %v81_v47 = vperm.slane %v205_v46, 0  ;;  %v88_v51 = vperm.slane %v205_v46, 1 }
   0x4   :  { %153 = vset.pattern.permute.xlu2 %v83_v45  ;;  %154 = vset.pattern.permute.xlu0 %v83_v45  ;;  %vm134_vm5 = vcmp.eq.s32.totalorder %v205_v46, 4294967196 }
   0x5   :  { %v16_v6 = vmax.f32 %v14_v2, %v15_v4  ;;  %v23_v7 = vmax.f32 %v21_v3, %v22_v5 }
   0x7   :  { %v17_v8 = vrot.slane %v16_v6, 2  ;;  %v24_v9 = vrot.slane %v23_v7, 2 }
   0x9   :  { %v18_v10 = vmax.f32 %v16_v6, %v17_v8  ;;  %v25_v11 = vmax.f32 %v23_v7, %v24_v9 }
   0xb   :  { %v19_v12 = vrot.slane %v18_v10, 1  ;;  %v26_v13 = vrot.slane %v25_v11, 1 }
   0xc   :  { %86 = vperm.xlu2 %153, %v81_v47  }
   0xd   :  { %v20_v14 = vmax.f32 %v18_v10, %v19_v12  ;;  %v27_v15 = vmax.f32 %v25_v11, %v26_v13 }
   0xf   :  { %v28_v16 = vsub.f32 %v11_v0, %v20_v14  ;;  %v29_v17 = vsub.f32 %v12_v1, %v27_v15  ;;  %v173_v1 = vmov 0.0   ;;  %v174_v15 = vmov 128.0  }
  0x11   :  { %v30_v18 = vmul.f32 1.442695, %v28_v16  ;;  %v32_v19 = vmul.f32 1.442695, %v29_v17 }
  0x13   :  { %155 = vpow2.f32 %v30_v18 }
  0x14   :  { %157 = vpow2.f32 %v32_v19  ;;  %93 = vperm.xlu2 %153, %v88_v51  }
  0x19   :  { %v156_v20 = vpop.eup %155 }
  0x1a   :  { %v158_v21 = vpop.eup %157  ;;  %v34_v22 = vsel %vm13_vm0, %v156_v20, 0.0 }
  0x1b   :  { %v35_v23 = vrot.slane %v34_v22, 4  ;;  %v41_v24 = vsel %vm13_vm0, %v158_v21, 0.0 }
  0x1c   :  { %v42_v25 = vrot.slane %v41_v24, 4 }
  0x1d   :  { %v36_v26 = vadd.f32 %v35_v23, %v34_v22 }
  0x1e   :  { %v43_v27 = vadd.f32 %v42_v25, %v41_v24 }
  0x1f   :  { %v37_v28 = vrot.slane %v36_v26, 2 }
  0x20   :  { %v44_v29 = vrot.slane %v43_v27, 2 }
  0x21   :  { %v38_v30 = vadd.f32 %v37_v28, %v36_v26 }
  0x22   :  { %v45_v31 = vadd.f32 %v44_v29, %v43_v27 }
  0x23   :  { %v39_v32 = vrot.slane %v38_v30, 1 }
  0x24   :  { %v46_v33 = vrot.slane %v45_v31, 1 }
  0x25   :  { %v40_v34 = vadd.f32 %v39_v32, %v38_v30 }
  0x26   :  { %v47_v35 = vadd.f32 %v46_v33, %v45_v31 }
  0x27   :  { %159 = vlog2.f32 %v40_v34 }
  0x28   :  { %161 = vlog2.f32 %v47_v35 }
  0x2d   :  { %v160_v36 = vpop.eup %159 }
  0x2e   :  { %v162_v37 = vpop.eup %161  ;;  %v49_v38 = vmul.f32 0.6931472, %v160_v36 }
  0x2f   :  { %v51_v40 = vmul.f32 0.6931472, %v162_v37 }
  0x30   :  { %v52_v39 = vsub.f32 %v28_v16, %v49_v38 }
  0x31   :  { %v53_v42 = vsub.f32 %v29_v17, %v51_v40 }
  0x32   :  { %v54_v41 = vsel %vm13_vm0, %v52_v39, -inf }
  0x33   :  { %55 = vmax.xlane.f32.xlu0 %v54_v41  ;;  %v57_v43 = vsel %vm13_vm0, %v53_v42, -inf }
  0x3b   :  { %58 = vmax.xlane.f32.xlu0 %v57_v43 }
  0x66   :  { %v87_v61 = vpop.permute.xlu2 %86 }
  0x67   :  { %vm95_vm1 = vcmp.eq.s32.totalorder %v80_v60, %v87_v61 }
  0x68   :  { %v149_v2 = vsel %vm95_vm1, 1.0, %v173_v1 }
  0x6e   :  { %v94_v6 = vpop.permute.xlu2 %93 }
  0x6f   :  { %vm96_vm2 = vcmp.eq.s32.totalorder %v80_v60, %v94_v6 }
  0x70   :  { %v150_v11 = vsel %vm96_vm2, 1.0, %v173_v1 }
  0xa6   :  { %v56_v48 = vpop.xlane.xlu0 %55 }
  0xa7   :  { %v60_v49 = vsub.f32 %v52_v39, %v56_v48 }
  0xa9   :  { %v62_v50 = vmul.f32 1.442695, %v60_v49 }
  0xab   :  { %163 = vpow2.f32 %v62_v50 }
  0xae   :  { %v59_v52 = vpop.xlane.xlu0 %58 }
  0xaf   :  { %v61_v53 = vsub.f32 %v53_v42, %v59_v52 }
  0xb1   :  { %v164_v54 = vpop.eup %163  ;;  %v64_v55 = vmul.f32 1.442695, %v61_v53 }
  0xb2   :  { %v66_v56 = vsel %vm13_vm0, %v164_v54, 0.0 }
  0xb3   :  { %165 = vpow2.f32 %v64_v55  ;;  %67 = vadd.xlane.f32.xlu1 %v66_v56 }
  0xb9   :  { %v166_v57 = vpop.eup %165 }
  0xba   :  { %v69_v58 = vsel %vm13_vm0, %v166_v57, 0.0 }
  0xbb   :  { %70 = vadd.xlane.f32.xlu1 %v69_v58 }
 0x126   :  { %v68_v59 = vpop.xlane.xlu1 %67 }
 0x127   :  { %167 = vlog2.f32 %v68_v59 }
 0x12d   :  { %v168_v62 = vpop.eup %167 }
 0x12e   :  { %v73_v63 = vmul.f32 0.6931472, %v168_v62  ;;  %v71_v0 = vpop.xlane.xlu1 %70 }
 0x12f   :  { %169 = vlog2.f32 %v71_v0 }
 0x130   :  { %v76_v3 = vsub.f32 %v60_v49, %v73_v63  ;;  %171 = vrcp.f32 %v174_v15 }
 0x132   :  { %v111_v4 = vsel %vm13_vm0, %v76_v3, 0.0  ;;  %v101_v5 = vmul.f32 %v149_v2, %v76_v3 }
 0x133   :  { %112 = vadd.xlane.f32.xlu0 %v111_v4 }
 0x134   :  { %v103_v7 = vsel %vm13_vm0, %v101_v5, 0.0 }
 0x135   :  { %v170_v8 = vpop.eup %169  ;;  %104 = vadd.xlane.f32.xlu2 %v103_v7 }
 0x136   :  { %v75_v9 = vmul.f32 0.6931472, %v170_v8  ;;  %v172_v16 = vpop.eup %171 }
 0x137   :  { %v120_v17 = vmul.f32 128.0, %v172_v16  ;;  %vm124_vm3 = vweird.f32 %v172_v16 }
 0x138   :  { %v77_v10 = vsub.f32 %v61_v53, %v75_v9 }
 0x139   :  { %v121_v18 = vsub.f32 1.0, %v120_v17 }
 0x13a   :  { %v114_v12 = vsel %vm13_vm0, %v77_v10, 0.0  ;;  %v102_v13 = vmul.f32 %v150_v11, %v77_v10 }
 0x13b   :  { %115 = vadd.xlane.f32.xlu1 %v114_v12  ;;  %v122_v19 = vmul.f32 %v172_v16, %v121_v18 }
 0x13c   :  { %v106_v14 = vsel %vm13_vm0, %v102_v13, 0.0 }
 0x13d   :  { %107 = vadd.xlane.f32.xlu0 %v106_v14  ;;  %v123_v20 = vadd.f32 %v172_v16, %v122_v19 }
 0x13f   :  { %v125_v23 = vsel %vm124_vm3, %v172_v16, %v123_v20 }
 0x1a6   :  { %v113_v21 = vpop.xlane.xlu0 %112 }
 0x1a7   :  { %v117_v22 = vsub.f32 0.0, %v113_v21 }
 0x1a8   :  { %v105_v24 = vpop.xlane.xlu2 %104 }
 0x1a9   :  { %v126_v25 = vmul.f32 %v125_v23, %v117_v22  ;;  %v109_v26 = vsub.f32 0.0, %v105_v24 }
 0x1ab   :  { %v130_v28 = vmul.f32 0.1, %v126_v25  ;;  %v128_v29 = vmul.f32 0.9, %v109_v26 }
 0x1ad   :  { %v132_v34 = vadd.f32 %v130_v28, %v128_v29 }
 0x1ae   :  { %v116_v27 = vpop.xlane.xlu1 %115 }
 0x1af   :  { %v118_v30 = vsub.f32 0.0, %v116_v27  ;;  %v137_v38 = vperm.slane %v132_v34, %v80_v60 }
 0x1b0   :  { %v108_v31 = vpop.xlane.xlu0 %107 }
 0x1b1   :  { %v127_v32 = vmul.f32 %v125_v23, %v118_v30  ;;  %v110_v33 = vsub.f32 0.0, %v108_v31 }
 0x1b3   :  { %v131_v35 = vmul.f32 0.1, %v127_v32  ;;  %v129_v36 = vmul.f32 0.9, %v110_v33 }
 0x1b5   :  { %v133_v37 = vadd.f32 %v131_v35, %v129_v36 }
 0x1b7   :  { %v138_v39 = vperm.slane %v133_v37, %v80_v60 }
 0x1b9   :  { %v140_v40 = vsel %vm139_vm4, %v138_v39, %v137_v38 }
 0x1ba   :  { %v142_v41 = vsel %vm134_vm5, 0.0, %v140_v40 }
 0x1bb   :  { %144 = vst.msk [vmem:[%s221_s2] sm:$0x3] %vm143_vm6, %v142_v41 }

// kernel: blip_decoder_forward.6
= control target key start
LH: loop header
LB: loop body
LE: loop exit
PB: predicated region body
PF: predicated region fallthrough
CT: control target
= control target key end

     0   :  { %s2874_s18 = smov 0   ;;  %s3437_s0 = inlined_call_operand.vmem [shape: f32[20,32], index: 0, kind: input, shape index: {}]   ;;  %s3438_s1 = inlined_call_operand.vmem [shape: f32[2,1,32], index: 1, kind: input, shape index: {}]   ;;  %s3439_s2 = inlined_call_operand.vmem [shape: f32[2,1,32], index: 2, kind: input, shape index: {}]   ;;  %s3440_s3 = inlined_call_operand.vmem [shape: bf16[2,32,96], index: 3, kind: input, shape index: {}]   ;;  %s3441_s4 = inlined_call_operand.vmem [shape: f32[2,1,96], index: 4, kind: input, shape index: {}]   ;;  %s3442_s5 = inlined_call_operand.vmem [shape: bf16[2,32,32], index: 5, kind: input, shape index: {}]   ;;  %s3443_s6 = inlined_call_operand.vmem [shape: f32[2,1,32], index: 6, kind: input, shape index: {}]   ;;  %s3444_s7 = inlined_call_operand.vmem [shape: f32[2,1,32], index: 7, kind: input, shape index: {}]   ;;  %s3445_s8 = inlined_call_operand.vmem [shape: f32[2,1,32], index: 8, kind: input, shape index: {}]   ;;  %s3446_s9 = inlined_call_operand.vmem [shape: bf16[2,32,64], index: 9, kind: input, shape index: {}]   ;;  %s3447_s10 = inlined_call_operand.vmem [shape: f32[2,1,64], index: 10, kind: input, shape index: {}]   ;;  %s3448_s11 = inlined_call_operand.vmem [shape: bf16[2,64,32], index: 11, kind: input, shape index: {}]   ;;  %s3449_s12 = inlined_call_operand.vmem [shape: f32[2,1,32], index: 12, kind: input, shape index: {}]   ;;  %s3450_s13 = inlined_call_operand.vmem [shape: f32[1,32], index: 13, kind: input, shape index: {}]   ;;  %s3451_s14 = inlined_call_operand.vmem [shape: f32[1,32], index: 14, kind: input, shape index: {}]   ;;  %s3452_s15 = inlined_call_operand.vmem [shape: f32[20,32], index: 15, kind: output, shape index: {}]  }
   0x1   :  { %3455 = sst [smem:[#allocation8_spill]] %s3439_s2 }
   0x2   :  { %3456 = sst [smem:[#allocation9_spill]] %s3440_s3 }
   0x3   :  { %3457 = sst [smem:[#allocation10_spill]] %s3442_s5 }
   0x4   :  { %3458 = sst [smem:[#allocation11_spill]] %s3450_s13 }
   0x5   :  { %3459 = sst [smem:[#allocation12_spill]] %s3451_s14 }
   0x6 LB: > { %3460 = sst [smem:[#allocation6_spill]] %s2776_s18  ;;  %s2880_s19 = sadd.s32 4294967295, %s2776_s18   ;;  %s2776_s18 = sphi %s2874_s18, %s25_s18  }
   0x7   : > { %p2523_p0 = scmp.ge.s32.totalorder %s2776_s18, 1  ;;  %p502_p1 = scmp.lt.s32.totalorder %s2776_s18, 3 }
   0x9   : > { %p503_p2 = pnand %p2523_p0, %p502_p1 }
   0xb   : > { %506 = sbr.rel (%p503_p2) target bundleno = 3614 (0xe1e), region = 76 }
  0x10   : > { %p582_p3 = scmp.lt.s32.totalorder %s2880_s19, 1  ;;  %s3462_s3 = sld [smem:[#allocation9_spill]] }
  0x11   : > { %s3463_s5 = sld [smem:[#allocation10_spill]]  ;;  %p2532_p4 = scmp.ne.s32.totalorder %s2880_s19, 0 }
  0x12   : > { %s2886_s20 = scalar_select %p582_p3, %s2880_s19, 1 }
  0x14   : > { %s2625_s27 = sshll.u32 %s2886_s20, 4  ;;  %s606_s2 = scalar_lea.vmem %s3444_s7, %s2886_s20 }
  0x15   : > { %s609_s30 = scalar_lea.vmem %s3445_s8, %s2886_s20  ;;  %630 = sbr.rel (%p2532_p4) target bundleno = 33 (0x21), region = 80 }
  0x16   : > { %s2904_s21 = scalar_lea.vmem %s3462_s3, %s2625_s27  ;;  %s2926_s3 = scalar_lea.vmem %s3446_s9, %s2625_s27 }
  0x17   : > { %s2909_s14 = scalar_lea.vmem %s3463_s5, %s2625_s27  ;;  %s617_s5 = scalar_lea.vmem %s3447_s10, %s2886_s20 }
  0x18   : > { %3464 = sst [smem:[#allocation7_spill]] %s2909_s14  ;;  %s2628_s14 = sshll.u32 %s2886_s20, 5 }
  0x19   : > { %s2936_s24 = scalar_lea.vmem %s3448_s11, %s2628_s14 }
  0x1a   : > { %v643_v0 = vld [vmem:[%s3437_s0] sm:$0xff]  ;;  %v645_v1 = vld [vmem:[%s3437_s0 + $0x8] sm:$0xff]  ;;  %v2533_v2 = vld [vmem:[%s3437_s0 + $0x10] sm:$0xf] }
  0x1b   : > { %644 = vst [vmem:[%s3452_s15] sm:$0xff] %v643_v0 }
  0x1c   : > { %646 = vst [vmem:[%s3452_s15 + $0x8] sm:$0xff] %v645_v1 }
  0x1d   : > { %2534 = vst [vmem:[%s3452_s15 + $0x10] sm:$0xf] %v2533_v2 }
  0x1e   : > { %662 = vsyncadd [#allocation3], 320 }
  0x1f   : > { %2772 = dma.done.wait [#allocation3], 320 }
  0x20   : > { %2773 = vsyncadd [#allocation3], 4294966976 }
  0x21 PF: > { %vm671_vm0 = vcmask 261120   ;;  %vm678_vm1 = vcmask 257024   ;;  %v2778_v9 = vmov 32.0   ;;  %v2630_v31 = vld [vmem:[%s2904_s21 + $0x8] sm:$0xff]  ;;  %v2629_v34 = vld [vmem:[%s2904_s21] sm:$0xff]  ;;  %s3465_s14 = scalar_lea.vmem %s3438_s1, %s2886_s20  ;;  %s3466_s26 = sld [smem:[#allocation8_spill]] }
  0x22   : > { %v666_v3 = vld [vmem:[%s3452_s15] sm:$0xff]  ;;  %2673 = vrcp.f32 %v2778_v9  ;;  %792 = vmatpush.bf16.msra.mxu0 %v2630_v31  ;;  %2639 = vmatpush.bf16.msra.mxu1 %v2630_v31  ;;  %s3468_s16 = scalar_lea.vmem %s3441_s4, %s2886_s20  ;;  %s2779_s17 = smov 96   ;;  %vm865_vm12 = vcmask 64512   ;;  %vm961_vm13 = vcmask 36864   ;;  %vm1016_vm14 = vcmask 1041408  }
  0x23   : > { %v672_v5 = vsel %vm671_vm0, %v666_v3, 0.0  ;;  %v667_v7 = vld [vmem:[%s3452_s15 + $0x8] sm:$0xff]  ;;  %v2665_v56 = vld [vmem:[%s3465_s14] ss:$0 sm:$0xff]  ;;  %s2780_s28 = smov 64   ;;  %s2781_s18 = smov 88  }
  0x24   : > { %v668_v4 = vld [vmem:[%s3452_s15 + $0x10] sm:$0xf]  ;;  %673 = vadd.xlane.f32.xlu0 %v672_v5  ;;  %v675_v8 = vsel %vm671_vm0, %v667_v7, 0.0  ;;  %s2782_s21 = smov 120   ;;  %vm1017_vm15 = vcmask 1042432   ;;  %s2784_s22 = smov 56  }
  0x25   : > { %v679_v6 = vsel %vm678_vm1, %v668_v4, 0.0  ;;  %s2785_s14 = smov 80   ;;  %s2786_s13 = smov 112  }
  0x26   : > { %680 = vadd.xlane.f32.xlu1 %v679_v6  ;;  %793 = vmatpush.bf16.msra.mxu0 %v2629_v34  ;;  %s2787_s23 = smov 72   ;;  %s2790_s29 = smov 40  }
  0x27   : > { %2640 = vmatpush.bf16.msra.mxu1 %v2629_v34  ;;  %s3467_s25 = scalar_lea.vmem %s3466_s26, %s2886_s20  ;;  %s2788_s26 = smov 48  }
  0x28   : > { %v2674_v10 = vpop.eup %2673  ;;  %v2666_v63 = vld [vmem:[%s3467_s25] ss:$0 sm:$0xff]  ;;  %s2789_s25 = smov 104   ;;  %s2791_s27 = smov 8  }
  0x29   : > { %v683_v11 = vmul.f32 32.0, %v2674_v10  ;;  %vm687_vm2 = vweird.f32 %v2674_v10  ;;  %p2621_p5 = scmp.ne.s32.totalorder %s2880_s19, 1 }
  0x2b   : > { %v684_v12 = vsub.f32 1.0, %v683_v11 }
  0x2c   : > { %676 = vadd.xlane.f32.xlu0 %v675_v8 }
  0x2d   : > { %v685_v13 = vmul.f32 %v2674_v10, %v684_v12  ;;  %v2667_v12 = vld [vmem:[%s3468_s16] ss:$0 sm:$0xff]  ;;  %s2792_s16 = smov 16  }
  0x2f   : > { %v686_v14 = vadd.f32 %v2674_v10, %v685_v13 }
  0x31   : > { %v2973_v15 = vsel %vm687_vm2, %v2674_v10, %v686_v14  ;;  %vm1012_vm2 = vcmask 39936  }
  0x97   : > { %v674_v16 = vpop.xlane.xlu0 %673 }
  0x98   : > { %v689_v17 = vmul.f32 %v2973_v15, %v674_v16 }
  0x99   : > { %v681_v20 = vpop.xlane.xlu1 %680 }
  0x9a   : > { %v692_v18 = vsub.f32 %v666_v3, %v689_v17  ;;  %v691_v24 = vmul.f32 %v2973_v15, %v681_v20 }
  0x9c   : > { %v695_v19 = vmul.f32 %v692_v18, %v692_v18  ;;  %v2979_v26 = vsub.f32 %v668_v4, %v691_v24 }
  0x9e   : > { %v698_v21 = vsel %vm671_vm0, %v695_v19, 0.0  ;;  %v697_v29 = vmul.f32 %v2979_v26, %v2979_v26 }
  0x9f   : > { %699 = vadd.xlane.f32.xlu1 %v698_v21  ;;  %v677_v22 = vpop.xlane.xlu0 %676 }
  0xa0   : > { %v690_v23 = vmul.f32 %v2973_v15, %v677_v22  ;;  %v704_v30 = vsel %vm678_vm1, %v697_v29, 0.0 }
  0xa2   : > { %v693_v25 = vsub.f32 %v667_v7, %v690_v23 }
  0xa4   : > { %v696_v27 = vmul.f32 %v693_v25, %v693_v25 }
  0xa6   : > { %v701_v28 = vsel %vm671_vm0, %v696_v27, 0.0 }
  0xa7   : > { %702 = vadd.xlane.f32.xlu2 %v701_v28 }
  0xaf   : > { %705 = vadd.xlane.f32.xlu2 %v704_v30 }
 0x112   : > { %v700_v32 = vpop.xlane.xlu1 %699 }
 0x113   : > { %v707_v33 = vmul.f32 %v700_v32, %v2973_v15 }
 0x115   : > { %v710_v35 = vadd.f32 1e-06, %v707_v33 }
 0x117   : > { %2675 = vrsqrt.f32 %v710_v35  ;;  %vm719_vm4 = vweird.f32 %v710_v35 }
 0x11a   : > { %v703_v36 = vpop.xlane.xlu2 %702 }
 0x11b   : > { %v708_v37 = vmul.f32 %v703_v36, %v2973_v15 }
 0x11d   : > { %v2676_v38 = vpop.eup %2675  ;;  %v711_v39 = vadd.f32 1e-06, %v708_v37 }
 0x11e   : > { %v714_v40 = vmul.f32 %v2676_v38, %v710_v35  ;;  %vm720_vm3 = vweird.f32 %v2676_v38 }
 0x11f   : > { %2677 = vrsqrt.f32 %v711_v39  ;;  %vm721_vm5 = vmor %vm719_vm4, %vm720_vm3  ;;  %vm729_vm7 = vweird.f32 %v711_v39  ;;  %vm1103_vm3 = vcmask 59392   ;;  %vm1104_vm4 = vsmask.f32 2304 }
 0x120   : > { %v715_v41 = vmul.f32 %v2676_v38, %v714_v40 }
 0x122   : > { %v716_v42 = vmul.f32 0.5, %v715_v41  ;;  %v706_v43 = vpop.xlane.xlu2 %705 }
 0x123   : > { %v709_v44 = vmul.f32 %v706_v43, %v2973_v15 }
 0x124   : > { %v717_v45 = vsub.f32 1.5, %v716_v42 }
 0x125   : > { %v2678_v46 = vpop.eup %2677  ;;  %v712_v47 = vadd.f32 1e-06, %v709_v44 }
 0x126   : > { %v718_v48 = vmul.f32 %v2676_v38, %v717_v45  ;;  %v724_v49 = vmul.f32 %v2678_v46, %v711_v39  ;;  %vm730_vm6 = vweird.f32 %v2678_v46 }
 0x127   : > { %2679 = vrsqrt.f32 %v712_v47  ;;  %vm731_vm8 = vmor %vm729_vm7, %vm730_vm6  ;;  %vm739_vm9 = vweird.f32 %v712_v47  ;;  %vm1366_vm6 = vcmask 124992  }
 0x128   : > { %v725_v50 = vmul.f32 %v2678_v46, %v724_v49  ;;  %v722_v51 = vsel %vm721_vm5, %v2676_v38, %v718_v48  ;;  %vm3087_vm5 = vmand %vm1103_vm3, %vm1104_vm4 }
 0x129   : > { %v743_v55 = vmul.f32 %v722_v51, %v692_v18  ;;  %vm3224_vm7 = vmand %vm1366_vm6, %vm1104_vm4 }
 0x12a   : > { %v726_v52 = vmul.f32 0.5, %v725_v50 }
 0x12b   : > { %v749_v62 = vmul.f32 %v2665_v56, %v743_v55 }
 0x12c   : > { %v727_v53 = vsub.f32 1.5, %v726_v52 }
 0x12d   : > { %v2680_v54 = vpop.eup %2679  ;;  %v755_v3 = vadd.f32 %v2666_v63, %v749_v62 }
 0x12e   : > { %v728_v57 = vmul.f32 %v2678_v46, %v727_v53  ;;  %v734_v58 = vmul.f32 %v2680_v54, %v712_v47  ;;  %vm740_vm10 = vweird.f32 %v2680_v54 }
 0x12f   : > { %vm741_vm11 = vmor %vm739_vm9, %vm740_vm10  ;;  %vm1890_vm10 = vcmask 256192  }
 0x130   : > { %v732_v59 = vsel %vm731_vm8, %v2678_v46, %v728_v57  ;;  %v735_v60 = vmul.f32 %v2680_v54, %v734_v58  ;;  %vm1628_vm8 = vcmask 190592  }
 0x131   : > { %v744_v61 = vmul.f32 %v732_v59, %v693_v25  ;;  %vm3259_vm9 = vmand %vm1628_vm8, %vm1104_vm4 }
 0x132   : > { %v736_v0 = vmul.f32 0.5, %v735_v60 }
 0x133   : > { %v750_v1 = vmul.f32 %v2665_v56, %v744_v61 }
 0x134   : > { %v737_v2 = vsub.f32 1.5, %v736_v0 }
 0x135   : > { %v756_v4 = vadd.f32 %v2666_v63, %v750_v1 }
 0x136   : > { %v738_v5 = vmul.f32 %v2680_v54, %v737_v2 }
 0x137   : > { %v763_v6 = vpack.c.bf16 %v756_v4, %v755_v3 }
 0x138   : > { %v742_v7 = vsel %vm741_vm11, %v2680_v54, %v738_v5  ;;  %vm3278_vm11 = vmand %vm1890_vm10, %vm1104_vm4  ;;  %vm2254_vm10 = vcmask 523264  }
 0x139   : > { %2543 = vmatmul.msk.bf16.vlgmr.msra.gmra.mxu0 %vm671_vm0, %v763_v6  ;;  %v745_v8 = vmul.f32 %v742_v7, %v2979_v26 }
 0x13b   : > { %v751_v9 = vmul.f32 %v2665_v56, %v745_v8 }
 0x13d   : > { %v757_v10 = vadd.f32 %v2666_v63, %v751_v9 }
 0x13f   : > { %v764_v11 = vpack.c.bf16 %v757_v10, %v757_v10 }
 0x141   : > { %2544 = vmatmul.msk.bf16.vlgmr.msra.gmra.mxu1 %vm671_vm0, %v764_v11 }
 0x1b6   : > { %v795_v13 = vpop.f32.mrf.mxu0 }
 0x1b7   : > { %v796_v14 = vadd.f32 %v2667_v12, %v795_v13 }
 0x1b9   : > { %v807_v16 = vrot.slane %v796_v14, 1  ;;  %v808_v17 = vrot.slane %v796_v14, 2  ;;  %v809_v18 = vrot.slane %v796_v14, 3  ;;  %824 = vst [vmem:[#allocation1] ss:$9 sm:$0xff] %v796_v14  ;;  %v810_v19 = vrot.slane %v796_v14, 4 }
 0x1ba   : > { %v811_v23 = vrot.slane %v796_v14, 5  ;;  %v813_v24 = vrot.slane %v796_v14, 7  ;;  %v812_v26 = vrot.slane %v796_v14, 6 }
 0x1bb   : > { %826 = vst [vmem:[#allocation1 + $0x1] ss:$9 sm:$0xff] %v807_v16 }
 0x1bc   : > { %828 = vst [vmem:[#allocation1 + $0x2] ss:$9 sm:$0xff] %v808_v17 }
 0x1bd   : > { %830 = vst [vmem:[#allocation1 + $0x3] ss:$9 sm:$0xff] %v809_v18 }
 0x1be   : > { %832 = vst [vmem:[#allocation1 + $0x4] ss:$9 sm:$0xff] %v810_v19  ;;  %v800_v20 = vpop.f32.mrf.mxu1  ;;  %v797_v21 = vpop.f32.mrf.mxu0 }
 0x1bf   : > { %v798_v22 = vadd.f32 %v2667_v12, %v797_v21  ;;  %v801_v41 = vadd.f32 %v2667_v12, %v800_v20 }
 0x1c1   : > { %v814_v27 = vrot.slane %v798_v22, 1  ;;  %v815_v32 = vrot.slane %v798_v22, 2  ;;  %v817_v33 = vrot.slane %v798_v22, 4  ;;  %v818_v35 = vrot.slane %v798_v22, 5 }
 0x1c2   : > { %v819_v37 = vrot.slane %v798_v22, 6  ;;  %v816_v38 = vrot.slane %v798_v22, 3  ;;  %v820_v42 = vrot.slane %v798_v22, 7  ;;  %v821_v44 = vrot.slane %v801_v41, 1 }
 0x1c3   : > { %v822_v46 = vrot.slane %v801_v41, 2  ;;  %v823_v47 = vrot.slane %v801_v41, 3 }
 0x1c5   : > { %v833_v25 = vld [vmem:[#allocation1] sm:$0xff] }
 0x1c6   : > { %834 = vst [vmem:[#allocation1] ss:$9 sm:$0xff] %v811_v23  ;;  %v802_v28 = vpop.f32.mrf.mxu1  ;;  %v856_v29 = vpack.c.bf16 %v833_v25, %v833_v25  ;;  %v2783_v23 = vmov 65535  }
 0x1c7   : > { %836 = vst [vmem:[#allocation1 + $0x2] ss:$9 sm:$0xff] %v813_v24  ;;  %v1018_v24 = vsel %vm1016_vm14, 4294967295, %v2783_v23  ;;  %vm1925_vm14 = vcmask 1042434  }
 0x1c8   : > { %835 = vst [vmem:[#allocation1 + $0x1] ss:$9 sm:$0xff] %v812_v26  ;;  %v861_v30 = vunpack.c.l.b16 %v856_v29  ;;  %v3052_v25 = vsel %vm1017_vm15, %v1018_v24, 0  ;;  %v1106_v24 = vld [vmem:[#allocation2] sm:$0x7] }
 0x1c9   : > { %837 = vst [vmem:[#allocation1 + $0x3] ss:$9 sm:$0xff] %v798_v22 }
 0x1ca   : > { %838 = vst [vmem:[#allocation1 + $0x4] ss:$9 sm:$0xff] %v814_v27  ;;  %v3008_v31 = vpack.c.b16 %v861_v30, %v861_v30 }
 0x1cc   : > { %863 = vrot.lane.b32.xlu1 %v3008_v31, %s2779_s17 }
 0x1d1   : > { %v839_v34 = vld [vmem:[#allocation1] sm:$0xff] }
 0x1d2   : > { %840 = vst [vmem:[#allocation1] ss:$9 sm:$0xff] %v815_v32  ;;  %v857_v36 = vpack.c.bf16 %v839_v34, %v839_v34 }
 0x1d3   : > { %842 = vst [vmem:[#allocation1 + $0x2] ss:$9 sm:$0xff] %v817_v33 }
 0x1d4   : > { %843 = vst [vmem:[#allocation1 + $0x3] ss:$9 sm:$0xff] %v818_v35  ;;  %v886_v39 = vunpack.c.l.b16 %v857_v36 }
 0x1d5   : > { %844 = vst [vmem:[#allocation1 + $0x4] ss:$9 sm:$0xff] %v819_v37 }
 0x1d6   : > { %841 = vst [vmem:[#allocation1 + $0x1] ss:$9 sm:$0xff] %v816_v38  ;;  %v3012_v40 = vpack.c.b16 %v886_v39, %v886_v39 }
 0x1d8   : > { %888 = vrot.lane.b32.xlu0 %v3012_v40, %s2779_s17 }
 0x1dd   : > { %v845_v43 = vld [vmem:[#allocation1] sm:$0xff] }
 0x1de   : > { %846 = vst [vmem:[#allocation1] ss:$9 sm:$0xff] %v820_v42  ;;  %v858_v45 = vpack.c.bf16 %v845_v43, %v845_v43 }
 0x1df   : > { %847 = vst [vmem:[#allocation1 + $0x1] ss:$9 sm:$0xff] %v801_v41 }
 0x1e0   : > { %848 = vst [vmem:[#allocation1 + $0x2] ss:$9 sm:$0xff] %v821_v44  ;;  %v910_v48 = vunpack.c.l.b16 %v858_v45 }
 0x1e1   : > { %849 = vst [vmem:[#allocation1 + $0x3] ss:$9 sm:$0xff] %v822_v46 }
 0x1e2   : > { %850 = vst [vmem:[#allocation1 + $0x4] ss:$9 sm:$0xff] %v823_v47  ;;  %v3016_v49 = vpack.c.b16 %v910_v48, %v910_v48 }
 0x1e4   : > { %912 = vrot.lane.b32.xlu2 %v3016_v49, %s2779_s17 }
 0x1e9   : > { %v851_v50 = vld [vmem:[#allocation1] sm:$0xff] }
 0x1ea   : > { %v859_v51 = vpack.c.bf16 %v851_v50, %v851_v50 }
 0x1ec   : > { %v934_v52 = vunpack.c.l.b16 %v859_v51 }
 0x1ee   : > { %v3020_v53 = vpack.c.b16 %v934_v52, %v934_v52 }
 0x1f0   : > { %936 = vrot.lane.b32.xlu0 %v3020_v53, %s2779_s17  ;;  %s2793_s17 = smov 24  }
 0x23e   : > { %v913_v54 = vpop.permute.xlu2 %912  ;;  %v864_v55 = vpop.permute.xlu1 %863 }
 0x23f   : > { %v918_v56 = vsel %vm865_vm12, %v913_v54, 0  ;;  %v870_v57 = vsel %vm865_vm12, %v864_v55, 0 }
 0x240   : > { %927 = vmatpush.bf16.xpose.msra.mxu3 %v918_v56  ;;  %879 = vmatpush.bf16.xpose.msrb.mxu1 %v870_v57 }
 0x247   : > { %2547 = vmatmul.msk.bf16.vlgmr.msra.gmra.mxu3 %vm865_vm12, %v858_v45  ;;  %2545 = vmatmul.msk.bf16.vlgmr.msrb.gmra.mxu1 %vm865_vm12, %v856_v29 }
 0x24a   : > { %v889_v58 = vpop.permute.xlu0 %888 }
 0x24b   : > { %v894_v59 = vsel %vm865_vm12, %v889_v58, 0 }
 0x24c   : > { %903 = vmatpush.bf16.xpose.msra.mxu2 %v894_v59 }
 0x253   : > { %2546 = vmatmul.msk.bf16.vlgmr.msra.gmra.mxu2 %vm865_vm12, %v857_v36 }
 0x262   : > { %v937_v60 = vpop.permute.xlu0 %936 }
 0x263   : > { %v942_v61 = vsel %vm865_vm12, %v937_v60, 0 }
 0x264   : > { %951 = vmatpush.bf16.xpose.msra.mxu1 %v942_v61 }
 0x26b   : > { %2548 = vmatmul.msk.bf16.vlgmr.msra.gmra.mxu1 %vm865_vm12, %v859_v51 }
 0x2c4   : > { %v881_v62 = vpop.f32.mrf.mxu1 }
 0x2c5   : > { %v957_v63 = vmul.f32 0.35355338, %v881_v62 }
 0x2c7   : > { %v962_v0 = vsel %vm961_vm13, %v957_v63, -inf }
 0x2c8   : > { %963 = vmax.xlane.f32.xlu1 %v962_v0 }
 0x2ca   : > { %v929_v1 = vpop.f32.mrf.mxu3 }
 0x2cb   : > { %v959_v2 = vmul.f32 0.35355338, %v929_v1 }
 0x2cc   : > { %v883_v3 = vpop.f32.mrf.mxu1 }
 0x2cd   : > { %v968_v4 = vsel %vm961_vm13, %v959_v2, -inf }
 0x2ce   : > { %969 = vmax.xlane.f32.xlu0 %v968_v4 }
 0x2d2   : > { %v931_v5 = vpop.f32.mrf.mxu3 }
 0x2d6   : > { %v905_v6 = vpop.f32.mrf.mxu2 }
 0x2d7   : > { %v958_v7 = vmul.f32 0.35355338, %v905_v6 }
 0x2d9   : > { %v965_v8 = vsel %vm961_vm13, %v958_v7, -inf }
 0x2da   : > { %966 = vmax.xlane.f32.xlu2 %v965_v8 }
 0x2de   : > { %v907_v9 = vpop.f32.mrf.mxu2 }
 0x2e8   : > { %v953_v10 = vpop.f32.mrf.mxu1 }
 0x2e9   : > { %v960_v12 = vmul.f32 0.35355338, %v953_v10 }
 0x2eb   : > { %v971_v13 = vsel %vm961_vm13, %v960_v12, -inf }
 0x2f0   : > { %v955_v11 = vpop.f32.mrf.mxu1 }
 0x2f2   : > { %1036 = vrot.lane.b32.xlu2 %v3012_v40, %s2780_s28 }
 0x31b   : > { %972 = vmax.xlane.f32.xlu2 %v971_v13 }
 0x333   : > { %1120 = vrot.lane.b32.xlu2 %v3008_v31, %s2781_s18 }
 0x33b   : > { %1141 = vrot.lane.b32.xlu2 %v3012_v40, %s2782_s21  ;;  %v964_v14 = vpop.xlane.xlu1 %963 }
 0x33c   : > { %v974_v16 = vsub.f32 %v957_v63, %v964_v14 }
 0x33e   : > { %v978_v17 = vmul.f32 1.442695, %v974_v16 }
 0x340   : > { %2681 = vpow2.f32 %v978_v17  ;;  %v1109_v17 = vld [vmem:[#allocation2 + $0x4] sm:$0x7] }
 0x341   : > { %v970_v30 = vpop.xlane.xlu0 %969 }
 0x342   : > { %v976_v32 = vsub.f32 %v959_v2, %v970_v30 }
 0x343   : > { %1118 = vrot.lane.b32.xlu2 %v3008_v31, %s2782_s21 }
 0x344   : > { %v982_v33 = vmul.f32 1.442695, %v976_v32 }
 0x346   : > { %v3044_v18 = vpop.eup %2681 }
 0x347   : > { %v986_v19 = vsel %vm961_vm13, %v3044_v18, 0.0 }
 0x348   : > { %987 = vadd.xlane.f32.xlu0 %v986_v19 }
 0x34b   : > { %1057 = vrot.lane.b32.xlu2 %v3016_v49, %s2780_s28 }
 0x34d   : > { %v967_v20 = vpop.xlane.xlu2 %966 }
 0x34e   : > { %v975_v21 = vsub.f32 %v958_v7, %v967_v20 }
 0x350   : > { %v980_v22 = vmul.f32 1.442695, %v975_v21 }
 0x352   : > { %2683 = vpow2.f32 %v980_v22 }
 0x353   : > { %1078 = vrot.lane.b32.xlu2 %v3020_v53, %s2780_s28  ;;  %2685 = vpow2.f32 %v982_v33 }
 0x355   : > { %v1037_v26 = vpop.permute.xlu2 %1036 }
 0x356   : > { %v1042_v27 = vand.u32 %v1037_v26, %v3052_v25 }
 0x358   : > { %v2684_v28 = vpop.eup %2683  ;;  %1051 = vmatpush.bf16.msrb.mxu3 %v1042_v27 }
 0x359   : > { %v989_v29 = vsel %vm961_vm13, %v2684_v28, 0.0  ;;  %v2686_v34 = vpop.eup %2685 }
 0x35a   : > { %990 = vadd.xlane.f32.xlu1 %v989_v29  ;;  %v992_v35 = vsel %vm961_vm13, %v2686_v34, 0.0 }
 0x35b   : > { %1166 = vrot.lane.b32.xlu2 %v3016_v49, %s2781_s18 }
 0x35c   : > { %1143 = vrot.lane.b32.xlu0 %v3012_v40, %s2781_s18 }
 0x363   : > { %1187 = vrot.lane.b32.xlu2 %v3020_v53, %s2782_s21 }
 0x373   : > { %1010 = vrot.lane.b32.xlu1 %v3008_v31, %s2780_s28  ;;  %s3477_s28 = sld [smem:[#allocation7_spill]] }
 0x386   : > { %993 = vadd.xlane.f32.xlu0 %v992_v35 }
 0x38e   : > { %v973_v36 = vpop.xlane.xlu2 %972 }
 0x38f   : > { %v977_v37 = vsub.f32 %v960_v12, %v973_v36  ;;  %v1112_v36 = vld [vmem:[#allocation2 + $0x8] sm:$0x7] }
 0x391   : > { %v984_v38 = vmul.f32 1.442695, %v977_v37 }
 0x393   : > { %2687 = vpow2.f32 %v984_v38 }
 0x396   : > { %v1121_v39 = vpop.permute.xlu2 %1120 }
 0x397   : > { %v1126_v0 = vsel %vm865_vm12, %v1121_v39, 0 }
 0x399   : > { %v2688_v41 = vpop.eup %2687 }
 0x39a   : > { %1189 = vrot.lane.b32.xlu0 %v3020_v53, %s2781_s18  ;;  %v995_v42 = vsel %vm961_vm13, %v2688_v41, 0.0 }
 0x39d   : > { %996 = vadd.xlane.f32.xlu1 %v995_v42 }
 0x39e   : > { %v1142_v43 = vpop.permute.xlu2 %1141 }
 0x3a6   : > { %v1119_v44 = vpop.permute.xlu2 %1118 }
 0x3ae   : > { %v1058_v45 = vpop.permute.xlu2 %1057 }
 0x3af   : > { %v1063_v46 = vand.u32 %v1058_v45, %v3052_v25 }
 0x3b1   : > { %1072 = vmatpush.bf16.msrb.mxu0 %v1063_v46 }
 0x3b6   : > { %1164 = vrot.lane.b32.xlu1 %v3016_v49, %s2782_s21  ;;  %v1079_v47 = vpop.permute.xlu2 %1078  ;;  %s3480_s21 = sld [smem:[#allocation11_spill]] (!%p2621_p5) }
 0x3b7   : > { %v1084_v48 = vand.u32 %v1079_v47, %v3052_v25 }
 0x3b9   : > { %1093 = vmatpush.bf16.msrb.mxu1 %v1084_v48 }
 0x3bb   : > { %v988_v52 = vpop.xlane.xlu0 %987 }
 0x3be   : > { %v1167_v50 = vpop.permute.xlu2 %1166 }
 0x3bf   : > { %v1172_v51 = vsel %vm865_vm12, %v1167_v50, 0 }
 0x3c0   : > { %1181 = vmatpush.bf16.xpose.msra.mxu0 %v1172_v51 }
 0x3c6   : > { %v1188_v13 = vpop.permute.xlu2 %1187 }
 0x3cd   : > { %v991_v54 = vpop.xlane.xlu1 %990 }
 0x3ce   : > { %2689 = vrcp.f32 %v991_v54  ;;  %v1144_v55 = vpop.permute.xlu0 %1143 }
 0x3cf   : > { %v1149_v56 = vsel %vm865_vm12, %v1144_v55, 0  ;;  %2691 = vrcp.f32 %v988_v52 }
 0x3d0   : > { %1158 = vmatpush.bf16.xpose.msra.mxu3 %v1149_v56 }
 0x3d4   : > { %v2690_v57 = vpop.eup %2689 }
 0x3d5   : > { %v1003_v58 = vmul.f32 %v2690_v57, %v2684_v28  ;;  %v2692_v60 = vpop.eup %2691 }
 0x3d6   : > { %v1002_v61 = vmul.f32 %v2692_v60, %v3044_v18 }
 0x3d7   : > { %v1007_v59 = vpack.c.bf16 %v1003_v58, %v1003_v58 }
 0x3d8   : > { %v1006_v1 = vpack.c.bf16 %v1002_v61, %v1002_v61 }
 0x3d9   : > { %2550 = vmatmul.msk.bf16.vlgmr.msrb.gmra.mxu3 %vm1012_vm2, %v1007_v59 }
 0x3e5   : > { %v1011_v62 = vpop.permute.xlu1 %1010 }
 0x3e6   : > { %v1021_v63 = vand.u32 %v3052_v25, %v1011_v62 }
 0x3e8   : > { %1030 = vmatpush.bf16.msrb.mxu2 %v1021_v63 }
 0x3e9   : > { %2554 = vmatmul.msk.bf16.vlgmr.msra.gmra.mxu3 %vm865_vm12, %v1142_v43  ;;  %v1115_v43 = vld [vmem:[#allocation2 + $0xc] sm:$0x7] }
 0x3eb   : > { %2549 = vmatmul.msk.bf16.vlgmr.msrb.gmra.mxu2 %vm1012_vm2, %v1006_v1 }
 0x3ec   : > { %1135 = vmatpush.bf16.xpose.msra.mxu2 %v1126_v0 }
 0x3f9   : > { %v994_v2 = vpop.xlane.xlu0 %993 }
 0x3fa   : > { %2693 = vrcp.f32 %v994_v2 }
 0x3fb   : > { %2553 = vmatmul.msk.bf16.vlgmr.msra.gmra.mxu2 %vm865_vm12, %v1119_v44 }
 0x400   : > { %v2694_v3 = vpop.eup %2693 }
 0x401   : > { %v1004_v4 = vmul.f32 %v2694_v3, %v2686_v34 }
 0x403   : > { %v1008_v5 = vpack.c.bf16 %v1004_v4, %v1004_v4 }
 0x405   : > { %2551 = vmatmul.msk.bf16.vlgmr.msrb.gmra.mxu0 %vm1012_vm2, %v1008_v5 }
 0x40c   : > { %v1190_v6 = vpop.permute.xlu0 %1189 }
 0x40d   : > { %v1195_v7 = vsel %vm865_vm12, %v1190_v6, 0 }
 0x40e   : > { %1204 = vmatpush.bf16.xpose.msra.mxu1 %v1195_v7 }
 0x410   : > { %v997_v8 = vpop.xlane.xlu1 %996 }
 0x411   : > { %2695 = vrcp.f32 %v997_v8 }
 0x417   : > { %v2696_v9 = vpop.eup %2695 }
 0x418   : > { %v1005_v10 = vmul.f32 %v2696_v9, %v2688_v41 }
 0x41a   : > { %v1009_v11 = vpack.c.bf16 %v1005_v10, %v1005_v10 }
 0x41c   : > { %2552 = vmatmul.msk.bf16.vlgmr.msrb.gmra.mxu1 %vm1012_vm2, %v1009_v11 }
 0x428   : > { %v1165_v12 = vpop.permute.xlu1 %1164 }
 0x429   : > { %2555 = vmatmul.msk.bf16.vlgmr.msra.gmra.mxu0 %vm865_vm12, %v1165_v12 }
 0x42c   : > { %2556 = vmatmul.msk.bf16.vlgmr.msra.gmra.mxu1 %vm865_vm12, %v1188_v13 }
 0x45c   : > { %v1053_v14 = vpop.f32.mrf.mxu3 }
 0x45d   : > { %v1100_v18 = vpack.c.bf16 %v1053_v14, %v1053_v14 }
 0x45f   : > { %v1110_v19 = vsel %vm3087_vm5, %v1100_v18, %v1109_v17 }
 0x460   : > { %1111 = vst [vmem:[#allocation2 + $0x4] sm:$0x7] %v1110_v19 }
 0x464   : > { %v1055_v20 = vpop.f32.mrf.mxu3 }
 0x46c   : > { %v1160_v21 = vpop.f32.mrf.mxu3 }
 0x46d   : > { %v1211_v22 = vmul.f32 0.35355338, %v1160_v21 }
 0x46e   : > { %v1032_v23 = vpop.f32.mrf.mxu2 }
 0x46f   : > { %v1099_v26 = vpack.c.bf16 %v1032_v23, %v1032_v23  ;;  %v1217_v27 = vsel %vm961_vm13, %v1211_v22, -inf }
 0x470   : > { %1218 = vmax.xlane.f32.xlu2 %v1217_v27 }
 0x471   : > { %v1107_v28 = vsel %vm3087_vm5, %v1099_v26, %v1106_v24 }
 0x472   : > { %1108 = vst [vmem:[#allocation2] sm:$0x7] %v1107_v28 }
 0x474   : > { %v1162_v29 = vpop.f32.mrf.mxu3 }
 0x476   : > { %v1034_v30 = vpop.f32.mrf.mxu2 }
 0x47e   : > { %v1137_v32 = vpop.f32.mrf.mxu2 }
 0x47f   : > { %v1210_v33 = vmul.f32 0.35355338, %v1137_v32 }
 0x481   : > { %v1214_v34 = vsel %vm961_vm13, %v1210_v33, -inf }
 0x482   : > { %1215 = vmax.xlane.f32.xlu0 %v1214_v34  ;;  %v1074_v35 = vpop.f32.mrf.mxu0 }
 0x483   : > { %v1101_v37 = vpack.c.bf16 %v1074_v35, %v1074_v35 }
 0x485   : > { %v1113_v38 = vsel %vm3087_vm5, %v1101_v37, %v1112_v36 }
 0x486   : > { %1114 = vst [vmem:[#allocation2 + $0x8] sm:$0x7] %v1113_v38  ;;  %v1139_v39 = vpop.f32.mrf.mxu2 }
 0x48a   : > { %v1076_v41 = vpop.f32.mrf.mxu0 }
 0x499   : > { %v1095_v42 = vpop.f32.mrf.mxu1 }
 0x49a   : > { %v1102_v44 = vpack.c.bf16 %v1095_v42, %v1095_v42 }
 0x49c   : > { %v1116_v45 = vsel %vm3087_vm5, %v1102_v44, %v1115_v43 }
 0x49d   : > { %1117 = vst [vmem:[#allocation2 + $0xc] sm:$0x7] %v1116_v45 }
 0x4a1   : > { %v1097_v46 = vpop.f32.mrf.mxu1 }
 0x4a6   : > { %v1183_v47 = vpop.f32.mrf.mxu0 }
 0x4a7   : > { %v1212_v48 = vmul.f32 0.35355338, %v1183_v47 }
 0x4a9   : > { %v1206_v50 = vpop.f32.mrf.mxu1  ;;  %v1220_v51 = vsel %vm961_vm13, %v1212_v48, -inf }
 0x4aa   : > { %v1213_v52 = vmul.f32 0.35355338, %v1206_v50  ;;  %1221 = vmax.xlane.f32.xlu1 %v1220_v51 }
 0x4ac   : > { %v1223_v54 = vsel %vm961_vm13, %v1213_v52, -inf }
 0x4ad   : > { %1224 = vmax.xlane.f32.xlu2 %v1223_v54 }
 0x4ae   : > { %v1185_v55 = vpop.f32.mrf.mxu0 }
 0x4b1   : > { %v1208_v56 = vpop.f32.mrf.mxu1 }
 0x4c3   : > { %1283 = vrot.lane.b32.xlu1 %v3012_v40, %s2784_s22 }
 0x4cb   : > { %1382 = vrot.lane.b32.xlu1 %v3008_v31, %s2785_s14 }
 0x4d3   : > { %1304 = vrot.lane.b32.xlu1 %v3016_v49, %s2784_s22 }
 0x4db   : > { %1325 = vrot.lane.b32.xlu1 %v3020_v53, %s2784_s22 }
 0x4e3   : > { %1428 = vrot.lane.b32.xlu1 %v3016_v49, %s2785_s14  ;;  %v1219_v57 = vpop.xlane.xlu2 %1218 }
 0x4e4   : > { %v1227_v58 = vsub.f32 %v1211_v22, %v1219_v57 }
 0x4e6   : > { %v1232_v59 = vmul.f32 1.442695, %v1227_v58 }
 0x4e8   : > { %2697 = vpow2.f32 %v1232_v59 }
 0x4eb   : > { %1426 = vrot.lane.b32.xlu1 %v3016_v49, %s2786_s13 }
 0x4ee   : > { %v2698_v60 = vpop.eup %2697 }
 0x4ef   : > { %v1241_v61 = vsel %vm961_vm13, %v2698_v60, 0.0 }
 0x4f0   : > { %1242 = vadd.xlane.f32.xlu0 %v1241_v61 }
 0x4f5   : > { %v1216_v62 = vpop.xlane.xlu0 %1215 }
 0x4f6   : > { %v1226_v63 = vsub.f32 %v1210_v33, %v1216_v62 }
 0x4f8   : > { %v1230_v0 = vmul.f32 1.442695, %v1226_v63 }
 0x4fa   : > { %2699 = vpow2.f32 %v1230_v0 }
 0x500   : > { %v2700_v1 = vpop.eup %2699 }
 0x501   : > { %v1238_v2 = vsel %vm961_vm13, %v2700_v1, 0.0 }
 0x502   : > { %1239 = vadd.xlane.f32.xlu2 %v1238_v2 }
 0x504   : > { %1262 = vrot.lane.b32.xlu0 %v3008_v31, %s2784_s22  ;;  %s3478_s22 = scalar_lea.vmem %s3443_s6, %s2886_s20 }
 0x51a   : > { %1405 = vrot.lane.b32.xlu2 %v3012_v40, %s2785_s14 }
 0x51d   : > { %v1222_v8 = vpop.xlane.xlu1 %1221 }
 0x51e   : > { %v1228_v9 = vsub.f32 %v1212_v48, %v1222_v8 }
 0x520   : > { %v1225_v3 = vpop.xlane.xlu2 %1224  ;;  %v1234_v10 = vmul.f32 1.442695, %v1228_v9 }
 0x521   : > { %v1229_v4 = vsub.f32 %v1213_v52, %v1225_v3 }
 0x523   : > { %v1236_v5 = vmul.f32 1.442695, %v1229_v4 }
 0x525   : > { %2701 = vpow2.f32 %v1236_v5 }
 0x526   : > { %2703 = vpow2.f32 %v1234_v10 }
 0x52b   : > { %v2702_v6 = vpop.eup %2701 }
 0x52c   : > { %v1247_v7 = vsel %vm961_vm13, %v2702_v6, 0.0  ;;  %v2704_v14 = vpop.eup %2703 }
 0x52d   : > { %v1244_v16 = vsel %vm961_vm13, %v2704_v14, 0.0 }
 0x52e   : > { %1248 = vadd.xlane.f32.xlu0 %v1247_v7 }
 0x535   : > { %v1284_v11 = vpop.permute.xlu1 %1283 }
 0x536   : > { %v1289_v12 = vand.u32 %v1284_v11, %v3052_v25 }
 0x538   : > { %1298 = vmatpush.bf16.msrb.mxu3 %v1289_v12 }
 0x53d   : > { %v1383_v13 = vpop.permute.xlu1 %1382 }
 0x53e   : > { %v1388_v32 = vsel %vm865_vm12, %v1383_v13, 0 }
 0x543   : > { %1245 = vadd.xlane.f32.xlu2 %v1244_v16 }
 0x545   : > { %v1305_v17 = vpop.permute.xlu1 %1304 }
 0x546   : > { %v1310_v18 = vand.u32 %v1305_v17, %v3052_v25 }
 0x548   : > { %1319 = vmatpush.bf16.msrb.mxu0 %v1310_v18 }
 0x54d   : > { %v1326_v19 = vpop.permute.xlu1 %1325 }
 0x54e   : > { %v1331_v20 = vand.u32 %v1326_v19, %v3052_v25 }
 0x550   : > { %1340 = vmatpush.bf16.msrb.mxu1 %v1331_v20 }
 0x555   : > { %v1429_v21 = vpop.permute.xlu1 %1428 }
 0x556   : > { %v1434_v22 = vsel %vm865_vm12, %v1429_v21, 0 }
 0x557   : > { %1443 = vmatpush.bf16.xpose.msra.mxu0 %v1434_v22 }
 0x55b   : > { %1403 = vrot.lane.b32.xlu2 %v3012_v40, %s2786_s13 }
 0x55d   : > { %v1427_v52 = vpop.permute.xlu1 %1426 }
 0x563   : > { %1380 = vrot.lane.b32.xlu2 %v3008_v31, %s2786_s13  ;;  %v1243_v23 = vpop.xlane.xlu0 %1242 }
 0x564   : > { %2705 = vrcp.f32 %v1243_v23 }
 0x56a   : > { %v2706_v24 = vpop.eup %2705 }
 0x56b   : > { %v1255_v26 = vmul.f32 %v2706_v24, %v2698_v60  ;;  %1451 = vrot.lane.b32.xlu2 %v3020_v53, %s2785_s14 }
 0x56d   : > { %v1259_v27 = vpack.c.bf16 %v1255_v26, %v1255_v26 }
 0x56f   : > { %2558 = vmatmul.msk.bf16.vlgmr.msrb.gmra.mxu3 %vm1012_vm2, %v1259_v27 }
 0x573   : > { %1449 = vrot.lane.b32.xlu2 %v3020_v53, %s2786_s13  ;;  %s3481_s13 = sld [smem:[#allocation12_spill]] (!%p2621_p5) }
 0x575   : > { %v1240_v28 = vpop.xlane.xlu2 %1239 }
 0x576   : > { %2707 = vrcp.f32 %v1240_v28  ;;  %v1263_v29 = vpop.permute.xlu0 %1262 }
 0x577   : > { %v1268_v30 = vand.u32 %v1263_v29, %v3052_v25 }
 0x579   : > { %1277 = vmatpush.bf16.msrb.mxu2 %v1268_v30 }
 0x57c   : > { %v2708_v33 = vpop.eup %2707 }
 0x57d   : > { %1397 = vmatpush.bf16.xpose.msra.mxu2 %v1388_v32  ;;  %v1254_v34 = vmul.f32 %v2708_v33, %v2700_v1  ;;  %v1406_v35 = vpop.permute.xlu2 %1405 }
 0x57e   : > { %v1411_v36 = vsel %vm865_vm12, %v1406_v35, 0 }
 0x57f   : > { %v1258_v37 = vpack.c.bf16 %v1254_v34, %v1254_v34  ;;  %1420 = vmatpush.bf16.xpose.msra.mxu3 %v1411_v36 }
 0x581   : > { %2557 = vmatmul.msk.bf16.vlgmr.msrb.gmra.mxu2 %vm1012_vm2, %v1258_v37 }
 0x5a1   : > { %v1249_v38 = vpop.xlane.xlu0 %1248 }
 0x5a2   : > { %2709 = vrcp.f32 %v1249_v38 }
 0x5a8   : > { %v2710_v39 = vpop.eup %2709 }
 0x5a9   : > { %v1257_v41 = vmul.f32 %v2710_v39, %v2702_v6 }
 0x5ab   : > { %v1261_v42 = vpack.c.bf16 %v1257_v41, %v1257_v41 }
 0x5ad   : > { %2560 = vmatmul.msk.bf16.vlgmr.msrb.gmra.mxu1 %vm1012_vm2, %v1261_v42 }
 0x5b6   : > { %v1246_v43 = vpop.xlane.xlu2 %1245 }
 0x5b7   : > { %2711 = vrcp.f32 %v1246_v43 }
 0x5bd   : > { %v2712_v44 = vpop.eup %2711 }
 0x5be   : > { %v1256_v45 = vmul.f32 %v2712_v44, %v2704_v14  ;;  %v1404_v46 = vpop.permute.xlu2 %1403 }
 0x5bf   : > { %2562 = vmatmul.msk.bf16.vlgmr.msra.gmra.mxu3 %vm865_vm12, %v1404_v46 }
 0x5c0   : > { %v1260_v47 = vpack.c.bf16 %v1256_v45, %v1256_v45 }
 0x5c2   : > { %2559 = vmatmul.msk.bf16.vlgmr.msrb.gmra.mxu0 %vm1012_vm2, %v1260_v47 }
 0x5c6   : > { %v1381_v48 = vpop.permute.xlu2 %1380 }
 0x5c7   : > { %2561 = vmatmul.msk.bf16.vlgmr.msra.gmra.mxu2 %vm865_vm12, %v1381_v48 }
 0x5ce   : > { %v1452_v50 = vpop.permute.xlu2 %1451 }
 0x5cf   : > { %v1457_v51 = vsel %vm865_vm12, %v1452_v50, 0 }
 0x5d0   : > { %1466 = vmatpush.bf16.xpose.msra.mxu1 %v1457_v51 }
 0x5d2   : > { %2563 = vmatmul.msk.bf16.vlgmr.msra.gmra.mxu0 %vm865_vm12, %v1427_v52 }
 0x5d6   : > { %v1450_v54 = vpop.permute.xlu2 %1449 }
 0x5d7   : > { %2564 = vmatmul.msk.bf16.vlgmr.msra.gmra.mxu1 %vm865_vm12, %v1450_v54 }
 0x5f2   : > { %v3143_v55 = vpop.f32.mrf.mxu3 }
 0x5fa   : > { %v1302_v56 = vpop.f32.mrf.mxu3 }
 0x604   : > { %v3145_v57 = vpop.f32.mrf.mxu2 }
 0x60c   : > { %v1281_v58 = vpop.f32.mrf.mxu2 }
 0x62a   : > { %v3147_v59 = vpop.f32.mrf.mxu1 }
 0x632   : > { %v1344_v60 = vpop.f32.mrf.mxu1 }
 0x63f   : > { %v3149_v61 = vpop.f32.mrf.mxu0 }
 0x642   : > { %v1422_v62 = vpop.f32.mrf.mxu3 }
 0x643   : > { %v1473_v12 = vmul.f32 0.35355338, %v1422_v62 }
 0x645   : > { %v1479_v14 = vsel %vm961_vm13, %v1473_v12, -inf }
 0x647   : > { %v1323_v63 = vpop.f32.mrf.mxu0 }
 0x64a   : > { %v1399_v0 = vpop.f32.mrf.mxu2  ;;  %v1424_v1 = vpop.f32.mrf.mxu3 }
 0x64b   : > { %v1472_v2 = vmul.f32 0.35355338, %v1399_v0 }
 0x64d   : > { %v1476_v3 = vsel %vm961_vm13, %v1472_v2, -inf }
 0x64e   : > { %1477 = vmax.xlane.f32.xlu1 %v1476_v3 }
 0x64f   : > { %v1445_v4 = vpop.f32.mrf.mxu0 }
 0x650   : > { %v1474_v5 = vmul.f32 0.35355338, %v1445_v4 }
 0x652   : > { %v1401_v6 = vpop.f32.mrf.mxu2  ;;  %v1482_v7 = vsel %vm961_vm13, %v1474_v5, -inf }
 0x653   : > { %1483 = vmax.xlane.f32.xlu2 %v1482_v7 }
 0x654   : > { %v1468_v8 = vpop.f32.mrf.mxu1 }
 0x655   : > { %v1475_v9 = vmul.f32 0.35355338, %v1468_v8 }
 0x657   : > { %v1447_v10 = vpop.f32.mrf.mxu0  ;;  %v1485_v11 = vsel %vm961_vm13, %v1475_v9, -inf }
 0x658   : > { %1486 = vmax.xlane.f32.xlu0 %v1485_v11 }
 0x65c   : > { %v1470_v13 = vpop.f32.mrf.mxu1 }
 0x660   : > { %1480 = vmax.xlane.f32.xlu0 %v1479_v14 }
 0x667   : > { %1667 = vrot.lane.b32.xlu1 %v3012_v40, %s2787_s23 }
 0x66b   : > { %1524 = vrot.lane.b32.xlu2 %v3008_v31, %s2788_s26 }
 0x66f   : > { %1587 = vrot.lane.b32.xlu1 %v3020_v53, %s2788_s26 }
 0x673   : > { %1566 = vrot.lane.b32.xlu2 %v3016_v49, %s2788_s26 }
 0x674   : > { %1545 = vrot.lane.b32.xlu0 %v3012_v40, %s2788_s26 }
 0x677   : > { %1642 = vrot.lane.b32.xlu1 %v3008_v31, %s2789_s25 }
 0x67b   : > { %1644 = vrot.lane.b32.xlu2 %v3008_v31, %s2787_s23 }
 0x683   : > { %1665 = vrot.lane.b32.xlu2 %v3012_v40, %s2789_s25 }
 0x68b   : > { %1690 = vrot.lane.b32.xlu2 %v3016_v49, %s2787_s23 }
 0x693   : > { %1711 = vrot.lane.b32.xlu2 %v3020_v53, %s2789_s25 }
 0x6c1   : > { %v1478_v16 = vpop.xlane.xlu1 %1477 }
 0x6c2   : > { %v1488_v17 = vsub.f32 %v1472_v2, %v1478_v16 }
 0x6c4   : > { %v1492_v18 = vmul.f32 1.442695, %v1488_v17 }
 0x6c6   : > { %2713 = vpow2.f32 %v1492_v18  ;;  %v1484_v19 = vpop.xlane.xlu2 %1483 }
 0x6c7   : > { %v1490_v20 = vsub.f32 %v1474_v5, %v1484_v19 }
 0x6c9   : > { %v1496_v21 = vmul.f32 1.442695, %v1490_v20 }
 0x6cb   : > { %2715 = vpow2.f32 %v1496_v21  ;;  %v1487_v22 = vpop.xlane.xlu0 %1486 }
 0x6cc   : > { %v2714_v23 = vpop.eup %2713  ;;  %v1491_v24 = vsub.f32 %v1475_v9, %v1487_v22 }
 0x6cd   : > { %v1500_v26 = vsel %vm961_vm13, %v2714_v23, 0.0 }
 0x6ce   : > { %v1498_v27 = vmul.f32 1.442695, %v1491_v24  ;;  %1501 = vadd.xlane.f32.xlu0 %v1500_v26  ;;  %v1525_v28 = vpop.permute.xlu2 %1524 }
 0x6cf   : > { %v1530_v29 = vand.u32 %v1525_v28, %v3052_v25 }
 0x6d0   : > { %2717 = vpow2.f32 %v1498_v27 }
 0x6d1   : > { %v2716_v30 = vpop.eup %2715  ;;  %1539 = vmatpush.bf16.msrb.mxu2 %v1530_v29 }
 0x6d2   : > { %v1506_v32 = vsel %vm961_vm13, %v2716_v30, 0.0 }
 0x6d3   : > { %v1481_v33 = vpop.xlane.xlu0 %1480  ;;  %1507 = vadd.xlane.f32.xlu1 %v1506_v32 }
 0x6d4   : > { %v1489_v34 = vsub.f32 %v1473_v12, %v1481_v33 }
 0x6d6   : > { %v2718_v35 = vpop.eup %2717  ;;  %v1494_v36 = vmul.f32 1.442695, %v1489_v34  ;;  %v1567_v37 = vpop.permute.xlu2 %1566 }
 0x6d7   : > { %v1572_v38 = vand.u32 %v1567_v37, %v3052_v25  ;;  %v1509_v39 = vsel %vm961_vm13, %v2718_v35, 0.0 }
 0x6d8   : > { %2719 = vpow2.f32 %v1494_v36  ;;  %1510 = vadd.xlane.f32.xlu0 %v1509_v39 }
 0x6d9   : > { %v1668_v41 = vpop.permute.xlu1 %1667  ;;  %1581 = vmatpush.bf16.msrb.mxu0 %v1572_v38 }
 0x6da   : > { %v1673_v52 = vsel %vm865_vm12, %v1668_v41, 0 }
 0x6de   : > { %v2720_v42 = vpop.eup %2719  ;;  %v1645_v43 = vpop.permute.xlu2 %1644 }
 0x6df   : > { %v1650_v44 = vsel %vm865_vm12, %v1645_v43, 0  ;;  %v1503_v45 = vsel %vm961_vm13, %v2720_v42, 0.0 }
 0x6e0   : > { %1504 = vadd.xlane.f32.xlu0 %v1503_v45  ;;  %1659 = vmatpush.bf16.xpose.msra.mxu2 %v1650_v44  ;;  %v1347_v45 = vpack.c.bf16 %v3143_v55, %v3143_v55 }
 0x6e1   : > { %v1588_v46 = vpop.permute.xlu1 %1587 }
 0x6e2   : > { %v1593_v47 = vand.u32 %v1588_v46, %v3052_v25  ;;  %v1348_v46 = vpack.c.bf16 %v3149_v61, %v3149_v61 }
 0x6e4   : > { %1602 = vmatpush.bf16.msrb.mxu1 %v1593_v47 }
 0x6e6   : > { %v1546_v48 = vpop.permute.xlu0 %1545  ;;  %v1666_v50 = vpop.permute.xlu2 %1665 }
 0x6e7   : > { %v1551_v51 = vand.u32 %v1546_v48, %v3052_v25 }
 0x6e9   : > { %1560 = vmatpush.bf16.msrb.mxu3 %v1551_v51  ;;  %v1643_v58 = vpop.permute.xlu1 %1642 }
 0x6ec   : > { %1713 = vrot.lane.b32.xlu1 %v3020_v53, %s2787_s23 }
 0x6ed   : > { %1682 = vmatpush.bf16.xpose.msra.mxu3 %v1673_v52 }
 0x6ee   : > { %v1691_v54 = vpop.permute.xlu2 %1690 }
 0x6ef   : > { %v1696_v56 = vsel %vm865_vm12, %v1691_v54, 0 }
 0x6f0   : > { %1705 = vmatpush.bf16.xpose.msra.mxu0 %v1696_v56 }
 0x6f4   : > { %1688 = vrot.lane.b32.xlu0 %v3016_v49, %s2789_s25 }
 0x6f6   : > { %v1712_v16 = vpop.permute.xlu2 %1711 }
 0x741   : > { %v1502_v60 = vpop.xlane.xlu0 %1501 }
 0x742   : > { %2721 = vrcp.f32 %v1502_v60 }
 0x746   : > { %v1508_v62 = vpop.xlane.xlu1 %1507 }
 0x747   : > { %2723 = vrcp.f32 %v1508_v62 }
 0x748   : > { %v2722_v63 = vpop.eup %2721 }
 0x749   : > { %v1516_v0 = vmul.f32 %v2722_v63, %v2714_v23 }
 0x74b   : > { %v1520_v1 = vpack.c.bf16 %v1516_v0, %v1516_v0  ;;  %v1511_v2 = vpop.xlane.xlu0 %1510 }
 0x74c   : > { %2725 = vrcp.f32 %v1511_v2 }
 0x74d   : > { %v2724_v3 = vpop.eup %2723  ;;  %2565 = vmatmul.msk.bf16.vlgmr.msrb.gmra.mxu2 %vm1012_vm2, %v1520_v1 }
 0x74e   : > { %v1518_v4 = vmul.f32 %v2724_v3, %v2716_v30 }
 0x750   : > { %v1522_v5 = vpack.c.bf16 %v1518_v4, %v1518_v4 }
 0x752   : > { %v2726_v6 = vpop.eup %2725  ;;  %2567 = vmatmul.msk.bf16.vlgmr.msrb.gmra.mxu0 %vm1012_vm2, %v1522_v5 }
 0x753   : > { %v1519_v7 = vmul.f32 %v2726_v6, %v2718_v35  ;;  %v1505_v8 = vpop.xlane.xlu0 %1504 }
 0x754   : > { %2727 = vrcp.f32 %v1505_v8 }
 0x755   : > { %v1523_v9 = vpack.c.bf16 %v1519_v7, %v1519_v7 }
 0x757   : > { %2568 = vmatmul.msk.bf16.vlgmr.msrb.gmra.mxu1 %vm1012_vm2, %v1523_v9  ;;  %v1371_v9 = vld [vmem:[#allocation2 + $0x4] sm:$0x7] }
 0x75a   : > { %v2728_v10 = vpop.eup %2727 }
 0x75b   : > { %v1517_v11 = vmul.f32 %v2728_v10, %v2720_v42 }
 0x75d   : > { %v1521_v12 = vpack.c.bf16 %v1517_v11, %v1517_v11  ;;  %2569 = vmatmul.msk.bf16.vlgmr.msra.gmra.mxu2 %vm865_vm12, %v1643_v58 }
 0x75e   : > { %v1714_v13 = vpop.permute.xlu1 %1713 }
 0x75f   : > { %v1719_v14 = vsel %vm865_vm12, %v1714_v13, 0  ;;  %2566 = vmatmul.msk.bf16.vlgmr.msrb.gmra.mxu3 %vm1012_vm2, %v1521_v12  ;;  %v1346_v13 = vpack.c.bf16 %v3145_v57, %v3145_v57 }
 0x760   : > { %1728 = vmatpush.bf16.xpose.msra.mxu1 %v1719_v14 }
 0x766   : > { %v1689_v17 = vpop.permute.xlu0 %1688 }
 0x767   : > { %2571 = vmatmul.msk.bf16.vlgmr.msra.gmra.mxu0 %vm865_vm12, %v1689_v17  ;;  %2572 = vmatmul.msk.bf16.vlgmr.msra.gmra.mxu1 %vm865_vm12, %v1712_v16  ;;  %v1374_v16 = vld [vmem:[#allocation2 + $0x8] sm:$0x7] }
 0x76f   : > { %2570 = vmatmul.msk.bf16.vlgmr.msra.gmra.mxu3 %vm865_vm12, %v1666_v50  ;;  %vm1921_vm12 = vcmask 1041409  }
 0x7cf   : > { %v3195_v18 = vpop.f32.mrf.mxu0 }
 0x7d0   : > { %v1541_v19 = vpop.f32.mrf.mxu2 }
 0x7d1   : > { %v1608_v47 = vpack.c.bf16 %v1541_v19, %v1541_v19  ;;  %v1349_v19 = vpack.c.bf16 %v3147_v59, %v3147_v59 }
 0x7d4   : > { %v3197_v20 = vpop.f32.mrf.mxu1 }
 0x7d7   : > { %v1585_v21 = vpop.f32.mrf.mxu0 }
 0x7d8   : > { %v1543_v22 = vpop.f32.mrf.mxu2  ;;  %v1610_v21 = vpack.c.bf16 %v3195_v18, %v3195_v18 }
 0x7d9   : > { %v1611_v22 = vpack.c.bf16 %v3197_v20, %v3197_v20 }
 0x7dc   : > { %v1606_v23 = vpop.f32.mrf.mxu1 }
 0x7e0   : > { %v1661_v24 = vpop.f32.mrf.mxu2 }
 0x7e1   : > { %v1734_v26 = vmul.f32 0.35355338, %v1661_v24 }
 0x7e2   : > { %v3199_v27 = vpop.f32.mrf.mxu3 }
 0x7e3   : > { %v1738_v28 = vsel %vm961_vm13, %v1734_v26, -inf  ;;  %v1609_v57 = vpack.c.bf16 %v3199_v27, %v3199_v27  ;;  %v1368_v27 = vld [vmem:[#allocation2] sm:$0x7] }
 0x7e4   : > { %1739 = vmax.xlane.f32.xlu2 %v1738_v28  ;;  %v1707_v29 = vpop.f32.mrf.mxu0  ;;  %v1730_v30 = vpop.f32.mrf.mxu1 }
 0x7e5   : > { %v1736_v32 = vmul.f32 0.35355338, %v1707_v29  ;;  %v1737_v42 = vmul.f32 0.35355338, %v1730_v30 }
 0x7e7   : > { %v1744_v33 = vsel %vm961_vm13, %v1736_v32, -inf  ;;  %v1747_v44 = vsel %vm961_vm13, %v1737_v42, -inf }
 0x7e8   : > { %v1663_v34 = vpop.f32.mrf.mxu2  ;;  %1745 = vmax.xlane.f32.xlu0 %v1744_v33 }
 0x7ea   : > { %v1564_v35 = vpop.f32.mrf.mxu3 }
 0x7ec   : > { %v1709_v36 = vpop.f32.mrf.mxu0  ;;  %v1732_v37 = vpop.f32.mrf.mxu1 }
 0x7f2   : > { %v1684_v38 = vpop.f32.mrf.mxu3 }
 0x7f3   : > { %v1735_v39 = vmul.f32 0.35355338, %v1684_v38  ;;  %v1377_v38 = vld [vmem:[#allocation2 + $0xc] sm:$0x7] }
 0x7f5   : > { %v1741_v41 = vsel %vm961_vm13, %v1735_v39, -inf }
 0x7f6   : > { %1742 = vmax.xlane.f32.xlu1 %v1741_v41 }
 0x7fa   : > { %v1686_v43 = vpop.f32.mrf.mxu3 }
 0x7fc   : > { %1807 = vrot.lane.b32.xlu0 %v3012_v40, %s2790_s29 }
 0x7fe   : > { %1748 = vmax.xlane.f32.xlu1 %v1747_v44 }
 0x804   : > { %1849 = vrot.lane.b32.xlu0 %v3020_v53, %s2790_s29 }
 0x80c   : > { %1356 = vrot.lane.b32.xlu0 %v1347_v45, %s2791_s27 }
 0x814   : > { %1358 = vrot.lane.b32.xlu0 %v1348_v46, %s2791_s27 }
 0x81c   : > { %1616 = vrot.lane.b32.xlu0 %v1608_v47, %s2792_s16 }
 0x857   : > { %v1740_v40 = vpop.xlane.xlu2 %1739 }
 0x858   : > { %v1750_v48 = vsub.f32 %v1734_v26, %v1740_v40 }
 0x85a   : > { %v1754_v50 = vmul.f32 1.442695, %v1750_v48 }
 0x85b   : > { %v1746_v51 = vpop.xlane.xlu0 %1745 }
 0x85c   : > { %2729 = vpow2.f32 %v1754_v50  ;;  %v1752_v53 = vsub.f32 %v1736_v32, %v1746_v51 }
 0x85e   : > { %v1758_v52 = vmul.f32 1.442695, %v1752_v53 }
 0x860   : > { %2731 = vpow2.f32 %v1758_v52 }
 0x862   : > { %v2730_v55 = vpop.eup %2729 }
 0x863   : > { %v1762_v54 = vsel %vm961_vm13, %v2730_v55, 0.0 }
 0x864   : > { %1763 = vadd.xlane.f32.xlu1 %v1762_v54 }
 0x866   : > { %v3217_v56 = vpop.eup %2731 }
 0x867   : > { %v1768_v61 = vsel %vm961_vm13, %v3217_v56, 0.0 }
 0x868   : > { %1769 = vadd.xlane.f32.xlu2 %v1768_v61 }
 0x869   : > { %v1743_v58 = vpop.xlane.xlu1 %1742 }
 0x86a   : > { %v1751_v1 = vsub.f32 %v1735_v39, %v1743_v58 }
 0x86c   : > { %v1756_v5 = vmul.f32 1.442695, %v1751_v1 }
 0x86e   : > { %v1808_v60 = vpop.permute.xlu0 %1807 }
 0x86f   : > { %v1813_v62 = vand.u32 %v1808_v60, %v3052_v25 }
 0x871   : > { %1822 = vmatpush.bf16.msrb.mxu3 %v1813_v62  ;;  %v1749_v63 = vpop.xlane.xlu1 %1748 }
 0x872   : > { %v1753_v0 = vsub.f32 %v1737_v42, %v1749_v63 }
 0x874   : > { %v1760_v2 = vmul.f32 1.442695, %v1753_v0 }
 0x876   : > { %2733 = vpow2.f32 %v1760_v2  ;;  %v1850_v3 = vpop.permute.xlu0 %1849 }
 0x877   : > { %v1855_v4 = vand.u32 %v1850_v3, %v3052_v25  ;;  %2735 = vpow2.f32 %v1756_v5 }
 0x879   : > { %1864 = vmatpush.bf16.msrb.mxu1 %v1855_v4 }
 0x87c   : > { %v2734_v6 = vpop.eup %2733 }
 0x87d   : > { %1786 = vrot.lane.b32.xlu1 %v3008_v31, %s2790_s29  ;;  %v1771_v8 = vsel %vm961_vm13, %v2734_v6, 0.0  ;;  %v2736_v12 = vpop.eup %2735 }
 0x87e   : > { %v1357_v10 = vpop.permute.xlu0 %1356  ;;  %1772 = vadd.xlane.f32.xlu2 %v1771_v8  ;;  %v1765_v14 = vsel %vm961_vm13, %v2736_v12, 0.0  ;;  %vm1916_vm13 = vcmask 1040384  }
 0x87f   : > { %v1372_v11 = vsel %vm3224_vm7, %v1357_v10, %v1371_v9  ;;  %v2758_v10 = vld [vmem:[%s3452_s15 + $0x8] sm:$0xff] }
 0x880   : > { %1373 = vst [vmem:[#allocation2 + $0x4] sm:$0x7] %v1372_v11 }
 0x885   : > { %1354 = vrot.lane.b32.xlu1 %v1346_v13, %s2791_s27 }
 0x886   : > { %v1359_v17 = vpop.permute.xlu0 %1358  ;;  %1766 = vadd.xlane.f32.xlu2 %v1765_v14 }
 0x887   : > { %v1375_v31 = vsel %vm3224_vm7, %v1359_v17, %v1374_v16  ;;  %v1633_v54 = vld [vmem:[#allocation2 + $0x4] sm:$0x7] }
 0x888   : > { %1376 = vst [vmem:[#allocation2 + $0x8] sm:$0x7] %v1375_v31 }
 0x88d   : > { %1360 = vrot.lane.b32.xlu1 %v1349_v19, %s2791_s27 }
 0x88e   : > { %v1617_v42 = vpop.permute.xlu0 %1616 }
 0x88f   : > { %v1636_v53 = vld [vmem:[#allocation2 + $0x8] sm:$0x7] }
 0x895   : > { %1620 = vrot.lane.b32.xlu1 %v1610_v21, %s2792_s16 }
 0x89e   : > { %1828 = vrot.lane.b32.xlu2 %v3016_v49, %s2790_s29 }
 0x8a6   : > { %1618 = vrot.lane.b32.xlu2 %v1609_v57, %s2792_s16 }
 0x8ae   : > { %1622 = vrot.lane.b32.xlu2 %v1611_v22, %s2792_s16 }
 0x8d7   : > { %v1764_v59 = vpop.xlane.xlu1 %1763 }
 0x8d8   : > { %2737 = vrcp.f32 %v1764_v59  ;;  %v2632_v59 = vld [vmem:[%s3477_s28 + $0x8] sm:$0xff] }
 0x8db   : > { %v1770_v23 = vpop.xlane.xlu2 %1769 }
 0x8de   : > { %v2738_v24 = vpop.eup %2737 }
 0x8df   : > { %v1778_v18 = vmul.f32 %v2738_v24, %v2730_v55 }
 0x8e1   : > { %v1782_v49 = vpack.c.bf16 %v1778_v18, %v1778_v18 }
 0x8ef   : > { %v1787_v26 = vpop.permute.xlu1 %1786 }
 0x8f0   : > { %v1792_v28 = vand.u32 %v1787_v26, %v3052_v25 }
 0x8f1   : > { %v1773_v29 = vpop.xlane.xlu2 %1772 }
 0x8f2   : > { %2739 = vrcp.f32 %v1773_v29  ;;  %1801 = vmatpush.bf16.msrb.mxu2 %v1792_v28 }
 0x8f3   : > { %2741 = vrcp.f32 %v1770_v23  ;;  %v2631_v23 = vld [vmem:[%s3477_s28] sm:$0xff]  ;;  %s3479_s28 = scalar_lea.vmem %s3449_s12, %s2886_s20 }
 0x8f5   : > { %2573 = vmatmul.msk.bf16.vlgmr.msrb.gmra.mxu2 %vm1012_vm2, %v1782_v49 }
 0x8f6   : > { %2048 = vmatpush.bf16.msra.mxu2 %v2632_v59 }
 0x8f7   : > { %v1355_v30 = vpop.permute.xlu1 %1354 }
 0x8f8   : > { %v2740_v32 = vpop.eup %2739  ;;  %v1369_v20 = vsel %vm3224_vm7, %v1355_v30, %v1368_v27 }
 0x8f9   : > { %v1781_v33 = vmul.f32 %v2740_v32, %v2734_v6  ;;  %1370 = vst [vmem:[#allocation2] sm:$0x7] %v1369_v20  ;;  %v1767_v34 = vpop.xlane.xlu2 %1766  ;;  %v2742_v36 = vpop.eup %2741 }
 0x8fa   : > { %2743 = vrcp.f32 %v1767_v34  ;;  %v1780_v45 = vmul.f32 %v2742_v36, %v3217_v56  ;;  %2049 = vmatpush.bf16.msra.mxu2 %v2631_v23 }
 0x8fb   : > { %v1785_v35 = vpack.c.bf16 %v1781_v33, %v1781_v33 }
 0x8fc   : > { %v1784_v51 = vpack.c.bf16 %v1780_v45, %v1780_v45 }
 0x8fd   : > { %2576 = vmatmul.msk.bf16.vlgmr.msrb.gmra.mxu1 %vm1012_vm2, %v1785_v35 }
 0x8ff   : > { %v1361_v39 = vpop.permute.xlu1 %1360 }
 0x900   : > { %v2744_v41 = vpop.eup %2743  ;;  %v1378_v43 = vsel %vm3224_vm7, %v1361_v39, %v1377_v38  ;;  %v1630_v44 = vld [vmem:[#allocation2] sm:$0x7] }
 0x901   : > { %v1779_v46 = vmul.f32 %v2744_v41, %v2736_v12  ;;  %1379 = vst [vmem:[#allocation2 + $0xc] sm:$0x7] %v1378_v43  ;;  %v1829_v47 = vpop.permute.xlu2 %1828  ;;  %v1631_v40 = vsel %vm3259_vm9, %v1617_v42, %v1630_v44 }
 0x902   : > { %v1834_v48 = vand.u32 %v1829_v47, %v3052_v25  ;;  %1632 = vst [vmem:[#allocation2] sm:$0x7] %v1631_v40 }
 0x903   : > { %v1783_v50 = vpack.c.bf16 %v1779_v46, %v1779_v46 }
 0x904   : > { %1843 = vmatpush.bf16.msrb.mxu0 %v1834_v48 }
 0x905   : > { %2574 = vmatmul.msk.bf16.vlgmr.msrb.gmra.mxu3 %vm1012_vm2, %v1783_v50 }
 0x907   : > { %v1621_v52 = vpop.permute.xlu1 %1620  ;;  %2575 = vmatmul.msk.bf16.vlgmr.msrb.gmra.mxu0 %vm1012_vm2, %v1784_v51 }
 0x908   : > { %v1637_v55 = vsel %vm3259_vm9, %v1621_v52, %v1636_v53  ;;  %v1639_v25 = vld [vmem:[#allocation2 + $0xc] sm:$0x7] }
 0x909   : > { %1638 = vst [vmem:[#allocation2 + $0x8] sm:$0x7] %v1637_v55  ;;  %v1619_v56 = vpop.permute.xlu2 %1618  ;;  %v1892_v31 = vld [vmem:[#allocation2] sm:$0x7] }
 0x90a   : > { %v1634_v61 = vsel %vm3259_vm9, %v1619_v56, %v1633_v54 }
 0x90b   : > { %1635 = vst [vmem:[#allocation2 + $0x4] sm:$0x7] %v1634_v61 }
 0x910   : > { %v1898_v11 = vld [vmem:[#allocation2 + $0x8] sm:$0x7] }
 0x911   : > { %v1623_v58 = vpop.permute.xlu2 %1622 }
 0x912   : > { %v1640_v60 = vsel %vm3259_vm9, %v1623_v58, %v1639_v25  ;;  %v1895_v27 = vld [vmem:[#allocation2 + $0x4] sm:$0x7] }
 0x913   : > { %1641 = vst [vmem:[#allocation2 + $0xc] sm:$0x7] %v1640_v60 }
 0x91a   : > { %v1901_v20 = vld [vmem:[#allocation2 + $0xc] sm:$0x7] }
 0x978   : > { %v1803_v62 = vpop.f32.mrf.mxu2 }
 0x979   : > { %v1870_v63 = vpack.c.bf16 %v1803_v62, %v1803_v62 }
 0x97a   : > { %v1866_v0 = vpop.f32.mrf.mxu1 }
 0x97b   : > { %1878 = vrot.lane.b32.xlu1 %v1870_v63, %s2793_s17  ;;  %v1873_v9 = vpack.c.bf16 %v1866_v0, %v1866_v0 }
 0x980   : > { %v1805_v1 = vpop.f32.mrf.mxu2 }
 0x982   : > { %v1868_v2 = vpop.f32.mrf.mxu1 }
 0x983   : > { %v2668_v2 = vld [vmem:[%s3478_s22] ss:$0 sm:$0xff] }
 0x984   : > { %v1845_v3 = vpop.f32.mrf.mxu0 }
 0x985   : > { %v1872_v4 = vpack.c.bf16 %v1845_v3, %v1845_v3 }
 0x987   : > { %1882 = vrot.lane.b32.xlu2 %v1872_v4, %s2793_s17 }
 0x988   : > { %v1824_v5 = vpop.f32.mrf.mxu3 }
 0x989   : > { %v1871_v6 = vpack.c.bf16 %v1824_v5, %v1824_v5  ;;  %v2757_v5 = vld [vmem:[%s3452_s15] sm:$0xff] }
 0x98b   : > { %1880 = vrot.lane.b32.xlu0 %v1871_v6, %s2793_s17 }
 0x98c   : > { %v1847_v7 = vpop.f32.mrf.mxu0 }
 0x990   : > { %v1826_v8 = vpop.f32.mrf.mxu3 }
 0x993   : > { %1884 = vrot.lane.b32.xlu0 %v1873_v9, %s2793_s17 }
 0x9e1   : > { %v1883_v12 = vpop.permute.xlu2 %1882 }
 0x9e2   : > { %v1899_v13 = vsel %vm3278_vm11, %v1883_v12, %v1898_v11 }
 0x9e3   : > { %1900 = vst [vmem:[#allocation2 + $0x8] sm:$0x7] %v1899_v13 }
 0x9ea   : > { %v1906_v14 = vld [vmem:[#allocation2 + $0x8] sm:$0x7] }
 0x9eb   : > { %v1914_v16 = vrot.slane %v1906_v14, 3 }
 0x9ed   : > { %v1943_v17 = vsel %vm1921_vm12, %v1906_v14, %v1914_v16  ;;  %v1879_v19 = vpop.permute.xlu1 %1878  ;;  %v1941_v21 = vsel %vm1916_vm13, %v1906_v14, %v1914_v16  ;;  %v1946_v40 = vsel %vm1925_vm14, %v1906_v14, %v1914_v16  ;;  %v2759_v16 = vld [vmem:[%s3452_s15 + $0x10] sm:$0xf] }
 0x9ee   : > { %v1945_v57 = vrot.slane %v1943_v17, 1  ;;  %v1893_v22 = vsel %vm3278_vm11, %v1879_v19, %v1892_v31  ;;  %2013 = vst [vmem:[#allocation1 + $0x5] ss:$9 sm:$0xff] %v1941_v21  ;;  %v1948_v53 = vrot.slane %v1946_v40, 2 }
 0x9ef   : > { %1894 = vst [vmem:[#allocation2] sm:$0x7] %v1893_v22 }
 0x9f0   : > { %2016 = vst [vmem:[#allocation1 + $0x6] ss:$9 sm:$0xff] %v1945_v57 }
 0x9f6   : > { %v1904_v24 = vld [vmem:[#allocation2] sm:$0x7] }
 0x9f7   : > { %v1912_v18 = vrot.slane %v1904_v24, 3 }
 0x9f9   : > { %v1919_v26 = vsel %vm1916_vm13, %v1904_v24, %v1912_v18  ;;  %v1922_v28 = vsel %vm1921_vm12, %v1904_v24, %v1912_v18  ;;  %v1926_v33 = vsel %vm1925_vm14, %v1904_v24, %v1912_v18 }
 0x9fa   : > { %v1924_v29 = vrot.slane %v1922_v28, 1  ;;  %1998 = vst [vmem:[#allocation1] ss:$9 sm:$0xff] %v1919_v26  ;;  %v1928_v37 = vrot.slane %v1926_v33, 2 }
 0x9fc   : > { %2001 = vst [vmem:[#allocation1 + $0x1] ss:$9 sm:$0xff] %v1924_v29 }
 0x9fd   : > { %v1881_v49 = vpop.permute.xlu0 %1880 }
 0x9fe   : > { %v1896_v30 = vsel %vm3278_vm11, %v1881_v49, %v1895_v27 }
 0x9ff   : > { %1897 = vst [vmem:[#allocation2 + $0x4] sm:$0x7] %v1896_v30 }
 0xa05   : > { %v1885_v32 = vpop.permute.xlu0 %1884 }
 0xa06   : > { %v1905_v34 = vld [vmem:[#allocation2 + $0x4] sm:$0x7]  ;;  %v1902_v35 = vsel %vm3278_vm11, %v1885_v32, %v1901_v20 }
 0xa07   : > { %v1913_v36 = vrot.slane %v1905_v34, 3  ;;  %1903 = vst [vmem:[#allocation2 + $0xc] sm:$0x7] %v1902_v35 }
 0xa09   : > { %v1933_v38 = vsel %vm1921_vm12, %v1905_v34, %v1913_v36  ;;  %v1936_v39 = vsel %vm1925_vm14, %v1905_v34, %v1913_v36  ;;  %v1931_v41 = vsel %vm1916_vm13, %v1905_v34, %v1913_v36  ;;  %v2634_v36 = vld [vmem:[%s2926_s3 + $0x8] sm:$0xff] }
 0xa0a   : > { %v1935_v42 = vrot.slane %v1933_v38, 1  ;;  %v1965_v43 = vunpack.i.h.s16 %v1931_v41  ;;  %v2577_v44 = vpack.i.b16 %v1931_v41, %v1928_v37  ;;  %v1938_v45 = vrot.slane %v1936_v39, 2  ;;  %2177 = vmatpush.bf16.msra.mxu3 %v2634_v36  ;;  %v2633_v38 = vld [vmem:[%s2926_s3] sm:$0xff] }
 0xa0c   : > { %v1967_v46 = vunpack.i.h.s16 %v1935_v42  ;;  %v2578_v47 = vpack.i.b16 %v1935_v42, %v1965_v43  ;;  %2004 = vst [vmem:[#allocation1 + $0x2] ss:$9 sm:$0xff] %v2577_v44 }
 0xa0e   : > { %v2579_v48 = vpack.i.b16 %v1938_v45, %v1967_v46  ;;  %v1907_v50 = vld [vmem:[#allocation2 + $0xc] sm:$0x7]  ;;  %2007 = vst [vmem:[#allocation1 + $0x3] ss:$9 sm:$0xff] %v2578_v47  ;;  %2178 = vmatpush.bf16.msra.mxu3 %v2633_v38 }
 0xa0f   : > { %v1915_v51 = vrot.slane %v1907_v50, 3 }
 0xa10   : > { %2010 = vst [vmem:[#allocation1 + $0x4] ss:$9 sm:$0xff] %v2579_v48 }
 0xa11   : > { %v1951_v52 = vsel %vm1916_vm13, %v1907_v50, %v1915_v51  ;;  %v1953_v55 = vsel %vm1921_vm12, %v1907_v50, %v1915_v51  ;;  %v1956_v61 = vsel %vm1925_vm14, %v1907_v50, %v1915_v51 }
 0xa12   : > { %v2580_v54 = vpack.i.b16 %v1951_v52, %v1948_v53  ;;  %v1955_v56 = vrot.slane %v1953_v55, 1  ;;  %v1975_v25 = vunpack.i.h.s16 %v1951_v52  ;;  %v1958_v60 = vrot.slane %v1956_v61, 2 }
 0xa14   : > { %2019 = vst [vmem:[#allocation1 + $0x7] ss:$9 sm:$0xff] %v2580_v54  ;;  %v1977_v58 = vunpack.i.h.s16 %v1955_v56  ;;  %v2581_v62 = vpack.i.b16 %v1955_v56, %v1975_v25  ;;  %v2669_v25 = vld [vmem:[%s606_s2] ss:$0 sm:$0xff] }
 0xa16   : > { %v2582_v63 = vpack.i.b16 %v1958_v60, %v1977_v58 }
 0xa1b   : > { %v2020_v0 = vld [vmem:[#allocation1] sm:$0xff] }
 0xa1c   : > { %2022 = vst [vmem:[#allocation1] ss:$9 sm:$0xff] %v2581_v62  ;;  %2591 = vmatmul.msk.bf16.vlgmr.msra.gmra.mxu2 %vm671_vm0, %v2020_v0 }
 0xa1d   : > { %2024 = vst [vmem:[#allocation1 + $0x1] ss:$9 sm:$0xff] %v2582_v63 }
 0xa24   : > { %v2025_v1 = vld [vmem:[#allocation1] sm:$0xff] }
 0xa2c   : > { %2592 = vmatmul.msk.bf16.gmra.mxu2 %vm671_vm0, %v2025_v1  ;;  %v2670_v1 = vld [vmem:[%s609_s30] ss:$0 sm:$0xff] }
 0xa9f   : > { %v2051_v3 = vpop.f32.mrf.mxu2 }
 0xaa0   : > { %v2052_v4 = vadd.f32 %v2668_v2, %v2051_v3 }
 0xaa2   : > { %v3314_v6 = vadd.f32 %v2757_v5, %v2052_v4 }
 0xaa4   : > { %v2065_v7 = vsel %vm671_vm0, %v3314_v6, 0.0 }
 0xaa5   : > { %2066 = vadd.xlane.f32.xlu1 %v2065_v7 }
 0xaa7   : > { %v2053_v8 = vpop.f32.mrf.mxu2 }
 0xaa8   : > { %v2054_v9 = vadd.f32 %v2668_v2, %v2053_v8 }
 0xaaa   : > { %v3321_v11 = vadd.f32 %v2758_v10, %v2054_v9 }
 0xaac   : > { %v2068_v12 = vsel %vm671_vm0, %v3321_v11, 0.0 }
 0xaad   : > { %2069 = vadd.xlane.f32.xlu2 %v2068_v12 }
 0xaaf   : > { %v2056_v13 = vpop.f32.mrf.mxu2 }
 0xab0   : > { %v2057_v14 = vadd.f32 %v2668_v2, %v2056_v13 }
 0xab2   : > { %v3328_v17 = vadd.f32 %v2759_v16, %v2057_v14 }
 0xab4   : > { %v2071_v31 = vsel %vm678_vm1, %v3328_v17, 0.0 }
 0xab5   : > { %2072 = vadd.xlane.f32.xlu0 %v2071_v31 }
 0xab7   : > { %v2058_v19 = vpop.f32.mrf.mxu2 }
 0xb18   : > { %v2067_v21 = vpop.xlane.xlu1 %2066 }
 0xb19   : > { %v2074_v57 = vmul.f32 %v2067_v21, %v2973_v15  ;;  %v2638_v21 = vld [vmem:[%s2936_s24 + $0x18] sm:$0xff] }
 0xb1a   : > { %2265 = vmatpush.bf16.msra.mxu0 %v2638_v21 }
 0xb1b   : > { %v2077_v22 = vsub.f32 %v3314_v6, %v2074_v57  ;;  %v2671_v57 = vld [vmem:[%s617_s5] ss:$0 sm:$0xff] }
 0xb1d   : > { %v2080_v59 = vmul.f32 %v2077_v22, %v2077_v22 }
 0xb1f   : > { %v2083_v23 = vsel %vm671_vm0, %v2080_v59, 0.0 }
 0xb20   : > { %v2070_v24 = vpop.xlane.xlu2 %2069  ;;  %2084 = vadd.xlane.f32.xlu1 %v2083_v23 }
 0xb21   : > { %v2075_v18 = vmul.f32 %v2070_v24, %v2973_v15  ;;  %v2636_v24 = vld [vmem:[%s2936_s24 + $0x8] sm:$0xff] }
 0xb23   : > { %v2078_v26 = vsub.f32 %v3321_v11, %v2075_v18 }
 0xb25   : > { %v2081_v28 = vmul.f32 %v2078_v26, %v2078_v26 }
 0xb27   : > { %v2086_v29 = vsel %vm671_vm0, %v2081_v28, 0.0  ;;  %v2635_v28 = vld [vmem:[%s2936_s24] sm:$0xff] }
 0xb28   : > { %2087 = vadd.xlane.f32.xlu2 %v2086_v29  ;;  %v2073_v49 = vpop.xlane.xlu0 %2072 }
 0xb29   : > { %v2076_v27 = vmul.f32 %v2073_v49, %v2973_v15 }
 0xb2b   : > { %v2079_v30 = vsub.f32 %v3328_v17, %v2076_v27 }
 0xb2d   : > { %v2082_v32 = vmul.f32 %v2079_v30, %v2079_v30 }
 0xb2f   : > { %v2089_v20 = vsel %vm678_vm1, %v2082_v32, 0.0 }
 0xb30   : > { %2090 = vadd.xlane.f32.xlu0 %v2089_v20 }
 0xb93   : > { %v2085_v33 = vpop.xlane.xlu1 %2084 }
 0xb94   : > { %v2092_v34 = vmul.f32 %v2085_v33, %v2973_v15 }
 0xb96   : > { %v2095_v35 = vadd.f32 1e-06, %v2092_v34 }
 0xb98   : > { %2745 = vrsqrt.f32 %v2095_v35  ;;  %vm2104_vm2 = vweird.f32 %v2095_v35 }
 0xb9b   : > { %v2088_v37 = vpop.xlane.xlu2 %2087 }
 0xb9c   : > { %v2093_v39 = vmul.f32 %v2088_v37, %v2973_v15 }
 0xb9e   : > { %v2746_v41 = vpop.eup %2745  ;;  %v2096_v42 = vadd.f32 1e-06, %v2093_v39 }
 0xb9f   : > { %v2099_v43 = vmul.f32 %v2746_v41, %v2095_v35  ;;  %vm2105_vm15 = vweird.f32 %v2746_v41 }
 0xba0   : > { %2747 = vrsqrt.f32 %v2096_v42  ;;  %vm2106_vm3 = vmor %vm2104_vm2, %vm2105_vm15  ;;  %vm2114_vm5 = vweird.f32 %v2096_v42 }
 0xba1   : > { %v2100_v44 = vmul.f32 %v2746_v41, %v2099_v43 }
 0xba3   : > { %v2101_v45 = vmul.f32 0.5, %v2100_v44  ;;  %v2091_v46 = vpop.xlane.xlu0 %2090 }
 0xba4   : > { %v2094_v47 = vmul.f32 %v2091_v46, %v2973_v15 }
 0xba5   : > { %v2102_v40 = vsub.f32 1.5, %v2101_v45 }
 0xba6   : > { %v2748_v48 = vpop.eup %2747  ;;  %v2097_v50 = vadd.f32 1e-06, %v2094_v47 }
 0xba7   : > { %v2103_v51 = vmul.f32 %v2746_v41, %v2102_v40  ;;  %v2109_v53 = vmul.f32 %v2748_v48, %v2096_v42  ;;  %vm2115_vm4 = vweird.f32 %v2748_v48 }
 0xba8   : > { %2749 = vrsqrt.f32 %v2097_v50  ;;  %vm2116_vm6 = vmor %vm2114_vm5, %vm2115_vm4  ;;  %vm2124_vm8 = vweird.f32 %v2097_v50 }
 0xba9   : > { %v2110_v52 = vmul.f32 %v2748_v48, %v2109_v53  ;;  %v2107_v55 = vsel %vm2106_vm3, %v2746_v41, %v2103_v51 }
 0xbaa   : > { %v2128_v58 = vmul.f32 %v2107_v55, %v2077_v22  ;;  %v2637_v22 = vld [vmem:[%s2936_s24 + $0x10] sm:$0xff] }
 0xbab   : > { %v2111_v54 = vmul.f32 0.5, %v2110_v52  ;;  %2266 = vmatpush.bf16.msra.mxu0 %v2637_v22 }
 0xbac   : > { %v2134_v2 = vmul.f32 %v2669_v25, %v2128_v58 }
 0xbad   : > { %v2112_v56 = vsub.f32 1.5, %v2111_v54 }
 0xbae   : > { %v2750_v61 = vpop.eup %2749  ;;  %v2140_v8 = vadd.f32 %v2670_v1, %v2134_v2 }
 0xbaf   : > { %v2113_v60 = vmul.f32 %v2748_v48, %v2112_v56  ;;  %v2119_v62 = vmul.f32 %v2750_v61, %v2097_v50  ;;  %vm2125_vm7 = vweird.f32 %v2750_v61  ;;  %2267 = vmatpush.bf16.msra.mxu0 %v2636_v24 }
 0xbb0   : > { %vm2126_vm9 = vmor %vm2124_vm8, %vm2125_vm7 }
 0xbb1   : > { %v2117_v63 = vsel %vm2116_vm6, %v2748_v48, %v2113_v60  ;;  %v2120_v0 = vmul.f32 %v2750_v61, %v2119_v62  ;;  %v2672_v60 = vld [vmem:[%s3479_s28] ss:$0 sm:$0xff] }
 0xbb2   : > { %v2129_v3 = vmul.f32 %v2117_v63, %v2078_v26 }
 0xbb3   : > { %v2121_v4 = vmul.f32 0.5, %v2120_v0  ;;  %2268 = vmatpush.bf16.msra.mxu0 %v2635_v28 }
 0xbb4   : > { %v2135_v5 = vmul.f32 %v2669_v25, %v2129_v3 }
 0xbb5   : > { %v2122_v7 = vsub.f32 1.5, %v2121_v4 }
 0xbb6   : > { %v2141_v9 = vadd.f32 %v2670_v1, %v2135_v5 }
 0xbb7   : > { %v2123_v10 = vmul.f32 %v2750_v61, %v2122_v7 }
 0xbb8   : > { %v2148_v12 = vpack.c.bf16 %v2141_v9, %v2140_v8 }
 0xbb9   : > { %v2127_v13 = vsel %vm2126_vm9, %v2750_v61, %v2123_v10 }
 0xbba   : > { %2601 = vmatmul.msk.bf16.vlgmr.msra.gmra.mxu3 %vm671_vm0, %v2148_v12  ;;  %v2130_v14 = vmul.f32 %v2127_v13, %v2079_v30 }
 0xbbc   : > { %v2136_v16 = vmul.f32 %v2669_v25, %v2130_v14 }
 0xbbe   : > { %v2142_v31 = vadd.f32 %v2670_v1, %v2136_v16 }
 0xbc0   : > { %v2149_v19 = vpack.c.bf16 %v2142_v31, %v2142_v31 }
 0xbca   : > { %2602 = vmatmul.msk.bf16.gmra.mxu3 %vm671_vm0, %v2149_v19 }
 0xc3d   : > { %v2180_v59 = vpop.f32.mrf.mxu3 }
 0xc3e   : > { %v2181_v23 = vadd.f32 %v2671_v57, %v2180_v59 }
 0xc40   : > { %v2189_v18 = vmul.f32 %v2181_v23, %v2181_v23 }
 0xc42   : > { %v2192_v26 = vmul.f32 %v2189_v18, %v2181_v23 }
 0xc44   : > { %v2195_v29 = vmul.f32 0.044715, %v2192_v26 }
 0xc45   : > { %v2182_v49 = vpop.f32.mrf.mxu3 }
 0xc46   : > { %v2198_v27 = vadd.f32 %v2195_v29, %v2181_v23  ;;  %v2183_v30 = vadd.f32 %v2671_v57, %v2182_v49 }
 0xc48   : > { %v2201_v32 = vmul.f32 0.7978846, %v2198_v27  ;;  %v2190_v20 = vmul.f32 %v2183_v30, %v2183_v30 }
 0xc4a   : > { %v2193_v33 = vmul.f32 %v2190_v20, %v2183_v30  ;;  %2751 = vtanh.f32 %v2201_v32 }
 0xc4c   : > { %v2196_v34 = vmul.f32 0.044715, %v2193_v33 }
 0xc4d   : > { %v2185_v35 = vpop.f32.mrf.mxu3 }
 0xc4e   : > { %v2199_v36 = vadd.f32 %v2196_v34, %v2183_v30  ;;  %v2186_v37 = vadd.f32 %v2671_v57, %v2185_v35 }
 0xc50   : > { %v2202_v38 = vmul.f32 0.7978846, %v2199_v36  ;;  %v2191_v39 = vmul.f32 %v2186_v37, %v2186_v37  ;;  %v2752_v41 = vpop.eup %2751 }
 0xc51   : > { %v2207_v44 = vadd.f32 1.0, %v2752_v41 }
 0xc52   : > { %2753 = vtanh.f32 %v2202_v38  ;;  %v2194_v42 = vmul.f32 %v2191_v39, %v2186_v37 }
 0xc53   : > { %v2210_v48 = vmul.f32 0.5, %v2207_v44 }
 0xc54   : > { %v2197_v43 = vmul.f32 0.044715, %v2194_v42 }
 0xc55   : > { %v2187_v45 = vpop.f32.mrf.mxu3  ;;  %v2213_v53 = vmul.f32 %v2210_v48, %v2181_v23 }
 0xc56   : > { %v2200_v46 = vadd.f32 %v2197_v43, %v2186_v37 }
 0xc58   : > { %v2754_v47 = vpop.eup %2753  ;;  %v2203_v40 = vmul.f32 0.7978846, %v2200_v46 }
 0xc59   : > { %v2208_v50 = vadd.f32 1.0, %v2754_v47 }
 0xc5a   : > { %2755 = vtanh.f32 %v2203_v40 }
 0xc5b   : > { %v2211_v51 = vmul.f32 0.5, %v2208_v50 }
 0xc5d   : > { %v2214_v52 = vmul.f32 %v2211_v51, %v2183_v30 }
 0xc5f   : > { %v2225_v55 = vpack.c.bf16 %v2214_v52, %v2213_v53 }
 0xc60   : > { %v2756_v54 = vpop.eup %2755 }
 0xc61   : > { %2619 = vmatmul.msk.bf16.vlgmr.msra.gmra.mxu0 %vm2254_vm10, %v2225_v55  ;;  %v2209_v56 = vadd.f32 1.0, %v2756_v54 }
 0xc63   : > { %v2212_v61 = vmul.f32 0.5, %v2209_v56 }
 0xc65   : > { %v2215_v25 = vmul.f32 %v2212_v61, %v2186_v37 }
 0xc67   : > { %v2226_v58 = vpack.c.bf16 %v2215_v25, %v2215_v25 }
 0xc71   : > { %2620 = vmatmul.msk.bf16.gmra.mxu0 %vm2254_vm10, %v2226_v58 }
 0xcde   : > { %v2270_v62 = vpop.f32.mrf.mxu0 }
 0xcdf   : > { %v2271_v63 = vadd.f32 %v2672_v60, %v2270_v62 }
 0xce1   : > { %v3373_v0 = vadd.f32 %v2271_v63, %v3314_v6 }
 0xce6   : > { %v2272_v1 = vpop.f32.mrf.mxu0 }
 0xce7   : > { %v2273_v2 = vadd.f32 %v2672_v60, %v2272_v1 }
 0xce9   : > { %v3376_v3 = vadd.f32 %v2273_v2, %v3321_v11 }
 0xcee   : > { %v2275_v4 = vpop.f32.mrf.mxu0 }
 0xcef   : > { %v2276_v5 = vadd.f32 %v2672_v60, %v2275_v4 }
 0xcf1   : > { %v3379_v7 = vadd.f32 %v2276_v5, %v3328_v17 }
 0xcf2   : > { %2285 = sbr.rel (%p2621_p5) target bundleno = 3604 (0xe14), region = 107 }
 0xcf6   : > { %v2277_v8 = vpop.f32.mrf.mxu0 }
 0xcf7   : > { %v2288_v9 = vsel %vm671_vm0, %v3373_v0, 0.0  ;;  %v2294_v6 = vsel %vm678_vm1, %v3379_v7, 0.0  ;;  %v2291_v11 = vsel %vm671_vm0, %v3376_v3, 0.0  ;;  %v2760_v43 = vld [vmem:[%s3480_s21] ss:$0 sm:$0xff] }
 0xcf8   : > { %2289 = vadd.xlane.f32.xlu0 %v2288_v9  ;;  %2295 = vadd.xlane.f32.xlu1 %v2294_v6 }
 0xd00   : > { %2292 = vadd.xlane.f32.xlu0 %v2291_v11 }
 0xd6b   : > { %v2290_v10 = vpop.xlane.xlu0 %2289  ;;  %v2296_v14 = vpop.xlane.xlu1 %2295 }
 0xd6c   : > { %v2297_v17 = vmul.f32 %v2290_v10, %v2973_v15  ;;  %v2299_v21 = vmul.f32 %v2296_v14, %v2973_v15 }
 0xd6e   : > { %v2300_v12 = vsub.f32 %v3373_v0, %v2297_v17  ;;  %v2302_v22 = vsub.f32 %v3379_v7, %v2299_v21 }
 0xd70   : > { %v2303_v13 = vmul.f32 %v2300_v12, %v2300_v12  ;;  %v2305_v24 = vmul.f32 %v2302_v22, %v2302_v22 }
 0xd72   : > { %v2306_v16 = vsel %vm671_vm0, %v2303_v13, 0.0  ;;  %v2312_v18 = vsel %vm678_vm1, %v2305_v24, 0.0 }
 0xd73   : > { %2307 = vadd.xlane.f32.xlu1 %v2306_v16  ;;  %v2293_v31 = vpop.xlane.xlu0 %2292 }
 0xd74   : > { %v2298_v19 = vmul.f32 %v2293_v31, %v2973_v15 }
 0xd76   : > { %v2301_v57 = vsub.f32 %v3376_v3, %v2298_v19 }
 0xd78   : > { %v2304_v59 = vmul.f32 %v2301_v57, %v2301_v57 }
 0xd7a   : > { %v2309_v23 = vsel %vm671_vm0, %v2304_v59, 0.0 }
 0xd7b   : > { %2310 = vadd.xlane.f32.xlu2 %v2309_v23 }
 0xd83   : > { %2313 = vadd.xlane.f32.xlu2 %v2312_v18 }
 0xde6   : > { %v2308_v26 = vpop.xlane.xlu1 %2307 }
 0xde7   : > { %v2315_v28 = vmul.f32 %v2308_v26, %v2973_v15 }
 0xde9   : > { %v2318_v29 = vadd.f32 1e-06, %v2315_v28 }
 0xdeb   : > { %2762 = vrsqrt.f32 %v2318_v29  ;;  %vm2327_vm12 = vweird.f32 %v2318_v29 }
 0xdee   : > { %v2311_v49 = vpop.xlane.xlu2 %2310 }
 0xdef   : > { %v2316_v27 = vmul.f32 %v2311_v49, %v2973_v15 }
 0xdf1   : > { %v2763_v30 = vpop.eup %2762  ;;  %v2319_v32 = vadd.f32 1e-06, %v2316_v27 }
 0xdf2   : > { %v2322_v20 = vmul.f32 %v2763_v30, %v2318_v29  ;;  %vm2328_vm11 = vweird.f32 %v2763_v30 }
 0xdf3   : > { %2764 = vrsqrt.f32 %v2319_v32  ;;  %vm2329_vm13 = vmor %vm2327_vm12, %vm2328_vm11  ;;  %vm2337_vm15 = vweird.f32 %v2319_v32 }
 0xdf4   : > { %v2323_v33 = vmul.f32 %v2763_v30, %v2322_v20 }
 0xdf6   : > { %v2324_v34 = vmul.f32 0.5, %v2323_v33  ;;  %v2314_v35 = vpop.xlane.xlu2 %2313 }
 0xdf7   : > { %v2317_v36 = vmul.f32 %v2314_v35, %v2973_v15  ;;  %v2761_v15 = vld [vmem:[%s3481_s13] ss:$0 sm:$0xff] }
 0xdf8   : > { %v2325_v37 = vsub.f32 1.5, %v2324_v34 }
 0xdf9   : > { %v2765_v38 = vpop.eup %2764  ;;  %v2320_v39 = vadd.f32 1e-06, %v2317_v36 }
 0xdfa   : > { %v2326_v41 = vmul.f32 %v2763_v30, %v2325_v37  ;;  %v2332_v42 = vmul.f32 %v2765_v38, %v2319_v32  ;;  %vm2338_vm14 = vweird.f32 %v2765_v38 }
 0xdfb   : > { %2766 = vrsqrt.f32 %v2320_v39  ;;  %vm2339_vm2 = vmor %vm2337_vm15, %vm2338_vm14  ;;  %vm2347_vm4 = vweird.f32 %v2320_v39 }
 0xdfc   : > { %v2330_v44 = vsel %vm2329_vm13, %v2763_v30, %v2326_v41  ;;  %v2333_v45 = vmul.f32 %v2765_v38, %v2332_v42 }
 0xdfd   : > { %v2351_v46 = vmul.f32 %v2330_v44, %v2300_v12 }
 0xdfe   : > { %v2334_v47 = vmul.f32 0.5, %v2333_v45 }
 0xdff   : > { %v2357_v40 = vmul.f32 %v2760_v43, %v2351_v46 }
 0xe00   : > { %v2335_v48 = vsub.f32 1.5, %v2334_v47 }
 0xe01   : > { %v2767_v50 = vpop.eup %2766  ;;  %v2363_v51 = vadd.f32 %v2761_v15, %v2357_v40 }
 0xe02   : > { %v2336_v53 = vmul.f32 %v2765_v38, %v2335_v48  ;;  %v2342_v52 = vmul.f32 %v2767_v50, %v2320_v39  ;;  %vm2348_vm3 = vweird.f32 %v2767_v50 }
 0xe03   : > { %2366 = vst.msk [vmem:[%s3452_s15] sm:$0xff] %vm671_vm0, %v2363_v51  ;;  %vm2349_vm5 = vmor %vm2347_vm4, %vm2348_vm3 }
 0xe04   : > { %v2340_v55 = vsel %vm2339_vm2, %v2765_v38, %v2336_v53  ;;  %v2343_v54 = vmul.f32 %v2767_v50, %v2342_v52 }
 0xe05   : > { %v2352_v56 = vmul.f32 %v2340_v55, %v2301_v57 }
 0xe06   : > { %v2344_v61 = vmul.f32 0.5, %v2343_v54 }
 0xe07   : > { %v2358_v25 = vmul.f32 %v2760_v43, %v2352_v56 }
 0xe08   : > { %v2345_v58 = vsub.f32 1.5, %v2344_v61 }
 0xe09   : > { %v2364_v60 = vadd.f32 %v2761_v15, %v2358_v25 }
 0xe0a   : > { %v2346_v62 = vmul.f32 %v2767_v50, %v2345_v58 }
 0xe0b   : > { %2367 = vst.msk [vmem:[%s3452_s15 + $0x8] sm:$0xff] %vm671_vm0, %v2364_v60 }
 0xe0c   : > { %v2350_v63 = vsel %vm2349_vm5, %v2767_v50, %v2346_v62 }
 0xe0d   : > { %v2353_v1 = vmul.f32 %v2350_v63, %v2302_v22 }
 0xe0f   : > { %v2359_v2 = vmul.f32 %v2760_v43, %v2353_v1 }
 0xe11   : > { %v2365_v4 = vadd.f32 %v2761_v15, %v2359_v2 }
 0xe13   : > { %2368 = vst.msk [vmem:[%s3452_s15 + $0x10] sm:$0xf] %vm678_vm1, %v2365_v4 }
 0xe14 PF: > { %p2622_p6 = scmp.ge.s32.totalorder %s2880_s19, 1 }
 0xe16   : > { %2372 = sbr.rel (%p2622_p6) target bundleno = 3614 (0xe1e), region = 111 }
 0xe1b   : > { %2373 = vst.msk [vmem:[%s3452_s15] sm:$0xff] %vm671_vm0, %v3373_v0 }
 0xe1c   : > { %2374 = vst.msk [vmem:[%s3452_s15 + $0x8] sm:$0xff] %vm671_vm0, %v3376_v3 }
 0xe1d   : > { %2375 = vst.msk [vmem:[%s3452_s15 + $0x10] sm:$0xf] %vm678_vm1, %v3379_v7 }
 0xe1e PF: > { %s3482_s19 = sld [smem:[#allocation6_spill]] }
 0xe24   : > { %s25_s18 = sadd.s32 1, %s3482_s19  }
 0xe25   : > { %p22_p7 = scmp.ge.s32.totalorder %s25_s18, 4  }
 0xe27   :  { %24 = sbr.rel (!%p22_p7) target bundleno = 6 (0x6), region = 191 }

// kernel: blip_decoder_forward.7
= control target key start
LH: loop header
LB: loop body
LE: loop exit
PB: predicated region body
PF: predicated region fallthrough
CT: control target
= control target key end

     0   :  { %s4830_s29 = smov 0   ;;  %s5842_s0 = inlined_call_operand.vmem [shape: f32[32,32], index: 0, kind: input, shape index: {}]   ;;  %s5843_s1 = inlined_call_operand.vmem [shape: bf16[20,32], index: 1, kind: input, shape index: {}]   ;;  %s5844_s2 = inlined_call_operand.vmem [shape: f32[4,8,8], index: 2, kind: input, shape index: {}]   ;;  %s5845_s3 = inlined_call_operand.vmem [shape: f32[1,32], index: 3, kind: input, shape index: {}]   ;;  %s5846_s4 = inlined_call_operand.vmem [shape: f32[1,32], index: 4, kind: input, shape index: {}]   ;;  %s5847_s5 = inlined_call_operand.vmem [shape: bf16[2,32,96], index: 5, kind: input, shape index: {}]   ;;  %s5848_s6 = inlined_call_operand.vmem [shape: f32[2,1,96], index: 6, kind: input, shape index: {}]   ;;  %s5849_s7 = inlined_call_operand.vmem [shape: bf16[2,32,32], index: 7, kind: input, shape index: {}]   ;;  %s5850_s8 = inlined_call_operand.vmem [shape: f32[2,1,32], index: 8, kind: input, shape index: {}]   ;;  %s5851_s9 = inlined_call_operand.vmem [shape: f32[2,1,32], index: 9, kind: input, shape index: {}]   ;;  %s5852_s10 = inlined_call_operand.vmem [shape: f32[2,1,32], index: 10, kind: input, shape index: {}]   ;;  %s5853_s11 = inlined_call_operand.vmem [shape: bf16[2,32,32], index: 11, kind: input, shape index: {}]   ;;  %s5854_s12 = inlined_call_operand.vmem [shape: f32[2,1,32], index: 12, kind: input, shape index: {}]   ;;  %s5855_s13 = inlined_call_operand.vmem [shape: bf16[2,32,64], index: 13, kind: input, shape index: {}]   ;;  %s5856_s14 = inlined_call_operand.vmem [shape: f32[2,1,64], index: 14, kind: input, shape index: {}]   ;;  %s5857_s15 = inlined_call_operand.vmem [shape: bf16[2,32,32], index: 15, kind: input, shape index: {}]   ;;  %s5858_s16 = inlined_call_operand.vmem [shape: f32[2,1,32], index: 16, kind: input, shape index: {}]   ;;  %s5859_s17 = inlined_call_operand.vmem [shape: f32[2,1,32], index: 17, kind: input, shape index: {}]   ;;  %s5860_s18 = inlined_call_operand.vmem [shape: f32[2,1,32], index: 18, kind: input, shape index: {}]   ;;  %s5861_s19 = inlined_call_operand.vmem [shape: bf16[2,32,64], index: 19, kind: input, shape index: {}]   ;;  %s5862_s20 = inlined_call_operand.vmem [shape: f32[2,1,64], index: 20, kind: input, shape index: {}]   ;;  %s5863_s21 = inlined_call_operand.vmem [shape: bf16[2,64,32], index: 21, kind: input, shape index: {}]   ;;  %s5864_s22 = inlined_call_operand.vmem [shape: f32[2,1,32], index: 22, kind: input, shape index: {}]   ;;  %s5865_s23 = inlined_call_operand.vmem [shape: f32[2,1,32], index: 23, kind: input, shape index: {}]   ;;  %s5866_s24 = inlined_call_operand.vmem [shape: f32[2,1,32], index: 24, kind: input, shape index: {}]   ;;  %s5867_s25 = inlined_call_operand.vmem [shape: f32[32,32], index: 25, kind: output, shape index: {}]  }
   0x1   :  { %5880 = sst [smem:[#allocation9_spill]] %s5842_s0 }
   0x2   :  { %5881 = sst [smem:[#allocation10_spill]] %s5843_s1 }
   0x3   :  { %5882 = sst [smem:[#allocation11_spill]] %s5844_s2 }
   0x4   :  { %5883 = sst [smem:[#allocation12_spill]] %s5845_s3 }
   0x5   :  { %5884 = sst [smem:[#allocation13_spill]] %s5846_s4 }
   0x6   :  { %5885 = sst [smem:[#allocation14_spill]] %s5847_s5 }
   0x7   :  { %5886 = sst [smem:[#allocation15_spill]] %s5848_s6 }
   0x8   :  { %5887 = sst [smem:[#allocation16_spill]] %s5849_s7 }
   0x9   :  { %5888 = sst [smem:[#allocation17_spill]] %s5850_s8 }
   0xa   :  { %5889 = sst [smem:[#allocation18_spill]] %s5851_s9 }
   0xb   :  { %5890 = sst [smem:[#allocation19_spill]] %s5853_s11 }
   0xc   :  { %5891 = sst [smem:[#allocation20_spill]] %s5855_s13 }
   0xd   :  { %5892 = sst [smem:[#allocation21_spill]] %s5857_s15 }
   0xe   :  { %5893 = sst [smem:[#allocation22_spill]] %s5859_s17 }
   0xf   :  { %5894 = sst [smem:[#allocation23_spill]] %s5860_s18 }
  0x10   :  { %5895 = sst [smem:[#allocation24_spill]] %s5861_s19 }
  0x11   :  { %5896 = sst [smem:[#allocation25_spill]] %s5864_s22 }
  0x12   :  { %5897 = sst [smem:[#allocation26_spill]] %s5865_s23 }
  0x13   :  { %5898 = sst [smem:[#allocation27_spill]] %s5866_s24 }
  0x14   :  { %5899 = sst [smem:[#allocation28_spill]] %s5867_s25 }
  0x15 LB: > { %5900 = sst [smem:[#allocation6_spill]] %s4681_s29  ;;  %s4836_s2 = sadd.s32 4294967295, %s4681_s29   ;;  %s4681_s29 = sphi %s4830_s29, %s35_s29  }
  0x16   : > { %5901 = sst [smem:[#allocation7_spill]] %s4836_s2  ;;  %p4247_p0 = scmp.ge.s32.totalorder %s4681_s29, 1 }
  0x17   : > { %p822_p1 = scmp.lt.s32.totalorder %s4681_s29, 3 }
  0x19   : > { %p823_p2 = pnand %p4247_p0, %p822_p1 }
  0x1b   : > { %826 = sbr.rel (%p823_p2) target bundleno = 6019 (0x1783), region = 116 }
  0x20   : > { %p952_p3 = scmp.lt.s32.totalorder %s4836_s2, 1  ;;  %s5903_s4 = sld [smem:[#allocation14_spill]] }
  0x21   : > { %s5905_s0 = sld [smem:[#allocation16_spill]] }
  0x22   : > { %s4842_s6 = scalar_select %p952_p3, %s4836_s2, 1 }
  0x23   : > { %s5908_s11 = sld [smem:[#allocation19_spill]] }
  0x24   : > { %s4427_s30 = sshll.u32 %s4842_s6, 4  ;;  %s5909_s13 = sld [smem:[#allocation20_spill]] }
  0x25   : > { %s5910_s15 = sld [smem:[#allocation21_spill]] }
  0x26   : > { %s4852_s28 = scalar_lea.vmem %s5903_s4, %s4427_s30  ;;  %s5913_s19 = sld [smem:[#allocation24_spill]] }
  0x27   : > { %5904 = sst [smem:[#allocation8_spill]] %s4852_s28  ;;  %s4857_s29 = scalar_lea.vmem %s5905_s0, %s4427_s30 }
  0x28   : > { %s5917_s27 = sld [smem:[#allocation7_spill]] }
  0x29   : > { %s4874_s9 = scalar_lea.vmem %s5908_s11, %s4427_s30 }
  0x2a   : > { %s4883_s22 = scalar_lea.vmem %s5909_s13, %s4427_s30 }
  0x2b   : > { %s4892_s26 = scalar_lea.vmem %s5910_s15, %s4427_s30  ;;  %s4433_s15 = sshll.u32 %s4842_s6, 5 }
  0x2c   : > { %s4909_s3 = scalar_lea.vmem %s5913_s19, %s4427_s30  ;;  %s4919_s23 = scalar_lea.vmem %s5863_s21, %s4433_s15 }
  0x2e   : > { %p4262_p4 = scmp.ne.s32.totalorder %s5917_s27, 0 }
  0x30   : > { %1030 = sbr.rel (%p4262_p4) target bundleno = 348 (0x15c), region = 120 }
  0x35   : > { %s5918_s28 = sld [smem:[#allocation9_spill]] }
  0x36   : > { %s5919_s0 = sld [smem:[#allocation28_spill]] }
  0x3b   : > { %v1041_v0 = vld [vmem:[%s5918_s28] sm:$0xff]  ;;  %v1043_v1 = vld [vmem:[%s5918_s28 + $0x8] sm:$0xff]  ;;  %v1045_v2 = vld [vmem:[%s5918_s28 + $0x10] sm:$0xff] }
  0x3c   : > { %1042 = vst [vmem:[%s5919_s0] sm:$0xff] %v1041_v0  ;;  %v1047_v3 = vld [vmem:[%s5918_s28 + $0x18] sm:$0xff] }
  0x3d   : > { %1044 = vst [vmem:[%s5919_s0 + $0x8] sm:$0xff] %v1043_v1 }
  0x3e   : > { %1046 = vst [vmem:[%s5919_s0 + $0x10] sm:$0xff] %v1045_v2 }
  0x3f   : > { %1048 = vst [vmem:[%s5919_s0 + $0x18] sm:$0xff] %v1047_v3 }
  0x40   : > { %1054 = vsyncadd [#allocation3], 512 }
  0x41   : > { %4677 = dma.done.wait [#allocation3], 512 }
  0x42   : > { %4678 = vsyncadd [#allocation3], 4294966784  ;;  %vm1064_vm0 = vcmask 261120   ;;  %v4683_v12 = vmov 32.0   ;;  %s5920_s27 = sld [smem:[#allocation12_spill]] }
  0x43   : > { %v1058_v5 = vld [vmem:[%s5919_s0] sm:$0xff]  ;;  %4484 = vrcp.f32 %v4683_v12  ;;  %s5921_s4 = sld [smem:[#allocation13_spill]] }
  0x44   : > { %v1065_v7 = vsel %vm1064_vm0, %v1058_v5, 0.0  ;;  %v1059_v9 = vld [vmem:[%s5919_s0 + $0x8] sm:$0xff] }
  0x45   : > { %v1060_v4 = vld [vmem:[%s5919_s0 + $0x10] sm:$0xff]  ;;  %1066 = vadd.xlane.f32.xlu0 %v1065_v7  ;;  %v1068_v11 = vsel %vm1064_vm0, %v1059_v9, 0.0 }
  0x46   : > { %v1071_v6 = vsel %vm1064_vm0, %v1060_v4, 0.0  ;;  %v1061_v8 = vld [vmem:[%s5919_s0 + $0x18] sm:$0xff] }
  0x47   : > { %1072 = vadd.xlane.f32.xlu1 %v1071_v6  ;;  %v1074_v10 = vsel %vm1064_vm0, %v1061_v8, 0.0 }
  0x48   : > { %v4482_v1 = vld [vmem:[%s5920_s27] ss:$0 sm:$0xff] }
  0x49   : > { %v4485_v13 = vpop.eup %4484  ;;  %v4483_v6 = vld [vmem:[%s5921_s4] ss:$0 sm:$0xff] }
  0x4a   : > { %v1078_v14 = vmul.f32 32.0, %v4485_v13  ;;  %vm1082_vm1 = vweird.f32 %v4485_v13 }
  0x4c   : > { %v1079_v15 = vsub.f32 1.0, %v1078_v14 }
  0x4d   : > { %1069 = vadd.xlane.f32.xlu0 %v1068_v11 }
  0x4e   : > { %v1080_v16 = vmul.f32 %v4485_v13, %v1079_v15 }
  0x4f   : > { %1075 = vadd.xlane.f32.xlu1 %v1074_v10 }
  0x50   : > { %v1081_v17 = vadd.f32 %v4485_v13, %v1080_v16 }
  0x52   : > { %v1083_v18 = vsel %vm1082_vm1, %v4485_v13, %v1081_v17 }
  0xb8   : > { %v1067_v20 = vpop.xlane.xlu0 %1066 }
  0xb9   : > { %v1084_v22 = vmul.f32 %v1083_v18, %v1067_v20 }
  0xba   : > { %v1073_v19 = vpop.xlane.xlu1 %1072 }
  0xbb   : > { %v1086_v21 = vmul.f32 %v1083_v18, %v1073_v19  ;;  %v1088_v24 = vsub.f32 %v1058_v5, %v1084_v22 }
  0xbd   : > { %v4974_v23 = vsub.f32 %v1060_v4, %v1086_v21  ;;  %v1092_v26 = vmul.f32 %v1088_v24, %v1088_v24 }
  0xbf   : > { %v1094_v25 = vmul.f32 %v4974_v23, %v4974_v23  ;;  %v1096_v28 = vsel %vm1064_vm0, %v1092_v26, 0.0 }
  0xc0   : > { %1097 = vadd.xlane.f32.xlu2 %v1096_v28  ;;  %v1070_v30 = vpop.xlane.xlu0 %1069 }
  0xc1   : > { %v1102_v27 = vsel %vm1064_vm0, %v1094_v25, 0.0  ;;  %v1085_v32 = vmul.f32 %v1083_v18, %v1070_v30 }
  0xc2   : > { %v1076_v29 = vpop.xlane.xlu1 %1075  ;;  %1103 = vadd.xlane.f32.xlu0 %v1102_v27 }
  0xc3   : > { %v1087_v31 = vmul.f32 %v1083_v18, %v1076_v29  ;;  %v4982_v34 = vsub.f32 %v1059_v9, %v1085_v32 }
  0xc5   : > { %v4980_v33 = vsub.f32 %v1061_v8, %v1087_v31  ;;  %v1093_v36 = vmul.f32 %v4982_v34, %v4982_v34 }
  0xc7   : > { %v1095_v35 = vmul.f32 %v4980_v33, %v4980_v33  ;;  %v1099_v38 = vsel %vm1064_vm0, %v1093_v36, 0.0 }
  0xc8   : > { %1100 = vadd.xlane.f32.xlu2 %v1099_v38 }
  0xc9   : > { %v1105_v37 = vsel %vm1064_vm0, %v1095_v35, 0.0 }
  0xca   : > { %1106 = vadd.xlane.f32.xlu1 %v1105_v37 }
 0x133   : > { %v1098_v39 = vpop.xlane.xlu2 %1097 }
 0x134   : > { %v1108_v41 = vmul.f32 %v1098_v39, %v1083_v18 }
 0x135   : > { %v1104_v40 = vpop.xlane.xlu0 %1103 }
 0x136   : > { %v1110_v42 = vmul.f32 %v1104_v40, %v1083_v18  ;;  %v1112_v43 = vadd.f32 1e-12, %v1108_v41 }
 0x138   : > { %v1114_v44 = vadd.f32 1e-12, %v1110_v42  ;;  %4486 = vrsqrt.f32 %v1112_v43  ;;  %vm1122_vm4 = vweird.f32 %v1112_v43 }
 0x13a   : > { %4488 = vrsqrt.f32 %v1114_v44  ;;  %vm1142_vm6 = vweird.f32 %v1114_v44 }
 0x13b   : > { %v1101_v46 = vpop.xlane.xlu2 %1100 }
 0x13c   : > { %v1109_v48 = vmul.f32 %v1101_v46, %v1083_v18 }
 0x13d   : > { %v1107_v45 = vpop.xlane.xlu1 %1106 }
 0x13e   : > { %v1111_v47 = vmul.f32 %v1107_v45, %v1083_v18  ;;  %v4487_v49 = vpop.eup %4486  ;;  %v1113_v51 = vadd.f32 1e-12, %v1109_v48 }
 0x13f   : > { %v1117_v53 = vmul.f32 %v4487_v49, %v1112_v43  ;;  %vm1123_vm2 = vweird.f32 %v4487_v49 }
 0x140   : > { %v1115_v50 = vadd.f32 1e-12, %v1111_v47  ;;  %v4489_v52 = vpop.eup %4488  ;;  %vm1124_vm5 = vmor %vm1122_vm4, %vm1123_vm2  ;;  %vm1132_vm12 = vweird.f32 %v1113_v51 }
 0x141   : > { %v1137_v54 = vmul.f32 %v4489_v52, %v1114_v44  ;;  %v1118_v55 = vmul.f32 %v4487_v49, %v1117_v53  ;;  %vm1143_vm3 = vweird.f32 %v4489_v52 }
 0x142   : > { %4490 = vrsqrt.f32 %v1115_v50  ;;  %vm1144_vm7 = vmor %vm1142_vm6, %vm1143_vm3  ;;  %vm1152_vm10 = vweird.f32 %v1115_v50 }
 0x143   : > { %4492 = vrsqrt.f32 %v1113_v51  ;;  %v1138_v56 = vmul.f32 %v4489_v52, %v1137_v54  ;;  %v1119_v57 = vmul.f32 0.5, %v1118_v55 }
 0x145   : > { %v1139_v58 = vmul.f32 0.5, %v1138_v56  ;;  %v1120_v59 = vsub.f32 1.5, %v1119_v57 }
 0x147   : > { %v1140_v61 = vsub.f32 1.5, %v1139_v58  ;;  %v1121_v63 = vmul.f32 %v4487_v49, %v1120_v59 }
 0x148   : > { %v4491_v60 = vpop.eup %4490 }
 0x149   : > { %v4493_v62 = vpop.eup %4492  ;;  %v1147_v0 = vmul.f32 %v4491_v60, %v1115_v50  ;;  %v1141_v2 = vmul.f32 %v4489_v52, %v1140_v61  ;;  %v1125_v4 = vsel %vm1124_vm5, %v4487_v49, %v1121_v63  ;;  %vm1153_vm8 = vweird.f32 %v4491_v60 }
 0x14a   : > { %v1127_v3 = vmul.f32 %v4493_v62, %v1113_v51  ;;  %v1156_v7 = vmul.f32 %v1125_v4, %v1088_v24  ;;  %vm1133_vm9 = vweird.f32 %v4493_v62  ;;  %vm1154_vm11 = vmor %vm1152_vm10, %vm1153_vm8 }
 0x14b   : > { %v1148_v5 = vmul.f32 %v4491_v60, %v1147_v0  ;;  %v1145_v8 = vsel %vm1144_vm7, %v4489_v52, %v1141_v2  ;;  %vm1134_vm13 = vmor %vm1132_vm12, %vm1133_vm9 }
 0x14c   : > { %v1128_v9 = vmul.f32 %v4493_v62, %v1127_v3  ;;  %v1158_v10 = vmul.f32 %v1145_v8, %v4974_v23  ;;  %v1163_v12 = vmul.f32 %v4482_v1, %v1156_v7 }
 0x14d   : > { %v1149_v11 = vmul.f32 0.5, %v1148_v5 }
 0x14e   : > { %v1129_v13 = vmul.f32 0.5, %v1128_v9  ;;  %v1165_v14 = vmul.f32 %v4482_v1, %v1158_v10  ;;  %v1170_v16 = vadd.f32 %v4483_v6, %v1163_v12 }
 0x14f   : > { %v1150_v15 = vsub.f32 1.5, %v1149_v11 }
 0x150   : > { %v1130_v17 = vsub.f32 1.5, %v1129_v13  ;;  %v1172_v18 = vadd.f32 %v4483_v6, %v1165_v14  ;;  %1174 = vst.msk [vmem:[%s5919_s0] sm:$0xff] %vm1064_vm0, %v1170_v16 }
 0x151   : > { %v1151_v19 = vmul.f32 %v4491_v60, %v1150_v15 }
 0x152   : > { %v1131_v20 = vmul.f32 %v4493_v62, %v1130_v17  ;;  %1176 = vst.msk [vmem:[%s5919_s0 + $0x10] sm:$0xff] %vm1064_vm0, %v1172_v18 }
 0x153   : > { %v1155_v21 = vsel %vm1154_vm11, %v4491_v60, %v1151_v19 }
 0x154   : > { %v1159_v22 = vmul.f32 %v1155_v21, %v4980_v33  ;;  %v1135_v23 = vsel %vm1134_vm13, %v4493_v62, %v1131_v20 }
 0x155   : > { %v1157_v24 = vmul.f32 %v1135_v23, %v4982_v34 }
 0x156   : > { %v1166_v25 = vmul.f32 %v4482_v1, %v1159_v22 }
 0x157   : > { %v1164_v26 = vmul.f32 %v4482_v1, %v1157_v24 }
 0x158   : > { %v1173_v27 = vadd.f32 %v4483_v6, %v1166_v25 }
 0x159   : > { %v1171_v28 = vadd.f32 %v4483_v6, %v1164_v26 }
 0x15a   : > { %1177 = vst.msk [vmem:[%s5919_s0 + $0x18] sm:$0xff] %vm1064_vm0, %v1173_v27 }
 0x15b   : > { %1175 = vst.msk [vmem:[%s5919_s0 + $0x8] sm:$0xff] %vm1064_vm0, %v1171_v28 }
 0x15c PF: > { %s5922_s1 = sld [smem:[#allocation8_spill]]  ;;  %vm1208_vm14 = vcmask 261120   ;;  %s4685_s27 = smov 96   ;;  %vm1243_vm15 = vcmask 64512   ;;  %vm1396_vm0 = vcmask 1043456   ;;  %vm1480_vm1 = vcmask 60416  }
 0x15d   : > { %s5923_s15 = sld [smem:[#allocation28_spill]]  ;;  %s4689_s8 = smov 56   ;;  %vm1737_vm2 = vcmask 126016   ;;  %vm1994_vm3 = vcmask 191616   ;;  %vm2251_vm4 = vcmask 257216  }
 0x15e   : > { %s5924_s30 = sld [smem:[#allocation15_spill]]  ;;  %s4690_s4 = smov 112  }
 0x15f   : > { %s5926_s25 = sld [smem:[#allocation11_spill]]  ;;  %s4691_s5 = smov 48  }
 0x160   : > { %s4692_s11 = smov 72   ;;  %s4693_s0 = smov 104  }
 0x161   : > { %s4694_s18 = smov 40   ;;  %s4695_s19 = smov 8  }
 0x162   : > { %v4435_v29 = vld [vmem:[%s5922_s1 + $0x8] sm:$0xff]  ;;  %v4434_v30 = vld [vmem:[%s5922_s1] sm:$0xff]  ;;  %s4684_s1 = smov 64   ;;  %s5878_s2 = smov 16  }
 0x163   : > { %v1178_v31 = vld [vmem:[%s5923_s15] sm:$0xff]  ;;  %v1179_v32 = vld [vmem:[%s5923_s15 + $0x8] sm:$0xff]  ;;  %v1180_v33 = vld [vmem:[%s5923_s15 + $0x10] sm:$0xff]  ;;  %1221 = vmatpush.bf16.msra.mxu0 %v4435_v29  ;;  %4455 = vmatpush.bf16.msra.mxu3 %v4435_v29  ;;  %s5934_s24 = scalar_lea.vmem %s5854_s12, %s4842_s6 }
 0x164   : > { %v1181_v34 = vld [vmem:[%s5923_s15 + $0x18] sm:$0xff]  ;;  %v1191_v35 = vpack.c.bf16 %v1179_v32, %v1178_v31  ;;  %s5925_s7 = scalar_lea.vmem %s5924_s30, %s4842_s6  ;;  %s4686_s30 = smov 88  }
 0x165   : > { %v1192_v36 = vpack.c.bf16 %v1181_v34, %v1180_v33  ;;  %v4494_v37 = vld [vmem:[%s5925_s7] ss:$0 sm:$0xff]  ;;  %v5069_v7 = vld [vmem:[%s5926_s25 + $0x10] sm:$0xff]  ;;  %v5083_v20 = vld [vmem:[%s5926_s25 + $0x8] sm:$0xff]  ;;  %s4687_s7 = smov 120  }
 0x166   : > { %v5075_v12 = vld [vmem:[%s5926_s25] sm:$0xff]  ;;  %v5090_v25 = vld [vmem:[%s5926_s25 + $0x18] sm:$0xff] }
 0x167   : > { %1222 = vmatpush.bf16.msra.mxu0 %v4434_v30  ;;  %4456 = vmatpush.bf16.msra.mxu3 %v4434_v30 }
 0x16a   : > { %4271 = vmatmul.msk.bf16.vlgmr.msra.gmra.mxu0 %vm1208_vm14, %v1191_v35  ;;  %4272 = vmatmul.msk.bf16.vlgmr.msra.gmra.mxu3 %vm1208_vm14, %v1192_v36 }
 0x1e7   : > { %v1224_v38 = vpop.f32.mrf.mxu0 }
 0x1e8   : > { %v1225_v39 = vadd.f32 %v4494_v37, %v1224_v38 }
 0x1ea   : > { %v1234_v40 = vpack.c.bf16 %v1225_v39, %v1225_v39 }
 0x1ec   : > { %v1239_v41 = vunpack.c.l.b16 %v1234_v40 }
 0x1ed   : > { %v1229_v42 = vpop.f32.mrf.mxu3 }
 0x1ee   : > { %v5036_v43 = vpack.c.b16 %v1239_v41, %v1239_v41  ;;  %v1230_v44 = vadd.f32 %v4494_v37, %v1229_v42 }
 0x1ef   : > { %v1226_v45 = vpop.f32.mrf.mxu0 }
 0x1f0   : > { %v1236_v46 = vpack.c.bf16 %v1230_v44, %v1230_v44  ;;  %v1227_v47 = vadd.f32 %v4494_v37, %v1226_v45  ;;  %1391 = vrot.lane.b32.xlu2 %v5036_v43, %s4684_s1 }
 0x1f2   : > { %v1288_v48 = vunpack.c.l.b16 %v1236_v46  ;;  %v1235_v49 = vpack.c.bf16 %v1227_v47, %v1227_v47 }
 0x1f4   : > { %v5040_v50 = vpack.c.b16 %v1288_v48, %v1288_v48  ;;  %v1264_v51 = vunpack.c.l.b16 %v1235_v49 }
 0x1f5   : > { %v1231_v52 = vpop.f32.mrf.mxu3 }
 0x1f6   : > { %v5042_v53 = vpack.c.b16 %v1264_v51, %v1264_v51  ;;  %1290 = vrot.lane.b32.xlu1 %v5040_v50, %s4685_s27  ;;  %v1232_v54 = vadd.f32 %v4494_v37, %v1231_v52 }
 0x1f8   : > { %1266 = vrot.lane.b32.xlu0 %v5042_v53, %s4685_s27  ;;  %1413 = vrot.lane.b32.xlu2 %v5042_v53, %s4684_s1  ;;  %v1237_v55 = vpack.c.bf16 %v1232_v54, %v1232_v54 }
 0x1fa   : > { %v1312_v56 = vunpack.c.l.b16 %v1237_v55 }
 0x1fc   : > { %v5050_v57 = vpack.c.b16 %v1312_v56, %v1312_v56 }
 0x1fe   : > { %1314 = vrot.lane.b32.xlu1 %v5050_v57, %s4685_s27 }
 0x200   : > { %1241 = vrot.lane.b32.xlu0 %v5036_v43, %s4685_s27 }
 0x24a   : > { %v1392_v58 = vpop.permute.xlu2 %1391 }
 0x24b   : > { %v1398_v1 = vsel %vm1396_vm0, %v1392_v58, 0 }
 0x252   : > { %v1414_v59 = vpop.permute.xlu2 %1413 }
 0x253   : > { %v1419_v62 = vsel %vm1396_vm0, %v1414_v59, 0 }
 0x268   : > { %v1291_v60 = vpop.permute.xlu1 %1290 }
 0x269   : > { %v1296_v61 = vsel %vm1243_vm15, %v1291_v60, 0 }
 0x26a   : > { %1305 = vmatpush.bf16.xpose.msrb.mxu3 %v1296_v61  ;;  %v1267_v63 = vpop.permute.xlu0 %1266 }
 0x26b   : > { %v1272_v0 = vsel %vm1243_vm15, %v1267_v63, 0 }
 0x26c   : > { %1281 = vmatpush.bf16.xpose.msra.mxu2 %v1272_v0 }
 0x270   : > { %v1315_v2 = vpop.permute.xlu1 %1314 }
 0x271   : > { %4275 = vmatmul.msk.bf16.vlgmr.msrb.gmra.mxu3 %vm1243_vm15, %v1236_v46  ;;  %v1320_v4 = vsel %vm1243_vm15, %v1315_v2, 0 }
 0x272   : > { %1428 = vmatpush.bf16.msra.mxu3 %v1419_v62  ;;  %v1242_v3 = vpop.permute.xlu0 %1241 }
 0x273   : > { %4274 = vmatmul.msk.bf16.vlgmr.msra.gmra.mxu2 %vm1243_vm15, %v1235_v49  ;;  %v1248_v5 = vsel %vm1243_vm15, %v1242_v3, 0 }
 0x274   : > { %1407 = vmatpush.bf16.msrb.mxu2 %v1398_v1  ;;  %1257 = vmatpush.bf16.xpose.msra.mxu1 %v1248_v5 }
 0x27b   : > { %4273 = vmatmul.msk.bf16.vlgmr.msra.gmra.mxu1 %vm1243_vm15, %v1234_v40 }
 0x27c   : > { %1329 = vmatpush.bf16.xpose.msrb.mxu1 %v1320_v4 }
 0x28b   : > { %4276 = vmatmul.msk.bf16.vlgmr.msrb.gmra.mxu1 %vm1243_vm15, %v1237_v55 }
 0x2f4   : > { %v1307_v6 = vpop.f32.mrf.mxu3 }
 0x2f5   : > { %v1337_v8 = vmul.f32 0.35355338, %v1307_v6 }
 0x2f6   : > { %v1283_v9 = vpop.f32.mrf.mxu2 }
 0x2f7   : > { %v1341_v10 = vadd.f32 %v1337_v8, %v5069_v7  ;;  %v1336_v17 = vmul.f32 0.35355338, %v1283_v9 }
 0x2f8   : > { %v1259_v11 = vpop.f32.mrf.mxu1 }
 0x2f9   : > { %v1335_v13 = vmul.f32 0.35355338, %v1259_v11  ;;  %v1349_v14 = vsel %vm1243_vm15, %v1341_v10, -inf  ;;  %v1340_v22 = vadd.f32 %v1336_v17, %v5083_v20 }
 0x2fa   : > { %1350 = vmax.xlane.f32.xlu0 %v1349_v14 }
 0x2fb   : > { %v1339_v15 = vadd.f32 %v1335_v13, %v5075_v12  ;;  %v1346_v23 = vsel %vm1243_vm15, %v1340_v22, -inf }
 0x2fc   : > { %v1309_v16 = vpop.f32.mrf.mxu3 }
 0x2fd   : > { %v1343_v18 = vsel %vm1243_vm15, %v1339_v15, -inf }
 0x2fe   : > { %v1285_v19 = vpop.f32.mrf.mxu2  ;;  %1344 = vmax.xlane.f32.xlu2 %v1343_v18 }
 0x300   : > { %v1261_v21 = vpop.f32.mrf.mxu1 }
 0x306   : > { %1347 = vmax.xlane.f32.xlu2 %v1346_v23 }
 0x308   : > { %v1331_v24 = vpop.f32.mrf.mxu1 }
 0x309   : > { %v1338_v26 = vmul.f32 0.35355338, %v1331_v24 }
 0x30b   : > { %v1342_v27 = vadd.f32 %v1338_v26, %v5090_v25 }
 0x30d   : > { %v1352_v28 = vsel %vm1243_vm15, %v1342_v27, -inf }
 0x30e   : > { %1487 = vrot.lane.b32.xlu0 %v5036_v43, %s4686_s30  ;;  %1353 = vmax.xlane.f32.xlu1 %v1352_v28 }
 0x310   : > { %v1333_v29 = vpop.f32.mrf.mxu1 }
 0x31e   : > { %1485 = vrot.lane.b32.xlu2 %v5036_v43, %s4687_s7 }
 0x327   : > { %1510 = vrot.lane.b32.xlu1 %v5042_v53, %s4686_s30 }
 0x32f   : > { %1434 = vrot.lane.b32.xlu1 %v5040_v50, %s4684_s1 }
 0x337   : > { %1455 = vrot.lane.b32.xlu1 %v5050_v57, %s4684_s1  ;;  %s4688_s1 = smov 80  }
 0x33f   : > { %1533 = vrot.lane.b32.xlu1 %v5040_v50, %s4686_s30 }
 0x347   : > { %1556 = vrot.lane.b32.xlu1 %v5050_v57, %s4686_s30 }
 0x34f   : > { %1531 = vrot.lane.b32.xlu1 %v5040_v50, %s4687_s7 }
 0x36d   : > { %v1351_v30 = vpop.xlane.xlu0 %1350 }
 0x36e   : > { %v1357_v31 = vsub.f32 %v1341_v10, %v1351_v30 }
 0x370   : > { %v1363_v32 = vmul.f32 1.442695, %v1357_v31 }
 0x371   : > { %v1345_v33 = vpop.xlane.xlu2 %1344 }
 0x372   : > { %4507 = vpow2.f32 %v1363_v32  ;;  %v1355_v34 = vsub.f32 %v1339_v15, %v1345_v33 }
 0x374   : > { %v1359_v35 = vmul.f32 1.442695, %v1355_v34 }
 0x376   : > { %4509 = vpow2.f32 %v1359_v35 }
 0x378   : > { %v4508_v36 = vpop.eup %4507 }
 0x379   : > { %v1348_v37 = vpop.xlane.xlu2 %1347  ;;  %v1373_v38 = vsel %vm1243_vm15, %v4508_v36, 0.0 }
 0x37a   : > { %v1356_v39 = vsub.f32 %v1340_v22, %v1348_v37  ;;  %1374 = vadd.xlane.f32.xlu0 %v1373_v38 }
 0x37c   : > { %v4510_v40 = vpop.eup %4509  ;;  %v1361_v41 = vmul.f32 1.442695, %v1356_v39 }
 0x37d   : > { %v1367_v42 = vsel %vm1243_vm15, %v4510_v40, 0.0 }
 0x37e   : > { %4511 = vpow2.f32 %v1361_v41  ;;  %1368 = vadd.xlane.f32.xlu2 %v1367_v42 }
 0x380   : > { %v1488_v44 = vpop.permute.xlu0 %1487 }
 0x381   : > { %v1493_v45 = vsel %vm1243_vm15, %v1488_v44, 0  ;;  %v1354_v48 = vpop.xlane.xlu1 %1353  ;;  %v1486_v2 = vpop.permute.xlu2 %1485 }
 0x382   : > { %1502 = vmatpush.bf16.xpose.msra.mxu2 %v1493_v45  ;;  %v1358_v60 = vsub.f32 %v1342_v27, %v1354_v48 }
 0x384   : > { %v4512_v46 = vpop.eup %4511  ;;  %v1365_v61 = vmul.f32 1.442695, %v1358_v60 }
 0x385   : > { %v1370_v47 = vsel %vm1243_vm15, %v4512_v46, 0.0 }
 0x386   : > { %1371 = vadd.xlane.f32.xlu2 %v1370_v47  ;;  %4513 = vpow2.f32 %v1365_v61 }
 0x38c   : > { %v4514_v0 = vpop.eup %4513 }
 0x38d   : > { %v1376_v1 = vsel %vm1243_vm15, %v4514_v0, 0.0 }
 0x38e   : > { %1554 = vrot.lane.b32.xlu0 %v5050_v57, %s4687_s7 }
 0x396   : > { %1767 = vrot.lane.b32.xlu0 %v5042_v53, %s4688_s1 }
 0x399   : > { %v1511_v49 = vpop.permute.xlu1 %1510 }
 0x39a   : > { %v1516_v51 = vsel %vm1243_vm15, %v1511_v49, 0 }
 0x39b   : > { %1525 = vmatpush.bf16.xpose.msrb.mxu3 %v1516_v51 }
 0x39e   : > { %1508 = vrot.lane.b32.xlu2 %v5042_v53, %s4687_s7 }
 0x3a1   : > { %v1435_v52 = vpop.permute.xlu1 %1434 }
 0x3a2   : > { %v1440_v54 = vsel %vm1396_vm0, %v1435_v52, 0 }
 0x3a3   : > { %1449 = vmatpush.bf16.msrb.mxu0 %v1440_v54 }
 0x3a9   : > { %v1456_v55 = vpop.permute.xlu1 %1455 }
 0x3aa   : > { %v1461_v56 = vsel %vm1396_vm0, %v1456_v55, 0 }
 0x3ab   : > { %1470 = vmatpush.bf16.msra.mxu1 %v1461_v56 }
 0x3b1   : > { %v1534_v58 = vpop.permute.xlu1 %1533 }
 0x3b2   : > { %v1539_v59 = vsel %vm1243_vm15, %v1534_v58, 0 }
 0x3b3   : > { %1548 = vmatpush.bf16.xpose.msra.mxu0 %v1539_v59 }
 0x3b9   : > { %v1557_v62 = vpop.permute.xlu1 %1556 }
 0x3ba   : > { %v1562_v63 = vsel %vm1243_vm15, %v1557_v62, 0 }
 0x3bb   : > { %1571 = vmatpush.bf16.xpose.msrb.mxu1 %v1562_v63 }
 0x3c1   : > { %v1532_v17 = vpop.permute.xlu1 %1531 }
 0x3c7   : > { %1377 = vadd.xlane.f32.xlu2 %v1376_v1 }
 0x3ed   : > { %v1375_v3 = vpop.xlane.xlu0 %1374 }
 0x3ee   : > { %4515 = vrcp.f32 %v1375_v3 }
 0x3f1   : > { %v1369_v4 = vpop.xlane.xlu2 %1368 }
 0x3f2   : > { %4517 = vrcp.f32 %v1369_v4 }
 0x3f4   : > { %v4516_v5 = vpop.eup %4515 }
 0x3f5   : > { %v1385_v6 = vmul.f32 %v4516_v5, %v4508_v36 }
 0x3f7   : > { %v1389_v8 = vpack.c.bf16 %v1385_v6, %v1385_v6 }
 0x3f8   : > { %v4518_v9 = vpop.eup %4517 }
 0x3f9   : > { %v1372_v10 = vpop.xlane.xlu2 %1371  ;;  %4279 = vmatmul.msk.bf16.vlgmr.msrb.gmra.mxu0 %vm1243_vm15, %v1389_v8  ;;  %v1383_v11 = vmul.f32 %v4518_v9, %v4510_v40 }
 0x3fa   : > { %4519 = vrcp.f32 %v1372_v10 }
 0x3fb   : > { %v1387_v13 = vpack.c.bf16 %v1383_v11, %v1383_v11 }
 0x3fd   : > { %4277 = vmatmul.msk.bf16.vlgmr.msrb.gmra.mxu2 %vm1243_vm15, %v1387_v13 }
 0x400   : > { %v4520_v14 = vpop.eup %4519  ;;  %v1555_v24 = vpop.permute.xlu0 %1554 }
 0x401   : > { %v1384_v15 = vmul.f32 %v4520_v14, %v4512_v46  ;;  %v1509_v18 = vpop.permute.xlu2 %1508 }
 0x403   : > { %v1388_v16 = vpack.c.bf16 %v1384_v15, %v1384_v15 }
 0x405   : > { %4278 = vmatmul.msk.bf16.vlgmr.msra.gmra.mxu3 %vm1243_vm15, %v1388_v16 }
 0x408   : > { %v1768_v9 = vpop.permute.xlu0 %1767 }
 0x409   : > { %4283 = vmatmul.msk.bf16.vlgmr.msra.gmra.mxu0 %vm1243_vm15, %v1532_v17  ;;  %v1773_v13 = vsel %vm1243_vm15, %v1768_v9, 0 }
 0x40d   : > { %4281 = vmatmul.msk.bf16.vlgmr.msra.gmra.mxu2 %vm1243_vm15, %v1486_v2 }
 0x415   : > { %4282 = vmatmul.msk.bf16.vlgmr.msrb.gmra.mxu3 %vm1243_vm15, %v1509_v18 }
 0x43a   : > { %v1378_v19 = vpop.xlane.xlu2 %1377 }
 0x43b   : > { %4521 = vrcp.f32 %v1378_v19 }
 0x441   : > { %v4522_v21 = vpop.eup %4521 }
 0x442   : > { %v1386_v22 = vmul.f32 %v4522_v21, %v4514_v0 }
 0x444   : > { %v1390_v23 = vpack.c.bf16 %v1386_v22, %v1386_v22 }
 0x446   : > { %4280 = vmatmul.msk.bf16.vlgmr.msra.gmra.mxu1 %vm1243_vm15, %v1390_v23 }
 0x456   : > { %4284 = vmatmul.msk.bf16.vlgmr.msrb.gmra.mxu1 %vm1243_vm15, %v1555_v24 }
 0x476   : > { %v1451_v26 = vpop.f32.mrf.mxu0 }
 0x477   : > { %v1478_v27 = vpack.c.bf16 %v1451_v26, %v1451_v26 }
 0x479   : > { %1483 = vst.msk [vmem:[#allocation2 + $0x8] sm:$0xf] %vm1480_vm1, %v1478_v27 }
 0x47e   : > { %v1453_v28 = vpop.f32.mrf.mxu0 }
 0x480   : > { %v1409_v29 = vpop.f32.mrf.mxu2 }
 0x481   : > { %v1476_v30 = vpack.c.bf16 %v1409_v29, %v1409_v29 }
 0x483   : > { %1481 = vst.msk [vmem:[#allocation2] sm:$0xf] %vm1480_vm1, %v1476_v30 }
 0x486   : > { %v1550_v31 = vpop.f32.mrf.mxu0 }
 0x487   : > { %v1579_v40 = vmul.f32 0.35355338, %v1550_v31 }
 0x488   : > { %v1411_v32 = vpop.f32.mrf.mxu2  ;;  %v1430_v33 = vpop.f32.mrf.mxu3 }
 0x489   : > { %v1477_v34 = vpack.c.bf16 %v1430_v33, %v1430_v33  ;;  %v1583_v46 = vadd.f32 %v1579_v40, %v5069_v7 }
 0x48b   : > { %1482 = vst.msk [vmem:[#allocation2 + $0x4] sm:$0xf] %vm1480_vm1, %v1477_v34  ;;  %v1591_v49 = vsel %vm1243_vm15, %v1583_v46, -inf }
 0x48e   : > { %v1552_v35 = vpop.f32.mrf.mxu0 }
 0x490   : > { %v1432_v36 = vpop.f32.mrf.mxu3  ;;  %v1504_v37 = vpop.f32.mrf.mxu2 }
 0x491   : > { %v1577_v38 = vmul.f32 0.35355338, %v1504_v37 }
 0x493   : > { %v1581_v39 = vadd.f32 %v1577_v38, %v5075_v12 }
 0x495   : > { %v1585_v41 = vsel %vm1243_vm15, %v1581_v39, -inf }
 0x496   : > { %1586 = vmax.xlane.f32.xlu2 %v1585_v41 }
 0x498   : > { %v1506_v42 = vpop.f32.mrf.mxu2  ;;  %v1527_v44 = vpop.f32.mrf.mxu3 }
 0x499   : > { %v1578_v45 = vmul.f32 0.35355338, %v1527_v44 }
 0x49b   : > { %v1582_v47 = vadd.f32 %v1578_v45, %v5083_v20 }
 0x49d   : > { %v1588_v48 = vsel %vm1243_vm15, %v1582_v47, -inf }
 0x49e   : > { %1589 = vmax.xlane.f32.xlu1 %v1588_v48  ;;  %1592 = vmax.xlane.f32.xlu2 %v1591_v49 }
 0x4a0   : > { %v1529_v51 = vpop.f32.mrf.mxu3 }
 0x4b7   : > { %1654 = vrot.lane.b32.xlu1 %v5042_v53, %s4689_s8 }
 0x4bf   : > { %1765 = vrot.lane.b32.xlu1 %v5042_v53, %s4690_s4 }
 0x4c3   : > { %v1472_v52 = vpop.f32.mrf.mxu1 }
 0x4c4   : > { %v1479_v54 = vpack.c.bf16 %v1472_v52, %v1472_v52 }
 0x4c6   : > { %1484 = vst.msk [vmem:[#allocation2 + $0xc] sm:$0xf] %vm1480_vm1, %v1479_v54 }
 0x4cb   : > { %v1474_v55 = vpop.f32.mrf.mxu1 }
 0x4d3   : > { %v1573_v56 = vpop.f32.mrf.mxu1 }
 0x4d4   : > { %v1580_v58 = vmul.f32 0.35355338, %v1573_v56 }
 0x4d6   : > { %v1584_v59 = vadd.f32 %v1580_v58, %v5090_v25 }
 0x4d8   : > { %v1594_v60 = vsel %vm1243_vm15, %v1584_v59, -inf }
 0x4d9   : > { %1595 = vmax.xlane.f32.xlu2 %v1594_v60 }
 0x4db   : > { %v1575_v61 = vpop.f32.mrf.mxu1 }
 0x4f1   : > { %1633 = vrot.lane.b32.xlu2 %v5036_v43, %s4689_s8 }
 0x4f9   : > { %1744 = vrot.lane.b32.xlu2 %v5036_v43, %s4688_s1 }
 0x509   : > { %v1587_v62 = vpop.xlane.xlu2 %1586 }
 0x50a   : > { %v1597_v63 = vsub.f32 %v1581_v39, %v1587_v62 }
 0x50c   : > { %v1601_v0 = vmul.f32 1.442695, %v1597_v63 }
 0x50e   : > { %4523 = vpow2.f32 %v1601_v0 }
 0x511   : > { %v1590_v1 = vpop.xlane.xlu1 %1589  ;;  %v1593_v14 = vpop.xlane.xlu2 %1592 }
 0x512   : > { %v1598_v2 = vsub.f32 %v1582_v47, %v1590_v1  ;;  %v1599_v18 = vsub.f32 %v1583_v46, %v1593_v14 }
 0x514   : > { %v4524_v3 = vpop.eup %4523  ;;  %v1603_v4 = vmul.f32 1.442695, %v1598_v2  ;;  %v1605_v21 = vmul.f32 1.442695, %v1599_v18 }
 0x515   : > { %v1609_v5 = vsel %vm1243_vm15, %v4524_v3, 0.0 }
 0x516   : > { %1610 = vadd.xlane.f32.xlu0 %v1609_v5  ;;  %4525 = vpow2.f32 %v1603_v4 }
 0x51c   : > { %v4526_v6 = vpop.eup %4525 }
 0x51d   : > { %v1612_v8 = vsel %vm1243_vm15, %v4526_v6, 0.0 }
 0x522   : > { %1613 = vadd.xlane.f32.xlu2 %v1612_v8 }
 0x529   : > { %v1655_v10 = vpop.permute.xlu1 %1654 }
 0x52a   : > { %v1660_v11 = vsel %vm1396_vm0, %v1655_v10, 0  ;;  %1675 = vrot.lane.b32.xlu0 %v5040_v50, %s4689_s8 }
 0x52b   : > { %1669 = vmatpush.bf16.msra.mxu3 %v1660_v11 }
 0x52f   : > { %1782 = vmatpush.bf16.xpose.msrb.mxu3 %v1773_v13 }
 0x531   : > { %v1766_v46 = vpop.permute.xlu1 %1765 }
 0x532   : > { %1696 = vrot.lane.b32.xlu0 %v5050_v57, %s4689_s8  ;;  %s5876_s8 = smov 24  }
 0x53a   : > { %1790 = vrot.lane.b32.xlu0 %v5040_v50, %s4688_s1  ;;  %1742 = vrot.lane.b32.xlu2 %v5036_v43, %s4690_s4 }
 0x542   : > { %1813 = vrot.lane.b32.xlu0 %v5050_v57, %s4688_s1 }
 0x54a   : > { %1788 = vrot.lane.b32.xlu0 %v5040_v50, %s4690_s4 }
 0x54c   : > { %v1596_v15 = vpop.xlane.xlu2 %1595 }
 0x54d   : > { %v1600_v16 = vsub.f32 %v1584_v59, %v1596_v15 }
 0x54f   : > { %v1607_v17 = vmul.f32 1.442695, %v1600_v16 }
 0x551   : > { %4527 = vpow2.f32 %v1607_v17 }
 0x552   : > { %4529 = vpow2.f32 %v1605_v21 }
 0x554   : > { %v1634_v19 = vpop.permute.xlu2 %1633 }
 0x555   : > { %v1639_v22 = vsel %vm1396_vm0, %v1634_v19, 0 }
 0x556   : > { %1648 = vmatpush.bf16.msrb.mxu2 %v1639_v22 }
 0x557   : > { %v4528_v23 = vpop.eup %4527 }
 0x558   : > { %v1618_v24 = vsel %vm1243_vm15, %v4528_v23, 0.0  ;;  %v4530_v28 = vpop.eup %4529 }
 0x559   : > { %1619 = vadd.xlane.f32.xlu1 %v1618_v24  ;;  %v1615_v29 = vsel %vm1243_vm15, %v4530_v28, 0.0 }
 0x55c   : > { %v1745_v26 = vpop.permute.xlu2 %1744 }
 0x55d   : > { %v1750_v27 = vsel %vm1243_vm15, %v1745_v26, 0 }
 0x55e   : > { %1759 = vmatpush.bf16.xpose.msra.mxu2 %v1750_v27 }
 0x563   : > { %1616 = vadd.xlane.f32.xlu2 %v1615_v29 }
 0x572   : > { %1890 = vrot.lane.b32.xlu1 %v5036_v43, %s4691_s5 }
 0x57b   : > { %1811 = vrot.lane.b32.xlu2 %v5050_v57, %s4690_s4 }
 0x583   : > { %2024 = vrot.lane.b32.xlu2 %v5042_v53, %s4692_s11 }
 0x589   : > { %v1611_v30 = vpop.xlane.xlu0 %1610 }
 0x58a   : > { %4531 = vrcp.f32 %v1611_v30 }
 0x590   : > { %v4532_v31 = vpop.eup %4531 }
 0x591   : > { %v1625_v32 = vmul.f32 %v4532_v31, %v4524_v3 }
 0x593   : > { %v1629_v33 = vpack.c.bf16 %v1625_v32, %v1625_v32 }
 0x595   : > { %v1614_v34 = vpop.xlane.xlu2 %1613  ;;  %4285 = vmatmul.msk.bf16.vlgmr.msrb.gmra.mxu2 %vm1243_vm15, %v1629_v33 }
 0x596   : > { %4533 = vrcp.f32 %v1614_v34 }
 0x59c   : > { %v4534_v35 = vpop.eup %4533  ;;  %v1676_v36 = vpop.permute.xlu0 %1675 }
 0x59d   : > { %v1626_v37 = vmul.f32 %v4534_v35, %v4526_v6  ;;  %v1681_v38 = vsel %vm1396_vm0, %v1676_v36, 0  ;;  %v1743_v40 = vpop.permute.xlu2 %1742 }
 0x59e   : > { %1690 = vmatpush.bf16.msrb.mxu0 %v1681_v38 }
 0x59f   : > { %v1630_v39 = vpack.c.bf16 %v1626_v37, %v1626_v37 }
 0x5a1   : > { %4286 = vmatmul.msk.bf16.vlgmr.msra.gmra.mxu3 %vm1243_vm15, %v1630_v39 }
 0x5a4   : > { %v1697_v41 = vpop.permute.xlu0 %1696 }
 0x5a5   : > { %v1702_v42 = vsel %vm1396_vm0, %v1697_v41, 0  ;;  %4289 = vmatmul.msk.bf16.vlgmr.msra.gmra.mxu2 %vm1243_vm15, %v1743_v40 }
 0x5a6   : > { %1711 = vmatpush.bf16.msra.mxu1 %v1702_v42 }
 0x5ac   : > { %v1791_v44 = vpop.permute.xlu0 %1790 }
 0x5ad   : > { %v1796_v45 = vsel %vm1243_vm15, %v1791_v44, 0 }
 0x5ae   : > { %1805 = vmatpush.bf16.xpose.msra.mxu0 %v1796_v45 }
 0x5b1   : > { %4290 = vmatmul.msk.bf16.vlgmr.msrb.gmra.mxu3 %vm1243_vm15, %v1766_v46 }
 0x5b4   : > { %v1814_v47 = vpop.permute.xlu0 %1813 }
 0x5b5   : > { %v1819_v48 = vsel %vm1243_vm15, %v1814_v47, 0 }
 0x5b6   : > { %1828 = vmatpush.bf16.xpose.msrb.mxu1 %v1819_v48 }
 0x5bc   : > { %v1789_v63 = vpop.permute.xlu0 %1788 }
 0x5cc   : > { %v1620_v49 = vpop.xlane.xlu1 %1619 }
 0x5cd   : > { %4535 = vrcp.f32 %v1620_v49 }
 0x5d3   : > { %v4536_v51 = vpop.eup %4535 }
 0x5d4   : > { %v1628_v52 = vmul.f32 %v4536_v51, %v4528_v23 }
 0x5d6   : > { %v1632_v54 = vpack.c.bf16 %v1628_v52, %v1628_v52  ;;  %v1617_v55 = vpop.xlane.xlu2 %1616 }
 0x5d7   : > { %4537 = vrcp.f32 %v1617_v55 }
 0x5d8   : > { %4288 = vmatmul.msk.bf16.vlgmr.msra.gmra.mxu1 %vm1243_vm15, %v1632_v54 }
 0x5dd   : > { %v4538_v56 = vpop.eup %4537 }
 0x5de   : > { %v1627_v58 = vmul.f32 %v4538_v56, %v4530_v28  ;;  %v1812_v62 = vpop.permute.xlu2 %1811 }
 0x5e0   : > { %v1631_v59 = vpack.c.bf16 %v1627_v58, %v1627_v58 }
 0x5e2   : > { %4287 = vmatmul.msk.bf16.vlgmr.msrb.gmra.mxu0 %vm1243_vm15, %v1631_v59 }
 0x5e4   : > { %v1891_v60 = vpop.permute.xlu1 %1890 }
 0x5e5   : > { %v1896_v61 = vsel %vm1396_vm0, %v1891_v60, 0 }
 0x5e6   : > { %1905 = vmatpush.bf16.msrb.mxu2 %v1896_v61  ;;  %v2025_v41 = vpop.permute.xlu2 %2024 }
 0x5e7   : > { %v2030_v46 = vsel %vm1243_vm15, %v2025_v41, 0 }
 0x5e8   : > { %4292 = vmatmul.msk.bf16.vlgmr.msrb.gmra.mxu1 %vm1243_vm15, %v1812_v62 }
 0x5f2   : > { %4291 = vmatmul.msk.bf16.vlgmr.msra.gmra.mxu0 %vm1243_vm15, %v1789_v63 }
 0x618   : > { %v5193_v0 = vpop.f32.mrf.mxu2 }
 0x620   : > { %v1652_v1 = vpop.f32.mrf.mxu2 }
 0x624   : > { %v5195_v2 = vpop.f32.mrf.mxu3 }
 0x628   : > { %v1761_v3 = vpop.f32.mrf.mxu2 }
 0x629   : > { %v1834_v4 = vmul.f32 0.35355338, %v1761_v3 }
 0x62b   : > { %v1838_v5 = vadd.f32 %v1834_v4, %v5075_v12 }
 0x62c   : > { %v1673_v6 = vpop.f32.mrf.mxu3 }
 0x62d   : > { %v1842_v8 = vsel %vm1243_vm15, %v1838_v5, -inf }
 0x62e   : > { %1843 = vmax.xlane.f32.xlu1 %v1842_v8 }
 0x630   : > { %v1763_v9 = vpop.f32.mrf.mxu2 }
 0x634   : > { %v1784_v10 = vpop.f32.mrf.mxu3 }
 0x635   : > { %v1835_v11 = vmul.f32 0.35355338, %v1784_v10 }
 0x637   : > { %v1839_v13 = vadd.f32 %v1835_v11, %v5083_v20 }
 0x639   : > { %v1845_v14 = vsel %vm1243_vm15, %v1839_v13, -inf }
 0x63a   : > { %1846 = vmax.xlane.f32.xlu0 %v1845_v14 }
 0x63c   : > { %v1786_v15 = vpop.f32.mrf.mxu3 }
 0x64e   : > { %1911 = vrot.lane.b32.xlu0 %v5042_v53, %s4691_s5 }
 0x655   : > { %v5203_v16 = vpop.f32.mrf.mxu1 }
 0x65d   : > { %v1715_v17 = vpop.f32.mrf.mxu1 }
 0x65f   : > { %v5205_v18 = vpop.f32.mrf.mxu0 }
 0x665   : > { %v1830_v19 = vpop.f32.mrf.mxu1 }
 0x666   : > { %v1837_v27 = vmul.f32 0.35355338, %v1830_v19 }
 0x667   : > { %v1694_v21 = vpop.f32.mrf.mxu0 }
 0x668   : > { %v1841_v30 = vadd.f32 %v1837_v27, %v5090_v25 }
 0x66a   : > { %v1851_v31 = vsel %vm1243_vm15, %v1841_v30, -inf }
 0x66d   : > { %v1832_v22 = vpop.f32.mrf.mxu1 }
 0x66f   : > { %v1807_v23 = vpop.f32.mrf.mxu0 }
 0x670   : > { %v1836_v24 = vmul.f32 0.35355338, %v1807_v23 }
 0x672   : > { %v1840_v26 = vadd.f32 %v1836_v24, %v5069_v7 }
 0x674   : > { %v1848_v28 = vsel %vm1243_vm15, %v1840_v26, -inf }
 0x675   : > { %1849 = vmax.xlane.f32.xlu1 %v1848_v28 }
 0x677   : > { %v1809_v29 = vpop.f32.mrf.mxu0 }
 0x67d   : > { %1852 = vmax.xlane.f32.xlu1 %v1851_v31 }
 0x696   : > { %2001 = vrot.lane.b32.xlu1 %v5036_v43, %s4692_s11 }
 0x6a1   : > { %v1844_v32 = vpop.xlane.xlu1 %1843 }
 0x6a2   : > { %v1854_v33 = vsub.f32 %v1838_v5, %v1844_v32 }
 0x6a4   : > { %v1858_v34 = vmul.f32 1.442695, %v1854_v33 }
 0x6a6   : > { %4539 = vpow2.f32 %v1858_v34 }
 0x6ac   : > { %v4540_v35 = vpop.eup %4539 }
 0x6ad   : > { %v1847_v36 = vpop.xlane.xlu0 %1846  ;;  %v1866_v37 = vsel %vm1243_vm15, %v4540_v35, 0.0 }
 0x6ae   : > { %v1855_v38 = vsub.f32 %v1839_v13, %v1847_v36  ;;  %1867 = vadd.xlane.f32.xlu2 %v1866_v37 }
 0x6b0   : > { %v1860_v39 = vmul.f32 1.442695, %v1855_v38 }
 0x6b2   : > { %4541 = vpow2.f32 %v1860_v39 }
 0x6b8   : > { %v4542_v40 = vpop.eup %4541 }
 0x6b9   : > { %v1869_v42 = vsel %vm1243_vm15, %v4542_v40, 0.0 }
 0x6c0   : > { %1870 = vadd.xlane.f32.xlu1 %v1869_v42  ;;  %v1912_v44 = vpop.permute.xlu0 %1911 }
 0x6c1   : > { %v1917_v45 = vsel %vm1396_vm0, %v1912_v44, 0 }
 0x6c2   : > { %1926 = vmatpush.bf16.msra.mxu3 %v1917_v45 }
 0x6c6   : > { %2039 = vmatpush.bf16.xpose.msrb.mxu3 %v2030_v46  ;;  %1999 = vrot.lane.b32.xlu2 %v5036_v43, %s4693_s0 }
 0x6ce   : > { %2022 = vrot.lane.b32.xlu2 %v5042_v53, %s4693_s0 }
 0x6d6   : > { %1932 = vrot.lane.b32.xlu2 %v5040_v50, %s4691_s5 }
 0x6de   : > { %2070 = vrot.lane.b32.xlu2 %v5050_v57, %s4692_s11 }
 0x6e6   : > { %2045 = vrot.lane.b32.xlu2 %v5040_v50, %s4693_s0 }
 0x6e8   : > { %v1850_v47 = vpop.xlane.xlu1 %1849 }
 0x6e9   : > { %v1856_v48 = vsub.f32 %v1840_v26, %v1850_v47 }
 0x6eb   : > { %v1862_v49 = vmul.f32 1.442695, %v1856_v48 }
 0x6ed   : > { %4543 = vpow2.f32 %v1862_v49 }
 0x6ee   : > { %2068 = vrot.lane.b32.xlu2 %v5050_v57, %s4693_s0 }
 0x6f0   : > { %v1853_v51 = vpop.xlane.xlu1 %1852 }
 0x6f1   : > { %v1857_v52 = vsub.f32 %v1841_v30, %v1853_v51 }
 0x6f3   : > { %v4544_v54 = vpop.eup %4543  ;;  %v1864_v55 = vmul.f32 1.442695, %v1857_v52 }
 0x6f4   : > { %v1872_v56 = vsel %vm1243_vm15, %v4544_v54, 0.0 }
 0x6f5   : > { %4545 = vpow2.f32 %v1864_v55  ;;  %1873 = vadd.xlane.f32.xlu0 %v1872_v56 }
 0x6fb   : > { %v4546_v58 = vpop.eup %4545 }
 0x6fc   : > { %v1875_v59 = vsel %vm1243_vm15, %v4546_v58, 0.0 }
 0x6fd   : > { %1876 = vadd.xlane.f32.xlu1 %v1875_v59 }
 0x708   : > { %v2002_v60 = vpop.permute.xlu1 %2001 }
 0x709   : > { %v2007_v61 = vsel %vm1243_vm15, %v2002_v60, 0  ;;  %1953 = vrot.lane.b32.xlu0 %v5050_v57, %s4691_s5  ;;  %s5929_s5 = sld [smem:[#allocation10_spill]] }
 0x70a   : > { %2016 = vmatpush.bf16.xpose.msra.mxu2 %v2007_v61 }
 0x716   : > { %2047 = vrot.lane.b32.xlu1 %v5040_v50, %s4692_s11 }
 0x721   : > { %v1868_v62 = vpop.xlane.xlu2 %1867 }
 0x722   : > { %4547 = vrcp.f32 %v1868_v62 }
 0x728   : > { %v4548_v63 = vpop.eup %4547 }
 0x729   : > { %v1882_v1 = vmul.f32 %v4548_v63, %v4540_v35  ;;  %v2000_v3 = vpop.permute.xlu2 %1999 }
 0x72b   : > { %v1886_v4 = vpack.c.bf16 %v1882_v1, %v1882_v1 }
 0x72d   : > { %4293 = vmatmul.msk.bf16.vlgmr.msrb.gmra.mxu2 %vm1243_vm15, %v1886_v4 }
 0x731   : > { %v2023_v5 = vpop.permute.xlu2 %2022 }
 0x733   : > { %v1871_v6 = vpop.xlane.xlu1 %1870 }
 0x734   : > { %4549 = vrcp.f32 %v1871_v6 }
 0x739   : > { %v1933_v8 = vpop.permute.xlu2 %1932 }
 0x73a   : > { %v4550_v9 = vpop.eup %4549  ;;  %v1938_v10 = vsel %vm1396_vm0, %v1933_v8, 0 }
 0x73b   : > { %v1883_v11 = vmul.f32 %v4550_v9, %v4542_v40  ;;  %1947 = vmatpush.bf16.msrb.mxu0 %v1938_v10 }
 0x73d   : > { %v1887_v13 = vpack.c.bf16 %v1883_v11, %v1883_v11  ;;  %4297 = vmatmul.msk.bf16.vlgmr.msra.gmra.mxu2 %vm1243_vm15, %v2000_v3 }
 0x73f   : > { %4294 = vmatmul.msk.bf16.vlgmr.msra.gmra.mxu3 %vm1243_vm15, %v1887_v13 }
 0x741   : > { %v2071_v23 = vpop.permute.xlu2 %2070 }
 0x742   : > { %v2076_v28 = vsel %vm1243_vm15, %v2071_v23, 0 }
 0x749   : > { %v2046_v30 = vpop.permute.xlu2 %2045 }
 0x74f   : > { %4298 = vmatmul.msk.bf16.vlgmr.msrb.gmra.mxu3 %vm1243_vm15, %v2023_v5 }
 0x751   : > { %v2069_v33 = vpop.permute.xlu2 %2068 }
 0x768   : > { %v1874_v14 = vpop.xlane.xlu0 %1873 }
 0x769   : > { %4551 = vrcp.f32 %v1874_v14 }
 0x76f   : > { %v4552_v15 = vpop.eup %4551 }
 0x770   : > { %v1884_v17 = vmul.f32 %v4552_v15, %v4544_v54  ;;  %v1877_v19 = vpop.xlane.xlu1 %1876 }
 0x771   : > { %4553 = vrcp.f32 %v1877_v19 }
 0x772   : > { %v1888_v21 = vpack.c.bf16 %v1884_v17, %v1884_v17 }
 0x774   : > { %4295 = vmatmul.msk.bf16.vlgmr.msrb.gmra.mxu0 %vm1243_vm15, %v1888_v21 }
 0x777   : > { %v4554_v22 = vpop.eup %4553 }
 0x778   : > { %v1885_v24 = vmul.f32 %v4554_v22, %v4546_v58 }
 0x77a   : > { %v1889_v29 = vpack.c.bf16 %v1885_v24, %v1885_v24 }
 0x77b   : > { %v1954_v26 = vpop.permute.xlu0 %1953 }
 0x77c   : > { %v1959_v27 = vsel %vm1396_vm0, %v1954_v26, 0 }
 0x77d   : > { %1968 = vmatpush.bf16.msra.mxu1 %v1959_v27 }
 0x780   : > { %4296 = vmatmul.msk.bf16.vlgmr.msra.gmra.mxu1 %vm1243_vm15, %v1889_v29 }
 0x781   : > { %2085 = vmatpush.bf16.xpose.msrb.mxu1 %v2076_v28 }
 0x788   : > { %v2048_v31 = vpop.permute.xlu1 %2047 }
 0x789   : > { %v2053_v32 = vsel %vm1243_vm15, %v2048_v31, 0 }
 0x78a   : > { %2062 = vmatpush.bf16.xpose.msra.mxu0 %v2053_v32 }
 0x790   : > { %4300 = vmatmul.msk.bf16.vlgmr.msrb.gmra.mxu1 %vm1243_vm15, %v2069_v33 }
 0x791   : > { %4299 = vmatmul.msk.bf16.vlgmr.msra.gmra.mxu0 %vm1243_vm15, %v2046_v30 }
 0x7b0   : > { %v1907_v34 = vpop.f32.mrf.mxu2 }
 0x7b1   : > { %v1974_v4 = vpack.c.bf16 %v1907_v34, %v1907_v34 }
 0x7b8   : > { %v1909_v35 = vpop.f32.mrf.mxu2 }
 0x7c0   : > { %v2018_v36 = vpop.f32.mrf.mxu2 }
 0x7c1   : > { %v2091_v37 = vmul.f32 0.35355338, %v2018_v36  ;;  %v1719_v36 = vpack.c.bf16 %v5205_v18, %v5205_v18 }
 0x7c2   : > { %v1928_v38 = vpop.f32.mrf.mxu3 }
 0x7c3   : > { %v2095_v39 = vadd.f32 %v2091_v37, %v5075_v12 }
 0x7c5   : > { %v2099_v40 = vsel %vm1243_vm15, %v2095_v39, -inf }
 0x7c6   : > { %2100 = vmax.xlane.f32.xlu0 %v2099_v40 }
 0x7c8   : > { %v2020_v41 = vpop.f32.mrf.mxu2 }
 0x7ca   : > { %v1930_v42 = vpop.f32.mrf.mxu3 }
 0x7d2   : > { %v2041_v44 = vpop.f32.mrf.mxu3 }
 0x7d3   : > { %v2092_v45 = vmul.f32 0.35355338, %v2041_v44 }
 0x7d5   : > { %v2096_v46 = vadd.f32 %v2092_v45, %v5083_v20 }
 0x7d7   : > { %v2102_v47 = vsel %vm1243_vm15, %v2096_v46, -inf }
 0x7d8   : > { %2103 = vmax.xlane.f32.xlu2 %v2102_v47 }
 0x7da   : > { %v2043_v48 = vpop.f32.mrf.mxu3 }
 0x7f1   : > { %v5252_v49 = vpop.f32.mrf.mxu0 }
 0x7f9   : > { %v1951_v51 = vpop.f32.mrf.mxu0 }
 0x7fd   : > { %v5254_v52 = vpop.f32.mrf.mxu1 }
 0x805   : > { %v1972_v54 = vpop.f32.mrf.mxu1 }
 0x80d   : > { %v2087_v12 = vpop.f32.mrf.mxu1 }
 0x80e   : > { %v2094_v55 = vmul.f32 0.35355338, %v2087_v12  ;;  %v2064_v56 = vpop.f32.mrf.mxu0 }
 0x80f   : > { %v2093_v58 = vmul.f32 0.35355338, %v2064_v56 }
 0x810   : > { %v2098_v59 = vadd.f32 %v2094_v55, %v5090_v25  ;;  %v1717_v25 = vpack.c.bf16 %v5193_v0, %v5193_v0  ;;  %v1975_v0 = vpack.c.bf16 %v1928_v38, %v1928_v38 }
 0x811   : > { %v2097_v60 = vadd.f32 %v2093_v58, %v5069_v7 }
 0x812   : > { %v2108_v20 = vsel %vm1243_vm15, %v2098_v59, -inf }
 0x813   : > { %2109 = vmax.xlane.f32.xlu0 %v2108_v20  ;;  %v2105_v61 = vsel %vm1243_vm15, %v2097_v60, -inf  ;;  %v1720_v20 = vpack.c.bf16 %v5203_v16, %v5203_v16 }
 0x814   : > { %2106 = vmax.xlane.f32.xlu1 %v2105_v61 }
 0x815   : > { %v2089_v62 = vpop.f32.mrf.mxu1 }
 0x816   : > { %v2066_v63 = vpop.f32.mrf.mxu0 }
 0x827   : > { %2147 = vrot.lane.b32.xlu0 %v5036_v43, %s4694_s18 }
 0x82f   : > { %2189 = vrot.lane.b32.xlu0 %v5040_v50, %s4694_s18  ;;  %v1718_v50 = vpack.c.bf16 %v5195_v2, %v5195_v2 }
 0x837   : > { %1725 = vrot.lane.b32.xlu0 %v1717_v25, %s4695_s19 }
 0x839   : > { %v2101_v7 = vpop.xlane.xlu0 %2100 }
 0x83a   : > { %v2111_v1 = vsub.f32 %v2095_v39, %v2101_v7 }
 0x83c   : > { %v2115_v3 = vmul.f32 1.442695, %v2111_v1 }
 0x83e   : > { %4555 = vpow2.f32 %v2115_v3  ;;  %v1976_v3 = vpack.c.bf16 %v5252_v49, %v5252_v49  ;;  %v4438_v49 = vld [vmem:[%s4857_s29] sm:$0xff] }
 0x83f   : > { %1982 = vrot.lane.b32.xlu0 %v1974_v4, %s5878_s2 }
 0x844   : > { %v4556_v5 = vpop.eup %4555 }
 0x845   : > { %v2123_v43 = vsel %vm1243_vm15, %v4556_v5, 0.0 }
 0x846   : > { %2124 = vadd.xlane.f32.xlu2 %v2123_v43 }
 0x84b   : > { %v2104_v14 = vpop.xlane.xlu2 %2103 }
 0x84c   : > { %v2112_v17 = vsub.f32 %v2096_v46, %v2104_v14 }
 0x84e   : > { %v2117_v2 = vmul.f32 1.442695, %v2112_v17 }
 0x85e   : > { %2168 = vrot.lane.b32.xlu2 %v5042_v53, %s4694_s18 }
 0x866   : > { %1727 = vrot.lane.b32.xlu2 %v1718_v50, %s4695_s19 }
 0x86e   : > { %1984 = vrot.lane.b32.xlu2 %v1975_v0, %s5878_s2 }
 0x886   : > { %v2110_v6 = vpop.xlane.xlu0 %2109 }
 0x887   : > { %v2107_v8 = vpop.xlane.xlu1 %2106  ;;  %v2114_v10 = vsub.f32 %v2098_v59, %v2110_v6  ;;  %v4439_v6 = vld [vmem:[%s4857_s29 + $0x8] sm:$0xff]  ;;  %s5930_s29 = scalar_lea.vmem %s5856_s14, %s4842_s6 }
 0x888   : > { %v2113_v9 = vsub.f32 %v2097_v60, %v2107_v8 }
 0x889   : > { %v2121_v13 = vmul.f32 1.442695, %v2114_v10 }
 0x88a   : > { %v2119_v11 = vmul.f32 1.442695, %v2113_v9 }
 0x88c   : > { %4557 = vpow2.f32 %v2119_v11 }
 0x88d   : > { %4559 = vpow2.f32 %v2121_v13 }
 0x88e   : > { %4561 = vpow2.f32 %v2117_v2  ;;  %v4669_v2 = vld [vmem:[%s5923_s15] sm:$0xff] }
 0x892   : > { %v4558_v15 = vpop.eup %4557 }
 0x893   : > { %v2129_v53 = vsel %vm1243_vm15, %v4558_v15, 0.0  ;;  %v4560_v19 = vpop.eup %4559 }
 0x894   : > { %2130 = vadd.xlane.f32.xlu1 %v2129_v53  ;;  %v2132_v23 = vsel %vm1243_vm15, %v4560_v19, 0.0  ;;  %v4562_v24 = vpop.eup %4561 }
 0x895   : > { %v2126_v28 = vsel %vm1243_vm15, %v4562_v24, 0.0 }
 0x899   : > { %v2148_v21 = vpop.permute.xlu0 %2147 }
 0x89a   : > { %v2153_v22 = vsel %vm1396_vm0, %v2148_v21, 0 }
 0x89b   : > { %2162 = vmatpush.bf16.msrb.mxu2 %v2153_v22 }
 0x89c   : > { %2133 = vadd.xlane.f32.xlu1 %v2132_v23 }
 0x89f   : > { %2302 = vmatpush.bf16.msra.mxu2 %v4439_v6 }
 0x8a1   : > { %v2190_v26 = vpop.permute.xlu0 %2189 }
 0x8a2   : > { %v2195_v27 = vsel %vm1396_vm0, %v2190_v26, 0 }
 0x8a3   : > { %2204 = vmatpush.bf16.msrb.mxu0 %v2195_v27  ;;  %2303 = vmatpush.bf16.msra.mxu2 %v4438_v49 }
 0x8a4   : > { %2127 = vadd.xlane.f32.xlu1 %v2126_v28 }
 0x8a9   : > { %v1726_v29 = vpop.permute.xlu0 %1725 }
 0x8aa   : > { %1738 = vst.msk [vmem:[#allocation2] sm:$0xf] %vm1737_vm2, %v1726_v29 }
 0x8b1   : > { %v1983_v30 = vpop.permute.xlu0 %1982 }
 0x8b2   : > { %1995 = vst.msk [vmem:[#allocation2] sm:$0xf] %vm1994_vm3, %v1983_v30  ;;  %v4671_v30 = vld [vmem:[%s5923_s15 + $0x10] sm:$0xff] }
 0x8b9   : > { %v2125_v31 = vpop.xlane.xlu2 %2124 }
 0x8ba   : > { %4563 = vrcp.f32 %v2125_v31 }
 0x8bd   : > { %2210 = vrot.lane.b32.xlu1 %v5050_v57, %s4694_s18  ;;  %v1977_v57 = vpack.c.bf16 %v5254_v52, %v5254_v52  ;;  %s5927_s18 = sld [smem:[#allocation17_spill]] }
 0x8c0   : > { %v4564_v32 = vpop.eup %4563 }
 0x8c1   : > { %v2139_v33 = vmul.f32 %v4564_v32, %v4556_v5  ;;  %v2169_v34 = vpop.permute.xlu2 %2168 }
 0x8c2   : > { %v2174_v35 = vsel %vm1396_vm0, %v2169_v34, 0 }
 0x8c3   : > { %v2143_v37 = vpack.c.bf16 %v2139_v33, %v2139_v33  ;;  %2183 = vmatpush.bf16.msra.mxu3 %v2174_v35  ;;  %s5928_s17 = scalar_lea.vmem %s5927_s18, %s4842_s6  ;;  %v4672_v35 = vld [vmem:[%s5923_s15 + $0x18] sm:$0xff] }
 0x8c5   : > { %1729 = vrot.lane.b32.xlu1 %v1719_v36, %s4695_s19  ;;  %4301 = vmatmul.msk.bf16.vlgmr.msrb.gmra.mxu2 %vm1243_vm15, %v2143_v37 }
 0x8c9   : > { %v1728_v38 = vpop.permute.xlu2 %1727 }
 0x8ca   : > { %1739 = vst.msk [vmem:[#allocation2 + $0x4] sm:$0xf] %vm1737_vm2, %v1728_v38  ;;  %v4698_v38 = vmov 32.0  }
 0x8cd   : > { %1988 = vrot.lane.b32.xlu1 %v1977_v57, %s5878_s2 }
 0x8d1   : > { %v1985_v39 = vpop.permute.xlu2 %1984 }
 0x8d2   : > { %1996 = vst.msk [vmem:[#allocation2 + $0x4] sm:$0xf] %vm1994_vm3, %v1985_v39 }
 0x907   : > { %v2131_v40 = vpop.xlane.xlu1 %2130 }
 0x908   : > { %4565 = vrcp.f32 %v2131_v40 }
 0x90e   : > { %v4566_v18 = vpop.eup %4565 }
 0x90f   : > { %v2141_v41 = vmul.f32 %v4566_v18, %v4558_v15  ;;  %v2134_v42 = vpop.xlane.xlu1 %2133  ;;  %v4495_v15 = vld [vmem:[%s5928_s17] ss:$0 sm:$0xff] }
 0x911   : > { %v2145_v44 = vpack.c.bf16 %v2141_v41, %v2141_v41 }
 0x913   : > { %4303 = vmatmul.msk.bf16.vlgmr.msrb.gmra.mxu0 %vm1243_vm15, %v2145_v44 }
 0x917   : > { %v2128_v45 = vpop.xlane.xlu1 %2127 }
 0x918   : > { %4567 = vrcp.f32 %v2128_v45  ;;  %v4444_v45 = vld [vmem:[%s4883_s22 + $0x8] sm:$0xff] }
 0x919   : > { %4569 = vrcp.f32 %v2134_v42  ;;  %2524 = vmatpush.bf16.msra.mxu0 %v4444_v45 }
 0x91a   : > { %4571 = vrcp.f32 %v4698_v38 }
 0x91e   : > { %v4568_v46 = vpop.eup %4567 }
 0x91f   : > { %v2140_v47 = vmul.f32 %v4568_v46, %v4562_v24  ;;  %v4570_v51 = vpop.eup %4569  ;;  %v4670_v24 = vld [vmem:[%s5923_s15 + $0x8] sm:$0xff] }
 0x920   : > { %v2142_v52 = vmul.f32 %v4570_v51, %v4560_v19  ;;  %v4572_v57 = vpop.eup %4571 }
 0x921   : > { %v2144_v48 = vpack.c.bf16 %v2140_v47, %v2140_v47  ;;  %v2334_v39 = vmul.f32 32.0, %v4572_v57  ;;  %vm2338_vm5 = vweird.f32 %v4572_v57  ;;  %v4443_v47 = vld [vmem:[%s4883_s22] sm:$0xff] }
 0x922   : > { %v2146_v55 = vpack.c.bf16 %v2142_v52, %v2142_v52  ;;  %v4442_v52 = vld [vmem:[%s5929_s5] sm:$0xff]  ;;  %2525 = vmatpush.bf16.msra.mxu0 %v4443_v47 }
 0x923   : > { %4302 = vmatmul.msk.bf16.vlgmr.msra.gmra.mxu3 %vm1243_vm15, %v2144_v48  ;;  %v2335_v40 = vsub.f32 1.0, %v2334_v39 }
 0x925   : > { %v2336_v18 = vmul.f32 %v4572_v57, %v2335_v40  ;;  %4345 = vmatmul.msk.bf16.vlgmr.msra.gmra.mxu0 %vm1208_vm14, %v4442_v52 }
 0x927   : > { %v2337_v41 = vadd.f32 %v4572_v57, %v2336_v18 }
 0x929   : > { %v5341_v42 = vsel %vm2338_vm5, %v4572_v57, %v2337_v41 }
 0x92f   : > { %v2211_v54 = vpop.permute.xlu1 %2210 }
 0x930   : > { %v2216_v12 = vsel %vm1396_vm0, %v2211_v54, 0 }
 0x931   : > { %2225 = vmatpush.bf16.msra.mxu1 %v2216_v12 }
 0x934   : > { %4304 = vmatmul.msk.bf16.vlgmr.msra.gmra.mxu1 %vm1243_vm15, %v2146_v55 }
 0x937   : > { %v1730_v56 = vpop.permute.xlu1 %1729 }
 0x938   : > { %1740 = vst.msk [vmem:[#allocation2 + $0x8] sm:$0xf] %vm1737_vm2, %v1730_v56 }
 0x93f   : > { %v1989_v0 = vpop.permute.xlu1 %1988 }
 0x948   : > { %v2164_v58 = vpop.f32.mrf.mxu2 }
 0x949   : > { %v2231_v59 = vpack.c.bf16 %v2164_v58, %v2164_v58 }
 0x94b   : > { %2239 = vrot.lane.b32.xlu0 %v2231_v59, %s5876_s8 }
 0x950   : > { %v2166_v60 = vpop.f32.mrf.mxu2 }
 0x953   : > { %1731 = vrot.lane.b32.xlu0 %v1720_v20, %s4695_s19 }
 0x990   : > { %v2206_v61 = vpop.f32.mrf.mxu0 }
 0x991   : > { %v2233_v62 = vpack.c.bf16 %v2206_v61, %v2206_v61 }
 0x993   : > { %2243 = vrot.lane.b32.xlu0 %v2233_v62, %s5876_s8 }
 0x998   : > { %v2208_v63 = vpop.f32.mrf.mxu0 }
 0x9a6   : > { %v2185_v25 = vpop.f32.mrf.mxu3 }
 0x9a7   : > { %v2232_v7 = vpack.c.bf16 %v2185_v25, %v2185_v25 }
 0x9a9   : > { %2241 = vrot.lane.b32.xlu2 %v2232_v7, %s5876_s8 }
 0x9ae   : > { %v2187_v1 = vpop.f32.mrf.mxu3 }
 0x9b1   : > { %1986 = vrot.lane.b32.xlu2 %v1976_v3, %s5878_s2  ;;  %v2227_v16 = vpop.f32.mrf.mxu1  ;;  %s5931_s2 = sld [smem:[#allocation18_spill]] }
 0x9b2   : > { %v2234_v4 = vpack.c.bf16 %v2227_v16, %v2227_v16 }
 0x9b9   : > { %2245 = vrot.lane.b32.xlu2 %v2234_v4, %s5876_s8  ;;  %v2229_v5 = vpop.f32.mrf.mxu1  ;;  %v2483_v4 = vld [vmem:[%s5929_s5 + $0x8] sm:$0x3]  ;;  %s5932_s8 = scalar_lea.vmem %s5931_s2, %s4842_s6  ;;  %s5940_s2 = sld [smem:[#allocation23_spill]] }
 0x9ba   : > { %v2497_v5 = vunpack.c.l.b16 %v2483_v4 }
 0x9bd   : > { %v2240_v43 = vpop.permute.xlu0 %2239 }
 0x9be   : > { %2252 = vst.msk [vmem:[#allocation2] sm:$0xf] %vm2251_vm4, %v2240_v43  ;;  %v2499_v43 = vpack.c.b16 %v2497_v5, %v2497_v5 }
 0x9c0   : > { %4346 = vmatmul.msk.bf16.gmra.mxu0 %vm1208_vm14, %v2499_v43 }
 0x9c5   : > { %v1732_v50 = vpop.permute.xlu0 %1731 }
 0x9c6   : > { %1741 = vst.msk [vmem:[#allocation2 + $0xc] sm:$0xf] %vm1737_vm2, %v1732_v50  ;;  %v4441_v50 = vld [vmem:[%s4874_s9 + $0x8] sm:$0xff] }
 0x9c7   : > { %1998 = vst.msk [vmem:[#allocation2 + $0xc] sm:$0xf] %vm1994_vm3, %v1989_v0  ;;  %2464 = vmatpush.bf16.msrb.mxu3 %v4441_v50 }
 0xa03   : > { %v2242_v8 = vpop.permute.xlu2 %2241 }
 0xa04   : > { %2253 = vst.msk [vmem:[#allocation2 + $0x4] sm:$0xf] %vm2251_vm4, %v2242_v8  ;;  %v4440_v8 = vld [vmem:[%s4874_s9] sm:$0xff]  ;;  %s5933_s9 = scalar_lea.vmem %s5852_s10, %s4842_s6 }
 0xa05   : > { %v2244_v11 = vpop.permute.xlu0 %2243  ;;  %2465 = vmatpush.bf16.msrb.mxu3 %v4440_v8  ;;  %v4497_v47 = vld [vmem:[%s5933_s9] ss:$0 sm:$0xff]  ;;  %s5942_s9 = scalar_lea.vmem %s5862_s20, %s4842_s6 }
 0xa0b   : > { %v1987_v9 = vpop.permute.xlu2 %1986  ;;  %v4436_v10 = vld [vmem:[#allocation2] sm:$0xff] }
 0xa0c   : > { %1997 = vst.msk [vmem:[#allocation2 + $0x8] sm:$0xf] %vm1994_vm3, %v1987_v9  ;;  %4321 = vmatmul.msk.bf16.vlgmr.msra.gmra.mxu2 %vm1208_vm14, %v4436_v10 }
 0xa0d   : > { %2254 = vst.msk [vmem:[#allocation2 + $0x8] sm:$0xf] %vm2251_vm4, %v2244_v11 }
 0xa13   : > { %v2246_v13 = vpop.permute.xlu2 %2245 }
 0xa14   : > { %2255 = vst.msk [vmem:[#allocation2 + $0xc] sm:$0xf] %vm2251_vm4, %v2246_v13 }
 0xa1b   : > { %v4437_v14 = vld [vmem:[#allocation2 + $0x8] sm:$0xff] }
 0xa1c   : > { %4322 = vmatmul.msk.bf16.gmra.mxu2 %vm1208_vm14, %v4437_v14 }
 0xa8f   : > { %v2305_v17 = vpop.f32.mrf.mxu2 }
 0xa90   : > { %v2306_v53 = vadd.f32 %v4495_v15, %v2305_v17 }
 0xa92   : > { %v2315_v19 = vadd.f32 %v4669_v2, %v2306_v53 }
 0xa94   : > { %v2321_v21 = vsel %vm1208_vm14, %v2315_v19, 0.0 }
 0xa95   : > { %2322 = vadd.xlane.f32.xlu1 %v2321_v21 }
 0xa97   : > { %v2307_v22 = vpop.f32.mrf.mxu2 }
 0xa98   : > { %v2308_v23 = vadd.f32 %v4495_v15, %v2307_v22 }
 0xa9a   : > { %v2316_v26 = vadd.f32 %v4670_v24, %v2308_v23 }
 0xa9c   : > { %v2324_v27 = vsel %vm1208_vm14, %v2316_v26, 0.0 }
 0xa9d   : > { %2325 = vadd.xlane.f32.xlu0 %v2324_v27  ;;  %v5387_v27 = vld [vmem:[%s5930_s29] ss:$0 sm:$0xff]  ;;  %s5943_s29 = sld [smem:[#allocation25_spill]] }
 0xa9f   : > { %v2310_v28 = vpop.f32.mrf.mxu2 }
 0xaa0   : > { %v2311_v29 = vadd.f32 %v4495_v15, %v2310_v28  ;;  %v2527_v28 = vpop.f32.mrf.mxu0 }
 0xaa2   : > { %v2317_v31 = vadd.f32 %v4671_v30, %v2311_v29 }
 0xaa4   : > { %v2327_v32 = vsel %vm1208_vm14, %v2317_v31, 0.0 }
 0xaa5   : > { %2328 = vadd.xlane.f32.xlu2 %v2327_v32 }
 0xaa7   : > { %v2312_v33 = vpop.f32.mrf.mxu2 }
 0xaa8   : > { %v2313_v34 = vadd.f32 %v4495_v15, %v2312_v33  ;;  %v5391_v33 = vadd.f32 %v5387_v27, %v2527_v28 }
 0xaaa   : > { %v2318_v36 = vadd.f32 %v4672_v35, %v2313_v34  ;;  %v4496_v34 = vld [vmem:[%s5932_s8] ss:$0 sm:$0xff]  ;;  %v2539_v57 = vrot.slane %v5391_v33, 1  ;;  %v2540_v39 = vrot.slane %v5391_v33, 2  ;;  %2556 = vst [vmem:[#allocation1] ss:$9 sm:$0xff] %v5391_v33  ;;  %s5941_s8 = scalar_lea.vmem %s5940_s2, %s4842_s6 }
 0xaab   : > { %v2541_v41 = vrot.slane %v5391_v33, 3 }
 0xaac   : > { %v2330_v37 = vsel %vm1208_vm14, %v2318_v36, 0.0  ;;  %2558 = vst [vmem:[#allocation1 + $0x1] ss:$9 sm:$0xff] %v2539_v57 }
 0xaad   : > { %2331 = vadd.xlane.f32.xlu1 %v2330_v37  ;;  %2560 = vst [vmem:[#allocation1 + $0x2] ss:$9 sm:$0xff] %v2540_v39 }
 0xaae   : > { %2562 = vst [vmem:[#allocation1 + $0x3] ss:$9 sm:$0xff] %v2541_v41 }
 0xb08   : > { %v2323_v44 = vpop.xlane.xlu1 %2322 }
 0xb09   : > { %v2340_v46 = vmul.f32 %v5341_v42, %v2323_v44  ;;  %v2542_v44 = vrot.slane %v5391_v33, 4 }
 0xb0b   : > { %v5346_v48 = vsub.f32 %v2315_v19, %v2340_v46  ;;  %2564 = vst [vmem:[#allocation1 + $0x4] ss:$9 sm:$0xff] %v2542_v44 }
 0xb0d   : > { %v2348_v51 = vmul.f32 %v5346_v48, %v5346_v48 }
 0xb0f   : > { %v2352_v54 = vsel %vm1208_vm14, %v2348_v51, 0.0 }
 0xb10   : > { %2353 = vadd.xlane.f32.xlu2 %v2352_v54  ;;  %v2326_v12 = vpop.xlane.xlu0 %2325  ;;  %v2529_v54 = vpop.f32.mrf.mxu0 }
 0xb11   : > { %v2341_v55 = vmul.f32 %v5341_v42, %v2326_v12 }
 0xb13   : > { %v5356_v56 = vsub.f32 %v2316_v26, %v2341_v55 }
 0xb15   : > { %v2349_v58 = vmul.f32 %v5356_v56, %v5356_v56 }
 0xb17   : > { %v2355_v59 = vsel %vm1208_vm14, %v2349_v58, 0.0 }
 0xb18   : > { %v2329_v60 = vpop.xlane.xlu2 %2328  ;;  %2356 = vadd.xlane.f32.xlu0 %v2355_v59 }
 0xb19   : > { %v2342_v20 = vmul.f32 %v5341_v42, %v2329_v60 }
 0xb1b   : > { %v5362_v61 = vsub.f32 %v2317_v31, %v2342_v20  ;;  %v2530_v20 = vadd.f32 %v5387_v27, %v2529_v54 }
 0xb1d   : > { %v2350_v62 = vmul.f32 %v5362_v61, %v5362_v61  ;;  %v2546_v4 = vrot.slane %v2530_v20, 1 }
 0xb1f   : > { %v2358_v63 = vsel %vm1208_vm14, %v2350_v62, 0.0 }
 0xb20   : > { %v2332_v25 = vpop.xlane.xlu1 %2331  ;;  %2359 = vadd.xlane.f32.xlu1 %v2358_v63 }
 0xb21   : > { %v2343_v7 = vmul.f32 %v5341_v42, %v2332_v25  ;;  %v2543_v25 = vrot.slane %v5391_v33, 5 }
 0xb23   : > { %v5368_v1 = vsub.f32 %v2318_v36, %v2343_v7  ;;  %v2545_v7 = vrot.slane %v5391_v33, 7 }
 0xb25   : > { %v2351_v3 = vmul.f32 %v5368_v1, %v5368_v1 }
 0xb27   : > { %v2361_v16 = vsel %vm1208_vm14, %v2351_v3, 0.0 }
 0xb28   : > { %2362 = vadd.xlane.f32.xlu2 %v2361_v16  ;;  %v2565_v16 = vld [vmem:[#allocation1] sm:$0xff] }
 0xb29   : > { %2566 = vst [vmem:[#allocation1] ss:$9 sm:$0xff] %v2543_v25 }
 0xb2a   : > { %2568 = vst [vmem:[#allocation1 + $0x2] ss:$9 sm:$0xff] %v2545_v7 }
 0xb2b   : > { %2569 = vst [vmem:[#allocation1 + $0x3] ss:$9 sm:$0xff] %v2530_v20 }
 0xb2c   : > { %2570 = vst [vmem:[#allocation1 + $0x4] ss:$9 sm:$0xff] %v2546_v4 }
 0xb83   : > { %v2354_v0 = vpop.xlane.xlu2 %2353 }
 0xb84   : > { %v2364_v6 = vmul.f32 %v2354_v0, %v5341_v42 }
 0xb86   : > { %v2368_v49 = vadd.f32 1e-12, %v2364_v6 }
 0xb88   : > { %4573 = vrsqrt.f32 %v2368_v49  ;;  %vm2378_vm7 = vweird.f32 %v2368_v49 }
 0xb8b   : > { %v2357_v9 = vpop.xlane.xlu0 %2356 }
 0xb8c   : > { %v2365_v10 = vmul.f32 %v2357_v9, %v5341_v42 }
 0xb8e   : > { %v4574_v11 = vpop.eup %4573  ;;  %v2369_v13 = vadd.f32 1e-12, %v2365_v10 }
 0xb8f   : > { %v2373_v14 = vmul.f32 %v4574_v11, %v2368_v49  ;;  %vm2379_vm6 = vweird.f32 %v4574_v11 }
 0xb90   : > { %4575 = vrsqrt.f32 %v2369_v13  ;;  %vm2380_vm8 = vmor %vm2378_vm7, %vm2379_vm6  ;;  %vm2388_vm10 = vweird.f32 %v2369_v13 }
 0xb91   : > { %v2374_v15 = vmul.f32 %v4574_v11, %v2373_v14 }
 0xb93   : > { %v2375_v17 = vmul.f32 0.5, %v2374_v15  ;;  %v2360_v53 = vpop.xlane.xlu1 %2359  ;;  %v2547_v15 = vrot.slane %v2530_v20, 2 }
 0xb94   : > { %v2366_v2 = vmul.f32 %v2360_v53, %v5341_v42  ;;  %v2549_v53 = vrot.slane %v2530_v20, 4 }
 0xb95   : > { %v2376_v19 = vsub.f32 1.5, %v2375_v17  ;;  %v2548_v17 = vrot.slane %v2530_v20, 3 }
 0xb96   : > { %v4576_v21 = vpop.eup %4575  ;;  %v2370_v22 = vadd.f32 1e-12, %v2366_v2  ;;  %v2550_v2 = vrot.slane %v2530_v20, 5 }
 0xb97   : > { %v2377_v23 = vmul.f32 %v4574_v11, %v2376_v19  ;;  %v2383_v24 = vmul.f32 %v4576_v21, %v2369_v13  ;;  %vm2389_vm9 = vweird.f32 %v4576_v21 }
 0xb98   : > { %4577 = vrsqrt.f32 %v2370_v22  ;;  %vm2390_vm11 = vmor %vm2388_vm10, %vm2389_vm9  ;;  %vm2398_vm13 = vweird.f32 %v2370_v22  ;;  %vm2730_vm9 = vcmask 1042432   ;;  %vm2672_vm10 = vcmask 39936  }
 0xb99   : > { %v2384_v26 = vmul.f32 %v4576_v21, %v2383_v24  ;;  %v2381_v29 = vsel %vm2380_vm8, %v4574_v11, %v2377_v23  ;;  %vm2729_vm8 = vcmask 1041408  }
 0xb9a   : > { %v2412_v37 = vmul.f32 %v2381_v29, %v5346_v48 }
 0xb9b   : > { %v2385_v30 = vmul.f32 0.5, %v2384_v26  ;;  %v2363_v31 = vpop.xlane.xlu2 %2362 }
 0xb9c   : > { %v2367_v32 = vmul.f32 %v2363_v31, %v5341_v42  ;;  %v2419_v48 = vmul.f32 %v4496_v34, %v2412_v37  ;;  %v2532_v31 = vpop.f32.mrf.mxu0 }
 0xb9d   : > { %v2386_v35 = vsub.f32 1.5, %v2385_v30 }
 0xb9e   : > { %v4578_v36 = vpop.eup %4577  ;;  %v2371_v38 = vadd.f32 1e-12, %v2367_v32  ;;  %v5410_v59 = vadd.f32 %v4497_v47, %v2419_v48  ;;  %v2533_v32 = vadd.f32 %v5387_v27, %v2532_v31  ;;  %v4499_v27 = vld [vmem:[%s5934_s24] ss:$0 sm:$0xff]  ;;  %s5944_s24 = scalar_lea.vmem %s5943_s29, %s4842_s6 }
 0xb9f   : > { %v2387_v40 = vmul.f32 %v4576_v21, %v2386_v35  ;;  %v2393_v18 = vmul.f32 %v4578_v36, %v2370_v22  ;;  %vm2399_vm12 = vweird.f32 %v4578_v36  ;;  %v5430_v22 = vpack.c.bf16 %v2565_v16, %v2565_v16 }
 0xba0   : > { %4579 = vrsqrt.f32 %v2371_v38  ;;  %vm2400_vm0 = vmor %vm2398_vm13, %vm2399_vm12  ;;  %vm2408_vm6 = vweird.f32 %v2371_v38  ;;  %v2555_v35 = vrot.slane %v2533_v32, 3 }
 0xba1   : > { %v2391_v45 = vsel %vm2390_vm11, %v4576_v21, %v2387_v40  ;;  %v2394_v46 = vmul.f32 %v4578_v36, %v2393_v18  ;;  %v2552_v21 = vrot.slane %v2530_v20, 7  ;;  %v2596_v26 = vsel %vm1243_vm15, %v5430_v22, 0 }
 0xba2   : > { %v2413_v51 = vmul.f32 %v2391_v45, %v5356_v56  ;;  %2605 = vmatpush.bf16.xpose.msrb.mxu1 %v2596_v26 }
 0xba3   : > { %v2395_v52 = vmul.f32 0.5, %v2394_v46 }
 0xba4   : > { %v2420_v12 = vmul.f32 %v4496_v34, %v2413_v51 }
 0xba5   : > { %v2396_v55 = vsub.f32 1.5, %v2395_v52 }
 0xba6   : > { %v4580_v58 = vpop.eup %4579  ;;  %v5412_v60 = vadd.f32 %v4497_v47, %v2420_v12 }
 0xba7   : > { %v2397_v62 = vmul.f32 %v4578_v36, %v2396_v55  ;;  %v2403_v63 = vmul.f32 %v4580_v58, %v2371_v38  ;;  %vm2409_vm5 = vweird.f32 %v4580_v58 }
 0xba8   : > { %v2435_v56 = vpack.c.bf16 %v5412_v60, %v5410_v59  ;;  %vm2410_vm7 = vmor %vm2408_vm6, %vm2409_vm5 }
 0xba9   : > { %v2404_v3 = vmul.f32 %v4580_v58, %v2403_v63  ;;  %v2401_v5 = vsel %vm2400_vm0, %v4578_v36, %v2397_v62  ;;  %v2534_v36 = vpop.f32.mrf.mxu0 }
 0xbaa   : > { %4331 = vmatmul.msk.bf16.vlgmr.msrb.gmra.mxu3 %vm1208_vm14, %v2435_v56  ;;  %v2414_v0 = vmul.f32 %v2401_v5, %v5362_v61  ;;  %v2544_v61 = vrot.slane %v5391_v33, 6  ;;  %v2553_v33 = vrot.slane %v2533_v32, 1 }
 0xbab   : > { %v2405_v43 = vmul.f32 0.5, %v2404_v3 }
 0xbac   : > { %v2421_v9 = vmul.f32 %v4496_v34, %v2414_v0  ;;  %2567 = vst [vmem:[#allocation1 + $0x1] ss:$9 sm:$0xff] %v2544_v61 }
 0xbad   : > { %v2406_v50 = vsub.f32 1.5, %v2405_v43 }
 0xbae   : > { %v5422_v11 = vadd.f32 %v4497_v47, %v2421_v9 }
 0xbaf   : > { %v2407_v6 = vmul.f32 %v4580_v58, %v2406_v50 }
 0xbb1   : > { %v2411_v49 = vsel %vm2410_vm7, %v4580_v58, %v2407_v6  ;;  %v4699_v58 = vmov 65535  }
 0xbb2   : > { %v2415_v8 = vmul.f32 %v2411_v49, %v5368_v1  ;;  %v2551_v1 = vrot.slane %v2530_v20, 6  ;;  %v2731_v20 = vsel %vm2729_vm8, 4294967295, %v4699_v58  ;;  %vm3885_vm8 = vcmask 523264  }
 0xbb3   : > { %v2571_v19 = vld [vmem:[#allocation1] sm:$0xff]  ;;  %v5465_v62 = vsel %vm2730_vm9, %v2731_v20, 0 }
 0xbb4   : > { %v2422_v10 = vmul.f32 %v4496_v34, %v2415_v8  ;;  %2572 = vst [vmem:[#allocation1] ss:$9 sm:$0xff] %v2547_v15  ;;  %v5432_v23 = vpack.c.bf16 %v2571_v19, %v2571_v19  ;;  %v2554_v34 = vrot.slane %v2533_v32, 2 }
 0xbb5   : > { %2573 = vst [vmem:[#allocation1 + $0x1] ss:$9 sm:$0xff] %v2548_v17 }
 0xbb6   : > { %v5424_v13 = vadd.f32 %v4497_v47, %v2422_v10  ;;  %2574 = vst [vmem:[#allocation1 + $0x2] ss:$9 sm:$0xff] %v2549_v53  ;;  %v2615_v28 = vsel %vm1243_vm15, %v5432_v23, 0  ;;  %v2750_v50 = vunpack.c.l.b16 %v5432_v23 }
 0xbb7   : > { %2575 = vst [vmem:[#allocation1 + $0x3] ss:$9 sm:$0xff] %v2550_v2  ;;  %2624 = vmatpush.bf16.xpose.msra.mxu1 %v2615_v28 }
 0xbb8   : > { %v2436_v14 = vpack.c.bf16 %v5424_v13, %v5422_v11  ;;  %2576 = vst [vmem:[#allocation1 + $0x4] ss:$9 sm:$0xff] %v2551_v1  ;;  %v5472_v9 = vpack.c.b16 %v2750_v50, %v2750_v50 }
 0xbba   : > { %4332 = vmatmul.msk.bf16.gmra.mxu3 %vm1208_vm14, %v2436_v14 }
 0xbbf   : > { %v2577_v24 = vld [vmem:[#allocation1] sm:$0xff] }
 0xbc0   : > { %2578 = vst [vmem:[#allocation1] ss:$9 sm:$0xff] %v2552_v21  ;;  %v5438_v29 = vpack.c.bf16 %v2577_v24, %v2577_v24  ;;  %v2722_v21 = vunpack.c.l.b16 %v5430_v22 }
 0xbc1   : > { %2579 = vst [vmem:[#allocation1 + $0x1] ss:$9 sm:$0xff] %v2533_v32 }
 0xbc2   : > { %v2634_v30 = vsel %vm1243_vm15, %v5438_v29, 0  ;;  %2580 = vst [vmem:[#allocation1 + $0x2] ss:$9 sm:$0xff] %v2553_v33  ;;  %v2774_v19 = vunpack.c.l.b16 %v5438_v29  ;;  %v5486_v23 = vpack.c.b16 %v2722_v21, %v2722_v21 }
 0xbc3   : > { %2643 = vmatpush.bf16.xpose.msrb.mxu2 %v2634_v30  ;;  %2581 = vst [vmem:[#allocation1 + $0x3] ss:$9 sm:$0xff] %v2554_v34 }
 0xbc4   : > { %2582 = vst [vmem:[#allocation1 + $0x4] ss:$9 sm:$0xff] %v2555_v35  ;;  %v5479_v1 = vpack.c.b16 %v2774_v19, %v2774_v19 }
 0xbcb   : > { %v2583_v37 = vld [vmem:[#allocation1] sm:$0xff] }
 0xbcc   : > { %v2591_v38 = vpack.c.bf16 %v2583_v37, %v2583_v37 }
 0xbce   : > { %v2798_v57 = vunpack.c.l.b16 %v2591_v38  ;;  %v2653_v39 = vsel %vm1243_vm15, %v2591_v38, 0 }
 0xbcf   : > { %2662 = vmatpush.bf16.xpose.msra.mxu3 %v2653_v39 }
 0xbd0   : > { %v5444_v40 = vpack.c.b16 %v2798_v57, %v2798_v57 }
 0xbd2   : > { %2800 = vrot.lane.b32.xlu1 %v5444_v40, %s4685_s27 }
 0xbda   : > { %2912 = vrot.lane.b32.xlu1 %v5444_v40, %s4687_s7 }
 0xc2d   : > { %v2467_v18 = vpop.f32.mrf.mxu3 }
 0xc2e   : > { %v2468_v41 = vadd.f32 %v4499_v27, %v2467_v18 }
 0xc30   : > { %v5455_v44 = vpack.c.bf16 %v2468_v41, %v2468_v41 }
 0xc32   : > { %4347 = vmatmul.msk.bf16.vlgmr.msrb.gmra.mxu1 %vm1243_vm15, %v5455_v44 }
 0xc35   : > { %v2469_v45 = vpop.f32.mrf.mxu3 }
 0xc36   : > { %v2470_v46 = vadd.f32 %v4499_v27, %v2469_v45 }
 0xc38   : > { %v2478_v51 = vpack.c.bf16 %v2470_v46, %v2470_v46 }
 0xc3a   : > { %v2856_v22 = vunpack.c.l.b16 %v2478_v51 }
 0xc3c   : > { %v5498_v28 = vpack.c.b16 %v2856_v22, %v2856_v22 }
 0xc3d   : > { %v2472_v47 = vpop.f32.mrf.mxu3 }
 0xc3e   : > { %v2473_v48 = vadd.f32 %v4499_v27, %v2472_v47 }
 0xc40   : > { %v2479_v52 = vpack.c.bf16 %v2473_v48, %v2473_v48 }
 0xc42   : > { %4348 = vmatmul.msk.bf16.vlgmr.msra.gmra.mxu1 %vm1243_vm15, %v2478_v51  ;;  %4349 = vmatmul.msk.bf16.vlgmr.msrb.gmra.mxu2 %vm1243_vm15, %v2479_v52  ;;  %v2882_v24 = vunpack.c.l.b16 %v2479_v52 }
 0xc44   : > { %v2801_v63 = vpop.permute.xlu1 %2800  ;;  %v5494_v26 = vpack.c.b16 %v2882_v24, %v2882_v24 }
 0xc45   : > { %v2474_v54 = vpop.f32.mrf.mxu3  ;;  %v2806_v25 = vand.u32 %v2801_v63, %v5465_v62 }
 0xc46   : > { %v2475_v12 = vadd.f32 %v4499_v27, %v2474_v54 }
 0xc47   : > { %2815 = vmatpush.bf16.msrb.mxu3 %v2806_v25 }
 0xc48   : > { %v5461_v55 = vpack.c.bf16 %v2475_v12, %v2475_v12 }
 0xc4a   : > { %4350 = vmatmul.msk.bf16.vlgmr.msra.gmra.mxu3 %vm1243_vm15, %v5461_v55  ;;  %v2908_v20 = vunpack.c.l.b16 %v5461_v55  ;;  %v2830_v55 = vunpack.c.l.b16 %v5455_v44 }
 0xc4c   : > { %v2913_v56 = vpop.permute.xlu1 %2912 }
 0xc4d   : > { %v2918_v7 = vsel %vm1243_vm15, %v2913_v56, 0 }
 0xc4e   : > { %2927 = vmatpush.bf16.xpose.msra.mxu3 %v2918_v7  ;;  %v5514_v7 = vpack.c.b16 %v2908_v20, %v2908_v20 }
 0xcaf   : > { %v2607_v3 = vpop.f32.mrf.mxu1 }
 0xcb0   : > { %v2668_v16 = vmul.f32 0.35355338, %v2607_v3 }
 0xcb2   : > { %v2673_v4 = vsel %vm2672_vm10, %v2668_v16, -inf }
 0xcb3   : > { %2674 = vmax.xlane.f32.xlu2 %v2673_v4 }
 0xcb7   : > { %v2609_v5 = vpop.f32.mrf.mxu1 }
 0xcbf   : > { %v2626_v43 = vpop.f32.mrf.mxu1 }
 0xcc0   : > { %v2669_v10 = vmul.f32 0.35355338, %v2626_v43  ;;  %v5523_v43 = vpack.c.b16 %v2830_v55, %v2830_v55 }
 0xcc2   : > { %v2676_v53 = vsel %vm2672_vm10, %v2669_v10, -inf }
 0xcc5   : > { %v2645_v0 = vpop.f32.mrf.mxu2 }
 0xcc6   : > { %v2670_v6 = vmul.f32 0.35355338, %v2645_v0 }
 0xcc7   : > { %v2628_v49 = vpop.f32.mrf.mxu1 }
 0xcc8   : > { %v2679_v8 = vsel %vm2672_vm10, %v2670_v6, -inf }
 0xcc9   : > { %2680 = vmax.xlane.f32.xlu0 %v2679_v8 }
 0xccb   : > { %2752 = vrot.lane.b32.xlu2 %v5472_v9, %s4685_s27 }
 0xccd   : > { %v2647_v14 = vpop.f32.mrf.mxu2  ;;  %v2664_v61 = vpop.f32.mrf.mxu3 }
 0xcce   : > { %v2671_v15 = vmul.f32 0.35355338, %v2664_v61 }
 0xcd0   : > { %v2682_v17 = vsel %vm2672_vm10, %v2671_v15, -inf }
 0xcd1   : > { %2683 = vmax.xlane.f32.xlu1 %v2682_v17  ;;  %2677 = vmax.xlane.f32.xlu0 %v2676_v53 }
 0xcd5   : > { %v2666_v2 = vpop.f32.mrf.mxu3 }
 0xce5   : > { %2776 = vrot.lane.b32.xlu0 %v5479_v1, %s4685_s27 }
 0xcea   : > { %2860 = vrot.lane.b32.xlu1 %v5472_v9, %s4687_s7 }
 0xced   : > { %2724 = vrot.lane.b32.xlu0 %v5486_v23, %s4685_s27  ;;  %s5935_s27 = smov 16  }
 0xcf5   : > { %2886 = vrot.lane.b32.xlu0 %v5479_v1, %s4687_s7 }
 0xcfd   : > { %2834 = vrot.lane.b32.xlu0 %v5486_v23, %s4687_s7 }
 0xd05   : > { %2884 = vrot.lane.b32.xlu0 %v5494_v26, %s4687_s7 }
 0xd0d   : > { %2858 = vrot.lane.b32.xlu0 %v5498_v28, %s4687_s7 }
 0xd15   : > { %3027 = vrot.lane.b32.xlu0 %v5479_v1, %s4686_s30 }
 0xd1d   : > { %3006 = vrot.lane.b32.xlu0 %v5472_v9, %s4686_s30 }
 0xd26   : > { %v2675_v29 = vpop.xlane.xlu2 %2674 }
 0xd27   : > { %v2685_v30 = vsub.f32 %v2668_v16, %v2675_v29 }
 0xd29   : > { %v2689_v31 = vmul.f32 1.442695, %v2685_v30 }
 0xd2b   : > { %4581 = vpow2.f32 %v2689_v31 }
 0xd2e   : > { %v2753_v32 = vpop.permute.xlu2 %2752 }
 0xd2f   : > { %v2758_v33 = vand.u32 %v2753_v32, %v5465_v62 }
 0xd31   : > { %v4582_v34 = vpop.eup %4581  ;;  %2767 = vmatpush.bf16.msrb.mxu1 %v2758_v33 }
 0xd32   : > { %v2697_v35 = vsel %vm2672_vm10, %v4582_v34, 0.0 }
 0xd33   : > { %2698 = vadd.xlane.f32.xlu2 %v2697_v35 }
 0xd3c   : > { %v2681_v36 = vpop.xlane.xlu0 %2680 }
 0xd3d   : > { %v2687_v37 = vsub.f32 %v2670_v6, %v2681_v36 }
 0xd3f   : > { %v2693_v38 = vmul.f32 1.442695, %v2687_v37 }
 0xd41   : > { %4583 = vpow2.f32 %v2693_v38 }
 0xd44   : > { %v2678_v57 = vpop.xlane.xlu0 %2677  ;;  %v2684_v39 = vpop.xlane.xlu1 %2683 }
 0xd45   : > { %v2686_v27 = vsub.f32 %v2669_v10, %v2678_v57  ;;  %v2688_v45 = vsub.f32 %v2671_v15, %v2684_v39 }
 0xd47   : > { %v4584_v18 = vpop.eup %4583  ;;  %v2691_v41 = vmul.f32 1.442695, %v2686_v27  ;;  %v2695_v47 = vmul.f32 1.442695, %v2688_v45 }
 0xd48   : > { %v2703_v46 = vsel %vm2672_vm10, %v4584_v18, 0.0 }
 0xd49   : > { %2704 = vadd.xlane.f32.xlu1 %v2703_v46  ;;  %4585 = vpow2.f32 %v2691_v41 }
 0xd4a   : > { %4587 = vpow2.f32 %v2695_v47 }
 0xd4f   : > { %v4586_v48 = vpop.eup %4585 }
 0xd50   : > { %v2700_v51 = vsel %vm2672_vm10, %v4586_v48, 0.0  ;;  %v4588_v52 = vpop.eup %4587 }
 0xd51   : > { %2701 = vadd.xlane.f32.xlu2 %v2700_v51  ;;  %v2706_v58 = vsel %vm2672_vm10, %v4588_v52, 0.0 }
 0xd57   : > { %v2777_v54 = vpop.permute.xlu0 %2776 }
 0xd58   : > { %v2782_v12 = vand.u32 %v2777_v54, %v5465_v62 }
 0xd59   : > { %2707 = vadd.xlane.f32.xlu2 %v2706_v58 }
 0xd5a   : > { %2791 = vmatpush.bf16.msra.mxu2 %v2782_v12 }
 0xd5c   : > { %v2861_v63 = vpop.permute.xlu1 %2860 }
 0xd5d   : > { %v2866_v25 = vsel %vm1243_vm15, %v2861_v63, 0 }
 0xd5e   : > { %2875 = vmatpush.bf16.xpose.msra.mxu1 %v2866_v25 }
 0xd5f   : > { %v2725_v56 = vpop.permute.xlu0 %2724 }
 0xd60   : > { %v2734_v3 = vand.u32 %v5465_v62, %v2725_v56 }
 0xd62   : > { %2910 = vrot.lane.b32.xlu1 %v5514_v7, %s4687_s7  ;;  %2743 = vmatpush.bf16.msrb.mxu0 %v2734_v3 }
 0xd67   : > { %v2887_v16 = vpop.permute.xlu0 %2886 }
 0xd68   : > { %v2892_v4 = vsel %vm1243_vm15, %v2887_v16, 0 }
 0xd69   : > { %2901 = vmatpush.bf16.xpose.msrb.mxu2 %v2892_v4 }
 0xd6a   : > { %3048 = vrot.lane.b32.xlu1 %v5444_v40, %s4686_s30 }
 0xd6f   : > { %v2835_v5 = vpop.permute.xlu0 %2834 }
 0xd70   : > { %v2840_v50 = vsel %vm1243_vm15, %v2835_v5, 0 }
 0xd71   : > { %2849 = vmatpush.bf16.xpose.msra.mxu0 %v2840_v50  ;;  %2832 = vrot.lane.b32.xlu2 %v5523_v43, %s4687_s7 }
 0xd72   : > { %3141 = vrot.lane.b32.xlu1 %v5479_v1, %s4690_s4 }
 0xd77   : > { %v2885_v49 = vpop.permute.xlu0 %2884 }
 0xd79   : > { %2985 = vrot.lane.b32.xlu2 %v5486_v23, %s4686_s30  ;;  %s5936_s30 = smov 24  }
 0xd7f   : > { %v2859_v10 = vpop.permute.xlu0 %2858 }
 0xd81   : > { %3164 = vrot.lane.b32.xlu2 %v5444_v40, %s4690_s4 }
 0xd87   : > { %v3028_v15 = vpop.permute.xlu0 %3027 }
 0xd88   : > { %v3033_v19 = vand.u32 %v3028_v15, %v5465_v62 }
 0xd8f   : > { %v3007_v24 = vpop.permute.xlu0 %3006 }
 0xd90   : > { %v3012_v31 = vand.u32 %v3007_v24, %v5465_v62 }
 0xda6   : > { %v2699_v0 = vpop.xlane.xlu2 %2698 }
 0xda7   : > { %4589 = vrcp.f32 %v2699_v0 }
 0xdad   : > { %v4590_v44 = vpop.eup %4589 }
 0xdae   : > { %v2713_v6 = vmul.f32 %v4590_v44, %v4582_v34 }
 0xdb0   : > { %v2717_v8 = vpack.c.bf16 %v2713_v6, %v2713_v6 }
 0xdb2   : > { %4351 = vmatmul.msk.bf16.vlgmr.msrb.gmra.mxu0 %vm2672_vm10, %v2717_v8 }
 0xdbc   : > { %v2705_v14 = vpop.xlane.xlu1 %2704 }
 0xdbd   : > { %4591 = vrcp.f32 %v2705_v14 }
 0xdc3   : > { %v4592_v61 = vpop.eup %4591 }
 0xdc4   : > { %v2715_v17 = vmul.f32 %v4592_v61, %v4584_v18  ;;  %v2702_v53 = vpop.xlane.xlu2 %2701 }
 0xdc5   : > { %4593 = vrcp.f32 %v2702_v53 }
 0xdc6   : > { %v2719_v2 = vpack.c.bf16 %v2715_v17, %v2715_v17 }
 0xdc8   : > { %4353 = vmatmul.msk.bf16.vlgmr.msra.gmra.mxu2 %vm2672_vm10, %v2719_v2 }
 0xdc9   : > { %3042 = vmatpush.bf16.msra.mxu2 %v3033_v19 }
 0xdcb   : > { %v4594_v21 = vpop.eup %4593 }
 0xdcc   : > { %v2714_v22 = vmul.f32 %v4594_v21, %v4586_v48  ;;  %v2708_v29 = vpop.xlane.xlu2 %2707 }
 0xdcd   : > { %4595 = vrcp.f32 %v2708_v29 }
 0xdce   : > { %v2718_v30 = vpack.c.bf16 %v2714_v22, %v2714_v22 }
 0xdd0   : > { %4352 = vmatmul.msk.bf16.vlgmr.msrb.gmra.mxu1 %vm2672_vm10, %v2718_v30 }
 0xdd1   : > { %3021 = vmatpush.bf16.msrb.mxu1 %v3012_v31 }
 0xdd3   : > { %v4596_v32 = vpop.eup %4595 }
 0xdd4   : > { %v2911_v33 = vpop.permute.xlu1 %2910  ;;  %v2716_v34 = vmul.f32 %v4596_v32, %v4588_v52  ;;  %v2833_v35 = vpop.permute.xlu2 %2832 }
 0xdd5   : > { %4355 = vmatmul.msk.bf16.vlgmr.msra.gmra.mxu0 %vm1243_vm15, %v2833_v35 }
 0xdd6   : > { %v2720_v36 = vpack.c.bf16 %v2716_v34, %v2716_v34 }
 0xdd8   : > { %4357 = vmatmul.msk.bf16.vlgmr.msrb.gmra.mxu2 %vm1243_vm15, %v2885_v49  ;;  %4354 = vmatmul.msk.bf16.vlgmr.msrb.gmra.mxu3 %vm2672_vm10, %v2720_v36 }
 0xddc   : > { %v3049_v37 = vpop.permute.xlu1 %3048  ;;  %v2986_v57 = vpop.permute.xlu2 %2985 }
 0xddd   : > { %v3054_v38 = vand.u32 %v3049_v37, %v5465_v62  ;;  %v2991_v39 = vand.u32 %v2986_v57, %v5465_v62 }
 0xddf   : > { %3063 = vmatpush.bf16.msrb.mxu3 %v3054_v38  ;;  %3000 = vmatpush.bf16.msrb.mxu0 %v2991_v39 }
 0xde0   : > { %4356 = vmatmul.msk.bf16.vlgmr.msra.gmra.mxu1 %vm1243_vm15, %v2859_v10 }
 0xde4   : > { %v3142_v27 = vpop.permute.xlu1 %3141  ;;  %v3165_v41 = vpop.permute.xlu2 %3164 }
 0xde5   : > { %v3147_v18 = vsel %vm1243_vm15, %v3142_v27, 0  ;;  %v3170_v45 = vsel %vm1243_vm15, %v3165_v41, 0 }
 0xde6   : > { %3156 = vmatpush.bf16.xpose.msrb.mxu2 %v3147_v18 }
 0xde8   : > { %4358 = vmatmul.msk.bf16.vlgmr.msra.gmra.mxu3 %vm1243_vm15, %v2911_v33 }
 0xde9   : > { %3179 = vmatpush.bf16.xpose.msra.mxu3 %v3170_v45 }
 0xe2f   : > { %v2745_v46 = vpop.f32.mrf.mxu0 }
 0xe30   : > { %v2821_v47 = vpack.c.bf16 %v2745_v46, %v2745_v46 }
 0xe32   : > { %2825 = vst.msk [vmem:[#allocation2] sm:$0xf] %vm1480_vm1, %v2821_v47 }
 0xe37   : > { %v2747_v48 = vpop.f32.mrf.mxu0 }
 0xe4b   : > { %v2793_v51 = vpop.f32.mrf.mxu2 }
 0xe4c   : > { %v2823_v52 = vpack.c.bf16 %v2793_v51, %v2793_v51 }
 0xe4d   : > { %v2769_v54 = vpop.f32.mrf.mxu1 }
 0xe4e   : > { %2827 = vst.msk [vmem:[#allocation2 + $0x8] sm:$0xf] %vm1480_vm1, %v2823_v52  ;;  %v2822_v12 = vpack.c.bf16 %v2769_v54, %v2769_v54 }
 0xe50   : > { %2826 = vst.msk [vmem:[#allocation2 + $0x4] sm:$0xf] %vm1480_vm1, %v2822_v12 }
 0xe52   : > { %v2851_v58 = vpop.f32.mrf.mxu0 }
 0xe53   : > { %v2795_v20 = vpop.f32.mrf.mxu2  ;;  %v2933_v63 = vmul.f32 0.35355338, %v2851_v58 }
 0xe55   : > { %v2771_v25 = vpop.f32.mrf.mxu1  ;;  %v2937_v56 = vsel %vm2672_vm10, %v2933_v63, -inf }
 0xe56   : > { %2938 = vmax.xlane.f32.xlu0 %v2937_v56 }
 0xe5a   : > { %v2853_v3 = vpop.f32.mrf.mxu0 }
 0xe5b   : > { %v2903_v16 = vpop.f32.mrf.mxu2  ;;  %v2817_v4 = vpop.f32.mrf.mxu3 }
 0xe5c   : > { %v2824_v55 = vpack.c.bf16 %v2817_v4, %v2817_v4  ;;  %v2935_v49 = vmul.f32 0.35355338, %v2903_v16 }
 0xe5d   : > { %v2877_v5 = vpop.f32.mrf.mxu1 }
 0xe5e   : > { %2828 = vst.msk [vmem:[#allocation2 + $0xc] sm:$0xf] %vm1480_vm1, %v2824_v55  ;;  %v2934_v50 = vmul.f32 0.35355338, %v2877_v5  ;;  %v2943_v10 = vsel %vm2672_vm10, %v2935_v49, -inf }
 0xe60   : > { %v2940_v0 = vsel %vm2672_vm10, %v2934_v50, -inf }
 0xe61   : > { %2941 = vmax.xlane.f32.xlu1 %v2940_v0 }
 0xe63   : > { %v2905_v44 = vpop.f32.mrf.mxu2  ;;  %v2819_v6 = vpop.f32.mrf.mxu3 }
 0xe65   : > { %v2879_v8 = vpop.f32.mrf.mxu1 }
 0xe69   : > { %2944 = vmax.xlane.f32.xlu1 %v2943_v10 }
 0xe6a   : > { %3095 = vrot.lane.b32.xlu0 %v5486_v23, %s4690_s4 }
 0xe6b   : > { %v2929_v14 = vpop.f32.mrf.mxu3 }
 0xe6c   : > { %v2936_v61 = vmul.f32 0.35355338, %v2929_v14 }
 0xe6e   : > { %v2946_v15 = vsel %vm2672_vm10, %v2936_v61, -inf }
 0xe6f   : > { %2947 = vmax.xlane.f32.xlu2 %v2946_v15 }
 0xe73   : > { %v2931_v17 = vpop.f32.mrf.mxu3 }
 0xe82   : > { %3118 = vrot.lane.b32.xlu1 %v5472_v9, %s4690_s4 }
 0xe87   : > { %3139 = vrot.lane.b32.xlu2 %v5494_v26, %s4690_s4 }
 0xec9   : > { %v2939_v53 = vpop.xlane.xlu0 %2938 }
 0xeca   : > { %v2949_v2 = vsub.f32 %v2933_v63, %v2939_v53 }
 0xecc   : > { %v2953_v19 = vmul.f32 1.442695, %v2949_v2 }
 0xece   : > { %4597 = vpow2.f32 %v2953_v19 }
 0xed4   : > { %v4598_v21 = vpop.eup %4597  ;;  %v2942_v24 = vpop.xlane.xlu1 %2941 }
 0xed5   : > { %v2950_v22 = vsub.f32 %v2934_v50, %v2942_v24  ;;  %v2961_v29 = vsel %vm2672_vm10, %v4598_v21, 0.0 }
 0xed6   : > { %2962 = vadd.xlane.f32.xlu1 %v2961_v29 }
 0xed7   : > { %v2955_v30 = vmul.f32 1.442695, %v2950_v22 }
 0xed9   : > { %4599 = vpow2.f32 %v2955_v30 }
 0xedc   : > { %v3096_v31 = vpop.permute.xlu0 %3095  ;;  %v2945_v32 = vpop.xlane.xlu1 %2944 }
 0xedd   : > { %v3101_v33 = vsel %vm1243_vm15, %v3096_v31, 0  ;;  %v2951_v34 = vsub.f32 %v2935_v49, %v2945_v32 }
 0xede   : > { %3110 = vmatpush.bf16.xpose.msra.mxu0 %v3101_v33 }
 0xedf   : > { %v4600_v35 = vpop.eup %4599  ;;  %v2957_v36 = vmul.f32 1.442695, %v2951_v34 }
 0xee0   : > { %v2964_v37 = vsel %vm2672_vm10, %v4600_v35, 0.0 }
 0xee1   : > { %4601 = vpow2.f32 %v2957_v36  ;;  %2965 = vadd.xlane.f32.xlu2 %v2964_v37 }
 0xee2   : > { %v2948_v38 = vpop.xlane.xlu2 %2947 }
 0xee3   : > { %v2952_v57 = vsub.f32 %v2936_v61, %v2948_v38 }
 0xee5   : > { %v2959_v39 = vmul.f32 1.442695, %v2952_v57 }
 0xee7   : > { %v4602_v27 = vpop.eup %4601  ;;  %4603 = vpow2.f32 %v2959_v39 }
 0xee8   : > { %v2967_v18 = vsel %vm2672_vm10, %v4602_v27, 0.0 }
 0xee9   : > { %2968 = vadd.xlane.f32.xlu2 %v2967_v18 }
 0xeea   : > { %v3140_v51 = vpop.permute.xlu2 %3139 }
 0xeed   : > { %v4604_v41 = vpop.eup %4603 }
 0xeee   : > { %v2970_v45 = vsel %vm2672_vm10, %v4604_v41, 0.0 }
 0xeef   : > { %2971 = vadd.xlane.f32.xlu0 %v2970_v45  ;;  %3093 = vrot.lane.b32.xlu1 %v5523_v43, %s4690_s4 }
 0xef4   : > { %v3119_v46 = vpop.permute.xlu1 %3118 }
 0xef5   : > { %v3124_v47 = vsel %vm1243_vm15, %v3119_v46, 0 }
 0xef6   : > { %3133 = vmatpush.bf16.xpose.msra.mxu1 %v3124_v47 }
 0xef7   : > { %3279 = vrot.lane.b32.xlu1 %v5479_v1, %s4688_s1 }
 0xf01   : > { %3116 = vrot.lane.b32.xlu2 %v5498_v28, %s4690_s4 }
 0xf03   : > { %3162 = vrot.lane.b32.xlu0 %v5514_v7, %s4690_s4  ;;  %s5947_s4 = sld [smem:[#allocation27_spill]] }
 0xf09   : > { %3237 = vrot.lane.b32.xlu2 %v5486_v23, %s4688_s1 }
 0xf0b   : > { %3258 = vrot.lane.b32.xlu0 %v5472_v9, %s4688_s1 }
 0xf11   : > { %3347 = vrot.lane.b32.xlu2 %v5486_v23, %s4693_s0 }
 0xf13   : > { %3300 = vrot.lane.b32.xlu0 %v5444_v40, %s4688_s1  ;;  %s5937_s1 = scalar_lea.vmem %s5858_s16, %s4842_s6 }
 0xf1b   : > { %3370 = vrot.lane.b32.xlu0 %v5472_v9, %s4693_s0 }
 0xf49   : > { %v2963_v48 = vpop.xlane.xlu1 %2962 }
 0xf4a   : > { %4605 = vrcp.f32 %v2963_v48 }
 0xf50   : > { %v4606_v52 = vpop.eup %4605 }
 0xf51   : > { %v2977_v54 = vmul.f32 %v4606_v52, %v4598_v21 }
 0xf53   : > { %v2981_v12 = vpack.c.bf16 %v2977_v54, %v2977_v54 }
 0xf54   : > { %v2966_v58 = vpop.xlane.xlu2 %2965 }
 0xf55   : > { %4607 = vrcp.f32 %v2966_v58  ;;  %4359 = vmatmul.msk.bf16.vlgmr.msrb.gmra.mxu0 %vm2672_vm10, %v2981_v12 }
 0xf5b   : > { %v4608_v20 = vpop.eup %4607 }
 0xf5c   : > { %v2978_v63 = vmul.f32 %v4608_v20, %v4600_v35  ;;  %v2969_v25 = vpop.xlane.xlu2 %2968 }
 0xf5d   : > { %4609 = vrcp.f32 %v2969_v25 }
 0xf5e   : > { %v2982_v56 = vpack.c.bf16 %v2978_v63, %v2978_v63 }
 0xf60   : > { %4360 = vmatmul.msk.bf16.vlgmr.msrb.gmra.mxu1 %vm2672_vm10, %v2982_v56 }
 0xf61   : > { %v3094_v3 = vpop.permute.xlu1 %3093 }
 0xf62   : > { %v2972_v16 = vpop.xlane.xlu0 %2971 }
 0xf63   : > { %v4610_v4 = vpop.eup %4609  ;;  %4611 = vrcp.f32 %v2972_v16 }
 0xf64   : > { %v2979_v55 = vmul.f32 %v4610_v4, %v4602_v27  ;;  %v3117_v5 = vpop.permute.xlu2 %3116 }
 0xf65   : > { %4363 = vmatmul.msk.bf16.vlgmr.msra.gmra.mxu0 %vm1243_vm15, %v3094_v3 }
 0xf66   : > { %v2983_v50 = vpack.c.bf16 %v2979_v55, %v2979_v55 }
 0xf68   : > { %4361 = vmatmul.msk.bf16.vlgmr.msra.gmra.mxu2 %vm2672_vm10, %v2983_v50 }
 0xf69   : > { %v4612_v0 = vpop.eup %4611  ;;  %v3280_v44 = vpop.permute.xlu1 %3279 }
 0xf6a   : > { %v2980_v6 = vmul.f32 %v4612_v0, %v4604_v41  ;;  %v3285_v49 = vand.u32 %v3280_v44, %v5465_v62 }
 0xf6c   : > { %v2984_v8 = vpack.c.bf16 %v2980_v6, %v2980_v6  ;;  %v3238_v10 = vpop.permute.xlu2 %3237  ;;  %3294 = vmatpush.bf16.msra.mxu2 %v3285_v49 }
 0xf6d   : > { %v3243_v14 = vand.u32 %v3238_v10, %v5465_v62 }
 0xf6e   : > { %4362 = vmatmul.msk.bf16.vlgmr.msrb.gmra.mxu3 %vm2672_vm10, %v2984_v8 }
 0xf6f   : > { %3252 = vmatpush.bf16.msrb.mxu0 %v3243_v14 }
 0xf70   : > { %4364 = vmatmul.msk.bf16.vlgmr.msra.gmra.mxu1 %vm1243_vm15, %v3117_v5 }
 0xf74   : > { %v3348_v61 = vpop.permute.xlu2 %3347 }
 0xf75   : > { %v3353_v15 = vsel %vm1243_vm15, %v3348_v61, 0  ;;  %v3163_v17 = vpop.permute.xlu0 %3162 }
 0xf76   : > { %3362 = vmatpush.bf16.xpose.msra.mxu0 %v3353_v15 }
 0xf78   : > { %4365 = vmatmul.msk.bf16.vlgmr.msrb.gmra.mxu2 %vm1243_vm15, %v3140_v51 }
 0xf7d   : > { %v3259_v53 = vpop.permute.xlu0 %3258 }
 0xf7e   : > { %v3264_v2 = vand.u32 %v3259_v53, %v5465_v62  ;;  %4366 = vmatmul.msk.bf16.vlgmr.msra.gmra.mxu3 %vm1243_vm15, %v3163_v17 }
 0xf80   : > { %3273 = vmatpush.bf16.msrb.mxu1 %v3264_v2 }
 0xf85   : > { %v3301_v19 = vpop.permute.xlu0 %3300 }
 0xf86   : > { %v3306_v21 = vand.u32 %v3301_v19, %v5465_v62 }
 0xf88   : > { %3315 = vmatpush.bf16.msrb.mxu3 %v3306_v21 }
 0xf8d   : > { %v3371_v24 = vpop.permute.xlu0 %3370 }
 0xf8e   : > { %v3376_v22 = vsel %vm1243_vm15, %v3371_v24, 0 }
 0xf8f   : > { %3385 = vmatpush.bf16.xpose.msra.mxu1 %v3376_v22 }
 0xfd2   : > { %v5600_v29 = vpop.f32.mrf.mxu0 }
 0xfda   : > { %v3004_v30 = vpop.f32.mrf.mxu0 }
 0xfdd   : > { %v5602_v31 = vpop.f32.mrf.mxu1 }
 0xfe2   : > { %v3112_v32 = vpop.f32.mrf.mxu0 }
 0xfe3   : > { %v3185_v33 = vmul.f32 0.35355338, %v3112_v32 }
 0xfe5   : > { %v3025_v34 = vpop.f32.mrf.mxu1  ;;  %v3189_v35 = vsel %vm2672_vm10, %v3185_v33, -inf }
 0xfe6   : > { %3190 = vmax.xlane.f32.xlu0 %v3189_v35 }
 0xfea   : > { %v3114_v36 = vpop.f32.mrf.mxu0 }
 0xfeb   : > { %v5605_v37 = vpop.f32.mrf.mxu2 }
 0xfed   : > { %v3135_v38 = vpop.f32.mrf.mxu1 }
 0xfee   : > { %v3186_v57 = vmul.f32 0.35355338, %v3135_v38 }
 0xff0   : > { %v3192_v39 = vsel %vm2672_vm10, %v3186_v57, -inf }
 0xff1   : > { %v5608_v27 = vpop.f32.mrf.mxu3  ;;  %3193 = vmax.xlane.f32.xlu1 %v3192_v39 }
 0xff3   : > { %v3046_v18 = vpop.f32.mrf.mxu2 }
 0xff5   : > { %v3137_v41 = vpop.f32.mrf.mxu1 }
 0xff9   : > { %v3067_v45 = vpop.f32.mrf.mxu3 }
 0xffb   : > { %v3158_v46 = vpop.f32.mrf.mxu2 }
 0xffc   : > { %v3187_v47 = vmul.f32 0.35355338, %v3158_v46 }
 0xffe   : > { %v3195_v48 = vsel %vm2672_vm10, %v3187_v47, -inf }
 0xfff   : > { %3196 = vmax.xlane.f32.xlu2 %v3195_v48 }
0x1001   : > { %v3181_v51 = vpop.f32.mrf.mxu3 }
0x1002   : > { %v3188_v52 = vmul.f32 0.35355338, %v3181_v51 }
0x1003   : > { %v3160_v54 = vpop.f32.mrf.mxu2 }
0x1004   : > { %v3198_v12 = vsel %vm2672_vm10, %v3188_v52, -inf }
0x1005   : > { %3199 = vmax.xlane.f32.xlu0 %v3198_v12 }
0x1009   : > { %v3183_v58 = vpop.f32.mrf.mxu3 }
0x100a   : > { %3416 = vrot.lane.b32.xlu1 %v5444_v40, %s4693_s0 }
0x1017   : > { %3393 = vrot.lane.b32.xlu2 %v5479_v1, %s4693_s0 }
0x1019   : > { %3345 = vrot.lane.b32.xlu0 %v5523_v43, %s4693_s0 }
0x1059   : > { %v3191_v20 = vpop.xlane.xlu0 %3190 }
0x105a   : > { %v3201_v63 = vsub.f32 %v3185_v33, %v3191_v20 }
0x105c   : > { %v3205_v25 = vmul.f32 1.442695, %v3201_v63 }
0x105e   : > { %4613 = vpow2.f32 %v3205_v25 }
0x1064   : > { %v4614_v56 = vpop.eup %4613  ;;  %v3194_v3 = vpop.xlane.xlu1 %3193 }
0x1065   : > { %v3202_v16 = vsub.f32 %v3186_v57, %v3194_v3  ;;  %v3213_v4 = vsel %vm2672_vm10, %v4614_v56, 0.0 }
0x1066   : > { %3214 = vadd.xlane.f32.xlu1 %v3213_v4 }
0x1067   : > { %v3207_v55 = vmul.f32 1.442695, %v3202_v16 }
0x1069   : > { %4615 = vpow2.f32 %v3207_v55 }
0x106f   : > { %v4616_v5 = vpop.eup %4615 }
0x1070   : > { %v3216_v50 = vsel %vm2672_vm10, %v4616_v5, 0.0 }
0x1071   : > { %3217 = vadd.xlane.f32.xlu2 %v3216_v50 }
0x1072   : > { %v3197_v0 = vpop.xlane.xlu2 %3196 }
0x1073   : > { %v3203_v44 = vsub.f32 %v3187_v47, %v3197_v0 }
0x1075   : > { %v3209_v6 = vmul.f32 1.442695, %v3203_v44 }
0x1077   : > { %4617 = vpow2.f32 %v3209_v6 }
0x1078   : > { %v3200_v43 = vpop.xlane.xlu0 %3199 }
0x1079   : > { %v3204_v49 = vsub.f32 %v3188_v52, %v3200_v43 }
0x107a   : > { %v3394_v8 = vpop.permute.xlu2 %3393 }
0x107b   : > { %v3211_v10 = vmul.f32 1.442695, %v3204_v49  ;;  %v3399_v14 = vsel %vm1243_vm15, %v3394_v8, 0 }
0x107c   : > { %3408 = vmatpush.bf16.xpose.msrb.mxu2 %v3399_v14  ;;  %v3417_v61 = vpop.permute.xlu1 %3416 }
0x107d   : > { %v4618_v15 = vpop.eup %4617  ;;  %4619 = vpow2.f32 %v3211_v10  ;;  %v3422_v17 = vsel %vm1243_vm15, %v3417_v61, 0  ;;  %v3070_v61 = vpack.c.bf16 %v5602_v31, %v5602_v31 }
0x107e   : > { %3431 = vmatpush.bf16.xpose.msra.mxu3 %v3422_v17  ;;  %v3219_v53 = vsel %vm2672_vm10, %v4618_v15, 0.0  ;;  %v3071_v17 = vpack.c.bf16 %v5605_v37, %v5605_v37 }
0x107f   : > { %3220 = vadd.xlane.f32.xlu0 %v3219_v53 }
0x1083   : > { %v4620_v2 = vpop.eup %4619 }
0x1084   : > { %v3222_v19 = vsel %vm2672_vm10, %v4620_v2, 0.0 }
0x1085   : > { %3223 = vadd.xlane.f32.xlu1 %v3222_v19 }
0x1089   : > { %3368 = vrot.lane.b32.xlu2 %v5498_v28, %s4693_s0 }
0x108b   : > { %v3346_v33 = vpop.permute.xlu0 %3345 }
0x1093   : > { %3414 = vrot.lane.b32.xlu0 %v5514_v7, %s4693_s0 }
0x109e   : > { %3391 = vrot.lane.b32.xlu1 %v5494_v26, %s4693_s0 }
0x10d9   : > { %v3215_v21 = vpop.xlane.xlu1 %3214 }
0x10da   : > { %4621 = vrcp.f32 %v3215_v21 }
0x10e0   : > { %v4622_v24 = vpop.eup %4621 }
0x10e1   : > { %v3229_v22 = vmul.f32 %v4622_v24, %v4614_v56 }
0x10e3   : > { %v3233_v30 = vpack.c.bf16 %v3229_v22, %v3229_v22 }
0x10e4   : > { %v3218_v32 = vpop.xlane.xlu2 %3217 }
0x10e5   : > { %4623 = vrcp.f32 %v3218_v32  ;;  %4367 = vmatmul.msk.bf16.vlgmr.msrb.gmra.mxu0 %vm2672_vm10, %v3233_v30 }
0x10eb   : > { %v4624_v34 = vpop.eup %4623 }
0x10ec   : > { %v3230_v35 = vmul.f32 %v4624_v34, %v4616_v5  ;;  %v3369_v18 = vpop.permute.xlu2 %3368 }
0x10ee   : > { %v3234_v36 = vpack.c.bf16 %v3230_v35, %v3230_v35 }
0x10f0   : > { %4368 = vmatmul.msk.bf16.vlgmr.msrb.gmra.mxu1 %vm2672_vm10, %v3234_v36 }
0x10f2   : > { %v3221_v28 = vpop.xlane.xlu0 %3220 }
0x10f3   : > { %4625 = vrcp.f32 %v3221_v28 }
0x10f5   : > { %4371 = vmatmul.msk.bf16.vlgmr.msra.gmra.mxu0 %vm1243_vm15, %v3346_v33 }
0x10f8   : > { %v3224_v26 = vpop.xlane.xlu1 %3223 }
0x10f9   : > { %v4626_v7 = vpop.eup %4625  ;;  %4627 = vrcp.f32 %v3224_v26  ;;  %v3069_v26 = vpack.c.bf16 %v5600_v29, %v5600_v29 }
0x10fa   : > { %v3231_v38 = vmul.f32 %v4626_v7, %v4618_v15 }
0x10fc   : > { %v3235_v57 = vpack.c.bf16 %v3231_v38, %v3231_v38 }
0x10fe   : > { %4369 = vmatmul.msk.bf16.vlgmr.msra.gmra.mxu2 %vm2672_vm10, %v3235_v57 }
0x10ff   : > { %v4628_v39 = vpop.eup %4627 }
0x1100   : > { %v3232_v41 = vmul.f32 %v4628_v39, %v4620_v2  ;;  %4372 = vmatmul.msk.bf16.vlgmr.msra.gmra.mxu1 %vm1243_vm15, %v3369_v18 }
0x1102   : > { %v3236_v45 = vpack.c.bf16 %v3232_v41, %v3232_v41 }
0x1104   : > { %4370 = vmatmul.msk.bf16.vlgmr.msrb.gmra.mxu3 %vm2672_vm10, %v3236_v45 }
0x1105   : > { %v3415_v47 = vpop.permute.xlu0 %3414 }
0x1110   : > { %v3392_v46 = vpop.permute.xlu1 %3391 }
0x1111   : > { %4373 = vmatmul.msk.bf16.vlgmr.msrb.gmra.mxu2 %vm1243_vm15, %v3392_v46 }
0x1114   : > { %4374 = vmatmul.msk.bf16.vlgmr.msra.gmra.mxu3 %vm1243_vm15, %v3415_v47 }
0x1162   : > { %v5638_v48 = vpop.f32.mrf.mxu0 }
0x116a   : > { %v3256_v51 = vpop.f32.mrf.mxu0 }
0x116d   : > { %v3275_v52 = vpop.f32.mrf.mxu1 }
0x116e   : > { %v3322_v15 = vpack.c.bf16 %v3275_v52, %v3275_v52 }
0x1172   : > { %v3364_v54 = vpop.f32.mrf.mxu0 }
0x1173   : > { %v3437_v12 = vmul.f32 0.35355338, %v3364_v54 }
0x1175   : > { %v3277_v58 = vpop.f32.mrf.mxu1  ;;  %v3441_v20 = vsel %vm2672_vm10, %v3437_v12, -inf }
0x1176   : > { %3442 = vmax.xlane.f32.xlu2 %v3441_v20 }
0x117a   : > { %v3366_v63 = vpop.f32.mrf.mxu0 }
0x117d   : > { %v3387_v25 = vpop.f32.mrf.mxu1 }
0x117e   : > { %v3438_v56 = vmul.f32 0.35355338, %v3387_v25 }
0x1180   : > { %v3444_v3 = vsel %vm2672_vm10, %v3438_v56, -inf }
0x1181   : > { %v5642_v16 = vpop.f32.mrf.mxu2  ;;  %3445 = vmax.xlane.f32.xlu1 %v3444_v3 }
0x1185   : > { %v3389_v4 = vpop.f32.mrf.mxu1 }
0x1187   : > { %v3317_v55 = vpop.f32.mrf.mxu3 }
0x1188   : > { %v3324_v53 = vpack.c.bf16 %v3317_v55, %v3317_v55 }
0x1189   : > { %v3298_v5 = vpop.f32.mrf.mxu2 }
0x118f   : > { %v3319_v50 = vpop.f32.mrf.mxu3 }
0x1194   : > { %v3410_v0 = vpop.f32.mrf.mxu2 }
0x1195   : > { %v3439_v44 = vmul.f32 0.35355338, %v3410_v0 }
0x1197   : > { %v3433_v6 = vpop.f32.mrf.mxu3  ;;  %v3447_v43 = vsel %vm2672_vm10, %v3439_v44, -inf }
0x1198   : > { %v3440_v49 = vmul.f32 0.35355338, %v3433_v6  ;;  %3448 = vmax.xlane.f32.xlu0 %v3447_v43 }
0x119a   : > { %v3450_v8 = vsel %vm2672_vm10, %v3440_v49, -inf }
0x119b   : > { %3451 = vmax.xlane.f32.xlu2 %v3450_v8 }
0x119c   : > { %v3412_v10 = vpop.f32.mrf.mxu2 }
0x119f   : > { %v3435_v14 = vpop.f32.mrf.mxu3 }
0x11b3   : > { %3489 = vrot.lane.b32.xlu2 %v5486_v23, %s4692_s11 }
0x11bb   : > { %3552 = vrot.lane.b32.xlu2 %v5444_v40, %s4692_s11 }
0x11c3   : > { %3079 = vrot.lane.b32.xlu2 %v3070_v61, %s4695_s19 }
0x11cb   : > { %3331 = vrot.lane.b32.xlu2 %v3322_v15, %s5935_s27 }
0x11d3   : > { %3081 = vrot.lane.b32.xlu2 %v3071_v17, %s4695_s19  ;;  %v3072_v17 = vpack.c.bf16 %v5608_v27, %v5608_v27 }
0x11db   : > { %3335 = vrot.lane.b32.xlu2 %v3324_v53, %s5935_s27 }
0x11e9   : > { %v3443_v23 = vpop.xlane.xlu2 %3442 }
0x11ea   : > { %v3453_v2 = vsub.f32 %v3437_v12, %v3443_v23 }
0x11ec   : > { %v3457_v19 = vmul.f32 1.442695, %v3453_v2  ;;  %v3323_v2 = vpack.c.bf16 %v5642_v16, %v5642_v16 }
0x11ee   : > { %4629 = vpow2.f32 %v3457_v19 }
0x11f4   : > { %v4630_v40 = vpop.eup %4629  ;;  %v3446_v21 = vpop.xlane.xlu1 %3445 }
0x11f5   : > { %v3454_v31 = vsub.f32 %v3438_v56, %v3446_v21  ;;  %v3465_v24 = vsel %vm2672_vm10, %v4630_v40, 0.0 }
0x11f6   : > { %3466 = vadd.xlane.f32.xlu1 %v3465_v24 }
0x11f7   : > { %v3459_v22 = vmul.f32 1.442695, %v3454_v31 }
0x11f9   : > { %4631 = vpow2.f32 %v3459_v22  ;;  %v4448_v22 = vld [vmem:[%s4892_s26 + $0x8] sm:$0xff] }
0x11ff   : > { %v4632_v30 = vpop.eup %4631 }
0x1200   : > { %v3468_v37 = vsel %vm2672_vm10, %v4632_v30, 0.0 }
0x1201   : > { %3469 = vadd.xlane.f32.xlu0 %v3468_v37 }
0x120b   : > { %v3449_v32 = vpop.xlane.xlu0 %3448 }
0x120c   : > { %v3455_v33 = vsub.f32 %v3439_v44, %v3449_v32 }
0x120e   : > { %v3461_v34 = vmul.f32 1.442695, %v3455_v33  ;;  %v3452_v35 = vpop.xlane.xlu2 %3451 }
0x120f   : > { %v3456_v36 = vsub.f32 %v3440_v49, %v3452_v35  ;;  %3510 = vrot.lane.b32.xlu1 %v5472_v9, %s4692_s11  ;;  %v3321_v9 = vpack.c.bf16 %v5638_v48, %v5638_v48 }
0x1210   : > { %4633 = vpow2.f32 %v3461_v34 }
0x1211   : > { %v3463_v28 = vmul.f32 1.442695, %v3456_v36 }
0x1213   : > { %4635 = vpow2.f32 %v3463_v28 }
0x1216   : > { %v4634_v7 = vpop.eup %4633  ;;  %v3490_v38 = vpop.permute.xlu2 %3489 }
0x1217   : > { %v3495_v57 = vand.u32 %v3490_v38, %v5465_v62  ;;  %3077 = vrot.lane.b32.xlu1 %v3069_v26, %s4695_s19  ;;  %v3471_v39 = vsel %vm2672_vm10, %v4634_v7, 0.0 }
0x1218   : > { %3472 = vadd.xlane.f32.xlu0 %v3471_v39 }
0x1219   : > { %3504 = vmatpush.bf16.msrb.mxu0 %v3495_v57  ;;  %v4636_v18 = vpop.eup %4635 }
0x121a   : > { %v3474_v29 = vsel %vm2672_vm10, %v4636_v18, 0.0 }
0x121d   : > { %3643 = vmatpush.bf16.msra.mxu0 %v4448_v22 }
0x121e   : > { %v3553_v41 = vpop.permute.xlu2 %3552 }
0x121f   : > { %v3558_v45 = vand.u32 %v3553_v41, %v5465_v62  ;;  %3329 = vrot.lane.b32.xlu1 %v3321_v9, %s5935_s27 }
0x1220   : > { %3475 = vadd.xlane.f32.xlu0 %v3474_v29 }
0x1221   : > { %3567 = vmatpush.bf16.msrb.mxu3 %v3558_v45 }
0x1226   : > { %v3080_v46 = vpop.permute.xlu2 %3079 }
0x1227   : > { %3090 = vst.msk [vmem:[#allocation2 + $0x4] sm:$0xf] %vm1737_vm2, %v3080_v46 }
0x122e   : > { %v3332_v47 = vpop.permute.xlu2 %3331 }
0x122f   : > { %3342 = vst.msk [vmem:[#allocation2 + $0x4] sm:$0xf] %vm1994_vm3, %v3332_v47 }
0x1234   : > { %3531 = vrot.lane.b32.xlu0 %v5479_v1, %s4692_s11  ;;  %s5938_s11 = sld [smem:[#allocation22_spill]] }
0x1236   : > { %v3082_v51 = vpop.permute.xlu2 %3081 }
0x1237   : > { %3091 = vst.msk [vmem:[#allocation2 + $0x8] sm:$0xf] %vm1737_vm2, %v3082_v51 }
0x123a   : > { %s5939_s0 = scalar_lea.vmem %s5938_s11, %s4842_s6  ;;  %s5948_s11 = scalar_lea.vmem %s5947_s4, %s4842_s6 }
0x123e   : > { %v3336_v32 = vpop.permute.xlu2 %3335 }
0x1269   : > { %v3467_v48 = vpop.xlane.xlu1 %3466 }
0x126a   : > { %4637 = vrcp.f32 %v3467_v48 }
0x1270   : > { %v4638_v52 = vpop.eup %4637 }
0x1271   : > { %v3481_v54 = vmul.f32 %v4638_v52, %v4630_v40 }
0x1273   : > { %v3485_v12 = vpack.c.bf16 %v3481_v54, %v3481_v54 }
0x1274   : > { %v3470_v58 = vpop.xlane.xlu0 %3469 }
0x1275   : > { %4375 = vmatmul.msk.bf16.vlgmr.msrb.gmra.mxu0 %vm2672_vm10, %v3485_v12  ;;  %4639 = vrcp.f32 %v3470_v58 }
0x127b   : > { %v4640_v20 = vpop.eup %4639 }
0x127c   : > { %v3482_v63 = vmul.f32 %v4640_v20, %v4632_v30  ;;  %v4447_v30 = vld [vmem:[%s4892_s26] sm:$0xff]  ;;  %s5945_s26 = sld [smem:[#allocation26_spill]] }
0x127d   : > { %3644 = vmatpush.bf16.msra.mxu0 %v4447_v30 }
0x127e   : > { %v3486_v3 = vpack.c.bf16 %v3482_v63, %v3482_v63 }
0x1281   : > { %v3511_v25 = vpop.permute.xlu1 %3510 }
0x1282   : > { %v3516_v56 = vand.u32 %v3511_v25, %v5465_v62  ;;  %s5946_s7 = scalar_lea.vmem %s5945_s26, %s4842_s6 }
0x1284   : > { %3525 = vmatpush.bf16.msrb.mxu1 %v3516_v56 }
0x1287   : > { %4376 = vmatmul.msk.bf16.vlgmr.msrb.gmra.mxu1 %vm2672_vm10, %v3486_v3 }
0x1289   : > { %v3078_v1 = vpop.permute.xlu1 %3077 }
0x128a   : > { %3089 = vst.msk [vmem:[#allocation2] sm:$0xf] %vm1737_vm2, %v3078_v1 }
0x128b   : > { %v3473_v4 = vpop.xlane.xlu0 %3472 }
0x1291   : > { %v3330_v55 = vpop.permute.xlu1 %3329 }
0x1292   : > { %3341 = vst.msk [vmem:[#allocation2] sm:$0xf] %vm1994_vm3, %v3330_v55 }
0x1293   : > { %v3476_v5 = vpop.xlane.xlu0 %3475 }
0x1294   : > { %4641 = vrcp.f32 %v3476_v5 }
0x1295   : > { %4643 = vrcp.f32 %v3473_v4 }
0x129a   : > { %v4642_v50 = vpop.eup %4641 }
0x129b   : > { %v3484_v0 = vmul.f32 %v4642_v50, %v4636_v18  ;;  %v4644_v6 = vpop.eup %4643 }
0x129c   : > { %v3483_v43 = vmul.f32 %v4644_v6, %v4634_v7  ;;  %v4500_v7 = vld [vmem:[%s5937_s1] ss:$0 sm:$0xff] }
0x129d   : > { %v3488_v44 = vpack.c.bf16 %v3484_v0, %v3484_v0 }
0x129e   : > { %v3487_v10 = vpack.c.bf16 %v3483_v43, %v3483_v43 }
0x129f   : > { %4378 = vmatmul.msk.bf16.vlgmr.msrb.gmra.mxu3 %vm2672_vm10, %v3488_v44 }
0x12a6   : > { %v3532_v49 = vpop.permute.xlu0 %3531 }
0x12a7   : > { %v3537_v8 = vand.u32 %v3532_v49, %v5465_v62 }
0x12a9   : > { %3546 = vmatpush.bf16.msra.mxu2 %v3537_v8 }
0x12ac   : > { %4377 = vmatmul.msk.bf16.vlgmr.msra.gmra.mxu2 %vm2672_vm10, %v3487_v10  ;;  %v4450_v10 = vld [vmem:[%s4909_s3 + $0x8] sm:$0xff] }
0x12ad   : > { %3798 = vmatpush.bf16.msra.mxu1 %v4450_v10  ;;  %v4451_v10 = vld [vmem:[%s4919_s23] sm:$0xff] }
0x12f2   : > { %v3506_v14 = vpop.f32.mrf.mxu0 }
0x12f3   : > { %v3573_v61 = vpack.c.bf16 %v3506_v14, %v3506_v14 }
0x12f5   : > { %3581 = vrot.lane.b32.xlu1 %v3573_v61, %s5936_s30 }
0x12fa   : > { %v3508_v15 = vpop.f32.mrf.mxu0 }
0x12fd   : > { %3083 = vrot.lane.b32.xlu1 %v3072_v17, %s4695_s19  ;;  %v4449_v17 = vld [vmem:[%s4909_s3] sm:$0xff] }
0x12fe   : > { %3799 = vmatpush.bf16.msra.mxu1 %v4449_v17 }
0x1304   : > { %v3527_v53 = vpop.f32.mrf.mxu1 }
0x1305   : > { %v3574_v23 = vpack.c.bf16 %v3527_v53, %v3527_v53 }
0x1307   : > { %3583 = vrot.lane.b32.xlu0 %v3574_v23, %s5936_s30 }
0x130c   : > { %v3529_v62 = vpop.f32.mrf.mxu1 }
0x130f   : > { %3333 = vrot.lane.b32.xlu0 %v3323_v2, %s5935_s27 }
0x1322   : > { %v3569_v19 = vpop.f32.mrf.mxu3 }
0x1323   : > { %v3576_v40 = vpack.c.bf16 %v3569_v19, %v3569_v19 }
0x1325   : > { %3587 = vrot.lane.b32.xlu0 %v3576_v40, %s5936_s30 }
0x132a   : > { %v3571_v21 = vpop.f32.mrf.mxu3 }
0x132f   : > { %v3548_v27 = vpop.f32.mrf.mxu2 }
0x1330   : > { %v3575_v31 = vpack.c.bf16 %v3548_v27, %v3548_v27 }
0x1332   : > { %3585 = vrot.lane.b32.xlu1 %v3575_v31, %s5936_s30 }
0x1337   : > { %v3550_v24 = vpop.f32.mrf.mxu2 }
0x1367   : > { %v3582_v37 = vpop.permute.xlu1 %3581 }
0x1368   : > { %3593 = vst.msk [vmem:[#allocation2] sm:$0xf] %vm2251_vm4, %v3582_v37 }
0x136f   : > { %v3084_v16 = vpop.permute.xlu1 %3083 }
0x1370   : > { %3092 = vst.msk [vmem:[#allocation2 + $0xc] sm:$0xf] %vm1737_vm2, %v3084_v16 }
0x1371   : > { %3344 = vst.msk [vmem:[#allocation2 + $0xc] sm:$0xf] %vm1994_vm3, %v3336_v32 }
0x1379   : > { %v3584_v33 = vpop.permute.xlu0 %3583 }
0x137a   : > { %3594 = vst.msk [vmem:[#allocation2 + $0x4] sm:$0xf] %vm2251_vm4, %v3584_v33  ;;  %v4501_v33 = vld [vmem:[%s5939_s0] ss:$0 sm:$0xff] }
0x1381   : > { %v3334_v34 = vpop.permute.xlu0 %3333  ;;  %v4445_v35 = vld [vmem:[#allocation2] sm:$0xff] }
0x1382   : > { %3343 = vst.msk [vmem:[#allocation2 + $0x8] sm:$0xf] %vm1994_vm3, %v3334_v34  ;;  %4395 = vmatmul.msk.bf16.vlgmr.msra.gmra.mxu0 %vm1208_vm14, %v4445_v35 }
0x1397   : > { %v3588_v36 = vpop.permute.xlu0 %3587 }
0x1398   : > { %3596 = vst.msk [vmem:[#allocation2 + $0xc] sm:$0xf] %vm2251_vm4, %v3588_v36 }
0x13a4   : > { %v3586_v28 = vpop.permute.xlu1 %3585 }
0x13a5   : > { %3595 = vst.msk [vmem:[#allocation2 + $0x8] sm:$0xf] %vm2251_vm4, %v3586_v28  ;;  %v4502_v28 = vld [vmem:[%s5941_s8] ss:$0 sm:$0xff] }
0x13ac   : > { %v4446_v26 = vld [vmem:[#allocation2 + $0x8] sm:$0xff] }
0x13ad   : > { %4396 = vmatmul.msk.bf16.gmra.mxu0 %vm1208_vm14, %v4446_v26 }
0x13ff   : > { %v3646_v38 = vpop.f32.mrf.mxu0 }
0x1400   : > { %v3647_v57 = vadd.f32 %v4500_v7, %v3646_v38 }
0x1402   : > { %v3656_v39 = vadd.f32 %v3647_v57, %v5410_v59 }
0x1404   : > { %v3662_v18 = vsel %vm1208_vm14, %v3656_v39, 0.0 }
0x1405   : > { %3663 = vadd.xlane.f32.xlu2 %v3662_v18 }
0x1407   : > { %v3648_v9 = vpop.f32.mrf.mxu0 }
0x1408   : > { %v3649_v41 = vadd.f32 %v4500_v7, %v3648_v9 }
0x140a   : > { %v3657_v45 = vadd.f32 %v3649_v41, %v5412_v60 }
0x140c   : > { %v3665_v29 = vsel %vm1208_vm14, %v3657_v45, 0.0 }
0x140d   : > { %3666 = vadd.xlane.f32.xlu1 %v3665_v29 }
0x142a   : > { %v3651_v46 = vpop.f32.mrf.mxu0 }
0x142b   : > { %v3652_v47 = vadd.f32 %v4500_v7, %v3651_v46 }
0x142d   : > { %v3658_v51 = vadd.f32 %v3652_v47, %v5422_v11 }
0x142f   : > { %v3668_v48 = vsel %vm1208_vm14, %v3658_v51, 0.0 }
0x1430   : > { %3669 = vadd.xlane.f32.xlu0 %v3668_v48 }
0x1432   : > { %v3653_v52 = vpop.f32.mrf.mxu0 }
0x1433   : > { %v3654_v54 = vadd.f32 %v4500_v7, %v3653_v52 }
0x1435   : > { %v3659_v59 = vadd.f32 %v3654_v54, %v5424_v13 }
0x1437   : > { %v3671_v12 = vsel %vm1208_vm14, %v3659_v59, 0.0 }
0x1438   : > { %3672 = vadd.xlane.f32.xlu2 %v3671_v12 }
0x1478   : > { %v3664_v58 = vpop.xlane.xlu2 %3663 }
0x1479   : > { %v3674_v60 = vmul.f32 %v3664_v58, %v5341_v42 }
0x147b   : > { %v3678_v20 = vsub.f32 %v3656_v39, %v3674_v60 }
0x147d   : > { %v3682_v63 = vmul.f32 %v3678_v20, %v3678_v20 }
0x147f   : > { %v3686_v25 = vsel %vm1208_vm14, %v3682_v63, 0.0 }
0x1480   : > { %v3667_v56 = vpop.xlane.xlu1 %3666  ;;  %3687 = vadd.xlane.f32.xlu1 %v3686_v25 }
0x1481   : > { %v3675_v11 = vmul.f32 %v3667_v56, %v5341_v42 }
0x1483   : > { %v3679_v3 = vsub.f32 %v3657_v45, %v3675_v11 }
0x1485   : > { %v3683_v1 = vmul.f32 %v3679_v3, %v3679_v3 }
0x1487   : > { %v3689_v4 = vsel %vm1208_vm14, %v3683_v1, 0.0 }
0x1488   : > { %3690 = vadd.xlane.f32.xlu0 %v3689_v4 }
0x14a3   : > { %v3670_v13 = vpop.xlane.xlu0 %3669 }
0x14a4   : > { %v3676_v55 = vmul.f32 %v3670_v13, %v5341_v42 }
0x14a6   : > { %v5724_v5 = vsub.f32 %v3658_v51, %v3676_v55 }
0x14a8   : > { %v3684_v50 = vmul.f32 %v5724_v5, %v5724_v5 }
0x14aa   : > { %v3692_v0 = vsel %vm1208_vm14, %v3684_v50, 0.0 }
0x14ab   : > { %v3673_v44 = vpop.xlane.xlu2 %3672  ;;  %3693 = vadd.xlane.f32.xlu2 %v3692_v0 }
0x14ac   : > { %v3677_v6 = vmul.f32 %v3673_v44, %v5341_v42 }
0x14ae   : > { %v5730_v43 = vsub.f32 %v3659_v59, %v3677_v6  ;;  %v4453_v6 = vld [vmem:[%s4919_s23 + $0x10] sm:$0xff] }
0x14b0   : > { %v3685_v49 = vmul.f32 %v5730_v43, %v5730_v43 }
0x14b2   : > { %v3695_v8 = vsel %vm1208_vm14, %v3685_v49, 0.0  ;;  %v4452_v49 = vld [vmem:[%s4919_s23 + $0x8] sm:$0xff] }
0x14b3   : > { %3696 = vadd.xlane.f32.xlu1 %v3695_v8 }
0x14f3   : > { %v3688_v14 = vpop.xlane.xlu1 %3687 }
0x14f4   : > { %v3698_v61 = vmul.f32 %v3688_v14, %v5341_v42 }
0x14f6   : > { %v3702_v15 = vadd.f32 1e-12, %v3698_v61 }
0x14f8   : > { %4645 = vrsqrt.f32 %v3702_v15  ;;  %vm3712_vm1 = vweird.f32 %v3702_v15 }
0x14fb   : > { %v3691_v53 = vpop.xlane.xlu0 %3690 }
0x14fc   : > { %v3699_v23 = vmul.f32 %v3691_v53, %v5341_v42 }
0x14fe   : > { %v4646_v62 = vpop.eup %4645  ;;  %v3703_v2 = vadd.f32 1e-12, %v3699_v23 }
0x14ff   : > { %v3707_v19 = vmul.f32 %v4646_v62, %v3702_v15  ;;  %vm3713_vm15 = vweird.f32 %v4646_v62 }
0x1500   : > { %4647 = vrsqrt.f32 %v3703_v2  ;;  %vm3714_vm2 = vmor %vm3712_vm1, %vm3713_vm15  ;;  %vm3722_vm4 = vweird.f32 %v3703_v2 }
0x1501   : > { %v3708_v40 = vmul.f32 %v4646_v62, %v3707_v19 }
0x1503   : > { %v3709_v21 = vmul.f32 0.5, %v3708_v40 }
0x1505   : > { %v3710_v27 = vsub.f32 1.5, %v3709_v21 }
0x1506   : > { %v4648_v31 = vpop.eup %4647 }
0x1507   : > { %v3711_v24 = vmul.f32 %v4646_v62, %v3710_v27  ;;  %v3717_v22 = vmul.f32 %v4648_v31, %v3703_v2  ;;  %vm3723_vm3 = vweird.f32 %v4648_v31 }
0x1508   : > { %vm3724_vm11 = vmor %vm3722_vm4, %vm3723_vm3 }
0x1509   : > { %v3718_v30 = vmul.f32 %v4648_v31, %v3717_v22  ;;  %v3715_v37 = vsel %vm3714_vm2, %v4646_v62, %v3711_v24 }
0x150a   : > { %v3746_v34 = vmul.f32 %v3715_v37, %v3678_v20 }
0x150b   : > { %v3719_v16 = vmul.f32 0.5, %v3718_v30 }
0x150c   : > { %v3753_v26 = vmul.f32 %v4501_v33, %v3746_v34 }
0x150d   : > { %v3720_v32 = vsub.f32 1.5, %v3719_v16 }
0x150e   : > { %v5749_v57 = vadd.f32 %v4502_v28, %v3753_v26 }
0x150f   : > { %v3721_v35 = vmul.f32 %v4648_v31, %v3720_v32 }
0x1511   : > { %v3725_v36 = vsel %vm3724_vm11, %v4648_v31, %v3721_v35 }
0x1512   : > { %v3747_v7 = vmul.f32 %v3725_v36, %v3679_v3 }
0x1514   : > { %v3754_v38 = vmul.f32 %v4501_v33, %v3747_v7 }
0x1516   : > { %v5751_v39 = vadd.f32 %v4502_v28, %v3754_v38 }
0x1518   : > { %v3769_v18 = vpack.c.bf16 %v5751_v39, %v5749_v57 }
0x151a   : > { %4405 = vmatmul.msk.bf16.vlgmr.msra.gmra.mxu1 %vm1208_vm14, %v3769_v18 }
0x151e   : > { %v3694_v9 = vpop.xlane.xlu2 %3693 }
0x151f   : > { %v3700_v41 = vmul.f32 %v3694_v9, %v5341_v42 }
0x1521   : > { %v3704_v45 = vadd.f32 1e-12, %v3700_v41 }
0x1523   : > { %4649 = vrsqrt.f32 %v3704_v45  ;;  %vm3732_vm13 = vweird.f32 %v3704_v45 }
0x1526   : > { %v3697_v29 = vpop.xlane.xlu1 %3696 }
0x1527   : > { %v3701_v46 = vmul.f32 %v3697_v29, %v5341_v42 }
0x1529   : > { %v4650_v47 = vpop.eup %4649  ;;  %v3705_v51 = vadd.f32 1e-12, %v3701_v46 }
0x152a   : > { %v3727_v48 = vmul.f32 %v4650_v47, %v3704_v45  ;;  %vm3733_vm12 = vweird.f32 %v4650_v47 }
0x152b   : > { %4651 = vrsqrt.f32 %v3705_v51  ;;  %vm3734_vm0 = vmor %vm3732_vm13, %vm3733_vm12  ;;  %vm3742_vm6 = vweird.f32 %v3705_v51 }
0x152c   : > { %v3728_v52 = vmul.f32 %v4650_v47, %v3727_v48 }
0x152e   : > { %v3729_v54 = vmul.f32 0.5, %v3728_v52 }
0x1530   : > { %v3730_v59 = vsub.f32 1.5, %v3729_v54 }
0x1531   : > { %v4652_v12 = vpop.eup %4651 }
0x1532   : > { %v3731_v58 = vmul.f32 %v4650_v47, %v3730_v59  ;;  %v3737_v60 = vmul.f32 %v4652_v12, %v3705_v51  ;;  %vm3743_vm5 = vweird.f32 %v4652_v12 }
0x1533   : > { %vm3744_vm7 = vmor %vm3742_vm6, %vm3743_vm5 }
0x1534   : > { %v3738_v20 = vmul.f32 %v4652_v12, %v3737_v60  ;;  %v3735_v63 = vsel %vm3734_vm0, %v4650_v47, %v3731_v58 }
0x1535   : > { %v3748_v11 = vmul.f32 %v3735_v63, %v5724_v5  ;;  %v4454_v5 = vld [vmem:[%s4919_s23 + $0x18] sm:$0xff] }
0x1536   : > { %v3739_v25 = vmul.f32 0.5, %v3738_v20  ;;  %3896 = vmatpush.bf16.msrb.mxu2 %v4454_v5 }
0x1537   : > { %v3755_v13 = vmul.f32 %v4501_v33, %v3748_v11 }
0x1538   : > { %v3740_v56 = vsub.f32 1.5, %v3739_v25 }
0x1539   : > { %v5760_v50 = vadd.f32 %v4502_v28, %v3755_v13 }
0x153a   : > { %v3741_v3 = vmul.f32 %v4652_v12, %v3740_v56  ;;  %3897 = vmatpush.bf16.msrb.mxu2 %v4453_v6  ;;  %v4504_v56 = vld [vmem:[%s5944_s24] ss:$0 sm:$0xff] }
0x153c   : > { %v3745_v1 = vsel %vm3744_vm7, %v4652_v12, %v3741_v3 }
0x153d   : > { %v3749_v4 = vmul.f32 %v3745_v1, %v5730_v43  ;;  %v4503_v43 = vld [vmem:[%s5942_s9] ss:$0 sm:$0xff] }
0x153e   : > { %3898 = vmatpush.bf16.msrb.mxu2 %v4452_v49 }
0x153f   : > { %v3756_v55 = vmul.f32 %v4501_v33, %v3749_v4 }
0x1541   : > { %v5762_v0 = vadd.f32 %v4502_v28, %v3756_v55 }
0x1542   : > { %3899 = vmatpush.bf16.msrb.mxu2 %v4451_v10 }
0x1543   : > { %v3770_v44 = vpack.c.bf16 %v5762_v0, %v5760_v50 }
0x1545   : > { %4406 = vmatmul.msk.bf16.gmra.mxu1 %vm1208_vm14, %v3770_v44 }
0x1597   : > { %v3801_v8 = vpop.f32.mrf.mxu1 }
0x1598   : > { %v3802_v14 = vadd.f32 %v4503_v43, %v3801_v8 }
0x159a   : > { %v3811_v61 = vmul.f32 %v3802_v14, %v3802_v14 }
0x159c   : > { %v3815_v15 = vmul.f32 %v3811_v61, %v3802_v14 }
0x159e   : > { %v3819_v17 = vmul.f32 0.044715, %v3815_v15 }
0x159f   : > { %v3803_v53 = vpop.f32.mrf.mxu1 }
0x15a0   : > { %v3823_v23 = vadd.f32 %v3819_v17, %v3802_v14  ;;  %v3804_v62 = vadd.f32 %v4503_v43, %v3803_v53 }
0x15a2   : > { %v3827_v2 = vmul.f32 0.7978846, %v3823_v23  ;;  %v3812_v19 = vmul.f32 %v3804_v62, %v3804_v62 }
0x15a4   : > { %v3816_v40 = vmul.f32 %v3812_v19, %v3804_v62  ;;  %4653 = vtanh.f32 %v3827_v2 }
0x15a6   : > { %v3820_v21 = vmul.f32 0.044715, %v3816_v40 }
0x15a8   : > { %v3824_v27 = vadd.f32 %v3820_v21, %v3804_v62 }
0x15aa   : > { %v3828_v31 = vmul.f32 0.7978846, %v3824_v27  ;;  %v4654_v24 = vpop.eup %4653 }
0x15ab   : > { %v3835_v22 = vadd.f32 1.0, %v4654_v24 }
0x15ac   : > { %4655 = vtanh.f32 %v3828_v31 }
0x15ad   : > { %v3839_v37 = vmul.f32 0.5, %v3835_v22 }
0x15af   : > { %v3843_v33 = vmul.f32 %v3839_v37, %v3802_v14 }
0x15b2   : > { %v4656_v30 = vpop.eup %4655 }
0x15b3   : > { %v3836_v16 = vadd.f32 1.0, %v4656_v30 }
0x15b5   : > { %v3840_v32 = vmul.f32 0.5, %v3836_v16 }
0x15b7   : > { %v3844_v34 = vmul.f32 %v3840_v32, %v3804_v62 }
0x15b9   : > { %v3856_v35 = vpack.c.bf16 %v3844_v34, %v3843_v33 }
0x15bb   : > { %4423 = vmatmul.msk.bf16.vlgmr.msrb.gmra.mxu2 %vm3885_vm8, %v3856_v35 }
0x15c2   : > { %v3806_v36 = vpop.f32.mrf.mxu1 }
0x15c3   : > { %v3807_v28 = vadd.f32 %v4503_v43, %v3806_v36 }
0x15c5   : > { %v3813_v26 = vmul.f32 %v3807_v28, %v3807_v28 }
0x15c7   : > { %v3817_v7 = vmul.f32 %v3813_v26, %v3807_v28 }
0x15c9   : > { %v3821_v38 = vmul.f32 0.044715, %v3817_v7 }
0x15ca   : > { %v3808_v18 = vpop.f32.mrf.mxu1 }
0x15cb   : > { %v3825_v9 = vadd.f32 %v3821_v38, %v3807_v28  ;;  %v3809_v41 = vadd.f32 %v4503_v43, %v3808_v18 }
0x15cd   : > { %v3829_v45 = vmul.f32 0.7978846, %v3825_v9  ;;  %v3814_v29 = vmul.f32 %v3809_v41, %v3809_v41 }
0x15cf   : > { %v3818_v46 = vmul.f32 %v3814_v29, %v3809_v41  ;;  %4657 = vtanh.f32 %v3829_v45 }
0x15d1   : > { %v3822_v47 = vmul.f32 0.044715, %v3818_v46 }
0x15d3   : > { %v3826_v51 = vadd.f32 %v3822_v47, %v3809_v41  ;;  %v4505_v47 = vld [vmem:[%s5946_s7] ss:$0 sm:$0xff] }
0x15d5   : > { %v3830_v48 = vmul.f32 0.7978846, %v3826_v51  ;;  %v4658_v52 = vpop.eup %4657 }
0x15d6   : > { %v3837_v54 = vadd.f32 1.0, %v4658_v52  ;;  %v4506_v52 = vld [vmem:[%s5948_s11] ss:$0 sm:$0xff] }
0x15d7   : > { %4659 = vtanh.f32 %v3830_v48 }
0x15d8   : > { %v3841_v12 = vmul.f32 0.5, %v3837_v54 }
0x15da   : > { %v3845_v20 = vmul.f32 %v3841_v12, %v3807_v28 }
0x15dd   : > { %v4660_v59 = vpop.eup %4659 }
0x15de   : > { %v3838_v58 = vadd.f32 1.0, %v4660_v59 }
0x15e0   : > { %v3842_v60 = vmul.f32 0.5, %v3838_v58 }
0x15e2   : > { %v3846_v63 = vmul.f32 %v3842_v60, %v3809_v41 }
0x15e4   : > { %v3857_v25 = vpack.c.bf16 %v3846_v63, %v3845_v20 }
0x15e6   : > { %4424 = vmatmul.msk.bf16.gmra.mxu2 %vm3885_vm8, %v3857_v25 }
0x163e   : > { %v3901_v11 = vpop.f32.mrf.mxu2 }
0x163f   : > { %v3902_v3 = vadd.f32 %v4504_v56, %v3901_v11 }
0x1641   : > { %v3911_v1 = vadd.f32 %v3902_v3, %v5749_v57 }
0x1643   : > { %v3917_v4 = vsel %vm1208_vm14, %v3911_v1, 0.0 }
0x1644   : > { %3918 = vadd.xlane.f32.xlu0 %v3917_v4 }
0x1646   : > { %v3903_v13 = vpop.f32.mrf.mxu2 }
0x1647   : > { %v3904_v55 = vadd.f32 %v4504_v56, %v3903_v13 }
0x1649   : > { %v3912_v44 = vadd.f32 %v3904_v55, %v5751_v39 }
0x164b   : > { %v3920_v5 = vsel %vm1208_vm14, %v3912_v44, 0.0 }
0x164c   : > { %3921 = vadd.xlane.f32.xlu2 %v3920_v5 }
0x1669   : > { %v3906_v6 = vpop.f32.mrf.mxu2 }
0x166a   : > { %v3907_v49 = vadd.f32 %v4504_v56, %v3906_v6 }
0x166c   : > { %v3913_v43 = vadd.f32 %v3907_v49, %v5760_v50 }
0x166e   : > { %v3923_v8 = vsel %vm1208_vm14, %v3913_v43, 0.0 }
0x166f   : > { %3924 = vadd.xlane.f32.xlu1 %v3923_v8 }
0x1671   : > { %v3908_v10 = vpop.f32.mrf.mxu2 }
0x1672   : > { %v3909_v14 = vadd.f32 %v4504_v56, %v3908_v10 }
0x1674   : > { %v3914_v57 = vadd.f32 %v3909_v14, %v5762_v0 }
0x1676   : > { %v3926_v61 = vsel %vm1208_vm14, %v3914_v57, 0.0 }
0x1677   : > { %3927 = vadd.xlane.f32.xlu0 %v3926_v61 }
0x16b7   : > { %v3919_v15 = vpop.xlane.xlu0 %3918 }
0x16b8   : > { %v3929_v39 = vmul.f32 %v3919_v15, %v5341_v42 }
0x16ba   : > { %v3933_v17 = vsub.f32 %v3911_v1, %v3929_v39 }
0x16bc   : > { %v3937_v53 = vmul.f32 %v3933_v17, %v3933_v17 }
0x16be   : > { %v3941_v23 = vsel %vm1208_vm14, %v3937_v53, 0.0 }
0x16bf   : > { %v3922_v62 = vpop.xlane.xlu2 %3921  ;;  %3942 = vadd.xlane.f32.xlu2 %v3941_v23 }
0x16c0   : > { %v3930_v50 = vmul.f32 %v3922_v62, %v5341_v42 }
0x16c2   : > { %v3934_v2 = vsub.f32 %v3912_v44, %v3930_v50 }
0x16c4   : > { %v3938_v19 = vmul.f32 %v3934_v2, %v3934_v2 }
0x16c6   : > { %v3944_v40 = vsel %vm1208_vm14, %v3938_v19, 0.0 }
0x16c7   : > { %3945 = vadd.xlane.f32.xlu1 %v3944_v40 }
0x16e2   : > { %v3925_v0 = vpop.xlane.xlu1 %3924 }
0x16e3   : > { %v3931_v21 = vmul.f32 %v3925_v0, %v5341_v42 }
0x16e5   : > { %v5796_v27 = vsub.f32 %v3913_v43, %v3931_v21 }
0x16e7   : > { %v3939_v31 = vmul.f32 %v5796_v27, %v5796_v27 }
0x16e9   : > { %v3947_v24 = vsel %vm1208_vm14, %v3939_v31, 0.0 }
0x16ea   : > { %3948 = vadd.xlane.f32.xlu0 %v3947_v24  ;;  %v3928_v22 = vpop.xlane.xlu0 %3927 }
0x16eb   : > { %v3932_v30 = vmul.f32 %v3928_v22, %v5341_v42 }
0x16ed   : > { %v5802_v37 = vsub.f32 %v3914_v57, %v3932_v30 }
0x16ef   : > { %v3940_v16 = vmul.f32 %v5802_v37, %v5802_v37 }
0x16f1   : > { %v3950_v32 = vsel %vm1208_vm14, %v3940_v16, 0.0 }
0x16f2   : > { %3951 = vadd.xlane.f32.xlu2 %v3950_v32 }
0x1732   : > { %v3943_v33 = vpop.xlane.xlu2 %3942 }
0x1733   : > { %v3953_v34 = vmul.f32 %v3943_v33, %v5341_v42 }
0x1735   : > { %v3957_v35 = vadd.f32 1e-12, %v3953_v34 }
0x1737   : > { %4661 = vrsqrt.f32 %v3957_v35  ;;  %vm3967_vm10 = vweird.f32 %v3957_v35 }
0x173a   : > { %v3946_v36 = vpop.xlane.xlu1 %3945 }
0x173b   : > { %v3954_v28 = vmul.f32 %v3946_v36, %v5341_v42 }
0x173d   : > { %v4662_v26 = vpop.eup %4661  ;;  %v3958_v7 = vadd.f32 1e-12, %v3954_v28 }
0x173e   : > { %v3962_v38 = vmul.f32 %v4662_v26, %v3957_v35  ;;  %vm3968_vm9 = vweird.f32 %v4662_v26 }
0x173f   : > { %4663 = vrsqrt.f32 %v3958_v7  ;;  %vm3969_vm15 = vmor %vm3967_vm10, %vm3968_vm9  ;;  %vm3977_vm2 = vweird.f32 %v3958_v7 }
0x1740   : > { %v3963_v18 = vmul.f32 %v4662_v26, %v3962_v38 }
0x1742   : > { %v3964_v9 = vmul.f32 0.5, %v3963_v18 }
0x1744   : > { %v3965_v41 = vsub.f32 1.5, %v3964_v9 }
0x1745   : > { %v4664_v45 = vpop.eup %4663 }
0x1746   : > { %v3966_v29 = vmul.f32 %v4662_v26, %v3965_v41  ;;  %v3972_v46 = vmul.f32 %v4664_v45, %v3958_v7  ;;  %vm3978_vm1 = vweird.f32 %v4664_v45 }
0x1747   : > { %vm3979_vm3 = vmor %vm3977_vm2, %vm3978_vm1 }
0x1748   : > { %v3970_v51 = vsel %vm3969_vm15, %v4662_v26, %v3966_v29  ;;  %v3973_v48 = vmul.f32 %v4664_v45, %v3972_v46 }
0x1749   : > { %v4001_v54 = vmul.f32 %v3970_v51, %v3933_v17 }
0x174a   : > { %v3974_v59 = vmul.f32 0.5, %v3973_v48 }
0x174b   : > { %v4008_v12 = vmul.f32 %v4505_v47, %v4001_v54 }
0x174c   : > { %v3975_v58 = vsub.f32 1.5, %v3974_v59 }
0x174d   : > { %v4015_v60 = vadd.f32 %v4506_v52, %v4008_v12 }
0x174e   : > { %v3976_v20 = vmul.f32 %v4664_v45, %v3975_v58 }
0x174f   : > { %4019 = vst.msk [vmem:[%s5923_s15] sm:$0xff] %vm1208_vm14, %v4015_v60 }
0x1750   : > { %v3980_v63 = vsel %vm3979_vm3, %v4664_v45, %v3976_v20 }
0x1751   : > { %v4002_v25 = vmul.f32 %v3980_v63, %v3934_v2 }
0x1753   : > { %v4009_v56 = vmul.f32 %v4505_v47, %v4002_v25 }
0x1755   : > { %v4016_v11 = vadd.f32 %v4506_v52, %v4009_v56 }
0x1757   : > { %4020 = vst.msk [vmem:[%s5923_s15 + $0x8] sm:$0xff] %vm1208_vm14, %v4016_v11 }
0x175d   : > { %v3949_v3 = vpop.xlane.xlu0 %3948 }
0x175e   : > { %v3955_v1 = vmul.f32 %v3949_v3, %v5341_v42 }
0x1760   : > { %v3959_v4 = vadd.f32 1e-12, %v3955_v1 }
0x1762   : > { %4665 = vrsqrt.f32 %v3959_v4  ;;  %vm3987_vm11 = vweird.f32 %v3959_v4 }
0x1765   : > { %v3952_v13 = vpop.xlane.xlu2 %3951 }
0x1766   : > { %v3956_v55 = vmul.f32 %v3952_v13, %v5341_v42 }
0x1768   : > { %v4666_v44 = vpop.eup %4665  ;;  %v3960_v5 = vadd.f32 1e-12, %v3956_v55 }
0x1769   : > { %v3982_v6 = vmul.f32 %v4666_v44, %v3959_v4  ;;  %vm3988_vm4 = vweird.f32 %v4666_v44 }
0x176a   : > { %4667 = vrsqrt.f32 %v3960_v5  ;;  %vm3989_vm12 = vmor %vm3987_vm11, %vm3988_vm4  ;;  %vm3997_vm0 = vweird.f32 %v3960_v5 }
0x176b   : > { %v3983_v49 = vmul.f32 %v4666_v44, %v3982_v6 }
0x176d   : > { %v3984_v43 = vmul.f32 0.5, %v3983_v49 }
0x176f   : > { %v3985_v8 = vsub.f32 1.5, %v3984_v43 }
0x1770   : > { %v4668_v10 = vpop.eup %4667 }
0x1771   : > { %v3986_v14 = vmul.f32 %v4666_v44, %v3985_v8  ;;  %v3992_v57 = vmul.f32 %v4668_v10, %v3960_v5  ;;  %vm3998_vm13 = vweird.f32 %v4668_v10 }
0x1772   : > { %vm3999_vm5 = vmor %vm3997_vm0, %vm3998_vm13 }
0x1773   : > { %v3990_v61 = vsel %vm3989_vm12, %v4666_v44, %v3986_v14  ;;  %v3993_v15 = vmul.f32 %v4668_v10, %v3992_v57 }
0x1774   : > { %v4003_v39 = vmul.f32 %v3990_v61, %v5796_v27 }
0x1775   : > { %v3994_v17 = vmul.f32 0.5, %v3993_v15 }
0x1776   : > { %v4010_v53 = vmul.f32 %v4505_v47, %v4003_v39 }
0x1777   : > { %v3995_v42 = vsub.f32 1.5, %v3994_v17 }
0x1778   : > { %v4017_v23 = vadd.f32 %v4506_v52, %v4010_v53 }
0x1779   : > { %v3996_v62 = vmul.f32 %v4668_v10, %v3995_v42 }
0x177a   : > { %4021 = vst.msk [vmem:[%s5923_s15 + $0x10] sm:$0xff] %vm1208_vm14, %v4017_v23 }
0x177b   : > { %v4000_v50 = vsel %vm3999_vm5, %v4668_v10, %v3996_v62 }
0x177c   : > { %v4004_v2 = vmul.f32 %v4000_v50, %v5802_v37 }
0x177e   : > { %v4011_v19 = vmul.f32 %v4505_v47, %v4004_v2 }
0x1780   : > { %v4018_v40 = vadd.f32 %v4506_v52, %v4011_v19 }
0x1782   : > { %4022 = vst.msk [vmem:[%s5923_s15 + $0x18] sm:$0xff] %vm1208_vm14, %v4018_v40 }
0x1783 PF: > { %s5949_s9 = sld [smem:[#allocation6_spill]] }
0x1789   : > { %s35_s29 = sadd.s32 1, %s5949_s9  }
0x178a   : > { %p32_p5 = scmp.ge.s32.totalorder %s35_s29, 4  }
0x178c   :  { %34 = sbr.rel (!%p32_p5) target bundleno = 21 (0x15), region = 231 }

</bundles_post_ra>
